<compile_context>
chip_gen: v7x
topology: tpu7x:2x2x1
jax: 0.10.0
libtpu: 0.0.40
codegen_flags: <defaults>
</compile_context>

<pallas_src>
import functools

import jax
import jax.numpy as jnp
from jax.experimental import pallas as pl
from jax.experimental.pallas import tpu as pltpu

_EPS = 1e-5


# --------------------------------------------------------------------------- #
# small helpers
# --------------------------------------------------------------------------- #
def _pick_row_tile(rows):
    """Largest sublane-aligned tile (<=512 per the review) that divides `rows`."""
    for t in (512, 256, 128, 64, 32, 16):
        if rows % t == 0:
            return t
    return rows  # fall back to a single full-size block


def _bsz(shape, itemsize=4):
    n = 1
    for d in shape:
        n *= int(d)
    return n * itemsize


def _cparams(block_bytes, extra_bytes=0):
    """Parallel 1-D grid + a VMEM limit sized from the real footprint:
    2x the per-step blocks (double buffering) + declared scratch/temporaries
    + margin, capped at 56 MiB so v7x's 64 MiB/TC keeps headroom."""
    limit = int(min(max(2 * block_bytes + extra_bytes + (8 << 20), 32 << 20),
                    56 << 20))
    return pltpu.CompilerParams(dimension_semantics=("parallel",),
                                vmem_limit_bytes=limit)


def _chanstats(v):
    """Per-channel [sum, sum_of_squares] over all leading axes -> (1, 2, C).
    Single sweep (var = E[x^2] - mean^2 folded later in f32)."""
    c = v.shape[-1]
    axes = tuple(range(v.ndim - 1))
    s = jnp.sum(v, axis=axes, keepdims=True).reshape(1, c)
    q = jnp.sum(v * v, axis=axes, keepdims=True).reshape(1, c)
    return jnp.concatenate([s, q], axis=0)[None]


def _fold_bn(stat_partials, count, gamma, beta):
    """Reduce per-tile [sum, sumsq] partials and fold training-mode BN
    (biased variance, eps=1e-5) into per-channel scale/bias."""
    s = jnp.sum(stat_partials.astype(jnp.float32), axis=0)       # (2, C)
    mean = s[0] / count
    var = s[1] / count - mean * mean
    scale = gamma.reshape(-1).astype(jnp.float32) * jax.lax.rsqrt(var + _EPS)
    bias = beta.reshape(-1).astype(jnp.float32) - mean * scale
    return scale.reshape(1, -1), bias.reshape(1, -1)


# --------------------------------------------------------------------------- #
# pass 1: 1x1 expand (+ optional shortcut 1x1) + BN1/BNs stat partials
# --------------------------------------------------------------------------- #
def _expand_kernel(need_sc, x_ref, w1_ref, *refs):
    if need_sc:
        ws_ref, h1_ref, s1_ref, sc_ref, ss_ref = refs
    else:
        h1_ref, s1_ref = refs
        ws_ref = sc_ref = ss_ref = None

    xb = x_ref[...]                                # already bf16 from HBM
    h1 = jnp.dot(xb, w1_ref[...], preferred_element_type=jnp.float32)
    h1_ref[...] = h1.astype(h1_ref.dtype)          # bf16 intermediate to HBM
    s1_ref[...] = _chanstats(h1)                   # stats in f32

    if need_sc:
        sc = jnp.dot(xb, ws_ref[...], preferred_element_type=jnp.float32)
        sc_ref[...] = sc.astype(sc_ref.dtype)
        ss_ref[...] = _chanstats(sc)


# --------------------------------------------------------------------------- #
# pass 2: BN1+ReLU (folded) -> depthwise 3x3 -> BN2 stat partials
# --------------------------------------------------------------------------- #
def _dwconv_kernel(stride, h1_ref, sc1_ref, b1_ref, w2_ref, h2_ref, s2_ref,
                   xpad_ref):
    _, H, W, C = h1_ref.shape
    Ho, Wo = h2_ref.shape[1], h2_ref.shape[2]
    f32 = jnp.float32

    # BN1 with pre-folded scale/bias + ReLU; single bf16->f32 upcast per element.
    h1n = jnp.maximum(h1_ref[...].astype(f32) * sc1_ref[...] + b1_ref[...], 0.0)

    # Zero only the 1-pixel halo of the f32 padded scratch every step (scratch
    # is per-core, so a "zero once at program_id==0" trick would be wrong under
    # megacore grid splitting), then overwrite the interior.
    xpad_ref[:, 0:1, :, :] = jnp.zeros((1, 1, W + 2, C), xpad_ref.dtype)
    xpad_ref[:, H + 1:H + 2, :, :] = jnp.zeros((1, 1, W + 2, C), xpad_ref.dtype)
    xpad_ref[:, 1:H + 1, 0:1, :] = jnp.zeros((1, H, 1, C), xpad_ref.dtype)
    xpad_ref[:, 1:H + 1, W + 1:W + 2, :] = jnp.zeros((1, H, 1, C), xpad_ref.dtype)
    xpad_ref[:, 1:H + 1, 1:W + 1, :] = h1n

    w2 = w2_ref[...]                    # (9, C); hoisted out of the tap loops
    acc = jnp.zeros((1, Ho, Wo, C), f32)   # single accumulator (review item)

    if stride == 1:
        for kh in range(3):
            rows = xpad_ref[:, kh:kh + H, :, :]          # (1, H, W+2, C) f32
            for kw in range(3):
                # NOTE: offset column slices kept (proven lowering); pltpu.roll
                # alternative deferred (perf-only, XLU offload).
                acc = acc + rows[:, :, kw:kw + W, :] \
                    * w2[3 * kh + kw:3 * kh + kw + 1, :]
    else:
        # stride=2: compact W in-kernel with a stride-2 sublane read of the
        # padded scratch; H subsampling stays on the cheap leading axis.
        for kw in range(3):
            colsw = xpad_ref[:, :, pl.ds(kw, Wo, stride=2), :]   # (1, H+2, Wo, C)
            for kh in range(3):
                tap = colsw[:, kh:kh + H, :, :]
                tap = tap.reshape(1, Ho, 2, Wo, C)[:, :, 0, :, :]
                acc = acc + tap * w2[3 * kh + kw:3 * kh + kw + 1, :]

    h2_ref[...] = acc.astype(h2_ref.dtype)          # bf16 intermediate to HBM
    s2_ref[...] = _chanstats(acc)                   # stats on the kept columns


# --------------------------------------------------------------------------- #
# pass 3: BN2+ReLU (folded) -> 1x1 project -> BN3 stat partials
# --------------------------------------------------------------------------- #
def _project_kernel(h2_ref, sc2_ref, b2_ref, w3_ref, h3_ref, s3_ref):
    h2n = jnp.maximum(h2_ref[...].astype(jnp.float32) * sc2_ref[...]
                      + b2_ref[...], 0.0)
    h3 = jnp.dot(h2n.astype(jnp.bfloat16), w3_ref[...],
                 preferred_element_type=jnp.float32)
    h3_ref[...] = h3.astype(h3_ref.dtype)           # bf16 intermediate to HBM
    s3_ref[...] = _chanstats(h3)


# --------------------------------------------------------------------------- #
# pass 4: BN3 (folded) + shortcut add, lane-dense (rows, Wo*Cout) layout
# --------------------------------------------------------------------------- #
def _finalize_kernel(mode, *refs):
    if mode == "conv":
        h3_ref, s3_ref, b3_ref, sc_ref, ss_ref, bs_ref, o_ref = refs
    elif mode == "identity":
        h3_ref, s3_ref, b3_ref, x_ref, o_ref = refs
    else:
        h3_ref, s3_ref, b3_ref, o_ref = refs

    y = h3_ref[...].astype(jnp.float32) * s3_ref[...] + b3_ref[...]
    if mode == "identity":
        y = y + x_ref[...].astype(jnp.float32)
    elif mode == "conv":
        y = y + (sc_ref[...].astype(jnp.float32) * ss_ref[...] + bs_ref[...])
    o_ref[...] = y.astype(o_ref.dtype)


# --------------------------------------------------------------------------- #
# wrapper
# --------------------------------------------------------------------------- #
def block_forward_nhwc(x_nhwc, params, stride):
    """Block.forward on NHWC input/output (preferred: avoids layout transposes)."""
    N, H, W, Cin = x_nhwc.shape
    planes = params["w1"].shape[1]
    Cout = params["w3"].shape[1]
    if stride not in (1, 2):
        raise ValueError("stride must be 1 or 2")
    if stride == 2 and (H % 2 or W % 2):
        # TODO(synk): odd spatial sizes at stride 2 not supported by the even-
        # column subsampling path (MobileNetV2 never hits this).
        raise NotImplementedError("stride=2 requires even H and W")
    Ho = (H - 1) // stride + 1
    Wo = (W - 1) // stride + 1

    need_sc_conv = (stride == 1 and Cin != Cout)
    need_identity = (stride == 1 and Cin == Cout)

    xb = x_nhwc.astype(jnp.bfloat16)     # bf16 everywhere between passes

    # ---------------- pass 1: 1x1 expand (+ optional shortcut 1x1) -----------
    R1 = N * H * W
    TR1 = _pick_row_tile(R1)
    G1 = R1 // TR1
    x2d = xb.reshape(R1, Cin)
    w1b = params["w1"].astype(jnp.bfloat16)

    in_specs = [pl.BlockSpec((TR1, Cin), lambda i: (i, 0)),
                pl.BlockSpec((Cin, planes), lambda i: (0, 0))]
    args = [x2d, w1b]
    out_shape = [jax.ShapeDtypeStruct((R1, planes), jnp.bfloat16),
                 jax.ShapeDtypeStruct((G1, 2, planes), jnp.float32)]
    out_specs = [pl.BlockSpec((TR1, planes), lambda i: (i, 0)),
                 pl.BlockSpec((1, 2, planes), lambda i: (i, 0, 0))]
    bb = (_bsz((TR1, Cin), 2) + _bsz((Cin, planes), 2)
          + _bsz((TR1, planes), 2) + _bsz((1, 2, planes), 4))
    if need_sc_conv:
        wsb = params["ws"].astype(jnp.bfloat16)   # only DMA'd when used
        args.append(wsb)
        in_specs.append(pl.BlockSpec((Cin, Cout), lambda i: (0, 0)))
        out_shape += [jax.ShapeDtypeStruct((R1, Cout), jnp.bfloat16),
                      jax.ShapeDtypeStruct((G1, 2, Cout), jnp.float32)]
        out_specs += [pl.BlockSpec((TR1, Cout), lambda i: (i, 0)),
                      pl.BlockSpec((1, 2, Cout), lambda i: (i, 0, 0))]
        bb += _bsz((Cin, Cout), 2) + _bsz((TR1, Cout), 2) + _bsz((1, 2, Cout), 4)

    outs = pl.pallas_call(
        functools.partial(_expand_kernel, need_sc_conv),
        grid=(G1,),
        in_specs=in_specs,
        out_specs=tuple(out_specs),
        out_shape=tuple(out_shape),
        compiler_params=_cparams(bb, 2 * _bsz((TR1, planes), 4)),
    )(*args)
    if need_sc_conv:
        h1, s1p, sc, ssp = outs
    else:
        h1, s1p = outs
        sc = ssp = None

    # ---------------- pass 2: depthwise 3x3 -----------------------------------
    scale1, bias1 = _fold_bn(s1p, R1, params["g1"], params["b1"])
    h1_4d = h1.reshape(N, H, W, planes)
    w2 = params["w2"].astype(jnp.float32)

    bb2 = (_bsz((1, H, W, planes), 2) + 2 * _bsz((1, planes), 4)
           + _bsz((9, planes), 4) + _bsz((1, Ho, Wo, planes), 2)
           + _bsz((1, 2, planes), 4))
    # f32 scratch + a conservative allowance for in-kernel f32 temporaries
    extra2 = (_bsz((1, H + 2, W + 2, planes), 4)
              + 4 * _bsz((1, H, W + 2, planes), 4))
    h2_4d, s2p = pl.pallas_call(
        functools.partial(_dwconv_kernel, stride),
        grid=(N,),
        in_specs=[pl.BlockSpec((1, H, W, planes), lambda n: (n, 0, 0, 0)),
                  pl.BlockSpec((1, planes), lambda n: (0, 0)),
                  pl.BlockSpec((1, planes), lambda n: (0, 0)),
                  pl.BlockSpec((9, planes), lambda n: (0, 0))],
        out_specs=(pl.BlockSpec((1, Ho, Wo, planes), lambda n: (n, 0, 0, 0)),
                   pl.BlockSpec((1, 2, planes), lambda n: (n, 0, 0))),
        out_shape=(jax.ShapeDtypeStruct((N, Ho, Wo, planes), jnp.bfloat16),
                   jax.ShapeDtypeStruct((N, 2, planes), jnp.float32)),
        scratch_shapes=[pltpu.VMEM((1, H + 2, W + 2, planes), jnp.float32)],
        compiler_params=_cparams(bb2, extra2),
    )(h1_4d, scale1, bias1, w2)

    # ---------------- pass 3: 1x1 project --------------------------------------
    scale2, bias2 = _fold_bn(s2p, N * Ho * Wo, params["g2"], params["b2"])
    R2 = N * Ho * Wo
    TR2 = _pick_row_tile(R2)
    G2 = R2 // TR2
    h2_2d = h2_4d.reshape(R2, planes)
    w3b = params["w3"].astype(jnp.bfloat16)

    bb3 = (_bsz((TR2, planes), 2) + 2 * _bsz((1, planes), 4)
           + _bsz((planes, Cout), 2) + _bsz((TR2, Cout), 2)
           + _bsz((1, 2, Cout), 4))
    h3, s3p = pl.pallas_call(
        _project_kernel,
        grid=(G2,),
        in_specs=[pl.BlockSpec((TR2, planes), lambda i: (i, 0)),
                  pl.BlockSpec((1, planes), lambda i: (0, 0)),
                  pl.BlockSpec((1, planes), lambda i: (0, 0)),
                  pl.BlockSpec((planes, Cout), lambda i: (0, 0))],
        out_specs=(pl.BlockSpec((TR2, Cout), lambda i: (i, 0)),
                   pl.BlockSpec((1, 2, Cout), lambda i: (i, 0, 0))),
        out_shape=(jax.ShapeDtypeStruct((R2, Cout), jnp.bfloat16),
                   jax.ShapeDtypeStruct((G2, 2, Cout), jnp.float32)),
        compiler_params=_cparams(bb3, 2 * _bsz((TR2, planes), 4)),
    )(h2_2d, scale2, bias2, w3b)

    # ---------------- pass 4: BN3 + shortcut, lane-dense output ----------------
    scale3, bias3 = _fold_bn(s3p, R2, params["g3"], params["b3"])
    RF = N * Ho
    CF = Wo * Cout                       # lane-dense last dim
    TRF = _pick_row_tile(RF)
    GF = RF // TRF
    h3v = h3.reshape(RF, CF)
    args4 = [h3v, jnp.tile(scale3, (1, Wo)), jnp.tile(bias3, (1, Wo))]
    in_specs4 = [pl.BlockSpec((TRF, CF), lambda i: (i, 0)),
                 pl.BlockSpec((1, CF), lambda i: (0, 0)),
                 pl.BlockSpec((1, CF), lambda i: (0, 0))]
    bb4 = _bsz((TRF, CF), 2) + _bsz((TRF, CF), 4) + 2 * _bsz((1, CF), 4)
    if need_sc_conv:
        mode = "conv"
        scale_s, bias_s = _fold_bn(ssp, R1, params["gs"], params["bs"])
        args4 += [sc.reshape(RF, CF),
                  jnp.tile(scale_s, (1, Wo)), jnp.tile(bias_s, (1, Wo))]
        in_specs4 += [pl.BlockSpec((TRF, CF), lambda i: (i, 0)),
                      pl.BlockSpec((1, CF), lambda i: (0, 0)),
                      pl.BlockSpec((1, CF), lambda i: (0, 0))]
        bb4 += _bsz((TRF, CF), 2) + 2 * _bsz((1, CF), 4)
    elif need_identity:
        mode = "identity"
        args4.append(xb.reshape(RF, CF))
        in_specs4.append(pl.BlockSpec((TRF, CF), lambda i: (i, 0)))
        bb4 += _bsz((TRF, CF), 2)
    else:
        mode = "none"

    out2d = pl.pallas_call(
        functools.partial(_finalize_kernel, mode),
        grid=(GF,),
        in_specs=in_specs4,
        out_specs=pl.BlockSpec((TRF, CF), lambda i: (i, 0)),
        out_shape=jax.ShapeDtypeStruct((RF, CF), x_nhwc.dtype),
        compiler_params=_cparams(bb4, 2 * _bsz((TRF, CF), 4)),
    )(*args4)
    return out2d.reshape(N, Ho, Wo, Cout)


def block_forward(x_nchw, params, stride):
    """PyTorch-layout (NCHW) Block.forward. Inside a full network prefer
    block_forward_nhwc to avoid per-block layout transposes."""
    x = jnp.transpose(x_nchw, (0, 2, 3, 1))
    out = block_forward_nhwc(x, params, stride)
    return jnp.transpose(out, (0, 3, 1, 2))


# --------------------------------------------------------------------------- #
# params + pure-JAX reference (mirrors the PyTorch module, training-mode BN)
# --------------------------------------------------------------------------- #
def init_params(key, in_planes, out_planes, expansion):
    planes = expansion * in_planes
    ks = jax.random.split(key, 12)

    def nrm(k, shape, scale=0.1):
        return (scale * jax.random.normal(k, shape)).astype(jnp.float32)

    return dict(
        w1=nrm(ks[0], (in_planes, planes)),            # conv1 1x1: (Cin, planes)
        g1=1.0 + nrm(ks[1], (1, planes), 0.05),
        b1=nrm(ks[2], (1, planes), 0.05),
        w2=nrm(ks[3], (9, planes)),                    # depthwise 3x3: (9, planes)
        g2=1.0 + nrm(ks[4], (1, planes), 0.05),
        b2=nrm(ks[5], (1, planes), 0.05),
        w3=nrm(ks[6], (planes, out_planes)),           # conv3 1x1: (planes, Cout)
        g3=1.0 + nrm(ks[7], (1, out_planes), 0.05),
        b3=nrm(ks[8], (1, out_planes), 0.05),
        ws=nrm(ks[9], (in_planes, out_planes)),        # shortcut 1x1 (if used)
        gs=1.0 + nrm(ks[10], (1, out_planes), 0.05),
        bs=nrm(ks[11], (1, out_planes), 0.05),
    )


def ref_forward(x_nchw, p, stride):
    x = jnp.transpose(x_nchw, (0, 2, 3, 1)).astype(jnp.float32)
    Cin = x.shape[-1]
    planes = p["w1"].shape[1]

    def bn(h, g, b, relu):
        mean = h.mean(axis=(0, 1, 2), keepdims=True)
        var = ((h - mean) ** 2).mean(axis=(0, 1, 2), keepdims=True)
        y = (h - mean) / jnp.sqrt(var + _EPS) * g.reshape(1, 1, 1, -1) \
            + b.reshape(1, 1, 1, -1)
        return jnp.maximum(y, 0.0) if relu else y

    h1 = bn(jnp.einsum("nhwc,cd->nhwd", x, p["w1"]), p["g1"], p["b1"], True)
    dw = p["w2"].reshape(3, 3, 1, planes)
    h2 = jax.lax.conv_general_dilated(
        h1, dw, window_strides=(stride, stride), padding=((1, 1), (1, 1)),
        dimension_numbers=("NHWC", "HWIO", "NHWC"), feature_group_count=planes)
    h2 = bn(h2, p["g2"], p["b2"], True)
    h3 = bn(jnp.einsum("nhwc,cd->nhwd", h2, p["w3"]), p["g3"], p["b3"], False)
    if stride == 1:
        Cout = p["w3"].shape[1]
        sc = x if Cin == Cout else bn(
            jnp.einsum("nhwc,cd->nhwd", x, p["ws"]), p["gs"], p["bs"], False)
        h3 = h3 + sc
    return jnp.transpose(h3, (0, 3, 1, 2))


# --------------------------------------------------------------------------- #
if __name__ == "__main__":
    key = jax.random.PRNGKey(0)
    configs = [
        # (N, in_planes, out_planes, expansion, stride, H, W)
        (2, 8, 16, 4, 1, 16, 16),   # stride 1, conv shortcut (Cin != Cout)
        (2, 16, 16, 3, 1, 16, 16),  # stride 1, identity shortcut (Cin == Cout)
        (2, 8, 24, 4, 2, 16, 16),   # stride 2, no shortcut
    ]
    for idx, (N, cin, cout, exp, stride, H, W) in enumerate(configs):
        k_x, k_p, key = jax.random.split(key, 3)
        x = jax.random.normal(k_x, (N, cin, H, W), dtype=jnp.float32)  # NCHW
        params = init_params(k_p, cin, cout, exp)

        fwd = jax.jit(functools.partial(block_forward, stride=stride))
        out = jax.block_until_ready(fwd(x, params))

        ref = ref_forward(x, params, stride)
        assert out.shape == ref.shape, (out.shape, ref.shape)
        err = float(jnp.max(jnp.abs(out - ref)))
        # Kernel keeps all inter-pass intermediates in bf16 (HBM-bandwidth
        # optimization) and feeds the MXU with bf16 operands; the reference is
        # pure f32, hence the relaxed tolerance.
        assert err < 1e-1, (idx, err)
    print("KERNEL_OK")
</pallas_src>

<mosaic_0001>
module attributes {stable_mosaic.version = 11 : i64} {
  func.func @_expand_kernel(%arg0: i32, %arg1: memref<512x8xbf16, #tpu.memory_space<vmem>>, %arg2: memref<8x32xbf16, #tpu.memory_space<vmem>>, %arg3: memref<8x16xbf16, #tpu.memory_space<vmem>>, %arg4: memref<512x32xbf16, #tpu.memory_space<vmem>>, %arg5: memref<1x2x32xf32, #tpu.memory_space<vmem>>, %arg6: memref<512x16xbf16, #tpu.memory_space<vmem>>, %arg7: memref<1x2x16xf32, #tpu.memory_space<vmem>>) attributes {dimension_semantics = [#tpu.dimension_semantics<parallel>], iteration_bounds = array<i64: 1>, scalar_prefetch = 0 : i64, scratch_operands = 0 : i64, tpu.core_type = #tpu.core_type<tc>, window_params = [{transform_indices = @transform_0, window_bounds = array<i64: 512, 8>}, {pipeline_mode = #tpu.pipeline_mode<synchronous>, transform_indices = @transform_1, window_bounds = array<i64: 8, 32>}, {pipeline_mode = #tpu.pipeline_mode<synchronous>, transform_indices = @transform_2, window_bounds = array<i64: 8, 16>}, {transform_indices = @transform_3, window_bounds = array<i64: 512, 32>}, {transform_indices = @transform_4, window_bounds = array<i64: 1, 2, 32>}, {transform_indices = @transform_5, window_bounds = array<i64: 512, 16>}, {transform_indices = @transform_6, window_bounds = array<i64: 1, 2, 16>}]} {
    %c0 = arith.constant 0 : index
    %c0_0 = arith.constant 0 : index
    %0 = vector.load %arg1[%c0, %c0_0] : memref<512x8xbf16, #tpu.memory_space<vmem>>, vector<512x8xbf16>
    %c0_1 = arith.constant 0 : index
    %c0_2 = arith.constant 0 : index
    %1 = vector.load %arg2[%c0_1, %c0_2] : memref<8x32xbf16, #tpu.memory_space<vmem>>, vector<8x32xbf16>
    %cst = arith.constant dense<0.000000e+00> : vector<512x32xf32>
    %2 = tpu.matmul %0, %1, %cst {dimension_numbers = #tpu.dot_dimension_numbers<[1], [0], [0], [1], [0, 0, 1, 1], [], []>} : vector<512x8xbf16>, vector<8x32xbf16>, vector<512x32xf32> -> vector<512x32xf32>
    %3 = arith.truncf %2 : vector<512x32xf32> to vector<512x32xbf16>
    %c0_3 = arith.constant 0 : index
    %c0_4 = arith.constant 0 : index
    %4 = vector.load %arg4[%c0_3, %c0_4] : memref<512x32xbf16, #tpu.memory_space<vmem>>, vector<512x32xbf16>
    tpu.vector_store %arg4[%c0_3, %c0_4], %3 {strides = array<i32>} : memref<512x32xbf16, #tpu.memory_space<vmem>>, vector<512x32xbf16>,
    %cst_5 = arith.constant dense<0.000000e+00> : vector<32xf32>
    %5 = vector.multi_reduction <add>, %2, %cst_5 [0] : vector<512x32xf32> to vector<32xf32>
    %6 = vector.shape_cast %5 : vector<32xf32> to vector<1x32xf32>
    %7 = arith.mulf %2, %2 : vector<512x32xf32>
    %cst_6 = arith.constant dense<0.000000e+00> : vector<32xf32>
    %8 = vector.multi_reduction <add>, %7, %cst_6 [0] : vector<512x32xf32> to vector<32xf32>
    %9 = vector.shape_cast %8 : vector<32xf32> to vector<1x32xf32>
    %10 = tpu.concatenate %6, %9 in 0 : vector<1x32xf32>, vector<1x32xf32> -> vector<2x32xf32>
    %11 = vector.shape_cast %10 : vector<2x32xf32> to vector<1x2x32xf32>
    %c0_7 = arith.constant 0 : index
    %c0_8 = arith.constant 0 : index
    %c0_9 = arith.constant 0 : index
    %12 = vector.load %arg5[%c0_7, %c0_8, %c0_9] : memref<1x2x32xf32, #tpu.memory_space<vmem>>, vector<1x2x32xf32>
    tpu.vector_store %arg5[%c0_7, %c0_8, %c0_9], %11 {strides = array<i32>} : memref<1x2x32xf32, #tpu.memory_space<vmem>>, vector<1x2x32xf32>,
    %c0_10 = arith.constant 0 : index
    %c0_11 = arith.constant 0 : index
    %13 = vector.load %arg3[%c0_10, %c0_11] : memref<8x16xbf16, #tpu.memory_space<vmem>>, vector<8x16xbf16>
    %cst_12 = arith.constant dense<0.000000e+00> : vector<512x16xf32>
    %14 = tpu.matmul %0, %13, %cst_12 {dimension_numbers = #tpu.dot_dimension_numbers<[1], [0], [0], [1], [0, 0, 1, 1], [], []>} : vector<512x8xbf16>, vector<8x16xbf16>, vector<512x16xf32> -> vector<512x16xf32>
    %15 = arith.truncf %14 : vector<512x16xf32> to vector<512x16xbf16>
    %c0_13 = arith.constant 0 : index
    %c0_14 = arith.constant 0 : index
    %16 = vector.load %arg6[%c0_13, %c0_14] : memref<512x16xbf16, #tpu.memory_space<vmem>>, vector<512x16xbf16>
    tpu.vector_store %arg6[%c0_13, %c0_14], %15 {strides = array<i32>} : memref<512x16xbf16, #tpu.memory_space<vmem>>, vector<512x16xbf16>,
    %cst_15 = arith.constant dense<0.000000e+00> : vector<16xf32>
    %17 = vector.multi_reduction <add>, %14, %cst_15 [0] : vector<512x16xf32> to vector<16xf32>
    %18 = vector.shape_cast %17 : vector<16xf32> to vector<1x16xf32>
    %19 = arith.mulf %14, %14 : vector<512x16xf32>
    %cst_16 = arith.constant dense<0.000000e+00> : vector<16xf32>
    %20 = vector.multi_reduction <add>, %19, %cst_16 [0] : vector<512x16xf32> to vector<16xf32>
    %21 = vector.shape_cast %20 : vector<16xf32> to vector<1x16xf32>
    %22 = tpu.concatenate %18, %21 in 0 : vector<1x16xf32>, vector<1x16xf32> -> vector<2x16xf32>
    %23 = vector.shape_cast %22 : vector<2x16xf32> to vector<1x2x16xf32>
    %c0_17 = arith.constant 0 : index
    %c0_18 = arith.constant 0 : index
    %c0_19 = arith.constant 0 : index
    %24 = vector.load %arg7[%c0_17, %c0_18, %c0_19] : memref<1x2x16xf32, #tpu.memory_space<vmem>>, vector<1x2x16xf32>
    tpu.vector_store %arg7[%c0_17, %c0_18, %c0_19], %23 {strides = array<i32>} : memref<1x2x16xf32, #tpu.memory_space<vmem>>, vector<1x2x16xf32>,
    return
  }
  func.func @transform_0(%arg0: i32) -> (i32, i32) {
    %c0_i32 = arith.constant 0 : i32
    %c0_i32_0 = arith.constant 0 : i32
    return %arg0, %c0_i32 : i32, i32
  }
  func.func @transform_1(%arg0: i32) -> (i32, i32) {
    %c0_i32 = arith.constant 0 : i32
    %c0_i32_0 = arith.constant 0 : i32
    %c0_i32_1 = arith.constant 0 : i32
    return %c0_i32, %c0_i32_0 : i32, i32
  }
  func.func @transform_2(%arg0: i32) -> (i32, i32) {
    %c0_i32 = arith.constant 0 : i32
    %c0_i32_0 = arith.constant 0 : i32
    %c0_i32_1 = arith.constant 0 : i32
    return %c0_i32, %c0_i32_0 : i32, i32
  }
  func.func @transform_3(%arg0: i32) -> (i32, i32) {
    %c0_i32 = arith.constant 0 : i32
    %c0_i32_0 = arith.constant 0 : i32
    return %arg0, %c0_i32 : i32, i32
  }
  func.func @transform_4(%arg0: i32) -> (i32, i32, i32) {
    %c0_i32 = arith.constant 0 : i32
    %c0_i32_0 = arith.constant 0 : i32
    %c0_i32_1 = arith.constant 0 : i32
    return %arg0, %c0_i32, %c0_i32_0 : i32, i32, i32
  }
  func.func @transform_5(%arg0: i32) -> (i32, i32) {
    %c0_i32 = arith.constant 0 : i32
    %c0_i32_0 = arith.constant 0 : i32
    return %arg0, %c0_i32 : i32, i32
  }
  func.func @transform_6(%arg0: i32) -> (i32, i32, i32) {
    %c0_i32 = arith.constant 0 : i32
    %c0_i32_0 = arith.constant 0 : i32
    %c0_i32_1 = arith.constant 0 : i32
    return %arg0, %c0_i32, %c0_i32_0 : i32, i32, i32
  }
}

module attributes {stable_mosaic.version = 11 : i64} {
  func.func @_dwconv_kernel(%arg0: i32, %arg1: memref<1x16x16x32xbf16, #tpu.memory_space<vmem>>, %arg2: memref<1x32xf32, #tpu.memory_space<vmem>>, %arg3: memref<1x32xf32, #tpu.memory_space<vmem>>, %arg4: memref<9x32xf32, #tpu.memory_space<vmem>>, %arg5: memref<1x16x16x32xbf16, #tpu.memory_space<vmem>>, %arg6: memref<1x2x32xf32, #tpu.memory_space<vmem>>, %arg7: memref<1x18x18x32xf32, #tpu.memory_space<vmem>>) attributes {dimension_semantics = [#tpu.dimension_semantics<parallel>], iteration_bounds = array<i64: 2>, scalar_prefetch = 0 : i64, scratch_operands = 1 : i64, tpu.core_type = #tpu.core_type<tc>, window_params = [{transform_indices = @transform_0, window_bounds = array<i64: 1, 16, 16, 32>}, {pipeline_mode = #tpu.pipeline_mode<synchronous>, transform_indices = @transform_1, window_bounds = array<i64: 1, 32>}, {pipeline_mode = #tpu.pipeline_mode<synchronous>, transform_indices = @transform_2, window_bounds = array<i64: 1, 32>}, {pipeline_mode = #tpu.pipeline_mode<synchronous>, transform_indices = @transform_3, window_bounds = array<i64: 9, 32>}, {transform_indices = @transform_4, window_bounds = array<i64: 1, 16, 16, 32>}, {transform_indices = @transform_5, window_bounds = array<i64: 1, 2, 32>}]} {
    %c0 = arith.constant 0 : index
    %c0_0 = arith.constant 0 : index
    %c0_1 = arith.constant 0 : index
    %c0_2 = arith.constant 0 : index
    %0 = vector.load %arg1[%c0, %c0_0, %c0_1, %c0_2] : memref<1x16x16x32xbf16, #tpu.memory_space<vmem>>, vector<1x16x16x32xbf16>
    %1 = arith.extf %0 : vector<1x16x16x32xbf16> to vector<1x16x16x32xf32>
    %c0_3 = arith.constant 0 : index
    %c0_4 = arith.constant 0 : index
    %2 = vector.load %arg2[%c0_3, %c0_4] : memref<1x32xf32, #tpu.memory_space<vmem>>, vector<1x32xf32>
    %3 = vector.shape_cast %2 : vector<1x32xf32> to vector<1x1x1x32xf32>
    %4 = vector.broadcast %3 : vector<1x1x1x32xf32> to vector<1x16x16x32xf32>
    %5 = arith.mulf %1, %4 : vector<1x16x16x32xf32>
    %c0_5 = arith.constant 0 : index
    %c0_6 = arith.constant 0 : index
    %6 = vector.load %arg3[%c0_5, %c0_6] : memref<1x32xf32, #tpu.memory_space<vmem>>, vector<1x32xf32>
    %7 = vector.shape_cast %6 : vector<1x32xf32> to vector<1x1x1x32xf32>
    %8 = vector.broadcast %7 : vector<1x1x1x32xf32> to vector<1x16x16x32xf32>
    %9 = arith.addf %5, %8 : vector<1x16x16x32xf32>
    %cst = arith.constant 0.000000e+00 : f32
    %10 = vector.broadcast %cst : f32 to vector<1x16x16x32xf32>
    %11 = arith.maximumf %9, %10 : vector<1x16x16x32xf32>
    %cst_7 = arith.constant 0.000000e+00 : f32
    %12 = vector.broadcast %cst_7 : f32 to vector<1x1x18x32xf32>
    %c0_8 = arith.constant 0 : index
    %c0_9 = arith.constant 0 : index
    %c0_10 = arith.constant 0 : index
    %c0_11 = arith.constant 0 : index
    %13 = vector.load %arg7[%c0_8, %c0_9, %c0_10, %c0_11] : memref<1x18x18x32xf32, #tpu.memory_space<vmem>>, vector<1x1x18x32xf32>
    tpu.vector_store %arg7[%c0_8, %c0_9, %c0_10, %c0_11], %12 {strides = array<i32>} : memref<1x18x18x32xf32, #tpu.memory_space<vmem>>, vector<1x1x18x32xf32>,
    %cst_12 = arith.constant 0.000000e+00 : f32
    %14 = vector.broadcast %cst_12 : f32 to vector<1x1x18x32xf32>
    %c0_13 = arith.constant 0 : index
    %c17 = arith.constant 17 : index
    %c0_14 = arith.constant 0 : index
    %c0_15 = arith.constant 0 : index
    %15 = vector.load %arg7[%c0_13, %c17, %c0_14, %c0_15] : memref<1x18x18x32xf32, #tpu.memory_space<vmem>>, vector<1x1x18x32xf32>
    tpu.vector_store %arg7[%c0_13, %c17, %c0_14, %c0_15], %14 {strides = array<i32>} : memref<1x18x18x32xf32, #tpu.memory_space<vmem>>, vector<1x1x18x32xf32>,
    %cst_16 = arith.constant 0.000000e+00 : f32
    %16 = vector.broadcast %cst_16 : f32 to vector<1x16x1x32xf32>
    %c0_17 = arith.constant 0 : index
    %c1 = arith.constant 1 : index
    %c0_18 = arith.constant 0 : index
    %c0_19 = arith.constant 0 : index
    %17 = vector.load %arg7[%c0_17, %c1, %c0_18, %c0_19] : memref<1x18x18x32xf32, #tpu.memory_space<vmem>>, vector<1x16x1x32xf32>
    tpu.vector_store %arg7[%c0_17, %c1, %c0_18, %c0_19], %16 {strides = array<i32>} : memref<1x18x18x32xf32, #tpu.memory_space<vmem>>, vector<1x16x1x32xf32>,
    %cst_20 = arith.constant 0.000000e+00 : f32
    %18 = vector.broadcast %cst_20 : f32 to vector<1x16x1x32xf32>
    %c0_21 = arith.constant 0 : index
    %c1_22 = arith.constant 1 : index
    %c17_23 = arith.constant 17 : index
    %c0_24 = arith.constant 0 : index
    %19 = vector.load %arg7[%c0_21, %c1_22, %c17_23, %c0_24] : memref<1x18x18x32xf32, #tpu.memory_space<vmem>>, vector<1x16x1x32xf32>
    tpu.vector_store %arg7[%c0_21, %c1_22, %c17_23, %c0_24], %18 {strides = array<i32>} : memref<1x18x18x32xf32, #tpu.memory_space<vmem>>, vector<1x16x1x32xf32>,
    %c0_25 = arith.constant 0 : index
    %c1_26 = arith.constant 1 : index
    %c1_27 = arith.constant 1 : index
    %c0_28 = arith.constant 0 : index
    %20 = vector.load %arg7[%c0_25, %c1_26, %c1_27, %c0_28] : memref<1x18x18x32xf32, #tpu.memory_space<vmem>>, vector<1x16x16x32xf32>
    tpu.vector_store %arg7[%c0_25, %c1_26, %c1_27, %c0_28], %11 {strides = array<i32>} : memref<1x18x18x32xf32, #tpu.memory_space<vmem>>, vector<1x16x16x32xf32>,
    %c0_29 = arith.constant 0 : index
    %c0_30 = arith.constant 0 : index
    %21 = vector.load %arg4[%c0_29, %c0_30] : memref<9x32xf32, #tpu.memory_space<vmem>>, vector<9x32xf32>
    %cst_31 = arith.constant 0.000000e+00 : f32
    %22 = vector.broadcast %cst_31 : f32 to vector<1x16x16x32xf32>
    %c0_32 = arith.constant 0 : index
    %c0_33 = arith.constant 0 : index
    %c0_34 = arith.constant 0 : index
    %c0_35 = arith.constant 0 : index
    %23 = vector.load %arg7[%c0_32, %c0_33, %c0_34, %c0_35] : memref<1x18x18x32xf32, #tpu.memory_space<vmem>>, vector<1x16x18x32xf32>
    %24 = vector.extract_strided_slice %23 {offsets = [0, 0, 0, 0], sizes = [1, 16, 16, 32], strides = [1, 1, 1, 1]} : vector<1x16x18x32xf32> to vector<1x16x16x32xf32>
    %25 = vector.extract_strided_slice %21 {offsets = [0, 0], sizes = [1, 32], strides = [1, 1]} : vector<9x32xf32> to vector<1x32xf32>
    %26 = vector.shape_cast %25 : vector<1x32xf32> to vector<1x1x1x32xf32>
    %27 = vector.broadcast %26 : vector<1x1x1x32xf32> to vector<1x16x16x32xf32>
    %28 = arith.mulf %24, %27 : vector<1x16x16x32xf32>
    %29 = arith.addf %22, %28 : vector<1x16x16x32xf32>
    %30 = vector.extract_strided_slice %23 {offsets = [0, 0, 1, 0], sizes = [1, 16, 16, 32], strides = [1, 1, 1, 1]} : vector<1x16x18x32xf32> to vector<1x16x16x32xf32>
    %31 = vector.extract_strided_slice %21 {offsets = [1, 0], sizes = [1, 32], strides = [1, 1]} : vector<9x32xf32> to vector<1x32xf32>
    %32 = vector.shape_cast %31 : vector<1x32xf32> to vector<1x1x1x32xf32>
    %33 = vector.broadcast %32 : vector<1x1x1x32xf32> to vector<1x16x16x32xf32>
    %34 = arith.mulf %30, %33 : vector<1x16x16x32xf32>
    %35 = arith.addf %29, %34 : vector<1x16x16x32xf32>
    %36 = vector.extract_strided_slice %23 {offsets = [0, 0, 2, 0], sizes = [1, 16, 16, 32], strides = [1, 1, 1, 1]} : vector<1x16x18x32xf32> to vector<1x16x16x32xf32>
    %37 = vector.extract_strided_slice %21 {offsets = [2, 0], sizes = [1, 32], strides = [1, 1]} : vector<9x32xf32> to vector<1x32xf32>
    %38 = vector.shape_cast %37 : vector<1x32xf32> to vector<1x1x1x32xf32>
    %39 = vector.broadcast %38 : vector<1x1x1x32xf32> to vector<1x16x16x32xf32>
    %40 = arith.mulf %36, %39 : vector<1x16x16x32xf32>
    %41 = arith.addf %35, %40 : vector<1x16x16x32xf32>
    %c0_36 = arith.constant 0 : index
    %c1_37 = arith.constant 1 : index
    %c0_38 = arith.constant 0 : index
    %c0_39 = arith.constant 0 : index
    %42 = vector.load %arg7[%c0_36, %c1_37, %c0_38, %c0_39] : memref<1x18x18x32xf32, #tpu.memory_space<vmem>>, vector<1x16x18x32xf32>
    %43 = vector.extract_strided_slice %42 {offsets = [0, 0, 0, 0], sizes = [1, 16, 16, 32], strides = [1, 1, 1, 1]} : vector<1x16x18x32xf32> to vector<1x16x16x32xf32>
    %44 = vector.extract_strided_slice %21 {offsets = [3, 0], sizes = [1, 32], strides = [1, 1]} : vector<9x32xf32> to vector<1x32xf32>
    %45 = vector.shape_cast %44 : vector<1x32xf32> to vector<1x1x1x32xf32>
    %46 = vector.broadcast %45 : vector<1x1x1x32xf32> to vector<1x16x16x32xf32>
    %47 = arith.mulf %43, %46 : vector<1x16x16x32xf32>
    %48 = arith.addf %41, %47 : vector<1x16x16x32xf32>
    %49 = vector.extract_strided_slice %42 {offsets = [0, 0, 1, 0], sizes = [1, 16, 16, 32], strides = [1, 1, 1, 1]} : vector<1x16x18x32xf32> to vector<1x16x16x32xf32>
    %50 = vector.extract_strided_slice %21 {offsets = [4, 0], sizes = [1, 32], strides = [1, 1]} : vector<9x32xf32> to vector<1x32xf32>
    %51 = vector.shape_cast %50 : vector<1x32xf32> to vector<1x1x1x32xf32>
    %52 = vector.broadcast %51 : vector<1x1x1x32xf32> to vector<1x16x16x32xf32>
    %53 = arith.mulf %49, %52 : vector<1x16x16x32xf32>
    %54 = arith.addf %48, %53 : vector<1x16x16x32xf32>
    %55 = vector.extract_strided_slice %42 {offsets = [0, 0, 2, 0], sizes = [1, 16, 16, 32], strides = [1, 1, 1, 1]} : vector<1x16x18x32xf32> to vector<1x16x16x32xf32>
    %56 = vector.extract_strided_slice %21 {offsets = [5, 0], sizes = [1, 32], strides = [1, 1]} : vector<9x32xf32> to vector<1x32xf32>
    %57 = vector.shape_cast %56 : vector<1x32xf32> to vector<1x1x1x32xf32>
    %58 = vector.broadcast %57 : vector<1x1x1x32xf32> to vector<1x16x16x32xf32>
    %59 = arith.mulf %55, %58 : vector<1x16x16x32xf32>
    %60 = arith.addf %54, %59 : vector<1x16x16x32xf32>
    %c0_40 = arith.constant 0 : index
    %c2 = arith.constant 2 : index
    %c0_41 = arith.constant 0 : index
    %c0_42 = arith.constant 0 : index
    %61 = vector.load %arg7[%c0_40, %c2, %c0_41, %c0_42] : memref<1x18x18x32xf32, #tpu.memory_space<vmem>>, vector<1x16x18x32xf32>
    %62 = vector.extract_strided_slice %61 {offsets = [0, 0, 0, 0], sizes = [1, 16, 16, 32], strides = [1, 1, 1, 1]} : vector<1x16x18x32xf32> to vector<1x16x16x32xf32>
    %63 = vector.extract_strided_slice %21 {offsets = [6, 0], sizes = [1, 32], strides = [1, 1]} : vector<9x32xf32> to vector<1x32xf32>
    %64 = vector.shape_cast %63 : vector<1x32xf32> to vector<1x1x1x32xf32>
    %65 = vector.broadcast %64 : vector<1x1x1x32xf32> to vector<1x16x16x32xf32>
    %66 = arith.mulf %62, %65 : vector<1x16x16x32xf32>
    %67 = arith.addf %60, %66 : vector<1x16x16x32xf32>
    %68 = vector.extract_strided_slice %61 {offsets = [0, 0, 1, 0], sizes = [1, 16, 16, 32], strides = [1, 1, 1, 1]} : vector<1x16x18x32xf32> to vector<1x16x16x32xf32>
    %69 = vector.extract_strided_slice %21 {offsets = [7, 0], sizes = [1, 32], strides = [1, 1]} : vector<9x32xf32> to vector<1x32xf32>
    %70 = vector.shape_cast %69 : vector<1x32xf32> to vector<1x1x1x32xf32>
    %71 = vector.broadcast %70 : vector<1x1x1x32xf32> to vector<1x16x16x32xf32>
    %72 = arith.mulf %68, %71 : vector<1x16x16x32xf32>
    %73 = arith.addf %67, %72 : vector<1x16x16x32xf32>
    %74 = vector.extract_strided_slice %61 {offsets = [0, 0, 2, 0], sizes = [1, 16, 16, 32], strides = [1, 1, 1, 1]} : vector<1x16x18x32xf32> to vector<1x16x16x32xf32>
    %75 = vector.extract_strided_slice %21 {offsets = [8, 0], sizes = [1, 32], strides = [1, 1]} : vector<9x32xf32> to vector<1x32xf32>
    %76 = vector.shape_cast %75 : vector<1x32xf32> to vector<1x1x1x32xf32>
    %77 = vector.broadcast %76 : vector<1x1x1x32xf32> to vector<1x16x16x32xf32>
    %78 = arith.mulf %74, %77 : vector<1x16x16x32xf32>
    %79 = arith.addf %73, %78 : vector<1x16x16x32xf32>
    %80 = arith.truncf %79 : vector<1x16x16x32xf32> to vector<1x16x16x32xbf16>
    %c0_43 = arith.constant 0 : index
    %c0_44 = arith.constant 0 : index
    %c0_45 = arith.constant 0 : index
    %c0_46 = arith.constant 0 : index
    %81 = vector.load %arg5[%c0_43, %c0_44, %c0_45, %c0_46] : memref<1x16x16x32xbf16, #tpu.memory_space<vmem>>, vector<1x16x16x32xbf16>
    tpu.vector_store %arg5[%c0_43, %c0_44, %c0_45, %c0_46], %80 {strides = array<i32>} : memref<1x16x16x32xbf16, #tpu.memory_space<vmem>>, vector<1x16x16x32xbf16>,
    %cst_47 = arith.constant dense<0.000000e+00> : vector<32xf32>
    %82 = vector.multi_reduction <add>, %79, %cst_47 [0, 1, 2] : vector<1x16x16x32xf32> to vector<32xf32>
    %83 = vector.shape_cast %82 : vector<32xf32> to vector<1x1x1x32xf32>
    %84 = vector.shape_cast %83 : vector<1x1x1x32xf32> to vector<1x32xf32>
    %85 = arith.mulf %79, %79 : vector<1x16x16x32xf32>
    %cst_48 = arith.constant dense<0.000000e+00> : vector<32xf32>
    %86 = vector.multi_reduction <add>, %85, %cst_48 [0, 1, 2] : vector<1x16x16x32xf32> to vector<32xf32>
    %87 = vector.shape_cast %86 : vector<32xf32> to vector<1x1x1x32xf32>
    %88 = vector.shape_cast %87 : vector<1x1x1x32xf32> to vector<1x32xf32>
    %89 = tpu.concatenate %84, %88 in 0 : vector<1x32xf32>, vector<1x32xf32> -> vector<2x32xf32>
    %90 = vector.shape_cast %89 : vector<2x32xf32> to vector<1x2x32xf32>
    %c0_49 = arith.constant 0 : index
    %c0_50 = arith.constant 0 : index
    %c0_51 = arith.constant 0 : index
    %91 = vector.load %arg6[%c0_49, %c0_50, %c0_51] : memref<1x2x32xf32, #tpu.memory_space<vmem>>, vector<1x2x32xf32>
    tpu.vector_store %arg6[%c0_49, %c0_50, %c0_51], %90 {strides = array<i32>} : memref<1x2x32xf32, #tpu.memory_space<vmem>>, vector<1x2x32xf32>,
    return
  }
  func.func @transform_0(%arg0: i32) -> (i32, i32, i32, i32) {
    %c0_i32 = arith.constant 0 : i32
    %c0_i32_0 = arith.constant 0 : i32
    %c0_i32_1 = arith.constant 0 : i32
    %c0_i32_2 = arith.constant 0 : i32
    return %arg0, %c0_i32, %c0_i32_0, %c0_i32_1 : i32, i32, i32, i32
  }
  func.func @transform_1(%arg0: i32) -> (i32, i32) {
    %c0_i32 = arith.constant 0 : i32
    %c0_i32_0 = arith.constant 0 : i32
    %c0_i32_1 = arith.constant 0 : i32
    return %c0_i32, %c0_i32_0 : i32, i32
  }
  func.func @transform_2(%arg0: i32) -> (i32, i32) {
    %c0_i32 = arith.constant 0 : i32
    %c0_i32_0 = arith.constant 0 : i32
    %c0_i32_1 = arith.constant 0 : i32
    return %c0_i32, %c0_i32_0 : i32, i32
  }
  func.func @transform_3(%arg0: i32) -> (i32, i32) {
    %c0_i32 = arith.constant 0 : i32
    %c0_i32_0 = arith.constant 0 : i32
    %c0_i32_1 = arith.constant 0 : i32
    return %c0_i32, %c0_i32_0 : i32, i32
  }
  func.func @transform_4(%arg0: i32) -> (i32, i32, i32, i32) {
    %c0_i32 = arith.constant 0 : i32
    %c0_i32_0 = arith.constant 0 : i32
    %c0_i32_1 = arith.constant 0 : i32
    %c0_i32_2 = arith.constant 0 : i32
    return %arg0, %c0_i32, %c0_i32_0, %c0_i32_1 : i32, i32, i32, i32
  }
  func.func @transform_5(%arg0: i32) -> (i32, i32, i32) {
    %c0_i32 = arith.constant 0 : i32
    %c0_i32_0 = arith.constant 0 : i32
    %c0_i32_1 = arith.constant 0 : i32
    return %arg0, %c0_i32, %c0_i32_0 : i32, i32, i32
  }
}

module attributes {stable_mosaic.version = 11 : i64} {
  func.func @_project_kernel(%arg0: i32, %arg1: memref<512x32xbf16, #tpu.memory_space<vmem>>, %arg2: memref<1x32xf32, #tpu.memory_space<vmem>>, %arg3: memref<1x32xf32, #tpu.memory_space<vmem>>, %arg4: memref<32x16xbf16, #tpu.memory_space<vmem>>, %arg5: memref<512x16xbf16, #tpu.memory_space<vmem>>, %arg6: memref<1x2x16xf32, #tpu.memory_space<vmem>>) attributes {dimension_semantics = [#tpu.dimension_semantics<parallel>], iteration_bounds = array<i64: 1>, scalar_prefetch = 0 : i64, scratch_operands = 0 : i64, tpu.core_type = #tpu.core_type<tc>, window_params = [{transform_indices = @transform_0, window_bounds = array<i64: 512, 32>}, {pipeline_mode = #tpu.pipeline_mode<synchronous>, transform_indices = @transform_1, window_bounds = array<i64: 1, 32>}, {pipeline_mode = #tpu.pipeline_mode<synchronous>, transform_indices = @transform_2, window_bounds = array<i64: 1, 32>}, {pipeline_mode = #tpu.pipeline_mode<synchronous>, transform_indices = @transform_3, window_bounds = array<i64: 32, 16>}, {transform_indices = @transform_4, window_bounds = array<i64: 512, 16>}, {transform_indices = @transform_5, window_bounds = array<i64: 1, 2, 16>}]} {
    %c0 = arith.constant 0 : index
    %c0_0 = arith.constant 0 : index
    %0 = vector.load %arg1[%c0, %c0_0] : memref<512x32xbf16, #tpu.memory_space<vmem>>, vector<512x32xbf16>
    %1 = arith.extf %0 : vector<512x32xbf16> to vector<512x32xf32>
    %c0_1 = arith.constant 0 : index
    %c0_2 = arith.constant 0 : index
    %2 = vector.load %arg2[%c0_1, %c0_2] : memref<1x32xf32, #tpu.memory_space<vmem>>, vector<1x32xf32>
    %3 = vector.broadcast %2 : vector<1x32xf32> to vector<512x32xf32>
    %4 = arith.mulf %1, %3 : vector<512x32xf32>
    %c0_3 = arith.constant 0 : index
    %c0_4 = arith.constant 0 : index
    %5 = vector.load %arg3[%c0_3, %c0_4] : memref<1x32xf32, #tpu.memory_space<vmem>>, vector<1x32xf32>
    %6 = vector.broadcast %5 : vector<1x32xf32> to vector<512x32xf32>
    %7 = arith.addf %4, %6 : vector<512x32xf32>
    %cst = arith.constant 0.000000e+00 : f32
    %8 = vector.broadcast %cst : f32 to vector<512x32xf32>
    %9 = arith.maximumf %7, %8 : vector<512x32xf32>
    %10 = arith.truncf %9 : vector<512x32xf32> to vector<512x32xbf16>
    %c0_5 = arith.constant 0 : index
    %c0_6 = arith.constant 0 : index
    %11 = vector.load %arg4[%c0_5, %c0_6] : memref<32x16xbf16, #tpu.memory_space<vmem>>, vector<32x16xbf16>
    %cst_7 = arith.constant dense<0.000000e+00> : vector<512x16xf32>
    %12 = tpu.matmul %10, %11, %cst_7 {dimension_numbers = #tpu.dot_dimension_numbers<[1], [0], [0], [1], [0, 0, 1, 1], [], []>} : vector<512x32xbf16>, vector<32x16xbf16>, vector<512x16xf32> -> vector<512x16xf32>
    %13 = arith.truncf %12 : vector<512x16xf32> to vector<512x16xbf16>
    %c0_8 = arith.constant 0 : index
    %c0_9 = arith.constant 0 : index
    %14 = vector.load %arg5[%c0_8, %c0_9] : memref<512x16xbf16, #tpu.memory_space<vmem>>, vector<512x16xbf16>
    tpu.vector_store %arg5[%c0_8, %c0_9], %13 {strides = array<i32>} : memref<512x16xbf16, #tpu.memory_space<vmem>>, vector<512x16xbf16>,
    %cst_10 = arith.constant dense<0.000000e+00> : vector<16xf32>
    %15 = vector.multi_reduction <add>, %12, %cst_10 [0] : vector<512x16xf32> to vector<16xf32>
    %16 = vector.shape_cast %15 : vector<16xf32> to vector<1x16xf32>
    %17 = arith.mulf %12, %12 : vector<512x16xf32>
    %cst_11 = arith.constant dense<0.000000e+00> : vector<16xf32>
    %18 = vector.multi_reduction <add>, %17, %cst_11 [0] : vector<512x16xf32> to vector<16xf32>
    %19 = vector.shape_cast %18 : vector<16xf32> to vector<1x16xf32>
    %20 = tpu.concatenate %16, %19 in 0 : vector<1x16xf32>, vector<1x16xf32> -> vector<2x16xf32>
    %21 = vector.shape_cast %20 : vector<2x16xf32> to vector<1x2x16xf32>
    %c0_12 = arith.constant 0 : index
    %c0_13 = arith.constant 0 : index
    %c0_14 = arith.constant 0 : index
    %22 = vector.load %arg6[%c0_12, %c0_13, %c0_14] : memref<1x2x16xf32, #tpu.memory_space<vmem>>, vector<1x2x16xf32>
    tpu.vector_store %arg6[%c0_12, %c0_13, %c0_14], %21 {strides = array<i32>} : memref<1x2x16xf32, #tpu.memory_space<vmem>>, vector<1x2x16xf32>,
    return
  }
  func.func @transform_0(%arg0: i32) -> (i32, i32) {
    %c0_i32 = arith.constant 0 : i32
    %c0_i32_0 = arith.constant 0 : i32
    return %arg0, %c0_i32 : i32, i32
  }
  func.func @transform_1(%arg0: i32) -> (i32, i32) {
    %c0_i32 = arith.constant 0 : i32
    %c0_i32_0 = arith.constant 0 : i32
    %c0_i32_1 = arith.constant 0 : i32
    return %c0_i32, %c0_i32_0 : i32, i32
  }
  func.func @transform_2(%arg0: i32) -> (i32, i32) {
    %c0_i32 = arith.constant 0 : i32
    %c0_i32_0 = arith.constant 0 : i32
    %c0_i32_1 = arith.constant 0 : i32
    return %c0_i32, %c0_i32_0 : i32, i32
  }
  func.func @transform_3(%arg0: i32) -> (i32, i32) {
    %c0_i32 = arith.constant 0 : i32
    %c0_i32_0 = arith.constant 0 : i32
    %c0_i32_1 = arith.constant 0 : i32
    return %c0_i32, %c0_i32_0 : i32, i32
  }
  func.func @transform_4(%arg0: i32) -> (i32, i32) {
    %c0_i32 = arith.constant 0 : i32
    %c0_i32_0 = arith.constant 0 : i32
    return %arg0, %c0_i32 : i32, i32
  }
  func.func @transform_5(%arg0: i32) -> (i32, i32, i32) {
    %c0_i32 = arith.constant 0 : i32
    %c0_i32_0 = arith.constant 0 : i32
    %c0_i32_1 = arith.constant 0 : i32
    return %arg0, %c0_i32, %c0_i32_0 : i32, i32, i32
  }
}

module attributes {stable_mosaic.version = 11 : i64} {
  func.func @_finalize_kernel(%arg0: i32, %arg1: memref<32x256xbf16, #tpu.memory_space<vmem>>, %arg2: memref<1x256xf32, #tpu.memory_space<vmem>>, %arg3: memref<1x256xf32, #tpu.memory_space<vmem>>, %arg4: memref<32x256xbf16, #tpu.memory_space<vmem>>, %arg5: memref<1x256xf32, #tpu.memory_space<vmem>>, %arg6: memref<1x256xf32, #tpu.memory_space<vmem>>, %arg7: memref<32x256xf32, #tpu.memory_space<vmem>>) attributes {dimension_semantics = [#tpu.dimension_semantics<parallel>], iteration_bounds = array<i64: 1>, scalar_prefetch = 0 : i64, scratch_operands = 0 : i64, tpu.core_type = #tpu.core_type<tc>, window_params = [{transform_indices = @transform_0, window_bounds = array<i64: 32, 256>}, {pipeline_mode = #tpu.pipeline_mode<synchronous>, transform_indices = @transform_1, window_bounds = array<i64: 1, 256>}, {pipeline_mode = #tpu.pipeline_mode<synchronous>, transform_indices = @transform_2, window_bounds = array<i64: 1, 256>}, {transform_indices = @transform_3, window_bounds = array<i64: 32, 256>}, {pipeline_mode = #tpu.pipeline_mode<synchronous>, transform_indices = @transform_4, window_bounds = array<i64: 1, 256>}, {pipeline_mode = #tpu.pipeline_mode<synchronous>, transform_indices = @transform_5, window_bounds = array<i64: 1, 256>}, {transform_indices = @transform_6, window_bounds = array<i64: 32, 256>}]} {
    %c0 = arith.constant 0 : index
    %c0_0 = arith.constant 0 : index
    %0 = vector.load %arg1[%c0, %c0_0] : memref<32x256xbf16, #tpu.memory_space<vmem>>, vector<32x256xbf16>
    %1 = arith.extf %0 : vector<32x256xbf16> to vector<32x256xf32>
    %c0_1 = arith.constant 0 : index
    %c0_2 = arith.constant 0 : index
    %2 = vector.load %arg2[%c0_1, %c0_2] : memref<1x256xf32, #tpu.memory_space<vmem>>, vector<1x256xf32>
    %3 = vector.broadcast %2 : vector<1x256xf32> to vector<32x256xf32>
    %4 = arith.mulf %1, %3 : vector<32x256xf32>
    %c0_3 = arith.constant 0 : index
    %c0_4 = arith.constant 0 : index
    %5 = vector.load %arg3[%c0_3, %c0_4] : memref<1x256xf32, #tpu.memory_space<vmem>>, vector<1x256xf32>
    %6 = vector.broadcast %5 : vector<1x256xf32> to vector<32x256xf32>
    %7 = arith.addf %4, %6 : vector<32x256xf32>
    %c0_5 = arith.constant 0 : index
    %c0_6 = arith.constant 0 : index
    %8 = vector.load %arg4[%c0_5, %c0_6] : memref<32x256xbf16, #tpu.memory_space<vmem>>, vector<32x256xbf16>
    %9 = arith.extf %8 : vector<32x256xbf16> to vector<32x256xf32>
    %c0_7 = arith.constant 0 : index
    %c0_8 = arith.constant 0 : index
    %10 = vector.load %arg5[%c0_7, %c0_8] : memref<1x256xf32, #tpu.memory_space<vmem>>, vector<1x256xf32>
    %11 = vector.broadcast %10 : vector<1x256xf32> to vector<32x256xf32>
    %12 = arith.mulf %9, %11 : vector<32x256xf32>
    %c0_9 = arith.constant 0 : index
    %c0_10 = arith.constant 0 : index
    %13 = vector.load %arg6[%c0_9, %c0_10] : memref<1x256xf32, #tpu.memory_space<vmem>>, vector<1x256xf32>
    %14 = vector.broadcast %13 : vector<1x256xf32> to vector<32x256xf32>
    %15 = arith.addf %12, %14 : vector<32x256xf32>
    %16 = arith.addf %7, %15 : vector<32x256xf32>
    %c0_11 = arith.constant 0 : index
    %c0_12 = arith.constant 0 : index
    %17 = vector.load %arg7[%c0_11, %c0_12] : memref<32x256xf32, #tpu.memory_space<vmem>>, vector<32x256xf32>
    tpu.vector_store %arg7[%c0_11, %c0_12], %16 {strides = array<i32>} : memref<32x256xf32, #tpu.memory_space<vmem>>, vector<32x256xf32>,
    return
  }
  func.func @transform_0(%arg0: i32) -> (i32, i32) {
    %c0_i32 = arith.constant 0 : i32
    %c0_i32_0 = arith.constant 0 : i32
    return %arg0, %c0_i32 : i32, i32
  }
  func.func @transform_1(%arg0: i32) -> (i32, i32) {
    %c0_i32 = arith.constant 0 : i32
    %c0_i32_0 = arith.constant 0 : i32
    %c0_i32_1 = arith.constant 0 : i32
    return %c0_i32, %c0_i32_0 : i32, i32
  }
  func.func @transform_2(%arg0: i32) -> (i32, i32) {
    %c0_i32 = arith.constant 0 : i32
    %c0_i32_0 = arith.constant 0 : i32
    %c0_i32_1 = arith.constant 0 : i32
    return %c0_i32, %c0_i32_0 : i32, i32
  }
  func.func @transform_3(%arg0: i32) -> (i32, i32) {
    %c0_i32 = arith.constant 0 : i32
    %c0_i32_0 = arith.constant 0 : i32
    return %arg0, %c0_i32 : i32, i32
  }
  func.func @transform_4(%arg0: i32) -> (i32, i32) {
    %c0_i32 = arith.constant 0 : i32
    %c0_i32_0 = arith.constant 0 : i32
    %c0_i32_1 = arith.constant 0 : i32
    return %c0_i32, %c0_i32_0 : i32, i32
  }
  func.func @transform_5(%arg0: i32) -> (i32, i32) {
    %c0_i32 = arith.constant 0 : i32
    %c0_i32_0 = arith.constant 0 : i32
    %c0_i32_1 = arith.constant 0 : i32
    return %c0_i32, %c0_i32_0 : i32, i32
  }
  func.func @transform_6(%arg0: i32) -> (i32, i32) {
    %c0_i32 = arith.constant 0 : i32
    %c0_i32_0 = arith.constant 0 : i32
    return %arg0, %c0_i32 : i32, i32
  }
}

</mosaic_0001>

<bundles_post_ra>
// kernel: block_forward.6
= control target key start
LH: loop header
LB: loop body
LE: loop exit
PB: predicated region body
PF: predicated region fallthrough
CT: control target
= control target key end

     0   :  { %vm402_vm0 = vcmask 261120   ;;  %vm1044_vm1 = vcmask 125952   ;;  %vm1109_vm2 = vcmask 130048   ;;  %vm1440_vm3 = vcmask 1040384   ;;  %s2830_s3 = inlined_call_operand.vmem [shape: bf16[32,16], index: 3, kind: input, shape index: {}]   ;;  %s2831_s0 = inlined_call_operand.vmem [shape: bf16[512,32], index: 0, kind: input, shape index: {}]   ;;  %s2832_s1 = inlined_call_operand.vmem [shape: f32[1,32], index: 1, kind: input, shape index: {}]   ;;  %s2833_s2 = inlined_call_operand.vmem [shape: f32[1,32], index: 2, kind: input, shape index: {}]   ;;  %s2834_s4 = inlined_call_operand.vmem [shape: bf16[512,16], index: 4, kind: output, shape index: {0}]   ;;  %s2835_s5 = inlined_call_operand.vmem [shape: f32[1,2,16], index: 5, kind: output, shape index: {1}]  }
   0x1   :  { %v1881_v0 = vld [vmem:[%s2830_s3] sm:$0xff]   ;;  %v1882_v1 = vld [vmem:[%s2830_s3 + $0x8] sm:$0xff]   ;;  %v1745_v7 = vld [vmem:[%s2831_s0 + $0x10] sm:$0xff]   ;;  %vm1442_vm4 = vcmask 123904  }
   0x2   :  { %1809 = vmatprep.subr.bf16.mxu0 %v1881_v0  ;;  %v1617_v2 = vld [vmem:[%s2831_s0] sm:$0xff]   ;;  %1877 = vmatprep.subr.bf16.mxu1 %v1881_v0  ;;  %v1744_v6 = vld [vmem:[%s2831_s0 + $0x8] sm:$0xff]   ;;  %v1746_v8 = vld [vmem:[%s2831_s0 + $0x18] sm:$0xff]   ;;  %v1626_v12 = vunpack.c.l.bf16 %v1745_v7  ;;  %v1627_v13 = vunpack.c.h.bf16 %v1745_v7 }
   0x3   :  { %v1925_v3 = vld [vmem:[%s2832_s1] ss:$0 sm:$0xff]  ;;  %1810 = vmatpush3.bf16.msra.mxu0 %v1881_v0  ;;  %v1618_v4 = vunpack.c.l.bf16 %v1617_v2  ;;  %v1619_v5 = vunpack.c.h.bf16 %v1617_v2  ;;  %1879 = vmatpush3.bf16.msra.mxu1 %v1881_v0  ;;  %v1622_v10 = vunpack.c.l.bf16 %v1744_v6  ;;  %v1623_v11 = vunpack.c.h.bf16 %v1744_v6  ;;  %v1748_v35 = vld [vmem:[%s2831_s0 + $0x28] sm:$0xff]   ;;  %v1749_v40 = vld [vmem:[%s2831_s0 + $0x30] sm:$0xff]  }
   0x4   :  { %1811 = vmatprep.subr.bf16.mxu0 %v1882_v1  ;;  %v1939_v9 = vld [vmem:[%s2833_s2] ss:$0 sm:$0xff]  ;;  %1878 = vmatprep.subr.bf16.mxu1 %v1882_v1  ;;  %v1630_v16 = vunpack.c.l.bf16 %v1746_v8  ;;  %v1631_v17 = vunpack.c.h.bf16 %v1746_v8  ;;  %v159_v20 = vmul.f32 %v1626_v12, %v1925_v3  ;;  %v160_v21 = vmul.f32 %v1627_v13, %v1925_v3  ;;  %v1750_v51 = vld [vmem:[%s2831_s0 + $0x38] sm:$0xff]   ;;  %v1752_v8 = vld [vmem:[%s2831_s0 + $0x48] sm:$0xff]  }
   0x5   :  { %v155_v14 = vmul.f32 %v1618_v4, %v1925_v3  ;;  %v156_v15 = vmul.f32 %v1619_v5, %v1925_v3  ;;  %v157_v18 = vmul.f32 %v1622_v10, %v1925_v3  ;;  %v158_v19 = vmul.f32 %v1623_v11, %v1925_v3  ;;  %v1747_v30 = vld [vmem:[%s2831_s0 + $0x20] sm:$0xff]   ;;  %v1753_v11 = vld [vmem:[%s2831_s0 + $0x50] sm:$0xff]  }
   0x6   :  { %v161_v24 = vmul.f32 %v1630_v16, %v1925_v3  ;;  %v162_v25 = vmul.f32 %v1631_v17, %v1925_v3  ;;  %v230_v28 = vadd.f32 %v1939_v9, %v159_v20  ;;  %v231_v29 = vadd.f32 %v1939_v9, %v160_v21  ;;  %v1751_v63 = vld [vmem:[%s2831_s0 + $0x40] sm:$0xff]   ;;  %v1754_v20 = vld [vmem:[%s2831_s0 + $0x58] sm:$0xff]  }
   0x7   :  { %1812 = vmatpush3.bf16.msra.mxu0 %v1882_v1  ;;  %v226_v22 = vadd.f32 %v1939_v9, %v155_v14  ;;  %v227_v23 = vadd.f32 %v1939_v9, %v156_v15  ;;  %v228_v26 = vadd.f32 %v1939_v9, %v157_v18  ;;  %v229_v27 = vadd.f32 %v1939_v9, %v158_v19 }
   0x8   :  { %1880 = vmatpush3.bf16.msra.mxu1 %v1882_v1  ;;  %v232_v33 = vadd.f32 %v1939_v9, %v161_v24  ;;  %v233_v34 = vadd.f32 %v1939_v9, %v162_v25  ;;  %v294_v38 = vmax.f32 %v230_v28, 0.0  ;;  %v295_v39 = vmax.f32 %v231_v29, 0.0 }
   0x9   :  { %v290_v31 = vmax.f32 %v226_v22, 0.0  ;;  %v291_v32 = vmax.f32 %v227_v23, 0.0  ;;  %v292_v36 = vmax.f32 %v228_v26, 0.0  ;;  %v293_v37 = vmax.f32 %v229_v27, 0.0 }
   0xa   :  { %v1634_v42 = vunpack.c.l.bf16 %v1747_v30  ;;  %v356_v44 = vpack.c.bf16 %v295_v39, %v294_v38  ;;  %v1635_v45 = vunpack.c.h.bf16 %v1747_v30  ;;  %v1638_v46 = vunpack.c.l.bf16 %v1748_v35 }
   0xb   :  { %v354_v41 = vpack.c.bf16 %v291_v32, %v290_v31  ;;  %v355_v43 = vpack.c.bf16 %v293_v37, %v292_v36  ;;  %v296_v47 = vmax.f32 %v232_v33, 0.0  ;;  %v1639_v49 = vunpack.c.h.bf16 %v1748_v35  ;;  %v1755_v31 = vld [vmem:[%s2831_s0 + $0x60] sm:$0xff]  }
   0xc   :  { %v163_v48 = vmul.f32 %v1634_v42, %v1925_v3  ;;  %v1642_v50 = vunpack.c.l.bf16 %v1749_v40  ;;  %v297_v52 = vmax.f32 %v233_v34, 0.0  ;;  %v164_v53 = vmul.f32 %v1635_v45, %v1925_v3 }
   0xd   :  { %1813 = vmatprep.mubr.msk.bf16.mxu0 %vm402_vm0, %v354_v41  ;;  %v165_v54 = vmul.f32 %v1638_v46, %v1925_v3  ;;  %v1643_v55 = vunpack.c.h.bf16 %v1749_v40  ;;  %v166_v57 = vmul.f32 %v1639_v49, %v1925_v3  ;;  %v1646_v61 = vunpack.c.l.bf16 %v1750_v51 }
   0xe   :  { %1814 = vmatmul.mubr.msk.bf16.vlgmr.msra.gmra.mrb[0].mxu0 %vm402_vm0, %v355_v43  ;;  %v234_v56 = vadd.f32 %v1939_v9, %v163_v48  ;;  %v167_v58 = vmul.f32 %v1642_v50, %v1925_v3  ;;  %v235_v59 = vadd.f32 %v1939_v9, %v164_v53  ;;  %v1647_v62 = vunpack.c.h.bf16 %v1750_v51 }
   0xf   :  { %1817 = vmatprep.mubr.msk.bf16.mxu0 %vm402_vm0, %v356_v44  ;;  %v168_v60 = vmul.f32 %v1643_v55, %v1925_v3  ;;  %v236_v1 = vadd.f32 %v1939_v9, %v165_v54  ;;  %v237_v2 = vadd.f32 %v1939_v9, %v166_v57  ;;  %v357_v5 = vpack.c.bf16 %v297_v52, %v296_v47  ;;  %v1756_v44 = vld [vmem:[%s2831_s0 + $0x68] sm:$0xff]  }
  0x10   :  { %v298_v0 = vmax.f32 %v234_v56, 0.0  ;;  %v238_v4 = vadd.f32 %v1939_v9, %v167_v58  ;;  %v299_v6 = vmax.f32 %v235_v59, 0.0  ;;  %v1650_v10 = vunpack.c.l.bf16 %v1751_v63  ;;  %v1757_v56 = vld [vmem:[%s2831_s0 + $0x70] sm:$0xff]  }
  0x11   :  { %v239_v7 = vadd.f32 %v1939_v9, %v168_v60  ;;  %v169_v13 = vmul.f32 %v1646_v61, %v1925_v3  ;;  %v170_v14 = vmul.f32 %v1647_v62, %v1925_v3  ;;  %v1651_v15 = vunpack.c.h.bf16 %v1751_v63 }
  0x12   :  { %v358_v12 = vpack.c.bf16 %v299_v6, %v298_v0  ;;  %v300_v16 = vmax.f32 %v236_v1, 0.0  ;;  %v301_v17 = vmax.f32 %v237_v2, 0.0  ;;  %v302_v18 = vmax.f32 %v238_v4, 0.0  ;;  %v2035_v1 = vld [vmem:[%s2831_s0 + $0x78] sm:$0xff]   ;;  %v1759_v2 = vld [vmem:[%s2831_s0 + $0x80] sm:$0xff]  }
  0x13   :  { %v1654_v19 = vunpack.c.l.bf16 %v1752_v8  ;;  %v303_v21 = vmax.f32 %v239_v7, 0.0  ;;  %v171_v22 = vmul.f32 %v1650_v10, %v1925_v3  ;;  %v1655_v23 = vunpack.c.h.bf16 %v1752_v8 }
  0x14   :  { %v1658_v24 = vunpack.c.l.bf16 %v1753_v11  ;;  %v172_v25 = vmul.f32 %v1651_v15, %v1925_v3  ;;  %v1659_v27 = vunpack.c.h.bf16 %v1753_v11  ;;  %v1662_v30 = vunpack.c.l.bf16 %v1754_v20 }
  0x15   :  { %v173_v26 = vmul.f32 %v1654_v19, %v1925_v3  ;;  %v174_v28 = vmul.f32 %v1655_v23, %v1925_v3  ;;  %v240_v32 = vadd.f32 %v1939_v9, %v169_v13  ;;  %v241_v33 = vadd.f32 %v1939_v9, %v170_v14  ;;  %v1760_v19 = vld [vmem:[%s2831_s0 + $0x88] sm:$0xff]  }
  0x16   :  { %1818 = vmatmul.mubr.msk.bf16.gmra.mrb[4].mxu0 %vm402_vm0, %v357_v5  ;;  %v175_v29 = vmul.f32 %v1658_v24, %v1925_v3  ;;  %v176_v34 = vmul.f32 %v1659_v27, %v1925_v3  ;;  %v1663_v35 = vunpack.c.h.bf16 %v1754_v20  ;;  %v359_v36 = vpack.c.bf16 %v301_v17, %v300_v16  ;;  %v1761_v24 = vld [vmem:[%s2831_s0 + $0x90] sm:$0xff]  }
  0x17   :  { %1821 = vmatprep.mubr.msk.bf16.mxu0 %vm402_vm0, %v358_v12  ;;  %v360_v37 = vpack.c.bf16 %v303_v21, %v302_v18  ;;  %v242_v38 = vadd.f32 %v1939_v9, %v171_v22  ;;  %v177_v39 = vmul.f32 %v1662_v30, %v1925_v3  ;;  %v243_v40 = vadd.f32 %v1939_v9, %v172_v25 }
  0x18   :  { %v244_v41 = vadd.f32 %v1939_v9, %v173_v26  ;;  %v178_v42 = vmul.f32 %v1663_v35, %v1925_v3  ;;  %v1666_v43 = vunpack.c.l.bf16 %v1755_v31  ;;  %v245_v45 = vadd.f32 %v1939_v9, %v174_v28 }
  0x19   :  { %v246_v46 = vadd.f32 %v1939_v9, %v175_v29  ;;  %v247_v47 = vadd.f32 %v1939_v9, %v176_v34  ;;  %v248_v48 = vadd.f32 %v1939_v9, %v177_v39  ;;  %v1667_v50 = vunpack.c.h.bf16 %v1755_v31 }
  0x1a   :  { %v249_v49 = vadd.f32 %v1939_v9, %v178_v42  ;;  %v179_v51 = vmul.f32 %v1666_v43, %v1925_v3  ;;  %v304_v52 = vmax.f32 %v240_v32, 0.0  ;;  %v305_v53 = vmax.f32 %v241_v33, 0.0  ;;  %v1762_v33 = vld [vmem:[%s2831_s0 + $0x98] sm:$0xff]  }
  0x1b   :  { %v1670_v54 = vunpack.c.l.bf16 %v1756_v44  ;;  %v1671_v55 = vunpack.c.h.bf16 %v1756_v44  ;;  %v306_v57 = vmax.f32 %v242_v38, 0.0  ;;  %v307_v58 = vmax.f32 %v243_v40, 0.0 }
  0x1c   :  { %v308_v59 = vmax.f32 %v244_v41, 0.0  ;;  %v180_v60 = vmul.f32 %v1667_v50, %v1925_v3  ;;  %v309_v61 = vmax.f32 %v245_v45, 0.0  ;;  %v310_v62 = vmax.f32 %v246_v46, 0.0  ;;  %v1763_v46 = vld [vmem:[%s2831_s0 + $0xa0] sm:$0xff]  }
  0x1d   :  { %v311_v63 = vmax.f32 %v247_v47, 0.0  ;;  %v181_v0 = vmul.f32 %v1670_v54, %v1925_v3  ;;  %v312_v4 = vmax.f32 %v248_v48, 0.0  ;;  %v313_v5 = vmax.f32 %v249_v49, 0.0 }
  0x1e   :  { %1822 = vmatmul.mubr.msk.bf16.gmra.mrb[8].mxu0 %vm402_vm0, %v359_v36  ;;  %v2041_v6 = vadd.f32 %v1939_v9, %v179_v51  ;;  %v1674_v7 = vunpack.c.l.bf16 %v1757_v56  ;;  %v361_v8 = vpack.c.bf16 %v305_v53, %v304_v52  ;;  %v2044_v10 = vadd.f32 %v1939_v9, %v180_v60 }
  0x1f   :  { %1825 = vmatprep.mubr.msk.bf16.mxu0 %vm402_vm0, %v360_v37  ;;  %v182_v11 = vmul.f32 %v1671_v55, %v1925_v3  ;;  %v1675_v12 = vunpack.c.h.bf16 %v1757_v56  ;;  %v362_v13 = vpack.c.bf16 %v307_v58, %v306_v57  ;;  %v1678_v14 = vunpack.c.l.bf16 %v2035_v1  ;;  %v1764_v55 = vld [vmem:[%s2831_s0 + $0xa8] sm:$0xff]  }
  0x20   :  { %v1682_v15 = vunpack.c.l.bf16 %v1759_v2  ;;  %v363_v16 = vpack.c.bf16 %v309_v61, %v308_v59  ;;  %v364_v17 = vpack.c.bf16 %v311_v63, %v310_v62  ;;  %v2049_v18 = vadd.f32 %v1939_v9, %v181_v0 }
  0x21   :  { %v2054_v20 = vpack.c.bf16 %v313_v5, %v312_v4  ;;  %v314_v21 = vmax.f32 %v2041_v6, 0.0  ;;  %v183_v22 = vmul.f32 %v1674_v7, %v1925_v3  ;;  %v1683_v23 = vunpack.c.h.bf16 %v1759_v2  ;;  %v1765_v7 = vld [vmem:[%s2831_s0 + $0xb0] sm:$0xff]   ;;  %v1767_v6 = vld [vmem:[%s2831_s0 + $0xc0] sm:$0xff]  }
  0x22   :  { %v315_v25 = vmax.f32 %v2044_v10, 0.0  ;;  %v2064_v26 = vadd.f32 %v1939_v9, %v182_v11  ;;  %v184_v27 = vmul.f32 %v1675_v12, %v1925_v3  ;;  %v187_v28 = vmul.f32 %v1682_v15, %v1925_v3 }
  0x23   :  { %v1679_v29 = vunpack.c.h.bf16 %v2035_v1  ;;  %v2071_v30 = vmul.f32 %v1678_v14, %v1925_v3  ;;  %v188_v31 = vmul.f32 %v1683_v23, %v1925_v3  ;;  %v1686_v32 = vunpack.c.l.bf16 %v1760_v19 }
  0x24   :  { %v316_v34 = vmax.f32 %v2049_v18, 0.0  ;;  %v258_v35 = vadd.f32 %v1939_v9, %v187_v28  ;;  %v1687_v36 = vunpack.c.h.bf16 %v1760_v19  ;;  %v1690_v37 = vunpack.c.l.bf16 %v1761_v24  ;;  %v1769_v18 = vld [vmem:[%s2831_s0 + $0xd0] sm:$0xff]  }
  0x25   :  { %v2080_v38 = vadd.f32 %v1939_v9, %v183_v22  ;;  %v259_v39 = vadd.f32 %v1939_v9, %v188_v31  ;;  %v189_v40 = vmul.f32 %v1686_v32, %v1925_v3  ;;  %v1691_v41 = vunpack.c.h.bf16 %v1761_v24  ;;  %v1766_v24 = vld [vmem:[%s2831_s0 + $0xb8] sm:$0xff]  }
  0x26   :  { %1826 = vmatmul.mubr.msk.bf16.gmra.mrb[12].mxu0 %vm402_vm0, %v361_v8  ;;  %v322_v42 = vmax.f32 %v258_v35, 0.0  ;;  %v190_v43 = vmul.f32 %v1687_v36, %v1925_v3  ;;  %v191_v44 = vmul.f32 %v1690_v37, %v1925_v3  ;;  %v1694_v45 = vunpack.c.l.bf16 %v1762_v33 }
  0x27   :  { %1829 = vmatprep.mubr.msk.bf16.mxu0 %vm402_vm0, %v362_v13  ;;  %v2090_v47 = vadd.f32 %v1939_v9, %v184_v27  ;;  %v323_v48 = vmax.f32 %v259_v39, 0.0  ;;  %v260_v49 = vadd.f32 %v1939_v9, %v189_v40  ;;  %v192_v50 = vmul.f32 %v1691_v41, %v1925_v3 }
  0x28   :  { %v261_v51 = vadd.f32 %v1939_v9, %v190_v43  ;;  %v262_v52 = vadd.f32 %v1939_v9, %v191_v44  ;;  %v1695_v53 = vunpack.c.h.bf16 %v1762_v33  ;;  %v193_v54 = vmul.f32 %v1694_v45, %v1925_v3 }
  0x29   :  { %v370_v56 = vpack.c.bf16 %v323_v48, %v322_v42  ;;  %v324_v57 = vmax.f32 %v260_v49, 0.0  ;;  %v263_v58 = vadd.f32 %v1939_v9, %v192_v50  ;;  %v1698_v59 = vunpack.c.l.bf16 %v1763_v46 }
  0x2a   :  { %v325_v60 = vmax.f32 %v261_v51, 0.0  ;;  %v326_v61 = vmax.f32 %v262_v52, 0.0  ;;  %v194_v62 = vmul.f32 %v1695_v53, %v1925_v3  ;;  %v264_v63 = vadd.f32 %v1939_v9, %v193_v54  ;;  %v1768_v52 = vld [vmem:[%s2831_s0 + $0xc8] sm:$0xff]  }
  0x2b   :  { %1845 = vmatprep.mubr.msk.bf16.mxu1 %vm402_vm0, %v370_v56  ;;  %v327_v0 = vmax.f32 %v263_v58, 0.0  ;;  %v1699_v2 = vunpack.c.h.bf16 %v1763_v46  ;;  %v195_v4 = vmul.f32 %v1698_v59, %v1925_v3  ;;  %v1702_v5 = vunpack.c.l.bf16 %v1764_v55 }
  0x2c   :  { %v371_v8 = vpack.c.bf16 %v325_v60, %v324_v57  ;;  %v265_v10 = vadd.f32 %v1939_v9, %v194_v62  ;;  %v328_v11 = vmax.f32 %v264_v63, 0.0  ;;  %v1703_v12 = vunpack.c.h.bf16 %v1764_v55 }
  0x2d   :  { %v372_v13 = vpack.c.bf16 %v327_v0, %v326_v61  ;;  %v196_v14 = vmul.f32 %v1699_v2, %v1925_v3  ;;  %v266_v15 = vadd.f32 %v1939_v9, %v195_v4  ;;  %v1706_v22 = vunpack.c.l.bf16 %v1765_v7 }
  0x2e   :  { %1830 = vmatmul.mubr.msk.bf16.gmra.mrb[16].mxu0 %vm402_vm0, %v363_v16  ;;  %v197_v16 = vmul.f32 %v1702_v5, %v1925_v3  ;;  %1846 = vmatmul.mubr.msk.bf16.vlgmr.msra.gmra.mrb[0].mxu1 %vm402_vm0, %v371_v8  ;;  %v198_v19 = vmul.f32 %v1703_v12, %v1925_v3  ;;  %v1707_v23 = vunpack.c.h.bf16 %v1765_v7  ;;  %v366_v27 = vpack.c.bf16 %v315_v25, %v314_v21 }
  0x2f   :  { %1833 = vmatprep.mubr.msk.bf16.mxu0 %vm402_vm0, %v364_v17  ;;  %v329_v17 = vmax.f32 %v265_v10, 0.0  ;;  %v317_v28 = vmax.f32 %v2064_v26, 0.0  ;;  %1849 = vmatprep.mubr.msk.bf16.mxu1 %vm402_vm0, %v372_v13  ;;  %v267_v31 = vadd.f32 %v1939_v9, %v196_v14  ;;  %v330_v32 = vmax.f32 %v266_v15, 0.0  ;;  %v1770_v14 = vld [vmem:[%s2831_s0 + $0xd8] sm:$0xff]  }
  0x30   :  { %v318_v33 = vmax.f32 %v2080_v38, 0.0  ;;  %v186_v35 = vmul.f32 %v1679_v29, %v1925_v3  ;;  %v199_v36 = vmul.f32 %v1706_v22, %v1925_v3  ;;  %v200_v37 = vmul.f32 %v1707_v23, %v1925_v3 }
  0x31   :  { %v319_v21 = vmax.f32 %v2090_v47, 0.0  ;;  %v331_v25 = vmax.f32 %v267_v31, 0.0  ;;  %v1710_v26 = vunpack.c.l.bf16 %v1766_v24  ;;  %v1711_v39 = vunpack.c.h.bf16 %v1766_v24 }
  0x32   :  { %v373_v38 = vpack.c.bf16 %v329_v17, %v328_v11  ;;  %v268_v1 = vadd.f32 %v1939_v9, %v197_v16  ;;  %v269_v29 = vadd.f32 %v1939_v9, %v198_v19  ;;  %v270_v40 = vadd.f32 %v1939_v9, %v199_v36  ;;  %v1771_v17 = vld [vmem:[%s2831_s0 + $0xe0] sm:$0xff]  }
  0x33   :  { %v374_v41 = vpack.c.bf16 %v331_v25, %v330_v32  ;;  %v271_v42 = vadd.f32 %v1939_v9, %v200_v37  ;;  %v1714_v43 = vunpack.c.l.bf16 %v1767_v6  ;;  %v1715_v44 = vunpack.c.h.bf16 %v1767_v6 }
  0x34   :  { %v256_v45 = vadd.f32 %v1939_v9, %v2071_v30  ;;  %v257_v46 = vadd.f32 %v1939_v9, %v186_v35  ;;  %v202_v47 = vmul.f32 %v1711_v39, %v1925_v3  ;;  %v367_v48 = vpack.c.bf16 %v317_v28, %v316_v34  ;;  %v1772_v39 = vld [vmem:[%s2831_s0 + $0xe8] sm:$0xff]  }
  0x35   :  { %v368_v49 = vpack.c.bf16 %v319_v21, %v318_v33  ;;  %v332_v50 = vmax.f32 %v268_v1, 0.0  ;;  %v333_v51 = vmax.f32 %v269_v29, 0.0  ;;  %v334_v30 = vmax.f32 %v270_v40, 0.0  ;;  %v1773_v29 = vld [vmem:[%s2831_s0 + $0xf0] sm:$0xff]  }
  0x36   :  { %1834 = vmatmul.mubr.msk.bf16.gmra.mrb[20].mxu0 %vm402_vm0, %v2054_v20  ;;  %v201_v20 = vmul.f32 %v1710_v26, %v1925_v3  ;;  %1850 = vmatmul.mubr.msk.bf16.gmra.mrb[4].mxu1 %vm402_vm0, %v373_v38  ;;  %v335_v53 = vmax.f32 %v271_v42, 0.0  ;;  %v203_v54 = vmul.f32 %v1714_v43, %v1925_v3  ;;  %v204_v55 = vmul.f32 %v1715_v44, %v1925_v3 }
  0x37   :  { %1837 = vmatprep.mubr.msk.bf16.mxu0 %vm402_vm0, %v366_v27  ;;  %1853 = vmatprep.mubr.msk.bf16.mxu1 %vm402_vm0, %v374_v41  ;;  %v320_v34 = vmax.f32 %v256_v45, 0.0  ;;  %v321_v56 = vmax.f32 %v257_v46, 0.0  ;;  %v273_v58 = vadd.f32 %v1939_v9, %v202_v47  ;;  %v1718_v59 = vunpack.c.l.bf16 %v1768_v52 }
  0x38   :  { %v272_v57 = vadd.f32 %v1939_v9, %v201_v20  ;;  %v375_v60 = vpack.c.bf16 %v333_v51, %v332_v50  ;;  %v1719_v61 = vunpack.c.h.bf16 %v1768_v52  ;;  %v1722_v62 = vunpack.c.l.bf16 %v1769_v18 }
  0x39   :  { %v1723_v63 = vunpack.c.h.bf16 %v1769_v18  ;;  %v376_v0 = vpack.c.bf16 %v335_v53, %v334_v30  ;;  %v274_v2 = vadd.f32 %v1939_v9, %v203_v54  ;;  %v275_v4 = vadd.f32 %v1939_v9, %v204_v55  ;;  %v1774_v18 = vld [vmem:[%s2831_s0 + $0xf8] sm:$0xff]  }
  0x3a   :  { %v336_v5 = vmax.f32 %v272_v57, 0.0  ;;  %v337_v7 = vmax.f32 %v273_v58, 0.0  ;;  %v205_v8 = vmul.f32 %v1718_v59, %v1925_v3  ;;  %v369_v10 = vpack.c.bf16 %v321_v56, %v320_v34 }
  0x3b   :  { %v206_v11 = vmul.f32 %v1719_v61, %v1925_v3  ;;  %v207_v12 = vmul.f32 %v1722_v62, %v1925_v3  ;;  %v208_v13 = vmul.f32 %v1723_v63, %v1925_v3  ;;  %v338_v15 = vmax.f32 %v274_v2, 0.0 }
  0x3c   :  { %v339_v16 = vmax.f32 %v275_v4, 0.0  ;;  %v377_v19 = vpack.c.bf16 %v337_v7, %v336_v5  ;;  %v276_v22 = vadd.f32 %v1939_v9, %v205_v8  ;;  %v1726_v23 = vunpack.c.l.bf16 %v1770_v14 }
  0x3d   :  { %v277_v24 = vadd.f32 %v1939_v9, %v206_v11  ;;  %v278_v27 = vadd.f32 %v1939_v9, %v207_v12  ;;  %v279_v28 = vadd.f32 %v1939_v9, %v208_v13  ;;  %v1727_v31 = vunpack.c.h.bf16 %v1770_v14 }
  0x3e   :  { %1838 = vmatmul.mubr.msk.bf16.gmra.mrb[24].mxu0 %vm402_vm0, %v367_v48  ;;  %1854 = vmatmul.mubr.msk.bf16.gmra.mrb[8].mxu1 %vm402_vm0, %v375_v60  ;;  %v378_v32 = vpack.c.bf16 %v339_v16, %v338_v15  ;;  %v1730_v33 = vunpack.c.l.bf16 %v1771_v17  ;;  %v1731_v35 = vunpack.c.h.bf16 %v1771_v17  ;;  %v340_v36 = vmax.f32 %v276_v22, 0.0 }
  0x3f   :  { %1841 = vmatprep.mubr.msk.bf16.mxu0 %vm402_vm0, %v368_v49  ;;  %1857 = vmatprep.mubr.msk.bf16.mxu1 %vm402_vm0, %v376_v0  ;;  %v209_v37 = vmul.f32 %v1726_v23, %v1925_v3  ;;  %v341_v6 = vmax.f32 %v277_v24, 0.0  ;;  %v342_v21 = vmax.f32 %v278_v27, 0.0  ;;  %v343_v25 = vmax.f32 %v279_v28, 0.0 }
  0x40   :  { %v210_v26 = vmul.f32 %v1727_v31, %v1925_v3  ;;  %v211_v38 = vmul.f32 %v1730_v33, %v1925_v3  ;;  %v212_v1 = vmul.f32 %v1731_v35, %v1925_v3  ;;  %v1734_v41 = vunpack.c.l.bf16 %v1772_v39 }
  0x41   :  { %v280_v40 = vadd.f32 %v1939_v9, %v209_v37  ;;  %v379_v42 = vpack.c.bf16 %v341_v6, %v340_v36  ;;  %v380_v43 = vpack.c.bf16 %v343_v25, %v342_v21  ;;  %v1735_v45 = vunpack.c.h.bf16 %v1772_v39 }
  0x42   :  { %v281_v44 = vadd.f32 %v1939_v9, %v210_v26  ;;  %v282_v46 = vadd.f32 %v1939_v9, %v211_v38  ;;  %v283_v20 = vadd.f32 %v1939_v9, %v212_v1  ;;  %v1738_v47 = vunpack.c.l.bf16 %v1773_v29 }
  0x43   :  { %v1739_v48 = vunpack.c.h.bf16 %v1773_v29  ;;  %v213_v49 = vmul.f32 %v1734_v41, %v1925_v3  ;;  %v344_v50 = vmax.f32 %v280_v40, 0.0  ;;  %v214_v52 = vmul.f32 %v1735_v45, %v1925_v3 }
  0x44   :  { %v345_v51 = vmax.f32 %v281_v44, 0.0  ;;  %v346_v30 = vmax.f32 %v282_v46, 0.0  ;;  %v347_v53 = vmax.f32 %v283_v20, 0.0  ;;  %v215_v54 = vmul.f32 %v1738_v47, %v1925_v3 }
  0x45   :  { %v216_v55 = vmul.f32 %v1739_v48, %v1925_v3  ;;  %v284_v34 = vadd.f32 %v1939_v9, %v213_v49  ;;  %v285_v57 = vadd.f32 %v1939_v9, %v214_v52  ;;  %v1742_v58 = vunpack.c.l.bf16 %v1774_v18 }
  0x46   :  { %1842 = vmatmul.mubr.msk.bf16.gmra.mrb[28].mxu0 %vm402_vm0, %v369_v10  ;;  %1858 = vmatmul.mubr.msk.bf16.gmra.mrb[12].mxu1 %vm402_vm0, %v377_v19  ;;  %v381_v56 = vpack.c.bf16 %v345_v51, %v344_v50  ;;  %v1743_v59 = vunpack.c.h.bf16 %v1774_v18  ;;  %v382_v60 = vpack.c.bf16 %v347_v53, %v346_v30  ;;  %v286_v61 = vadd.f32 %v1939_v9, %v215_v54 }
  0x47   :  { %1861 = vmatprep.mubr.msk.bf16.mxu1 %vm402_vm0, %v378_v32  ;;  %v287_v62 = vadd.f32 %v1939_v9, %v216_v55  ;;  %v348_v63 = vmax.f32 %v284_v34, 0.0  ;;  %v349_v0 = vmax.f32 %v285_v57, 0.0  ;;  %v217_v2 = vmul.f32 %v1742_v58, %v1925_v3 }
  0x48   :  { %v218_v4 = vmul.f32 %v1743_v59, %v1925_v3  ;;  %v350_v5 = vmax.f32 %v286_v61, 0.0 }
  0x49   :  { %v351_v7 = vmax.f32 %v287_v62, 0.0  ;;  %v383_v8 = vpack.c.bf16 %v349_v0, %v348_v63  ;;  %v288_v10 = vadd.f32 %v1939_v9, %v217_v2 }
  0x4a   :  { %v289_v11 = vadd.f32 %v1939_v9, %v218_v4 }
  0x4b   :  { %v384_v12 = vpack.c.bf16 %v351_v7, %v350_v5  ;;  %v352_v13 = vmax.f32 %v288_v10, 0.0 }
  0x4c   :  { %v353_v14 = vmax.f32 %v289_v11, 0.0 }
  0x4e   :  { %1862 = vmatmul.mubr.msk.bf16.gmra.mrb[16].mxu1 %vm402_vm0, %v379_v42  ;;  %v385_v15 = vpack.c.bf16 %v353_v14, %v352_v13 }
  0x4f   :  { %1865 = vmatprep.mubr.msk.bf16.mxu1 %vm402_vm0, %v380_v43 }
  0x56   :  { %1866 = vmatmul.mubr.msk.bf16.gmra.mrb[20].mxu1 %vm402_vm0, %v381_v56 }
  0x57   :  { %1869 = vmatprep.mubr.msk.bf16.mxu1 %vm402_vm0, %v382_v60 }
  0x5e   :  { %1870 = vmatmul.mubr.msk.bf16.gmra.mrb[24].mxu1 %vm402_vm0, %v383_v8 }
  0x5f   :  { %1873 = vmatprep.mubr.msk.bf16.mxu1 %vm402_vm0, %v384_v12 }
  0x66   :  { %1874 = vmatmul.mubr.msk.bf16.gmra.mrb[28].mxu1 %vm402_vm0, %v385_v15 }
  0xe1   :  { %v1815_v3 = vpop.f32.mrb[0].mxu0 }
  0xe2   :  { %v1554_v16 = vpack.c.bf16 %v1815_v3, %v1815_v3  ;;  %v533_v17 = vpop.f32.mrb[1].mxu0  ;;  %v1245_v9 = vmul.f32 %v1815_v3, %v1815_v3  ;;  %v1113_v37 = vsel %vm1109_vm2, %v1815_v3, 0.0 }
  0xe3   :  { %v1552_v19 = vpack.c.bf16 %v533_v17, %v533_v17  ;;  %v1243_v22 = vmul.f32 %v533_v17, %v533_v17  ;;  %v1816_v23 = vpop.f32.mrb[2].mxu0  ;;  %v1110_v28 = vsel %vm1109_vm2, %v533_v17, 0.0 }
  0xe4   :  { %1047 = vst.msk [vmem:[%s2834_s4 + $0x8] sm:$0xf] %vm1044_vm1, %v1554_v16  ;;  %v1555_v24 = vpack.c.bf16 %v1816_v23, %v1816_v23  ;;  %v536_v27 = vpop.f32.mrb[3].mxu0  ;;  %v1246_v35 = vmul.f32 %v1816_v23, %v1816_v23  ;;  %v1310_v39 = vsel %vm1109_vm2, %v1245_v9, 0.0  ;;  %v1115_v1 = vsel %vm1109_vm2, %v1816_v23, 0.0 }
  0xe5   :  { %1045 = vst.msk [vmem:[%s2834_s4] sm:$0xf] %vm1044_vm1, %v1552_v19  ;;  %v1553_v31 = vpack.c.bf16 %v536_v27, %v536_v27  ;;  %v1111_v32 = vsel %vm1109_vm2, %v536_v27, 0.0  ;;  %v1244_v33 = vmul.f32 %v536_v27, %v536_v27  ;;  %v1307_v6 = vsel %vm1109_vm2, %v1243_v22, 0.0 }
  0xe6   :  { %1048 = vst.msk [vmem:[%s2834_s4 + $0xc] sm:$0xf] %vm1044_vm1, %v1555_v24  ;;  %v1112_v36 = vadd.f32 %v1111_v32, %v1110_v28  ;;  %v1312_v29 = vsel %vm1109_vm2, %v1246_v35, 0.0 }
  0xe7   :  { %1046 = vst.msk [vmem:[%s2834_s4 + $0x4] sm:$0xf] %vm1044_vm1, %v1553_v31  ;;  %v1308_v21 = vsel %vm1109_vm2, %v1244_v33, 0.0 }
  0xe8   :  { %v1114_v25 = vadd.f32 %v1113_v37, %v1112_v36  ;;  %v1309_v26 = vadd.f32 %v1308_v21, %v1307_v6 }
  0xe9   :  { %v1819_v38 = vpop.f32.mrb[4].mxu0 }
  0xea   :  { %v1311_v40 = vadd.f32 %v1310_v39, %v1309_v26  ;;  %v1558_v41 = vpack.c.bf16 %v1819_v38, %v1819_v38  ;;  %v549_v42 = vpop.f32.mrb[5].mxu0  ;;  %v1116_v44 = vadd.f32 %v1115_v1, %v1114_v25  ;;  %v1249_v30 = vmul.f32 %v1819_v38, %v1819_v38 }
  0xeb   :  { %v1556_v43 = vpack.c.bf16 %v549_v42, %v549_v42  ;;  %v1117_v45 = vsel %vm1109_vm2, %v549_v42, 0.0  ;;  %v1247_v46 = vmul.f32 %v549_v42, %v549_v42  ;;  %v1820_v20 = vpop.f32.mrb[6].mxu0  ;;  %v1121_v34 = vsel %vm1109_vm2, %v1819_v38, 0.0 }
  0xec   :  { %1051 = vst.msk [vmem:[%s2834_s4 + $0x18] sm:$0xf] %vm1044_vm1, %v1558_v41  ;;  %v1313_v47 = vadd.f32 %v1312_v29, %v1311_v40  ;;  %v1559_v48 = vpack.c.bf16 %v1820_v20, %v1820_v20  ;;  %v552_v49 = vpop.f32.mrb[7].mxu0  ;;  %v1118_v50 = vadd.f32 %v1117_v45, %v1116_v44  ;;  %v1250_v56 = vmul.f32 %v1820_v20, %v1820_v20 }
  0xed   :  { %1049 = vst.msk [vmem:[%s2834_s4 + $0x10] sm:$0xf] %vm1044_vm1, %v1556_v43  ;;  %v1314_v51 = vsel %vm1109_vm2, %v1247_v46, 0.0  ;;  %v1557_v52 = vpack.c.bf16 %v552_v49, %v552_v49  ;;  %v1119_v54 = vsel %vm1109_vm2, %v552_v49, 0.0  ;;  %v1248_v55 = vmul.f32 %v552_v49, %v552_v49 }
  0xee   :  { %v1315_v53 = vadd.f32 %v1314_v51, %v1313_v47  ;;  %1052 = vst.msk [vmem:[%s2834_s4 + $0x1c] sm:$0xf] %vm1044_vm1, %v1559_v48  ;;  %v1120_v18 = vadd.f32 %v1119_v54, %v1118_v50  ;;  %v1318_v61 = vsel %vm1109_vm2, %v1249_v30, 0.0  ;;  %v1123_v62 = vsel %vm1109_vm2, %v1820_v20, 0.0 }
  0xef   :  { %1050 = vst.msk [vmem:[%s2834_s4 + $0x14] sm:$0xf] %vm1044_vm1, %v1557_v52  ;;  %v1316_v57 = vsel %vm1109_vm2, %v1248_v55, 0.0  ;;  %v1320_v10 = vsel %vm1109_vm2, %v1250_v56, 0.0 }
  0xf0   :  { %v1122_v58 = vadd.f32 %v1121_v34, %v1120_v18  ;;  %v1317_v59 = vadd.f32 %v1316_v57, %v1315_v53 }
  0xf1   :  { %v1823_v60 = vpop.f32.mrb[8].mxu0 }
  0xf2   :  { %v1562_v63 = vpack.c.bf16 %v1823_v60, %v1823_v60  ;;  %v565_v0 = vpop.f32.mrb[9].mxu0  ;;  %v1319_v2 = vadd.f32 %v1318_v61, %v1317_v59  ;;  %v1124_v5 = vadd.f32 %v1123_v62, %v1122_v58  ;;  %v1253_v16 = vmul.f32 %v1823_v60, %v1823_v60 }
  0xf3   :  { %v1560_v4 = vpack.c.bf16 %v565_v0, %v565_v0  ;;  %v1125_v7 = vsel %vm1109_vm2, %v565_v0, 0.0  ;;  %v1824_v8 = vpop.f32.mrb[10].mxu0  ;;  %v1251_v11 = vmul.f32 %v565_v0, %v565_v0  ;;  %v1129_v24 = vsel %vm1109_vm2, %v1823_v60, 0.0 }
  0xf4   :  { %1055 = vst.msk [vmem:[%s2834_s4 + $0x28] sm:$0xf] %vm1044_vm1, %v1562_v63  ;;  %v1563_v12 = vpack.c.bf16 %v1824_v8, %v1824_v8  ;;  %v568_v13 = vpop.f32.mrb[11].mxu0  ;;  %v1126_v14 = vadd.f32 %v1125_v7, %v1124_v5  ;;  %v1321_v15 = vadd.f32 %v1320_v10, %v1319_v2  ;;  %v1254_v27 = vmul.f32 %v1824_v8, %v1824_v8 }
  0xf5   :  { %1053 = vst.msk [vmem:[%s2834_s4 + $0x20] sm:$0xf] %vm1044_vm1, %v1560_v4  ;;  %v1561_v3 = vpack.c.bf16 %v568_v13, %v568_v13  ;;  %v1322_v17 = vsel %vm1109_vm2, %v1251_v11, 0.0  ;;  %v1127_v19 = vsel %vm1109_vm2, %v568_v13, 0.0  ;;  %v1252_v22 = vmul.f32 %v568_v13, %v568_v13 }
  0xf6   :  { %1056 = vst.msk [vmem:[%s2834_s4 + $0x2c] sm:$0xf] %vm1044_vm1, %v1563_v12  ;;  %v1323_v23 = vadd.f32 %v1322_v17, %v1321_v15  ;;  %v1128_v9 = vadd.f32 %v1127_v19, %v1126_v14  ;;  %v1326_v35 = vsel %vm1109_vm2, %v1253_v16, 0.0  ;;  %v1131_v36 = vsel %vm1109_vm2, %v1824_v8, 0.0 }
  0xf7   :  { %1054 = vst.msk [vmem:[%s2834_s4 + $0x24] sm:$0xf] %vm1044_vm1, %v1561_v3  ;;  %v1324_v28 = vsel %vm1109_vm2, %v1252_v22, 0.0  ;;  %v1328_v1 = vsel %vm1109_vm2, %v1254_v27, 0.0 }
  0xf8   :  { %v1130_v31 = vadd.f32 %v1129_v24, %v1128_v9  ;;  %v1325_v32 = vadd.f32 %v1324_v28, %v1323_v23 }
  0xf9   :  { %v1827_v33 = vpop.f32.mrb[12].mxu0 }
  0xfa   :  { %v1566_v37 = vpack.c.bf16 %v1827_v33, %v1827_v33  ;;  %v581_v6 = vpop.f32.mrb[13].mxu0  ;;  %v1327_v21 = vadd.f32 %v1326_v35, %v1325_v32  ;;  %v1132_v26 = vadd.f32 %v1131_v36, %v1130_v31  ;;  %v1257_v45 = vmul.f32 %v1827_v33, %v1827_v33 }
  0xfb   :  { %v1564_v25 = vpack.c.bf16 %v581_v6, %v581_v6  ;;  %v1133_v39 = vsel %vm1109_vm2, %v581_v6, 0.0  ;;  %v1828_v38 = vpop.f32.mrb[14].mxu0  ;;  %v1255_v29 = vmul.f32 %v581_v6, %v581_v6  ;;  %v1137_v50 = vsel %vm1109_vm2, %v1827_v33, 0.0 }
  0xfc   :  { %1059 = vst.msk [vmem:[%s2834_s4 + $0x38] sm:$0xf] %vm1044_vm1, %v1566_v37  ;;  %v1567_v40 = vpack.c.bf16 %v1828_v38, %v1828_v38  ;;  %v584_v41 = vpop.f32.mrb[15].mxu0  ;;  %v1134_v42 = vadd.f32 %v1133_v39, %v1132_v26  ;;  %v1329_v43 = vadd.f32 %v1328_v1, %v1327_v21  ;;  %v1258_v51 = vmul.f32 %v1828_v38, %v1828_v38 }
  0xfd   :  { %1057 = vst.msk [vmem:[%s2834_s4 + $0x30] sm:$0xf] %vm1044_vm1, %v1564_v25  ;;  %v1565_v44 = vpack.c.bf16 %v584_v41, %v584_v41  ;;  %v1330_v46 = vsel %vm1109_vm2, %v1255_v29, 0.0  ;;  %v1135_v20 = vsel %vm1109_vm2, %v584_v41, 0.0  ;;  %v1256_v47 = vmul.f32 %v584_v41, %v584_v41 }
  0xfe   :  { %1060 = vst.msk [vmem:[%s2834_s4 + $0x3c] sm:$0xf] %vm1044_vm1, %v1567_v40  ;;  %v1331_v48 = vadd.f32 %v1330_v46, %v1329_v43  ;;  %v1136_v49 = vadd.f32 %v1135_v20, %v1134_v42  ;;  %v1334_v55 = vsel %vm1109_vm2, %v1257_v45, 0.0  ;;  %v1139_v18 = vsel %vm1109_vm2, %v1828_v38, 0.0 }
  0xff   :  { %1058 = vst.msk [vmem:[%s2834_s4 + $0x34] sm:$0xf] %vm1044_vm1, %v1565_v44  ;;  %v1332_v52 = vsel %vm1109_vm2, %v1256_v47, 0.0  ;;  %v1336_v62 = vsel %vm1109_vm2, %v1258_v51, 0.0 }
 0x100   :  { %v1138_v30 = vadd.f32 %v1137_v50, %v1136_v49  ;;  %v1333_v53 = vadd.f32 %v1332_v52, %v1331_v48 }
 0x101   :  { %v1831_v54 = vpop.f32.mrb[16].mxu0  ;;  %v2324_v10 = vpop.f32.mrb[0].mxu1 }
 0x102   :  { %v1570_v34 = vpack.c.bf16 %v1831_v54, %v1831_v54  ;;  %v597_v56 = vpop.f32.mrb[17].mxu0  ;;  %v1335_v57 = vadd.f32 %v1334_v55, %v1333_v53  ;;  %v1140_v59 = vadd.f32 %v1139_v18, %v1138_v30  ;;  %v1261_v4 = vmul.f32 %v1831_v54, %v1831_v54  ;;  %v2334_v15 = vpop.f32.mrb[1].mxu1 }
 0x103   :  { %v1568_v58 = vpack.c.bf16 %v597_v56, %v597_v56  ;;  %v1141_v60 = vsel %vm1109_vm2, %v597_v56, 0.0  ;;  %v1832_v61 = vpop.f32.mrb[18].mxu0  ;;  %v1259_v63 = vmul.f32 %v597_v56, %v597_v56  ;;  %v1586_v14 = vpack.c.bf16 %v2324_v10, %v2324_v10  ;;  %v2340_v17 = vpop.f32.mrb[2].mxu1 }
 0x104   :  { %1063 = vst.msk [vmem:[%s2834_s4 + $0x48] sm:$0xf] %vm1044_vm1, %v1570_v34  ;;  %v1571_v0 = vpack.c.bf16 %v1832_v61, %v1832_v61  ;;  %v600_v2 = vpop.f32.mrb[19].mxu0  ;;  %v1142_v5 = vadd.f32 %v1141_v60, %v1140_v59  ;;  %v1337_v7 = vadd.f32 %v1336_v62, %v1335_v57  ;;  %v1145_v19 = vsel %vm1109_vm2, %v1831_v54, 0.0  ;;  %v2350_v24 = vpop.f32.mrb[3].mxu1 }
 0x105   :  { %1061 = vst.msk [vmem:[%s2834_s4 + $0x40] sm:$0xf] %vm1044_vm1, %v1568_v58  ;;  %v1569_v8 = vpack.c.bf16 %v600_v2, %v600_v2  ;;  %v1338_v11 = vsel %vm1109_vm2, %v1259_v63, 0.0  ;;  %v1143_v12 = vsel %vm1109_vm2, %v600_v2, 0.0  ;;  %v1260_v13 = vmul.f32 %v600_v2, %v600_v2  ;;  %1079 = vst.msk [vmem:[%s2834_s4 + $0x88] sm:$0xf] %vm1044_vm1, %v1586_v14 }
 0x106   :  { %1064 = vst.msk [vmem:[%s2834_s4 + $0x4c] sm:$0xf] %vm1044_vm1, %v1571_v0  ;;  %v1339_v3 = vadd.f32 %v1338_v11, %v1337_v7  ;;  %v1144_v16 = vadd.f32 %v1143_v12, %v1142_v5  ;;  %v1262_v22 = vmul.f32 %v1832_v61, %v1832_v61  ;;  %v1584_v9 = vpack.c.bf16 %v2334_v15, %v2334_v15 }
 0x107   :  { %1062 = vst.msk [vmem:[%s2834_s4 + $0x44] sm:$0xf] %vm1044_vm1, %v1569_v8  ;;  %v1340_v23 = vsel %vm1109_vm2, %v1260_v13, 0.0  ;;  %v1587_v32 = vpack.c.bf16 %v2340_v17, %v2340_v17  ;;  %v1342_v33 = vsel %vm1109_vm2, %v1261_v4, 0.0  ;;  %v1147_v35 = vsel %vm1109_vm2, %v1832_v61, 0.0 }
 0x108   :  { %v1146_v27 = vadd.f32 %v1145_v19, %v1144_v16  ;;  %v1341_v28 = vadd.f32 %v1340_v23, %v1339_v3  ;;  %1077 = vst.msk [vmem:[%s2834_s4 + $0x80] sm:$0xf] %vm1044_vm1, %v1584_v9  ;;  %v1344_v38 = vsel %vm1109_vm2, %v1262_v22, 0.0  ;;  %v1585_v54 = vpack.c.bf16 %v2350_v24, %v2350_v24 }
 0x109   :  { %v1835_v31 = vpop.f32.mrb[20].mxu0  ;;  %1080 = vst.msk [vmem:[%s2834_s4 + $0x8c] sm:$0xf] %vm1044_vm1, %v1587_v32  ;;  %v2374_v44 = vpop.f32.mrb[4].mxu1 }
 0x10a   :  { %v1574_v36 = vpack.c.bf16 %v1835_v31, %v1835_v31  ;;  %v613_v37 = vpop.f32.mrb[21].mxu0  ;;  %v1343_v6 = vadd.f32 %v1342_v33, %v1341_v28  ;;  %v1148_v25 = vadd.f32 %v1147_v35, %v1146_v27  ;;  %v1265_v45 = vmul.f32 %v1835_v31, %v1835_v31  ;;  %v2382_v48 = vpop.f32.mrb[5].mxu1  ;;  %1078 = vst.msk [vmem:[%s2834_s4 + $0x84] sm:$0xf] %vm1044_vm1, %v1585_v54 }
 0x10b   :  { %v1572_v21 = vpack.c.bf16 %v613_v37, %v613_v37  ;;  %v1149_v26 = vsel %vm1109_vm2, %v613_v37, 0.0  ;;  %v1836_v39 = vpop.f32.mrb[22].mxu0  ;;  %v1263_v1 = vmul.f32 %v613_v37, %v613_v37  ;;  %v2388_v51 = vpop.f32.mrb[6].mxu1  ;;  %v1153_v52 = vsel %vm1109_vm2, %v1835_v31, 0.0 }
 0x10c   :  { %1067 = vst.msk [vmem:[%s2834_s4 + $0x58] sm:$0xf] %vm1044_vm1, %v1574_v36  ;;  %v1575_v29 = vpack.c.bf16 %v1836_v39, %v1836_v39  ;;  %v616_v40 = vpop.f32.mrb[23].mxu0  ;;  %v1150_v41 = vadd.f32 %v1149_v26, %v1148_v25  ;;  %v1345_v42 = vadd.f32 %v1344_v38, %v1343_v6  ;;  %v1266_v30 = vmul.f32 %v1836_v39, %v1836_v39  ;;  %v2394_v55 = vpop.f32.mrb[7].mxu1 }
 0x10d   :  { %1065 = vst.msk [vmem:[%s2834_s4 + $0x50] sm:$0xf] %vm1044_vm1, %v1572_v21  ;;  %v1573_v43 = vpack.c.bf16 %v616_v40, %v616_v40  ;;  %v1346_v46 = vsel %vm1109_vm2, %v1263_v1, 0.0  ;;  %v1151_v20 = vsel %vm1109_vm2, %v616_v40, 0.0  ;;  %v1264_v47 = vmul.f32 %v616_v40, %v616_v40 }
 0x10e   :  { %1068 = vst.msk [vmem:[%s2834_s4 + $0x5c] sm:$0xf] %vm1044_vm1, %v1575_v29  ;;  %v1347_v49 = vadd.f32 %v1346_v46, %v1345_v42  ;;  %v1152_v50 = vadd.f32 %v1151_v20, %v1150_v41  ;;  %v1590_v57 = vpack.c.bf16 %v2374_v44, %v2374_v44  ;;  %v1350_v58 = vsel %vm1109_vm2, %v1265_v45, 0.0 }
 0x10f   :  { %1066 = vst.msk [vmem:[%s2834_s4 + $0x54] sm:$0xf] %vm1044_vm1, %v1573_v43  ;;  %v1348_v53 = vsel %vm1109_vm2, %v1264_v47, 0.0  ;;  %v1155_v59 = vsel %vm1109_vm2, %v1836_v39, 0.0  ;;  %v1352_v5 = vsel %vm1109_vm2, %v1266_v30, 0.0  ;;  %v1588_v36 = vpack.c.bf16 %v2382_v48, %v2382_v48 }
 0x110   :  { %v1154_v18 = vadd.f32 %v1153_v52, %v1152_v50  ;;  %v1349_v34 = vadd.f32 %v1348_v53, %v1347_v49  ;;  %1083 = vst.msk [vmem:[%s2834_s4 + $0x98] sm:$0xf] %vm1044_vm1, %v1590_v57  ;;  %v1591_v26 = vpack.c.bf16 %v2388_v51, %v2388_v51 }
 0x111   :  { %v1839_v56 = vpop.f32.mrb[24].mxu0  ;;  %v2418_v3 = vpop.f32.mrb[8].mxu1  ;;  %1081 = vst.msk [vmem:[%s2834_s4 + $0x90] sm:$0xf] %vm1044_vm1, %v1588_v36  ;;  %v1277_v36 = vmul.f32 %v2324_v10, %v2324_v10 }
 0x112   :  { %v1578_v60 = vpack.c.bf16 %v1839_v56, %v1839_v56  ;;  %v629_v61 = vpop.f32.mrb[25].mxu0  ;;  %v1351_v62 = vadd.f32 %v1350_v58, %v1349_v34  ;;  %v1156_v0 = vadd.f32 %v1155_v59, %v1154_v18  ;;  %v1269_v16 = vmul.f32 %v1839_v56, %v1839_v56  ;;  %v2426_v9 = vpop.f32.mrb[9].mxu1  ;;  %1084 = vst.msk [vmem:[%s2834_s4 + $0x9c] sm:$0xf] %vm1044_vm1, %v1591_v26 }
 0x113   :  { %v1576_v63 = vpack.c.bf16 %v629_v61, %v629_v61  ;;  %v1157_v2 = vsel %vm1109_vm2, %v629_v61, 0.0  ;;  %v1840_v4 = vpop.f32.mrb[26].mxu0  ;;  %v1267_v7 = vmul.f32 %v629_v61, %v629_v61  ;;  %v2432_v31 = vpop.f32.mrb[10].mxu1  ;;  %v1161_v32 = vsel %vm1109_vm2, %v1839_v56, 0.0 }
 0x114   :  { %1071 = vst.msk [vmem:[%s2834_s4 + $0x68] sm:$0xf] %vm1044_vm1, %v1578_v60  ;;  %v1579_v8 = vpack.c.bf16 %v1840_v4, %v1840_v4  ;;  %v632_v11 = vpop.f32.mrb[27].mxu0  ;;  %v1158_v12 = vadd.f32 %v1157_v2, %v1156_v0  ;;  %v1353_v13 = vadd.f32 %v1352_v5, %v1351_v62  ;;  %v1270_v33 = vmul.f32 %v1840_v4, %v1840_v4  ;;  %v2438_v37 = vpop.f32.mrb[11].mxu1 }
 0x115   :  { %1069 = vst.msk [vmem:[%s2834_s4 + $0x60] sm:$0xf] %vm1044_vm1, %v1576_v63  ;;  %v1577_v14 = vpack.c.bf16 %v632_v11, %v632_v11  ;;  %v1354_v19 = vsel %vm1109_vm2, %v1267_v7, 0.0  ;;  %v1159_v22 = vsel %vm1109_vm2, %v632_v11, 0.0  ;;  %v1268_v23 = vmul.f32 %v632_v11, %v632_v11 }
 0x116   :  { %1072 = vst.msk [vmem:[%s2834_s4 + $0x6c] sm:$0xf] %vm1044_vm1, %v1579_v8  ;;  %v1355_v27 = vadd.f32 %v1354_v19, %v1353_v13  ;;  %v1160_v28 = vadd.f32 %v1159_v22, %v1158_v12  ;;  %v1358_v39 = vsel %vm1109_vm2, %v1269_v16, 0.0  ;;  %v1163_v38 = vsel %vm1109_vm2, %v1840_v4, 0.0 }
 0x117   :  { %1070 = vst.msk [vmem:[%s2834_s4 + $0x64] sm:$0xf] %vm1044_vm1, %v1577_v14  ;;  %v1356_v35 = vsel %vm1109_vm2, %v1268_v23, 0.0  ;;  %v1360_v46 = vsel %vm1109_vm2, %v1270_v33, 0.0  ;;  %v1275_v60 = vmul.f32 %v2334_v15, %v2334_v15  ;;  %v1589_v2 = vpack.c.bf16 %v2394_v55, %v2394_v55 }
 0x118   :  { %v1162_v6 = vadd.f32 %v1161_v32, %v1160_v28  ;;  %v1357_v21 = vadd.f32 %v1356_v35, %v1355_v27  ;;  %v1594_v8 = vpack.c.bf16 %v2418_v3, %v2418_v3  ;;  %v1173_v13 = vsel %vm1109_vm2, %v2334_v15, 0.0 }
 0x119   :  { %v1843_v25 = vpop.f32.mrb[28].mxu0  ;;  %v2462_v53 = vpop.f32.mrb[12].mxu1  ;;  %1082 = vst.msk [vmem:[%s2834_s4 + $0x94] sm:$0xf] %vm1044_vm1, %v1589_v2  ;;  %v1592_v14 = vpack.c.bf16 %v2426_v9, %v2426_v9  ;;  %v1370_v23 = vsel %vm1109_vm2, %v1275_v60, 0.0  ;;  %v1276_v15 = vmul.f32 %v2350_v24, %v2350_v24  ;;  %v1595_v27 = vpack.c.bf16 %v2432_v31, %v2432_v31 }
 0x11a   :  { %v1582_v1 = vpack.c.bf16 %v1843_v25, %v1843_v25  ;;  %v645_v29 = vpop.f32.mrb[29].mxu0  ;;  %v1359_v40 = vadd.f32 %v1358_v39, %v1357_v21  ;;  %v1164_v42 = vadd.f32 %v1163_v38, %v1162_v6  ;;  %v1273_v54 = vmul.f32 %v1843_v25, %v1843_v25  ;;  %v2470_v57 = vpop.f32.mrb[13].mxu1  ;;  %1087 = vst.msk [vmem:[%s2834_s4 + $0xa8] sm:$0xf] %vm1044_vm1, %v1594_v8 }
 0x11b   :  { %v1580_v41 = vpack.c.bf16 %v645_v29, %v645_v29  ;;  %v1165_v43 = vsel %vm1109_vm2, %v645_v29, 0.0  ;;  %v1844_v45 = vpop.f32.mrb[30].mxu0  ;;  %v1271_v20 = vmul.f32 %v645_v29, %v645_v29  ;;  %v2478_v61 = vpop.f32.mrb[14].mxu1  ;;  %v1169_v62 = vsel %vm1109_vm2, %v1843_v25, 0.0  ;;  %1085 = vst.msk [vmem:[%s2834_s4 + $0xa0] sm:$0xf] %vm1044_vm1, %v1592_v14 }
 0x11c   :  { %1075 = vst.msk [vmem:[%s2834_s4 + $0x78] sm:$0xf] %vm1044_vm1, %v1582_v1  ;;  %v1583_v47 = vpack.c.bf16 %v1844_v45, %v1844_v45  ;;  %v648_v49 = vpop.f32.mrb[31].mxu0  ;;  %v1166_v50 = vadd.f32 %v1165_v43, %v1164_v42  ;;  %v1361_v52 = vadd.f32 %v1360_v46, %v1359_v40  ;;  %v1274_v63 = vmul.f32 %v1844_v45, %v1844_v45  ;;  %v2484_v4 = vpop.f32.mrb[15].mxu1 }
 0x11d   :  { %1073 = vst.msk [vmem:[%s2834_s4 + $0x70] sm:$0xf] %vm1044_vm1, %v1580_v41  ;;  %v1581_v30 = vpack.c.bf16 %v648_v49, %v648_v49  ;;  %v1362_v18 = vsel %vm1109_vm2, %v1271_v20, 0.0  ;;  %v1167_v34 = vsel %vm1109_vm2, %v648_v49, 0.0  ;;  %v1272_v56 = vmul.f32 %v648_v49, %v648_v49  ;;  %1088 = vst.msk [vmem:[%s2834_s4 + $0xac] sm:$0xf] %vm1044_vm1, %v1595_v27 }
 0x11e   :  { %1076 = vst.msk [vmem:[%s2834_s4 + $0x7c] sm:$0xf] %vm1044_vm1, %v1583_v47  ;;  %v1363_v58 = vadd.f32 %v1362_v18, %v1361_v52  ;;  %v1168_v59 = vadd.f32 %v1167_v34, %v1166_v50  ;;  %v1366_v11 = vsel %vm1109_vm2, %v1273_v54, 0.0  ;;  %v1171_v12 = vsel %vm1109_vm2, %v1844_v45, 0.0 }
 0x11f   :  { %1074 = vst.msk [vmem:[%s2834_s4 + $0x74] sm:$0xf] %vm1044_vm1, %v1581_v30  ;;  %v1364_v0 = vsel %vm1109_vm2, %v1272_v56, 0.0  ;;  %v1368_v22 = vsel %vm1109_vm2, %v1274_v63, 0.0  ;;  %v1593_v33 = vpack.c.bf16 %v2438_v37, %v2438_v37  ;;  %v1175_v6 = vsel %vm1109_vm2, %v2350_v24, 0.0 }
 0x120   :  { %v1170_v5 = vadd.f32 %v1169_v62, %v1168_v59  ;;  %v1365_v7 = vadd.f32 %v1364_v0, %v1363_v58  ;;  %v1598_v21 = vpack.c.bf16 %v2462_v53, %v2462_v53  ;;  %v1177_v26 = vsel %vm1109_vm2, %v2324_v10, 0.0 }
 0x121   :  { %v2514_v35 = vpop.f32.mrb[16].mxu1  ;;  %1086 = vst.msk [vmem:[%s2834_s4 + $0xa4] sm:$0xf] %vm1044_vm1, %v1593_v33  ;;  %v1278_v1 = vmul.f32 %v2340_v17, %v2340_v17  ;;  %v1372_v29 = vsel %vm1109_vm2, %v1276_v15, 0.0  ;;  %v1279_v40 = vmul.f32 %v2382_v48, %v2382_v48  ;;  %v1596_v10 = vpack.c.bf16 %v2470_v57, %v2470_v57 }
 0x122   :  { %v1367_v16 = vadd.f32 %v1366_v11, %v1365_v7  ;;  %v1172_v19 = vadd.f32 %v1171_v12, %v1170_v5  ;;  %v2526_v25 = vpop.f32.mrb[17].mxu1  ;;  %1091 = vst.msk [vmem:[%s2834_s4 + $0xb8] sm:$0xf] %vm1044_vm1, %v1598_v21  ;;  %v1599_v45 = vpack.c.bf16 %v2478_v61, %v2478_v61  ;;  %v1374_v46 = vsel %vm1109_vm2, %v1277_v36, 0.0 }
 0x123   :  { %v2534_v24 = vpop.f32.mrb[18].mxu1  ;;  %v1179_v20 = vsel %vm1109_vm2, %v2340_v17, 0.0  ;;  %v1181_v47 = vsel %vm1109_vm2, %v2382_v48, 0.0  ;;  %1089 = vst.msk [vmem:[%s2834_s4 + $0xb0] sm:$0xf] %vm1044_vm1, %v1596_v10  ;;  %v1597_v49 = vpack.c.bf16 %v2484_v4, %v2484_v4  ;;  %v1376_v17 = vsel %vm1109_vm2, %v1278_v1, 0.0 }
 0x124   :  { %v1174_v28 = vadd.f32 %v1173_v13, %v1172_v19  ;;  %v1369_v32 = vadd.f32 %v1368_v22, %v1367_v16  ;;  %v2547_v41 = vpop.f32.mrb[19].mxu1  ;;  %1092 = vst.msk [vmem:[%s2834_s4 + $0xbc] sm:$0xf] %vm1044_vm1, %v1599_v45  ;;  %v1378_v30 = vsel %vm1109_vm2, %v1279_v40, 0.0  ;;  %v1280_v48 = vmul.f32 %v2394_v55, %v2394_v55 }
 0x125   :  { %1090 = vst.msk [vmem:[%s2834_s4 + $0xb4] sm:$0xf] %vm1044_vm1, %v1597_v49  ;;  %v1602_v54 = vpack.c.bf16 %v2514_v35, %v2514_v35  ;;  %v1600_v56 = vpack.c.bf16 %v2526_v25, %v2526_v25  ;;  %v1281_v59 = vmul.f32 %v2374_v44, %v2374_v44  ;;  %v1183_v60 = vsel %vm1109_vm2, %v2394_v55, 0.0 }
 0x126   :  { %v1371_v39 = vadd.f32 %v1370_v23, %v1369_v32  ;;  %v1176_v38 = vadd.f32 %v1175_v6, %v1174_v28  ;;  %v1603_v62 = vpack.c.bf16 %v2534_v24, %v2534_v24  ;;  %v1185_v0 = vsel %vm1109_vm2, %v2374_v44, 0.0 }
 0x127   :  { %1095 = vst.msk [vmem:[%s2834_s4 + $0xc8] sm:$0xf] %vm1044_vm1, %v1602_v54  ;;  %1093 = vst.msk [vmem:[%s2834_s4 + $0xc0] sm:$0xf] %vm1044_vm1, %v1600_v56  ;;  %v1282_v7 = vmul.f32 %v2388_v51, %v2388_v51  ;;  %v1380_v8 = vsel %vm1109_vm2, %v1280_v48, 0.0  ;;  %v1283_v11 = vmul.f32 %v2426_v9, %v2426_v9  ;;  %v1601_v44 = vpack.c.bf16 %v2547_v41, %v2547_v41 }
 0x128   :  { %v1178_v42 = vadd.f32 %v1177_v26, %v1176_v38  ;;  %v1373_v43 = vadd.f32 %v1372_v29, %v1371_v39  ;;  %1096 = vst.msk [vmem:[%s2834_s4 + $0xcc] sm:$0xf] %vm1044_vm1, %v1603_v62  ;;  %v1382_v19 = vsel %vm1109_vm2, %v1281_v59, 0.0  ;;  %v1187_v22 = vsel %vm1109_vm2, %v2388_v51, 0.0 }
 0x129   :  { %v2578_v58 = vpop.f32.mrb[20].mxu1  ;;  %v1189_v23 = vsel %vm1109_vm2, %v2426_v9, 0.0  ;;  %1094 = vst.msk [vmem:[%s2834_s4 + $0xc4] sm:$0xf] %vm1044_vm1, %v1601_v44  ;;  %v1384_v51 = vsel %vm1109_vm2, %v1282_v7, 0.0  ;;  %v1386_v32 = vsel %vm1109_vm2, %v1283_v11, 0.0  ;;  %v1284_v9 = vmul.f32 %v2438_v37, %v2438_v37 }
 0x12a   :  { %v1375_v50 = vadd.f32 %v1374_v46, %v1373_v43  ;;  %v1180_v52 = vadd.f32 %v1179_v20, %v1178_v42  ;;  %v2590_v63 = vpop.f32.mrb[21].mxu1  ;;  %v1606_v16 = vpack.c.bf16 %v2578_v58, %v2578_v58  ;;  %v1285_v39 = vmul.f32 %v2418_v3, %v2418_v3 }
 0x12b   :  { %v2598_v55 = vpop.f32.mrb[22].mxu1  ;;  %v1604_v15 = vpack.c.bf16 %v2590_v63, %v2590_v63  ;;  %v1191_v38 = vsel %vm1109_vm2, %v2438_v37, 0.0  ;;  %v1193_v40 = vsel %vm1109_vm2, %v2418_v3, 0.0  ;;  %v1286_v43 = vmul.f32 %v2432_v31, %v2432_v31 }
 0x12c   :  { %v1182_v18 = vadd.f32 %v1181_v47, %v1180_v52  ;;  %v1377_v34 = vadd.f32 %v1376_v17, %v1375_v50  ;;  %v2611_v12 = vpop.f32.mrb[23].mxu1  ;;  %1099 = vst.msk [vmem:[%s2834_s4 + $0xd8] sm:$0xf] %vm1044_vm1, %v1606_v16  ;;  %v1607_v33 = vpack.c.bf16 %v2598_v55, %v2598_v55  ;;  %v1388_v45 = vsel %vm1109_vm2, %v1284_v9, 0.0 }
 0x12d   :  { %1097 = vst.msk [vmem:[%s2834_s4 + $0xd0] sm:$0xf] %vm1044_vm1, %v1604_v15  ;;  %v1605_v21 = vpack.c.bf16 %v2611_v12, %v2611_v12  ;;  %v1287_v46 = vmul.f32 %v2470_v57, %v2470_v57  ;;  %v1390_v52 = vsel %vm1109_vm2, %v1285_v39, 0.0  ;;  %v1195_v17 = vsel %vm1109_vm2, %v2432_v31, 0.0 }
 0x12e   :  { %v1379_v2 = vadd.f32 %v1378_v30, %v1377_v34  ;;  %v1184_v5 = vadd.f32 %v1183_v60, %v1182_v18  ;;  %1100 = vst.msk [vmem:[%s2834_s4 + $0xdc] sm:$0xf] %vm1044_vm1, %v1607_v33  ;;  %v1197_v30 = vsel %vm1109_vm2, %v2470_v57, 0.0  ;;  %v1392_v31 = vsel %vm1109_vm2, %v1286_v43, 0.0 }
 0x12f   :  { %1098 = vst.msk [vmem:[%s2834_s4 + $0xd4] sm:$0xf] %vm1044_vm1, %v1605_v21  ;;  %v1394_v34 = vsel %vm1109_vm2, %v1287_v46, 0.0  ;;  %v1288_v57 = vmul.f32 %v2484_v4, %v2484_v4  ;;  %v1289_v62 = vmul.f32 %v2462_v53, %v2462_v53  ;;  %v1201_v7 = vsel %vm1109_vm2, %v2462_v53, 0.0 }
 0x130   :  { %v1186_v13 = vadd.f32 %v1185_v0, %v1184_v5  ;;  %v1381_v14 = vadd.f32 %v1380_v8, %v1379_v2  ;;  %v1199_v0 = vsel %vm1109_vm2, %v2484_v4, 0.0  ;;  %v1291_v16 = vmul.f32 %v2526_v25, %v2526_v25 }
 0x131   :  { %v2642_v26 = vpop.f32.mrb[24].mxu1  ;;  %v1396_v4 = vsel %vm1109_vm2, %v1288_v57, 0.0  ;;  %v1293_v21 = vmul.f32 %v2514_v35, %v2514_v35  ;;  %v1207_v39 = vsel %vm1109_vm2, %v2547_v41, 0.0  ;;  %v1295_v43 = vmul.f32 %v2590_v63, %v2590_v63 }
 0x132   :  { %v1383_v27 = vadd.f32 %v1382_v19, %v1381_v14  ;;  %v1188_v28 = vadd.f32 %v1187_v22, %v1186_v13  ;;  %v1610_v1 = vpack.c.bf16 %v2642_v26, %v2642_v26  ;;  %v2654_v29 = vpop.f32.mrb[25].mxu1  ;;  %v1290_v14 = vmul.f32 %v2478_v61, %v2478_v61 }
 0x133   :  { %v2662_v37 = vpop.f32.mrb[26].mxu1  ;;  %v1608_v3 = vpack.c.bf16 %v2654_v29, %v2654_v29 }
 0x134   :  { %v1190_v36 = vadd.f32 %v1189_v23, %v1188_v28  ;;  %v1385_v6 = vadd.f32 %v1384_v51, %v1383_v27  ;;  %1103 = vst.msk [vmem:[%s2834_s4 + $0xe8] sm:$0xf] %vm1044_vm1, %v1610_v1  ;;  %v2675_v20 = vpop.f32.mrb[27].mxu1  ;;  %v1611_v50 = vpack.c.bf16 %v2662_v37, %v2662_v37  ;;  %v1398_v27 = vsel %vm1109_vm2, %v1289_v62, 0.0 }
 0x135   :  { %1101 = vst.msk [vmem:[%s2834_s4 + $0xe0] sm:$0xf] %vm1044_vm1, %v1608_v3  ;;  %v1609_v48 = vpack.c.bf16 %v2675_v20, %v2675_v20  ;;  %v1203_v28 = vsel %vm1109_vm2, %v2478_v61, 0.0  ;;  %v1205_v51 = vsel %vm1109_vm2, %v2526_v25, 0.0  ;;  %v1400_v33 = vsel %vm1109_vm2, %v1290_v14, 0.0 }
 0x136   :  { %v1387_v10 = vadd.f32 %v1386_v32, %v1385_v6  ;;  %v1192_v42 = vadd.f32 %v1191_v38, %v1190_v36  ;;  %1104 = vst.msk [vmem:[%s2834_s4 + $0xec] sm:$0xf] %vm1044_vm1, %v1611_v50  ;;  %v1402_v36 = vsel %vm1109_vm2, %v1291_v16, 0.0  ;;  %v1292_v61 = vmul.f32 %v2547_v41, %v2547_v41 }
 0x137   :  { %1102 = vst.msk [vmem:[%s2834_s4 + $0xe4] sm:$0xf] %vm1044_vm1, %v1609_v48  ;;  %v1406_v3 = vsel %vm1109_vm2, %v1293_v21, 0.0  ;;  %v1211_v41 = vsel %vm1109_vm2, %v2534_v24, 0.0  ;;  %v1301_v16 = vmul.f32 %v2642_v26, %v2642_v26 }
 0x138   :  { %v1194_v47 = vadd.f32 %v1193_v40, %v1192_v42  ;;  %v1389_v49 = vadd.f32 %v1388_v45, %v1387_v10  ;;  %v1209_v40 = vsel %vm1109_vm2, %v2514_v35, 0.0  ;;  %v1294_v10 = vmul.f32 %v2534_v24, %v2534_v24 }
 0x139   :  { %v2702_v60 = vpop.f32.mrb[28].mxu1  ;;  %v1404_v42 = vsel %vm1109_vm2, %v1292_v61, 0.0  ;;  %v1215_v24 = vsel %vm1109_vm2, %v2611_v12, 0.0 }
 0x13a   :  { %v1391_v54 = vadd.f32 %v1390_v52, %v1389_v49  ;;  %v1196_v18 = vadd.f32 %v1195_v17, %v1194_v47  ;;  %v1614_v2 = vpack.c.bf16 %v2702_v60, %v2702_v60  ;;  %v2710_v5 = vpop.f32.mrb[29].mxu1  ;;  %v1213_v47 = vsel %vm1109_vm2, %v2590_v63, 0.0 }
 0x13b   :  { %v1612_v44 = vpack.c.bf16 %v2710_v5, %v2710_v5  ;;  %v2716_v13 = vpop.f32.mrb[30].mxu1  ;;  %v1408_v50 = vsel %vm1109_vm2, %v1294_v10, 0.0  ;;  %v1410_v52 = vsel %vm1109_vm2, %v1295_v43, 0.0  ;;  %v1296_v17 = vmul.f32 %v2611_v12, %v2611_v12 }
 0x13c   :  { %v1198_v56 = vadd.f32 %v1197_v30, %v1196_v18  ;;  %v1393_v59 = vadd.f32 %v1392_v31, %v1391_v54  ;;  %1107 = vst.msk [vmem:[%s2834_s4 + $0xf8] sm:$0xf] %vm1044_vm1, %v1614_v2  ;;  %v1615_v53 = vpack.c.bf16 %v2716_v13, %v2716_v13  ;;  %v2729_v19 = vpop.f32.mrb[31].mxu1  ;;  %v1297_v54 = vmul.f32 %v2578_v58, %v2578_v58 }
 0x13d   :  { %1105 = vst.msk [vmem:[%s2834_s4 + $0xf0] sm:$0xf] %vm1044_vm1, %v1612_v44  ;;  %v1613_v15 = vpack.c.bf16 %v2729_v19, %v2729_v19  ;;  %v1217_v63 = vsel %vm1109_vm2, %v2578_v58, 0.0  ;;  %v1412_v57 = vsel %vm1109_vm2, %v1296_v17, 0.0  ;;  %v1219_v12 = vsel %vm1109_vm2, %v2598_v55, 0.0 }
 0x13e   :  { %v1395_v8 = vadd.f32 %v1394_v34, %v1393_v59  ;;  %v1200_v11 = vadd.f32 %v1199_v0, %v1198_v56  ;;  %1108 = vst.msk [vmem:[%s2834_s4 + $0xfc] sm:$0xf] %vm1044_vm1, %v1615_v53  ;;  %v1298_v34 = vmul.f32 %v2598_v55, %v2598_v55  ;;  %v1299_v56 = vmul.f32 %v2654_v29, %v2654_v29 }
 0x13f   :  { %1106 = vst.msk [vmem:[%s2834_s4 + $0xf4] sm:$0xf] %vm1044_vm1, %v1613_v15  ;;  %v1414_v0 = vsel %vm1109_vm2, %v1297_v54, 0.0  ;;  %v1221_v2 = vsel %vm1109_vm2, %v2654_v29, 0.0  ;;  %v1300_v44 = vmul.f32 %v2675_v20, %v2675_v20  ;;  %v1223_v55 = vsel %vm1109_vm2, %v2675_v20, 0.0 }
 0x140   :  { %v1202_v22 = vadd.f32 %v1201_v7, %v1200_v11  ;;  %v1397_v23 = vadd.f32 %v1396_v4, %v1395_v8  ;;  %v1416_v8 = vsel %vm1109_vm2, %v1298_v34, 0.0  ;;  %v1418_v11 = vsel %vm1109_vm2, %v1299_v56, 0.0 }
 0x141   :  { %v1225_v29 = vsel %vm1109_vm2, %v2642_v26, 0.0  ;;  %v1420_v15 = vsel %vm1109_vm2, %v1300_v44, 0.0  ;;  %v1227_v20 = vsel %vm1109_vm2, %v2662_v37, 0.0 }
 0x142   :  { %v1399_v32 = vadd.f32 %v1398_v27, %v1397_v23  ;;  %v1204_v9 = vadd.f32 %v1203_v28, %v1202_v22  ;;  %v1302_v23 = vmul.f32 %v2662_v37, %v2662_v37  ;;  %v1303_v27 = vmul.f32 %v2710_v5, %v2710_v5 }
 0x143   :  { %v1231_v37 = vsel %vm1109_vm2, %v2729_v19, 0.0 }
 0x144   :  { %v1206_v25 = vadd.f32 %v1205_v51, %v1204_v9  ;;  %v1401_v6 = vadd.f32 %v1400_v33, %v1399_v32  ;;  %v1422_v32 = vsel %vm1109_vm2, %v1301_v16, 0.0  ;;  %v1229_v9 = vsel %vm1109_vm2, %v2710_v5, 0.0 }
 0x145   :  { %v1426_v61 = vsel %vm1109_vm2, %v1303_v27, 0.0  ;;  %v1233_v5 = vsel %vm1109_vm2, %v2702_v60, 0.0 }
 0x146   :  { %v1403_v38 = vadd.f32 %v1402_v36, %v1401_v6  ;;  %v1208_v1 = vadd.f32 %v1207_v39, %v1206_v25  ;;  %v1424_v36 = vsel %vm1109_vm2, %v1302_v23, 0.0  ;;  %v1304_v25 = vmul.f32 %v2729_v19, %v2729_v19 }
 0x147   :  { %v1305_v39 = vmul.f32 %v2702_v60, %v2702_v60 }
 0x148   :  { %v1210_v45 = vadd.f32 %v1209_v40, %v1208_v1  ;;  %v1405_v46 = vadd.f32 %v1404_v42, %v1403_v38  ;;  %v1306_v40 = vmul.f32 %v2716_v13, %v2716_v13  ;;  %v1428_v10 = vsel %vm1109_vm2, %v1304_v25, 0.0 }
 0x14a   :  { %v1407_v49 = vadd.f32 %v1406_v3, %v1405_v46  ;;  %v1212_v35 = vadd.f32 %v1211_v41, %v1210_v45  ;;  %v1430_v45 = vsel %vm1109_vm2, %v1305_v39, 0.0  ;;  %v1235_v46 = vsel %vm1109_vm2, %v2716_v13, 0.0 }
 0x14b   :  { %v1432_v19 = vsel %vm1109_vm2, %v1306_v40, 0.0 }
 0x14c   :  { %v1214_v30 = vadd.f32 %v1213_v47, %v1212_v35  ;;  %v1409_v48 = vadd.f32 %v1408_v50, %v1407_v49 }
 0x14e   :  { %v1411_v18 = vadd.f32 %v1410_v52, %v1409_v48  ;;  %v1216_v31 = vadd.f32 %v1215_v24, %v1214_v30 }
 0x150   :  { %v1218_v59 = vadd.f32 %v1217_v63, %v1216_v31  ;;  %v1413_v62 = vadd.f32 %v1412_v57, %v1411_v18 }
 0x152   :  { %v1415_v7 = vadd.f32 %v1414_v0, %v1413_v62  ;;  %v1220_v58 = vadd.f32 %v1219_v12, %v1218_v59 }
 0x154   :  { %v1222_v14 = vadd.f32 %v1221_v2, %v1220_v58  ;;  %v1417_v4 = vadd.f32 %v1416_v8, %v1415_v7 }
 0x156   :  { %v1419_v53 = vadd.f32 %v1418_v11, %v1417_v4  ;;  %v1224_v22 = vadd.f32 %v1223_v55, %v1222_v14 }
 0x158   :  { %v1226_v28 = vadd.f32 %v1225_v29, %v1224_v22  ;;  %v1421_v51 = vadd.f32 %v1420_v15, %v1419_v53 }
 0x15a   :  { %v1423_v33 = vadd.f32 %v1422_v32, %v1421_v51  ;;  %v1228_v26 = vadd.f32 %v1227_v20, %v1226_v28 }
 0x15c   :  { %v1230_v6 = vadd.f32 %v1229_v9, %v1228_v26  ;;  %v1425_v21 = vadd.f32 %v1424_v36, %v1423_v33 }
 0x15e   :  { %v1427_v38 = vadd.f32 %v1426_v61, %v1425_v21  ;;  %v1232_v1 = vadd.f32 %v1231_v37, %v1230_v6 }
 0x160   :  { %v1234_v42 = vadd.f32 %v1233_v5, %v1232_v1  ;;  %v1429_v43 = vadd.f32 %v1428_v10, %v1427_v38 }
 0x162   :  { %v1236_v3 = vadd.f32 %v1235_v46, %v1234_v42  ;;  %v1431_v41 = vadd.f32 %v1430_v45, %v1429_v43 }
 0x164   :  { %v1237_v47 = vrot.slane %v1236_v3, 4  ;;  %v1433_v49 = vadd.f32 %v1432_v19, %v1431_v41 }
 0x166   :  { %v1238_v35 = vadd.f32 %v1237_v47, %v1236_v3  ;;  %v1434_v60 = vrot.slane %v1433_v49, 4 }
 0x168   :  { %v1239_v50 = vrot.slane %v1238_v35, 2  ;;  %v1435_v52 = vadd.f32 %v1434_v60, %v1433_v49 }
 0x16a   :  { %v1240_v17 = vadd.f32 %v1239_v50, %v1238_v35  ;;  %v1436_v30 = vrot.slane %v1435_v52, 2 }
 0x16c   :  { %v1241_v48 = vrot.slane %v1240_v17, 1  ;;  %v1437_v54 = vadd.f32 %v1436_v30, %v1435_v52 }
 0x16e   :  { %v1438_v24 = vrot.slane %v1437_v54, 1  ;;  %v1242_v18 = vadd.f32 %v1241_v48, %v1240_v17 }
 0x170   :  { %v1439_v31 = vadd.f32 %v1438_v24, %v1437_v54 }
 0x172   :  { %v1441_v13 = vsel %vm1440_vm3, %v1242_v18, %v1439_v31 }
 0x173   :  { %1443 = vst.msk [vmem:[%s2835_s5] sm:$0x3] %vm1442_vm4, %v1441_v13 }

// kernel: block_forward.4
= control target key start
LH: loop header
LB: loop body
LE: loop exit
PB: predicated region body
PF: predicated region fallthrough
CT: control target
= control target key end

     0   :  { %vm341_vm0 = vcmask 1043456   ;;  %vm244_vm1 = vcmask 64512   ;;  %vm890_vm2 = vcmask 257024   ;;  %vm955_vm3 = vcmask 261120   ;;  %s4597_s1 = inlined_call_operand.vmem [shape: bf16[8,32], index: 1, kind: input, shape index: {}]   ;;  %s4598_s2 = inlined_call_operand.vmem [shape: bf16[8,16], index: 2, kind: input, shape index: {}]   ;;  %s4599_s0 = inlined_call_operand.vmem [shape: bf16[512,8], index: 0, kind: input, shape index: {}]   ;;  %s4600_s3 = inlined_call_operand.vmem [shape: bf16[512,32], index: 3, kind: output, shape index: {0}]   ;;  %s4601_s5 = inlined_call_operand.vmem [shape: bf16[512,16], index: 5, kind: output, shape index: {2}]   ;;  %s4602_s4 = inlined_call_operand.vmem [shape: f32[1,2,32], index: 4, kind: output, shape index: {1}]   ;;  %s4603_s6 = inlined_call_operand.vmem [shape: f32[1,2,16], index: 6, kind: output, shape index: {3}]  }
   0x1   :  { %v83_v0 = vld [vmem:[%s4597_s1] sm:$0xf]  ;;  %v2807_v5 = vld [vmem:[%s4599_s0 + $0x8] sm:$0xff]   ;;  %v2808_v6 = vld [vmem:[%s4599_s0 + $0x10] sm:$0xff]   ;;  %vm1839_vm4 = vcmask 125952   ;;  %vm1904_vm5 = vcmask 130048  }
   0x2   :  { %v1290_v1 = vld [vmem:[%s4598_s2] sm:$0xf]  ;;  %2804 = vmatprep.subr.msk.bf16.mxu0 %vm341_vm0, %v83_v0  ;;  %v343_v2 = vsel %vm341_vm0, %v83_v0, 0  ;;  %v2809_v7 = vld [vmem:[%s4599_s0 + $0x18] sm:$0xff]   ;;  %v2811_v9 = vld [vmem:[%s4599_s0 + $0x28] sm:$0xff]   ;;  %vm1286_vm6 = vcmask 1040384  }
   0x3   :  { %2805 = vmatprep.subr.msk.bf16.mxu1 %vm341_vm0, %v1290_v1  ;;  %v1292_v3 = vsel %vm341_vm0, %v1290_v1, 0  ;;  %v2806_v4 = vld [vmem:[%s4599_s0] sm:$0xff]   ;;  %2673 = vmatpush3.bf16.msra.mxu0 %v343_v2  ;;  %v2812_v10 = vld [vmem:[%s4599_s0 + $0x30] sm:$0xff]   ;;  %v2813_v11 = vld [vmem:[%s4599_s0 + $0x38] sm:$0xff]   ;;  %vm1288_vm7 = vcmask 254976   ;;  %vm2236_vm8 = vcmask 123904  }
   0x4   :  { %2739 = vmatpush3.bf16.msra.mxu1 %v1292_v3  ;;  %2674 = vmatprep.mubr.msk.bf16.mxu0 %vm244_vm1, %v2806_v4  ;;  %v2810_v8 = vld [vmem:[%s4599_s0 + $0x20] sm:$0xff]   ;;  %v2815_v13 = vld [vmem:[%s4599_s0 + $0x48] sm:$0xff]   ;;  %v2816_v14 = vld [vmem:[%s4599_s0 + $0x50] sm:$0xff]  }
   0x5   :  { %2740 = vmatprep.mubr.msk.bf16.mxu1 %vm244_vm1, %v2806_v4  ;;  %v2814_v12 = vld [vmem:[%s4599_s0 + $0x40] sm:$0xff]   ;;  %v2817_v15 = vld [vmem:[%s4599_s0 + $0x58] sm:$0xff]   ;;  %v2819_v17 = vld [vmem:[%s4599_s0 + $0x68] sm:$0xff]  }
   0x6   :  { %2675 = vmatmul.mubr.msk.bf16.vlgmr.msra.gmra.mrb[0].mxu0 %vm244_vm1, %v2807_v5  ;;  %v2818_v16 = vld [vmem:[%s4599_s0 + $0x60] sm:$0xff]   ;;  %v2820_v18 = vld [vmem:[%s4599_s0 + $0x70] sm:$0xff]   ;;  %v2821_v19 = vld [vmem:[%s4599_s0 + $0x78] sm:$0xff]  }
   0x7   :  { %2741 = vmatmul.mubr.msk.bf16.vlgmr.msra.gmra.mrb[0].mxu1 %vm244_vm1, %v2807_v5  ;;  %2678 = vmatprep.mubr.msk.bf16.mxu0 %vm244_vm1, %v2808_v6  ;;  %v2822_v20 = vld [vmem:[%s4599_s0 + $0x80] sm:$0xff]   ;;  %v2823_v21 = vld [vmem:[%s4599_s0 + $0x88] sm:$0xff]   ;;  %v2824_v22 = vld [vmem:[%s4599_s0 + $0x90] sm:$0xff]  }
   0x8   :  { %2744 = vmatprep.mubr.msk.bf16.mxu1 %vm244_vm1, %v2808_v6  ;;  %v2825_v23 = vld [vmem:[%s4599_s0 + $0x98] sm:$0xff]   ;;  %v2826_v24 = vld [vmem:[%s4599_s0 + $0xa0] sm:$0xff]   ;;  %v2827_v25 = vld [vmem:[%s4599_s0 + $0xa8] sm:$0xff]  }
   0x9   :  { %v2828_v26 = vld [vmem:[%s4599_s0 + $0xb0] sm:$0xff]   ;;  %v2829_v27 = vld [vmem:[%s4599_s0 + $0xb8] sm:$0xff]   ;;  %v2830_v28 = vld [vmem:[%s4599_s0 + $0xc0] sm:$0xff]  }
   0xa   :  { %v2831_v29 = vld [vmem:[%s4599_s0 + $0xc8] sm:$0xff]   ;;  %v2832_v30 = vld [vmem:[%s4599_s0 + $0xd0] sm:$0xff]   ;;  %v2833_v31 = vld [vmem:[%s4599_s0 + $0xd8] sm:$0xff]  }
   0xb   :  { %v2834_v32 = vld [vmem:[%s4599_s0 + $0xe0] sm:$0xff]   ;;  %v2835_v33 = vld [vmem:[%s4599_s0 + $0xe8] sm:$0xff]   ;;  %v2836_v34 = vld [vmem:[%s4599_s0 + $0xf0] sm:$0xff]  }
   0xc   :  { %v2837_v35 = vld [vmem:[%s4599_s0 + $0xf8] sm:$0xff]  }
   0xe   :  { %2679 = vmatmul.mubr.msk.bf16.gmra.mrb[4].mxu0 %vm244_vm1, %v2809_v7 }
   0xf   :  { %2745 = vmatmul.mubr.msk.bf16.gmra.mrb[4].mxu1 %vm244_vm1, %v2809_v7  ;;  %2682 = vmatprep.mubr.msk.bf16.mxu0 %vm244_vm1, %v2810_v8 }
  0x10   :  { %2748 = vmatprep.mubr.msk.bf16.mxu1 %vm244_vm1, %v2810_v8 }
  0x16   :  { %2683 = vmatmul.mubr.msk.bf16.gmra.mrb[8].mxu0 %vm244_vm1, %v2811_v9 }
  0x17   :  { %2749 = vmatmul.mubr.msk.bf16.gmra.mrb[8].mxu1 %vm244_vm1, %v2811_v9  ;;  %2686 = vmatprep.mubr.msk.bf16.mxu0 %vm244_vm1, %v2812_v10 }
  0x18   :  { %2752 = vmatprep.mubr.msk.bf16.mxu1 %vm244_vm1, %v2812_v10 }
  0x1e   :  { %2687 = vmatmul.mubr.msk.bf16.gmra.mrb[12].mxu0 %vm244_vm1, %v2813_v11 }
  0x1f   :  { %2753 = vmatmul.mubr.msk.bf16.gmra.mrb[12].mxu1 %vm244_vm1, %v2813_v11  ;;  %2690 = vmatprep.mubr.msk.bf16.mxu0 %vm244_vm1, %v2814_v12 }
  0x20   :  { %2756 = vmatprep.mubr.msk.bf16.mxu1 %vm244_vm1, %v2814_v12 }
  0x26   :  { %2691 = vmatmul.mubr.msk.bf16.gmra.mrb[16].mxu0 %vm244_vm1, %v2815_v13 }
  0x27   :  { %2757 = vmatmul.mubr.msk.bf16.gmra.mrb[16].mxu1 %vm244_vm1, %v2815_v13  ;;  %2694 = vmatprep.mubr.msk.bf16.mxu0 %vm244_vm1, %v2816_v14 }
  0x28   :  { %2760 = vmatprep.mubr.msk.bf16.mxu1 %vm244_vm1, %v2816_v14 }
  0x2e   :  { %2695 = vmatmul.mubr.msk.bf16.gmra.mrb[20].mxu0 %vm244_vm1, %v2817_v15 }
  0x2f   :  { %2761 = vmatmul.mubr.msk.bf16.gmra.mrb[20].mxu1 %vm244_vm1, %v2817_v15  ;;  %2698 = vmatprep.mubr.msk.bf16.mxu0 %vm244_vm1, %v2818_v16 }
  0x30   :  { %2764 = vmatprep.mubr.msk.bf16.mxu1 %vm244_vm1, %v2818_v16 }
  0x36   :  { %2699 = vmatmul.mubr.msk.bf16.gmra.mrb[24].mxu0 %vm244_vm1, %v2819_v17 }
  0x37   :  { %2765 = vmatmul.mubr.msk.bf16.gmra.mrb[24].mxu1 %vm244_vm1, %v2819_v17  ;;  %2702 = vmatprep.mubr.msk.bf16.mxu0 %vm244_vm1, %v2820_v18 }
  0x38   :  { %2768 = vmatprep.mubr.msk.bf16.mxu1 %vm244_vm1, %v2820_v18 }
  0x3e   :  { %2703 = vmatmul.mubr.msk.bf16.gmra.mrb[28].mxu0 %vm244_vm1, %v2821_v19 }
  0x3f   :  { %2769 = vmatmul.mubr.msk.bf16.gmra.mrb[28].mxu1 %vm244_vm1, %v2821_v19  ;;  %2706 = vmatprep.mubr.msk.bf16.mxu0 %vm244_vm1, %v2822_v20 }
  0x40   :  { %2772 = vmatprep.mubr.msk.bf16.mxu1 %vm244_vm1, %v2822_v20 }
  0x46   :  { %2707 = vmatmul.mubr.msk.bf16.gmra.mrb[32].mxu0 %vm244_vm1, %v2823_v21 }
  0x47   :  { %2773 = vmatmul.mubr.msk.bf16.gmra.mrb[32].mxu1 %vm244_vm1, %v2823_v21  ;;  %2710 = vmatprep.mubr.msk.bf16.mxu0 %vm244_vm1, %v2824_v22 }
  0x48   :  { %2776 = vmatprep.mubr.msk.bf16.mxu1 %vm244_vm1, %v2824_v22 }
  0x4e   :  { %2711 = vmatmul.mubr.msk.bf16.gmra.mrb[36].mxu0 %vm244_vm1, %v2825_v23 }
  0x4f   :  { %2777 = vmatmul.mubr.msk.bf16.gmra.mrb[36].mxu1 %vm244_vm1, %v2825_v23  ;;  %2714 = vmatprep.mubr.msk.bf16.mxu0 %vm244_vm1, %v2826_v24 }
  0x50   :  { %2780 = vmatprep.mubr.msk.bf16.mxu1 %vm244_vm1, %v2826_v24 }
  0x56   :  { %2715 = vmatmul.mubr.msk.bf16.gmra.mrb[40].mxu0 %vm244_vm1, %v2827_v25 }
  0x57   :  { %2781 = vmatmul.mubr.msk.bf16.gmra.mrb[40].mxu1 %vm244_vm1, %v2827_v25  ;;  %2718 = vmatprep.mubr.msk.bf16.mxu0 %vm244_vm1, %v2828_v26 }
  0x58   :  { %2784 = vmatprep.mubr.msk.bf16.mxu1 %vm244_vm1, %v2828_v26 }
  0x5e   :  { %2719 = vmatmul.mubr.msk.bf16.gmra.mrb[44].mxu0 %vm244_vm1, %v2829_v27 }
  0x5f   :  { %2785 = vmatmul.mubr.msk.bf16.gmra.mrb[44].mxu1 %vm244_vm1, %v2829_v27  ;;  %2722 = vmatprep.mubr.msk.bf16.mxu0 %vm244_vm1, %v2830_v28 }
  0x60   :  { %2788 = vmatprep.mubr.msk.bf16.mxu1 %vm244_vm1, %v2830_v28 }
  0x66   :  { %2723 = vmatmul.mubr.msk.bf16.gmra.mrb[48].mxu0 %vm244_vm1, %v2831_v29 }
  0x67   :  { %2789 = vmatmul.mubr.msk.bf16.gmra.mrb[48].mxu1 %vm244_vm1, %v2831_v29  ;;  %2726 = vmatprep.mubr.msk.bf16.mxu0 %vm244_vm1, %v2832_v30 }
  0x68   :  { %2792 = vmatprep.mubr.msk.bf16.mxu1 %vm244_vm1, %v2832_v30 }
  0x6e   :  { %2727 = vmatmul.mubr.msk.bf16.gmra.mrb[52].mxu0 %vm244_vm1, %v2833_v31 }
  0x6f   :  { %2793 = vmatmul.mubr.msk.bf16.gmra.mrb[52].mxu1 %vm244_vm1, %v2833_v31  ;;  %2730 = vmatprep.mubr.msk.bf16.mxu0 %vm244_vm1, %v2834_v32 }
  0x70   :  { %2796 = vmatprep.mubr.msk.bf16.mxu1 %vm244_vm1, %v2834_v32 }
  0x76   :  { %2731 = vmatmul.mubr.msk.bf16.gmra.mrb[56].mxu0 %vm244_vm1, %v2835_v33 }
  0x77   :  { %2797 = vmatmul.mubr.msk.bf16.gmra.mrb[56].mxu1 %vm244_vm1, %v2835_v33  ;;  %2734 = vmatprep.mubr.msk.bf16.mxu0 %vm244_vm1, %v2836_v34 }
  0x78   :  { %2800 = vmatprep.mubr.msk.bf16.mxu1 %vm244_vm1, %v2836_v34 }
  0x7e   :  { %2735 = vmatmul.mubr.msk.bf16.gmra.mrb[60].mxu0 %vm244_vm1, %v2837_v35 }
  0x7f   :  { %2801 = vmatmul.mubr.msk.bf16.gmra.mrb[60].mxu1 %vm244_vm1, %v2837_v35 }
  0xd9   :  { %v2676_v36 = vpop.f32.mrb[0].mxu0 }
  0xda   :  { %v2742_v37 = vpop.f32.mrb[0].mxu1  ;;  %v2480_v38 = vpack.c.bf16 %v2676_v36, %v2676_v36  ;;  %v1091_v39 = vmul.f32 %v2676_v36, %v2676_v36  ;;  %v379_v41 = vpop.f32.mrb[1].mxu0  ;;  %v959_v51 = vsel %vm955_vm3, %v2676_v36, 0.0 }
  0xdb   :  { %v2544_v40 = vpack.c.bf16 %v2742_v37, %v2742_v37  ;;  %v1328_v42 = vpop.f32.mrb[1].mxu1  ;;  %v2040_v43 = vmul.f32 %v2742_v37, %v2742_v37  ;;  %v2478_v44 = vpack.c.bf16 %v379_v41, %v379_v41  ;;  %v2677_v45 = vpop.f32.mrb[2].mxu0  ;;  %v1089_v47 = vmul.f32 %v379_v41, %v379_v41 }
  0xdc   :  { %v2743_v46 = vpop.f32.mrb[2].mxu1  ;;  %893 = vst.msk [vmem:[%s4600_s3 + $0x8] sm:$0xf] %vm890_vm2, %v2480_v38  ;;  %v2542_v48 = vpack.c.bf16 %v1328_v42, %v1328_v42  ;;  %v382_v49 = vpop.f32.mrb[3].mxu0  ;;  %v1908_v52 = vsel %vm1904_vm5, %v2742_v37, 0.0  ;;  %v2481_v53 = vpack.c.bf16 %v2677_v45, %v2677_v45  ;;  %v1156_v54 = vsel %vm955_vm3, %v1091_v39, 0.0 }
  0xdd   :  { %1842 = vst.msk [vmem:[%s4601_s5 + $0x8] sm:$0xf] %vm1839_vm4, %v2544_v40  ;;  %v1331_v50 = vpop.f32.mrb[3].mxu1  ;;  %v956_v55 = vsel %vm955_vm3, %v379_v41, 0.0  ;;  %v1905_v56 = vsel %vm1904_vm5, %v1328_v42, 0.0  ;;  %v2545_v57 = vpack.c.bf16 %v2743_v46, %v2743_v46  ;;  %v2105_v58 = vsel %vm1904_vm5, %v2040_v43, 0.0 }
  0xde   :  { %891 = vst.msk [vmem:[%s4600_s3] sm:$0xf] %vm890_vm2, %v2478_v44  ;;  %v2038_v59 = vmul.f32 %v1328_v42, %v1328_v42  ;;  %894 = vst.msk [vmem:[%s4600_s3 + $0xc] sm:$0xf] %vm890_vm2, %v2481_v53  ;;  %v2479_v60 = vpack.c.bf16 %v382_v49, %v382_v49  ;;  %v957_v61 = vsel %vm955_vm3, %v382_v49, 0.0  ;;  %v1153_v62 = vsel %vm955_vm3, %v1089_v47, 0.0 }
  0xdf   :  { %1840 = vst.msk [vmem:[%s4601_s5] sm:$0xf] %vm1839_vm4, %v2542_v48  ;;  %1843 = vst.msk [vmem:[%s4601_s5 + $0xc] sm:$0xf] %vm1839_vm4, %v2545_v57  ;;  %v958_v63 = vadd.f32 %v957_v61, %v956_v55  ;;  %v1090_v0 = vmul.f32 %v382_v49, %v382_v49  ;;  %v2543_v1 = vpack.c.bf16 %v1331_v50, %v1331_v50  ;;  %v1906_v4 = vsel %vm1904_vm5, %v1331_v50, 0.0 }
  0xe0   :  { %v1092_v2 = vmul.f32 %v2677_v45, %v2677_v45  ;;  %v2041_v3 = vmul.f32 %v2743_v46, %v2743_v46  ;;  %892 = vst.msk [vmem:[%s4600_s3 + $0x4] sm:$0xf] %vm890_vm2, %v2479_v60  ;;  %v2039_v5 = vmul.f32 %v1331_v50, %v1331_v50  ;;  %v1907_v10 = vadd.f32 %v1906_v4, %v1905_v56 }
  0xe1   :  { %v2680_v6 = vpop.f32.mrb[4].mxu0  ;;  %v960_v8 = vadd.f32 %v959_v51, %v958_v63  ;;  %v1154_v9 = vsel %vm955_vm3, %v1090_v0, 0.0  ;;  %1841 = vst.msk [vmem:[%s4601_s5 + $0x4] sm:$0xf] %vm1839_vm4, %v2543_v1  ;;  %v2102_v14 = vsel %vm1904_vm5, %v2038_v59, 0.0  ;;  %v961_v15 = vsel %vm955_vm3, %v2677_v45, 0.0 }
  0xe2   :  { %v2746_v7 = vpop.f32.mrb[4].mxu1  ;;  %v2484_v11 = vpack.c.bf16 %v2680_v6, %v2680_v6  ;;  %v395_v12 = vpop.f32.mrb[5].mxu0  ;;  %v1155_v16 = vadd.f32 %v1154_v9, %v1153_v62  ;;  %v2103_v17 = vsel %vm1904_vm5, %v2039_v5, 0.0  ;;  %v1910_v20 = vsel %vm1904_vm5, %v2743_v46, 0.0 }
  0xe3   :  { %v1344_v13 = vpop.f32.mrb[5].mxu1  ;;  %v3084_v18 = vpop.f32.mrb[6].mxu0  ;;  %v1909_v21 = vadd.f32 %v1908_v52, %v1907_v10  ;;  %v2104_v22 = vadd.f32 %v2103_v17, %v2102_v14  ;;  %v2548_v23 = vpack.c.bf16 %v2746_v7, %v2746_v7  ;;  %v1158_v26 = vsel %vm955_vm3, %v1092_v2, 0.0 }
  0xe4   :  { %v3086_v19 = vpop.f32.mrb[6].mxu1  ;;  %897 = vst.msk [vmem:[%s4600_s3 + $0x18] sm:$0xf] %vm890_vm2, %v2484_v11  ;;  %v398_v24 = vpop.f32.mrb[7].mxu0  ;;  %v2107_v27 = vsel %vm1904_vm5, %v2041_v3, 0.0  ;;  %v1157_v28 = vadd.f32 %v1156_v54, %v1155_v16  ;;  %v2482_v29 = vpack.c.bf16 %v395_v12, %v395_v12  ;;  %v962_v31 = vadd.f32 %v961_v15, %v960_v8 }
  0xe5   :  { %v1347_v25 = vpop.f32.mrb[7].mxu1  ;;  %v2106_v30 = vadd.f32 %v2105_v58, %v2104_v22  ;;  %1846 = vst.msk [vmem:[%s4601_s5 + $0x18] sm:$0xf] %vm1839_vm4, %v2548_v23  ;;  %v963_v32 = vsel %vm955_vm3, %v395_v12, 0.0  ;;  %v1093_v33 = vmul.f32 %v395_v12, %v395_v12  ;;  %v1095_v34 = vmul.f32 %v2680_v6, %v2680_v6 }
  0xe6   :  { %895 = vst.msk [vmem:[%s4600_s3 + $0x10] sm:$0xf] %vm890_vm2, %v2482_v29  ;;  %v1159_v35 = vadd.f32 %v1158_v26, %v1157_v28  ;;  %v2546_v36 = vpack.c.bf16 %v1344_v13, %v1344_v13  ;;  %v1911_v37 = vadd.f32 %v1910_v20, %v1909_v21  ;;  %v964_v38 = vadd.f32 %v963_v32, %v962_v31 }
  0xe7   :  { %v1160_v39 = vsel %vm955_vm3, %v1093_v33, 0.0  ;;  %v1912_v40 = vsel %vm1904_vm5, %v1344_v13, 0.0  ;;  %v2042_v41 = vmul.f32 %v1344_v13, %v1344_v13  ;;  %v2108_v44 = vadd.f32 %v2107_v27, %v2106_v30 }
  0xe8   :  { %v1161_v42 = vadd.f32 %v1160_v39, %v1159_v35  ;;  %1844 = vst.msk [vmem:[%s4601_s5 + $0x10] sm:$0xf] %vm1839_vm4, %v2546_v36  ;;  %v1913_v43 = vadd.f32 %v1912_v40, %v1911_v37  ;;  %v2485_v45 = vpack.c.bf16 %v3084_v18, %v3084_v18  ;;  %v967_v48 = vsel %vm955_vm3, %v2680_v6, 0.0 }
  0xe9   :  { %v3112_v46 = vpop.f32.mrb[8].mxu0  ;;  %v2044_v49 = vmul.f32 %v2746_v7, %v2746_v7  ;;  %v2109_v50 = vsel %vm1904_vm5, %v2042_v41, 0.0  ;;  %v2549_v51 = vpack.c.bf16 %v3086_v19, %v3086_v19  ;;  %v1164_v54 = vsel %vm955_vm3, %v1095_v34, 0.0 }
  0xea   :  { %v3114_v47 = vpop.f32.mrb[8].mxu1  ;;  %v411_v52 = vpop.f32.mrb[9].mxu0  ;;  %v1916_v55 = vsel %vm1904_vm5, %v2746_v7, 0.0  ;;  %v2110_v56 = vadd.f32 %v2109_v50, %v2108_v44  ;;  %898 = vst.msk [vmem:[%s4600_s3 + $0x1c] sm:$0xf] %vm890_vm2, %v2485_v45  ;;  %v2483_v57 = vpack.c.bf16 %v398_v24, %v398_v24  ;;  %v1096_v60 = vmul.f32 %v3084_v18, %v3084_v18 }
  0xeb   :  { %v1360_v53 = vpop.f32.mrb[9].mxu1  ;;  %v3126_v58 = vpop.f32.mrb[10].mxu0  ;;  %1847 = vst.msk [vmem:[%s4601_s5 + $0x1c] sm:$0xf] %vm1839_vm4, %v2549_v51  ;;  %v965_v61 = vsel %vm955_vm3, %v398_v24, 0.0  ;;  %v1094_v62 = vmul.f32 %v398_v24, %v398_v24  ;;  %v2547_v63 = vpack.c.bf16 %v1347_v25, %v1347_v25  ;;  %v2045_v2 = vmul.f32 %v3086_v19, %v3086_v19 }
  0xec   :  { %v3128_v59 = vpop.f32.mrb[10].mxu1  ;;  %v3137_v0 = vpop.f32.mrb[11].mxu0  ;;  %896 = vst.msk [vmem:[%s4600_s3 + $0x14] sm:$0xf] %vm890_vm2, %v2483_v57  ;;  %v966_v3 = vadd.f32 %v965_v61, %v964_v38  ;;  %v1914_v4 = vsel %vm1904_vm5, %v1347_v25, 0.0  ;;  %v2043_v5 = vmul.f32 %v1347_v25, %v1347_v25  ;;  %v2113_v6 = vsel %vm1904_vm5, %v2044_v49, 0.0 }
  0xed   :  { %v3139_v1 = vpop.f32.mrb[11].mxu1  ;;  %v1162_v7 = vsel %vm955_vm3, %v1094_v62, 0.0  ;;  %1845 = vst.msk [vmem:[%s4601_s5 + $0x14] sm:$0xf] %vm1839_vm4, %v2547_v63  ;;  %v1915_v8 = vadd.f32 %v1914_v4, %v1913_v43  ;;  %v2488_v9 = vpack.c.bf16 %v3112_v46, %v3112_v46  ;;  %v969_v10 = vsel %vm955_vm3, %v3084_v18, 0.0 }
  0xee   :  { %v968_v11 = vadd.f32 %v967_v48, %v966_v3  ;;  %v1163_v12 = vadd.f32 %v1162_v7, %v1161_v42  ;;  %v2111_v13 = vsel %vm1904_vm5, %v2043_v5, 0.0  ;;  %v1918_v14 = vsel %vm1904_vm5, %v3086_v19, 0.0 }
  0xef   :  { %v1917_v15 = vadd.f32 %v1916_v55, %v1915_v8  ;;  %v2112_v16 = vadd.f32 %v2111_v13, %v2110_v56  ;;  %901 = vst.msk [vmem:[%s4600_s3 + $0x28] sm:$0xf] %vm890_vm2, %v2488_v9  ;;  %v2552_v17 = vpack.c.bf16 %v3114_v47, %v3114_v47  ;;  %v1166_v20 = vsel %vm955_vm3, %v1096_v60, 0.0 }
  0xf0   :  { %v2115_v18 = vsel %vm1904_vm5, %v2045_v2, 0.0  ;;  %v1165_v21 = vadd.f32 %v1164_v54, %v1163_v12  ;;  %v2486_v22 = vpack.c.bf16 %v411_v52, %v411_v52  ;;  %v970_v25 = vadd.f32 %v969_v10, %v968_v11 }
  0xf1   :  { %v3169_v23 = vpop.f32.mrb[12].mxu0  ;;  %v2114_v19 = vadd.f32 %v2113_v6, %v2112_v16  ;;  %1850 = vst.msk [vmem:[%s4601_s5 + $0x28] sm:$0xf] %vm1839_vm4, %v2552_v17  ;;  %v971_v26 = vsel %vm955_vm3, %v411_v52, 0.0  ;;  %v1097_v27 = vmul.f32 %v411_v52, %v411_v52  ;;  %v1099_v30 = vmul.f32 %v3112_v46, %v3112_v46 }
  0xf2   :  { %v3171_v24 = vpop.f32.mrb[12].mxu1  ;;  %v3178_v28 = vpop.f32.mrb[13].mxu0  ;;  %899 = vst.msk [vmem:[%s4600_s3 + $0x20] sm:$0xf] %vm890_vm2, %v2486_v22  ;;  %v1167_v31 = vadd.f32 %v1166_v20, %v1165_v21  ;;  %v2550_v32 = vpack.c.bf16 %v1360_v53, %v1360_v53  ;;  %v1919_v33 = vadd.f32 %v1918_v14, %v1917_v15  ;;  %v972_v36 = vadd.f32 %v971_v26, %v970_v25 }
  0xf3   :  { %v3180_v29 = vpop.f32.mrb[13].mxu1  ;;  %v3188_v34 = vpop.f32.mrb[14].mxu0  ;;  %v1168_v37 = vsel %vm955_vm3, %v1097_v27, 0.0  ;;  %v1920_v38 = vsel %vm1904_vm5, %v1360_v53, 0.0  ;;  %v2046_v39 = vmul.f32 %v1360_v53, %v1360_v53  ;;  %v2116_v44 = vadd.f32 %v2115_v18, %v2114_v19 }
  0xf4   :  { %v3190_v35 = vpop.f32.mrb[14].mxu1  ;;  %v3194_v40 = vpop.f32.mrb[15].mxu0  ;;  %v1169_v42 = vadd.f32 %v1168_v37, %v1167_v31  ;;  %1848 = vst.msk [vmem:[%s4601_s5 + $0x20] sm:$0xf] %vm1839_vm4, %v2550_v32  ;;  %v1921_v43 = vadd.f32 %v1920_v38, %v1919_v33  ;;  %v2489_v45 = vpack.c.bf16 %v3126_v58, %v3126_v58  ;;  %v975_v48 = vsel %vm955_vm3, %v3112_v46, 0.0 }
  0xf5   :  { %v3196_v41 = vpop.f32.mrb[15].mxu1  ;;  %v2048_v49 = vmul.f32 %v3114_v47, %v3114_v47  ;;  %v2117_v50 = vsel %vm1904_vm5, %v2046_v39, 0.0  ;;  %v2553_v51 = vpack.c.bf16 %v3128_v59, %v3128_v59  ;;  %v1172_v52 = vsel %vm955_vm3, %v1099_v30, 0.0 }
  0xf6   :  { %v1924_v53 = vsel %vm1904_vm5, %v3114_v47, 0.0  ;;  %v2118_v54 = vadd.f32 %v2117_v50, %v2116_v44  ;;  %902 = vst.msk [vmem:[%s4600_s3 + $0x2c] sm:$0xf] %vm890_vm2, %v2489_v45  ;;  %v2487_v46 = vpack.c.bf16 %v3137_v0, %v3137_v0  ;;  %v1100_v55 = vmul.f32 %v3126_v58, %v3126_v58 }
  0xf7   :  { %1851 = vst.msk [vmem:[%s4601_s5 + $0x2c] sm:$0xf] %vm1839_vm4, %v2553_v51  ;;  %v973_v47 = vsel %vm955_vm3, %v3137_v0, 0.0  ;;  %v1098_v56 = vmul.f32 %v3137_v0, %v3137_v0  ;;  %v2551_v57 = vpack.c.bf16 %v3139_v1, %v3139_v1  ;;  %v2049_v60 = vmul.f32 %v3128_v59, %v3128_v59 }
  0xf8   :  { %900 = vst.msk [vmem:[%s4600_s3 + $0x24] sm:$0xf] %vm890_vm2, %v2487_v46  ;;  %v974_v61 = vadd.f32 %v973_v47, %v972_v36  ;;  %v1922_v62 = vsel %vm1904_vm5, %v3139_v1, 0.0  ;;  %v2047_v63 = vmul.f32 %v3139_v1, %v3139_v1  ;;  %v2121_v3 = vsel %vm1904_vm5, %v2048_v49, 0.0 }
  0xf9   :  { %v3242_v2 = vpop.f32.mrb[16].mxu0  ;;  %v1170_v4 = vsel %vm955_vm3, %v1098_v56, 0.0  ;;  %1849 = vst.msk [vmem:[%s4601_s5 + $0x24] sm:$0xf] %vm1839_vm4, %v2551_v57  ;;  %v1923_v5 = vadd.f32 %v1922_v62, %v1921_v43  ;;  %v2492_v6 = vpack.c.bf16 %v3169_v23, %v3169_v23  ;;  %v977_v8 = vsel %vm955_vm3, %v3126_v58, 0.0 }
  0xfa   :  { %v3244_v0 = vpop.f32.mrb[16].mxu1  ;;  %v3254_v7 = vpop.f32.mrb[17].mxu0  ;;  %v976_v9 = vadd.f32 %v975_v48, %v974_v61  ;;  %v1171_v10 = vadd.f32 %v1170_v4, %v1169_v42  ;;  %v2119_v11 = vsel %vm1904_vm5, %v2047_v63, 0.0  ;;  %v1926_v14 = vsel %vm1904_vm5, %v3128_v59, 0.0 }
  0xfb   :  { %v3256_v1 = vpop.f32.mrb[17].mxu1  ;;  %v3261_v12 = vpop.f32.mrb[18].mxu0  ;;  %v1925_v15 = vadd.f32 %v1924_v53, %v1923_v5  ;;  %v2120_v16 = vadd.f32 %v2119_v11, %v2118_v54  ;;  %905 = vst.msk [vmem:[%s4600_s3 + $0x38] sm:$0xf] %vm890_vm2, %v2492_v6  ;;  %v2556_v58 = vpack.c.bf16 %v3171_v24, %v3171_v24  ;;  %v1174_v18 = vsel %vm955_vm3, %v1100_v55, 0.0 }
  0xfc   :  { %v3263_v13 = vpop.f32.mrb[18].mxu1  ;;  %v3273_v17 = vpop.f32.mrb[19].mxu0  ;;  %v2123_v21 = vsel %vm1904_vm5, %v2049_v60, 0.0  ;;  %v1173_v22 = vadd.f32 %v1172_v52, %v1171_v10  ;;  %v2490_v59 = vpack.c.bf16 %v3178_v28, %v3178_v28  ;;  %v978_v25 = vadd.f32 %v977_v8, %v976_v9 }
  0xfd   :  { %v3275_v20 = vpop.f32.mrb[19].mxu1  ;;  %v2122_v19 = vadd.f32 %v2121_v3, %v2120_v16  ;;  %1854 = vst.msk [vmem:[%s4601_s5 + $0x38] sm:$0xf] %vm1839_vm4, %v2556_v58  ;;  %v979_v26 = vsel %vm955_vm3, %v3178_v28, 0.0  ;;  %v1101_v27 = vmul.f32 %v3178_v28, %v3178_v28  ;;  %v1103_v30 = vmul.f32 %v3169_v23, %v3169_v23 }
  0xfe   :  { %903 = vst.msk [vmem:[%s4600_s3 + $0x30] sm:$0xf] %vm890_vm2, %v2490_v59  ;;  %v1175_v31 = vadd.f32 %v1174_v18, %v1173_v22  ;;  %v2554_v32 = vpack.c.bf16 %v3180_v29, %v3180_v29  ;;  %v1927_v33 = vadd.f32 %v1926_v14, %v1925_v15  ;;  %v980_v36 = vadd.f32 %v979_v26, %v978_v25 }
  0xff   :  { %v1176_v37 = vsel %vm955_vm3, %v1101_v27, 0.0  ;;  %v1928_v38 = vsel %vm1904_vm5, %v3180_v29, 0.0  ;;  %v2050_v28 = vmul.f32 %v3180_v29, %v3180_v29  ;;  %v2124_v43 = vadd.f32 %v2123_v21, %v2122_v19 }
 0x100   :  { %v1177_v39 = vadd.f32 %v1176_v37, %v1175_v31  ;;  %1852 = vst.msk [vmem:[%s4601_s5 + $0x30] sm:$0xf] %vm1839_vm4, %v2554_v32  ;;  %v1929_v42 = vadd.f32 %v1928_v38, %v1927_v33  ;;  %v2493_v44 = vpack.c.bf16 %v3188_v34, %v3188_v34  ;;  %v983_v49 = vsel %vm955_vm3, %v3169_v23, 0.0 }
 0x101   :  { %v3308_v45 = vpop.f32.mrb[20].mxu0  ;;  %v2052_v29 = vmul.f32 %v3171_v24, %v3171_v24  ;;  %v2125_v50 = vsel %vm1904_vm5, %v2050_v28, 0.0  ;;  %v2557_v51 = vpack.c.bf16 %v3190_v35, %v3190_v35  ;;  %v1180_v54 = vsel %vm955_vm3, %v1103_v30, 0.0 }
 0x102   :  { %v3310_v48 = vpop.f32.mrb[20].mxu1  ;;  %v3319_v52 = vpop.f32.mrb[21].mxu0  ;;  %v1932_v46 = vsel %vm1904_vm5, %v3171_v24, 0.0  ;;  %v2126_v55 = vadd.f32 %v2125_v50, %v2124_v43  ;;  %906 = vst.msk [vmem:[%s4600_s3 + $0x3c] sm:$0xf] %vm890_vm2, %v2493_v44  ;;  %v2491_v23 = vpack.c.bf16 %v3194_v40, %v3194_v40  ;;  %v1104_v57 = vmul.f32 %v3188_v34, %v3188_v34 }
 0x103   :  { %v3321_v53 = vpop.f32.mrb[21].mxu1  ;;  %v3332_v47 = vpop.f32.mrb[22].mxu0  ;;  %1855 = vst.msk [vmem:[%s4601_s5 + $0x3c] sm:$0xf] %vm1839_vm4, %v2557_v51  ;;  %v981_v24 = vsel %vm955_vm3, %v3194_v40, 0.0  ;;  %v1102_v60 = vmul.f32 %v3194_v40, %v3194_v40  ;;  %v2555_v61 = vpack.c.bf16 %v3196_v41, %v3196_v41  ;;  %v2053_v3 = vmul.f32 %v3190_v35, %v3190_v35 }
 0x104   :  { %v3334_v56 = vpop.f32.mrb[22].mxu1  ;;  %v3348_v62 = vpop.f32.mrb[23].mxu0  ;;  %904 = vst.msk [vmem:[%s4600_s3 + $0x34] sm:$0xf] %vm890_vm2, %v2491_v23  ;;  %v982_v4 = vadd.f32 %v981_v24, %v980_v36  ;;  %v1930_v5 = vsel %vm1904_vm5, %v3196_v41, 0.0  ;;  %v2051_v40 = vmul.f32 %v3196_v41, %v3196_v41  ;;  %v2129_v6 = vsel %vm1904_vm5, %v2052_v29, 0.0 }
 0x105   :  { %v3350_v63 = vpop.f32.mrb[23].mxu1  ;;  %v1178_v8 = vsel %vm955_vm3, %v1102_v60, 0.0  ;;  %1853 = vst.msk [vmem:[%s4601_s5 + $0x34] sm:$0xf] %vm1839_vm4, %v2555_v61  ;;  %v1931_v9 = vadd.f32 %v1930_v5, %v1929_v42  ;;  %v2496_v10 = vpack.c.bf16 %v3242_v2, %v3242_v2  ;;  %v985_v11 = vsel %vm955_vm3, %v3188_v34, 0.0 }
 0x106   :  { %v984_v14 = vadd.f32 %v983_v49, %v982_v4  ;;  %v1179_v15 = vadd.f32 %v1178_v8, %v1177_v39  ;;  %v2127_v41 = vsel %vm1904_vm5, %v2051_v40, 0.0  ;;  %v1934_v16 = vsel %vm1904_vm5, %v3190_v35, 0.0 }
 0x107   :  { %v1933_v58 = vadd.f32 %v1932_v46, %v1931_v9  ;;  %v2128_v18 = vadd.f32 %v2127_v41, %v2126_v55  ;;  %909 = vst.msk [vmem:[%s4600_s3 + $0x48] sm:$0xf] %vm890_vm2, %v2496_v10  ;;  %v2560_v21 = vpack.c.bf16 %v3244_v0, %v3244_v0  ;;  %v1182_v22 = vsel %vm955_vm3, %v1104_v57, 0.0 }
 0x108   :  { %v2131_v34 = vsel %vm1904_vm5, %v2053_v3, 0.0  ;;  %v1181_v59 = vadd.f32 %v1180_v54, %v1179_v15  ;;  %v2494_v19 = vpack.c.bf16 %v3254_v7, %v3254_v7  ;;  %v986_v27 = vadd.f32 %v985_v11, %v984_v14 }
 0x109   :  { %v3385_v25 = vpop.f32.mrb[24].mxu0  ;;  %v2130_v26 = vadd.f32 %v2129_v6, %v2128_v18  ;;  %1858 = vst.msk [vmem:[%s4601_s5 + $0x48] sm:$0xf] %vm1839_vm4, %v2560_v21  ;;  %v987_v30 = vsel %vm955_vm3, %v3254_v7, 0.0  ;;  %v1105_v31 = vmul.f32 %v3254_v7, %v3254_v7  ;;  %v1107_v36 = vmul.f32 %v3242_v2, %v3242_v2 }
 0x10a   :  { %v3387_v35 = vpop.f32.mrb[24].mxu1  ;;  %v3397_v32 = vpop.f32.mrb[25].mxu0  ;;  %907 = vst.msk [vmem:[%s4600_s3 + $0x40] sm:$0xf] %vm890_vm2, %v2494_v19  ;;  %v1183_v37 = vadd.f32 %v1182_v22, %v1181_v59  ;;  %v2558_v38 = vpack.c.bf16 %v3256_v1, %v3256_v1  ;;  %v1935_v28 = vadd.f32 %v1934_v16, %v1933_v58  ;;  %v988_v42 = vadd.f32 %v987_v30, %v986_v27 }
 0x10b   :  { %v3399_v33 = vpop.f32.mrb[25].mxu1  ;;  %v3409_v39 = vpop.f32.mrb[26].mxu0  ;;  %v1184_v43 = vsel %vm955_vm3, %v1105_v31, 0.0  ;;  %v1936_v44 = vsel %vm1904_vm5, %v3256_v1, 0.0  ;;  %v2054_v49 = vmul.f32 %v3256_v1, %v3256_v1  ;;  %v2132_v46 = vadd.f32 %v2131_v34, %v2130_v26 }
 0x10c   :  { %v3411_v7 = vpop.f32.mrb[26].mxu1  ;;  %v3418_v29 = vpop.f32.mrb[27].mxu0  ;;  %v1185_v51 = vadd.f32 %v1184_v43, %v1183_v37  ;;  %1856 = vst.msk [vmem:[%s4601_s5 + $0x40] sm:$0xf] %vm1839_vm4, %v2558_v38  ;;  %v1937_v54 = vadd.f32 %v1936_v44, %v1935_v28  ;;  %v2497_v55 = vpack.c.bf16 %v3261_v12, %v3261_v12  ;;  %v991_v23 = vsel %vm955_vm3, %v3242_v2, 0.0 }
 0x10d   :  { %v3420_v50 = vpop.f32.mrb[27].mxu1  ;;  %v2056_v1 = vmul.f32 %v3244_v0, %v3244_v0  ;;  %v2133_v57 = vsel %vm1904_vm5, %v2054_v49, 0.0  ;;  %v2561_v24 = vpack.c.bf16 %v3263_v13, %v3263_v13  ;;  %v1188_v60 = vsel %vm955_vm3, %v1107_v36, 0.0 }
 0x10e   :  { %v1940_v61 = vsel %vm1904_vm5, %v3244_v0, 0.0  ;;  %v2134_v3 = vadd.f32 %v2133_v57, %v2132_v46  ;;  %910 = vst.msk [vmem:[%s4600_s3 + $0x4c] sm:$0xf] %vm890_vm2, %v2497_v55  ;;  %v2495_v2 = vpack.c.bf16 %v3273_v17, %v3273_v17  ;;  %v1108_v4 = vmul.f32 %v3261_v12, %v3261_v12 }
 0x10f   :  { %1859 = vst.msk [vmem:[%s4601_s5 + $0x4c] sm:$0xf] %vm1839_vm4, %v2561_v24  ;;  %v989_v0 = vsel %vm955_vm3, %v3273_v17, 0.0  ;;  %v1106_v5 = vmul.f32 %v3273_v17, %v3273_v17  ;;  %v2559_v40 = vpack.c.bf16 %v3275_v20, %v3275_v20  ;;  %v2057_v6 = vmul.f32 %v3263_v13, %v3263_v13 }
 0x110   :  { %908 = vst.msk [vmem:[%s4600_s3 + $0x44] sm:$0xf] %vm890_vm2, %v2495_v2  ;;  %v990_v8 = vadd.f32 %v989_v0, %v988_v42  ;;  %v1938_v9 = vsel %vm1904_vm5, %v3275_v20, 0.0  ;;  %v2055_v10 = vmul.f32 %v3275_v20, %v3275_v20  ;;  %v2137_v14 = vsel %vm1904_vm5, %v2056_v1, 0.0 }
 0x111   :  { %v3466_v11 = vpop.f32.mrb[28].mxu0  ;;  %v1186_v15 = vsel %vm955_vm3, %v1106_v5, 0.0  ;;  %1857 = vst.msk [vmem:[%s4601_s5 + $0x44] sm:$0xf] %vm1839_vm4, %v2559_v40  ;;  %v1939_v41 = vadd.f32 %v1938_v9, %v1937_v54  ;;  %v2500_v16 = vpack.c.bf16 %v3308_v45, %v3308_v45  ;;  %v993_v18 = vsel %vm955_vm3, %v3261_v12, 0.0 }
 0x112   :  { %v3468_v17 = vpop.f32.mrb[28].mxu1  ;;  %v3478_v58 = vpop.f32.mrb[29].mxu0  ;;  %v992_v21 = vadd.f32 %v991_v23, %v990_v8  ;;  %v1187_v22 = vadd.f32 %v1186_v15, %v1185_v51  ;;  %v2135_v34 = vsel %vm1904_vm5, %v2055_v10, 0.0  ;;  %v1942_v26 = vsel %vm1904_vm5, %v3263_v13, 0.0 }
 0x113   :  { %v3480_v20 = vpop.f32.mrb[29].mxu1  ;;  %v3485_v59 = vpop.f32.mrb[30].mxu0  ;;  %v1941_v27 = vadd.f32 %v1940_v61, %v1939_v41  ;;  %v2136_v30 = vadd.f32 %v2135_v34, %v2134_v3  ;;  %913 = vst.msk [vmem:[%s4600_s3 + $0x58] sm:$0xf] %vm890_vm2, %v2500_v16  ;;  %v2564_v12 = vpack.c.bf16 %v3310_v48, %v3310_v48  ;;  %v1190_v37 = vsel %vm955_vm3, %v1108_v4, 0.0 }
 0x114   :  { %v3487_v19 = vpop.f32.mrb[30].mxu1  ;;  %v3497_v31 = vpop.f32.mrb[31].mxu0  ;;  %v2139_v38 = vsel %vm1904_vm5, %v2057_v6, 0.0  ;;  %v1189_v28 = vadd.f32 %v1188_v60, %v1187_v22  ;;  %v2498_v13 = vpack.c.bf16 %v3319_v52, %v3319_v52  ;;  %v994_v43 = vadd.f32 %v993_v18, %v992_v21 }
 0x115   :  { %v3499_v36 = vpop.f32.mrb[31].mxu1  ;;  %v2138_v42 = vadd.f32 %v2137_v14, %v2136_v30  ;;  %1862 = vst.msk [vmem:[%s4601_s5 + $0x58] sm:$0xf] %vm1839_vm4, %v2564_v12  ;;  %v995_v44 = vsel %vm955_vm3, %v3319_v52, 0.0  ;;  %v1109_v49 = vmul.f32 %v3319_v52, %v3319_v52  ;;  %v1111_v51 = vmul.f32 %v3308_v45, %v3308_v45 }
 0x116   :  { %911 = vst.msk [vmem:[%s4600_s3 + $0x50] sm:$0xf] %vm890_vm2, %v2498_v13  ;;  %v1191_v54 = vadd.f32 %v1190_v37, %v1189_v28  ;;  %v2562_v46 = vpack.c.bf16 %v3321_v53, %v3321_v53  ;;  %v1943_v55 = vadd.f32 %v1942_v26, %v1941_v27  ;;  %v996_v23 = vadd.f32 %v995_v44, %v994_v43 }
 0x117   :  { %v1192_v1 = vsel %vm955_vm3, %v1109_v49, 0.0  ;;  %v1944_v57 = vsel %vm1904_vm5, %v3321_v53, 0.0  ;;  %v2058_v52 = vmul.f32 %v3321_v53, %v3321_v53  ;;  %v2140_v61 = vadd.f32 %v2139_v38, %v2138_v42 }
 0x118   :  { %v1193_v24 = vadd.f32 %v1192_v1, %v1191_v54  ;;  %1860 = vst.msk [vmem:[%s4601_s5 + $0x50] sm:$0xf] %vm1839_vm4, %v2562_v46  ;;  %v1945_v60 = vadd.f32 %v1944_v57, %v1943_v55  ;;  %v2501_v3 = vpack.c.bf16 %v3332_v47, %v3332_v47  ;;  %v999_v0 = vsel %vm955_vm3, %v3308_v45, 0.0 }
 0x119   :  { %v3532_v2 = vpop.f32.mrb[32].mxu0  ;;  %v2060_v53 = vmul.f32 %v3310_v48, %v3310_v48  ;;  %v2141_v5 = vsel %vm1904_vm5, %v2058_v52, 0.0  ;;  %v2565_v40 = vpack.c.bf16 %v3334_v56, %v3334_v56  ;;  %v1196_v9 = vsel %vm955_vm3, %v1111_v51, 0.0 }
 0x11a   :  { %v3534_v4 = vpop.f32.mrb[32].mxu1  ;;  %v3543_v6 = vpop.f32.mrb[33].mxu0  ;;  %v1948_v10 = vsel %vm1904_vm5, %v3310_v48, 0.0  ;;  %v2142_v14 = vadd.f32 %v2141_v5, %v2140_v61  ;;  %914 = vst.msk [vmem:[%s4600_s3 + $0x5c] sm:$0xf] %vm890_vm2, %v2501_v3  ;;  %v2499_v45 = vpack.c.bf16 %v3348_v62, %v3348_v62  ;;  %v1112_v16 = vmul.f32 %v3332_v47, %v3332_v47 }
 0x11b   :  { %v3545_v8 = vpop.f32.mrb[33].mxu1  ;;  %v3556_v15 = vpop.f32.mrb[34].mxu0  ;;  %1863 = vst.msk [vmem:[%s4601_s5 + $0x5c] sm:$0xf] %vm1839_vm4, %v2565_v40  ;;  %v997_v48 = vsel %vm955_vm3, %v3348_v62, 0.0  ;;  %v1110_v18 = vmul.f32 %v3348_v62, %v3348_v62  ;;  %v2563_v21 = vpack.c.bf16 %v3350_v63, %v3350_v63  ;;  %v2061_v26 = vmul.f32 %v3334_v56, %v3334_v56 }
 0x11c   :  { %v3558_v41 = vpop.f32.mrb[34].mxu1  ;;  %v3572_v22 = vpop.f32.mrb[35].mxu0  ;;  %912 = vst.msk [vmem:[%s4600_s3 + $0x54] sm:$0xf] %vm890_vm2, %v2499_v45  ;;  %v998_v27 = vadd.f32 %v997_v48, %v996_v23  ;;  %v1946_v30 = vsel %vm1904_vm5, %v3350_v63, 0.0  ;;  %v2059_v62 = vmul.f32 %v3350_v63, %v3350_v63  ;;  %v2145_v12 = vsel %vm1904_vm5, %v2060_v53, 0.0 }
 0x11d   :  { %v3574_v34 = vpop.f32.mrb[35].mxu1  ;;  %v1194_v37 = vsel %vm955_vm3, %v1110_v18, 0.0  ;;  %1861 = vst.msk [vmem:[%s4601_s5 + $0x54] sm:$0xf] %vm1839_vm4, %v2563_v21  ;;  %v1947_v38 = vadd.f32 %v1946_v30, %v1945_v60  ;;  %v2504_v28 = vpack.c.bf16 %v3385_v25, %v3385_v25  ;;  %v1001_v13 = vsel %vm955_vm3, %v3332_v47, 0.0 }
 0x11e   :  { %v1000_v42 = vadd.f32 %v999_v0, %v998_v27  ;;  %v1195_v43 = vadd.f32 %v1194_v37, %v1193_v24  ;;  %v2143_v63 = vsel %vm1904_vm5, %v2059_v62, 0.0  ;;  %v1950_v44 = vsel %vm1904_vm5, %v3334_v56, 0.0 }
 0x11f   :  { %v1949_v49 = vadd.f32 %v1948_v10, %v1947_v38  ;;  %v2144_v51 = vadd.f32 %v2143_v63, %v2142_v14  ;;  %917 = vst.msk [vmem:[%s4600_s3 + $0x68] sm:$0xf] %vm890_vm2, %v2504_v28  ;;  %v2568_v54 = vpack.c.bf16 %v3387_v35, %v3387_v35  ;;  %v1198_v46 = vsel %vm955_vm3, %v1112_v16, 0.0 }
 0x120   :  { %v2147_v47 = vsel %vm1904_vm5, %v2061_v26, 0.0  ;;  %v1197_v55 = vadd.f32 %v1196_v9, %v1195_v43  ;;  %v2502_v23 = vpack.c.bf16 %v3397_v32, %v3397_v32  ;;  %v1002_v52 = vadd.f32 %v1001_v13, %v1000_v42 }
 0x121   :  { %v3609_v1 = vpop.f32.mrb[36].mxu0  ;;  %v2146_v57 = vadd.f32 %v2145_v12, %v2144_v51  ;;  %1866 = vst.msk [vmem:[%s4601_s5 + $0x68] sm:$0xf] %vm1839_vm4, %v2568_v54  ;;  %v1003_v24 = vsel %vm955_vm3, %v3397_v32, 0.0  ;;  %v1113_v60 = vmul.f32 %v3397_v32, %v3397_v32  ;;  %v1115_v0 = vmul.f32 %v3385_v25, %v3385_v25 }
 0x122   :  { %v3611_v56 = vpop.f32.mrb[36].mxu1  ;;  %v3621_v61 = vpop.f32.mrb[37].mxu0  ;;  %915 = vst.msk [vmem:[%s4600_s3 + $0x60] sm:$0xf] %vm890_vm2, %v2502_v23  ;;  %v1199_v53 = vadd.f32 %v1198_v46, %v1197_v55  ;;  %v2566_v5 = vpack.c.bf16 %v3399_v33, %v3399_v33  ;;  %v1951_v40 = vadd.f32 %v1950_v44, %v1949_v49  ;;  %v1004_v10 = vadd.f32 %v1003_v24, %v1002_v52 }
 0x123   :  { %v3623_v3 = vpop.f32.mrb[37].mxu1  ;;  %v3633_v9 = vpop.f32.mrb[38].mxu0  ;;  %v1200_v14 = vsel %vm955_vm3, %v1113_v60, 0.0  ;;  %v1952_v45 = vsel %vm1904_vm5, %v3399_v33, 0.0  ;;  %v2062_v16 = vmul.f32 %v3399_v33, %v3399_v33  ;;  %v2148_v27 = vadd.f32 %v2147_v47, %v2146_v57 }
 0x124   :  { %v3635_v32 = vpop.f32.mrb[38].mxu1  ;;  %v3642_v48 = vpop.f32.mrb[39].mxu0  ;;  %v1201_v21 = vadd.f32 %v1200_v14, %v1199_v53  ;;  %1864 = vst.msk [vmem:[%s4601_s5 + $0x60] sm:$0xf] %vm1839_vm4, %v2566_v5  ;;  %v1953_v26 = vadd.f32 %v1952_v45, %v1951_v40  ;;  %v2505_v30 = vpack.c.bf16 %v3409_v39, %v3409_v39  ;;  %v1007_v62 = vsel %vm955_vm3, %v3385_v25, 0.0 }
 0x125   :  { %v3644_v18 = vpop.f32.mrb[39].mxu1  ;;  %v2064_v33 = vmul.f32 %v3387_v35, %v3387_v35  ;;  %v2149_v12 = vsel %vm1904_vm5, %v2062_v16, 0.0  ;;  %v2569_v37 = vpack.c.bf16 %v3411_v7, %v3411_v7  ;;  %v1204_v38 = vsel %vm955_vm3, %v1115_v0, 0.0 }
 0x126   :  { %v1956_v28 = vsel %vm1904_vm5, %v3387_v35, 0.0  ;;  %v2150_v13 = vadd.f32 %v2149_v12, %v2148_v27  ;;  %918 = vst.msk [vmem:[%s4600_s3 + $0x6c] sm:$0xf] %vm890_vm2, %v2505_v30  ;;  %v2503_v25 = vpack.c.bf16 %v3418_v29, %v3418_v29  ;;  %v1116_v42 = vmul.f32 %v3409_v39, %v3409_v39 }
 0x127   :  { %1867 = vst.msk [vmem:[%s4601_s5 + $0x6c] sm:$0xf] %vm1839_vm4, %v2569_v37  ;;  %v1005_v35 = vsel %vm955_vm3, %v3418_v29, 0.0  ;;  %v1114_v43 = vmul.f32 %v3418_v29, %v3418_v29  ;;  %v2567_v63 = vpack.c.bf16 %v3420_v50, %v3420_v50  ;;  %v2065_v44 = vmul.f32 %v3411_v7, %v3411_v7 }
 0x128   :  { %916 = vst.msk [vmem:[%s4600_s3 + $0x64] sm:$0xf] %vm890_vm2, %v2503_v25  ;;  %v1006_v49 = vadd.f32 %v1005_v35, %v1004_v10  ;;  %v1954_v51 = vsel %vm1904_vm5, %v3420_v50, 0.0  ;;  %v2063_v54 = vmul.f32 %v3420_v50, %v3420_v50  ;;  %v2153_v47 = vsel %vm1904_vm5, %v2064_v33, 0.0 }
 0x129   :  { %v3690_v46 = vpop.f32.mrb[40].mxu0  ;;  %v1202_v55 = vsel %vm955_vm3, %v1114_v43, 0.0  ;;  %1865 = vst.msk [vmem:[%s4601_s5 + $0x64] sm:$0xf] %vm1839_vm4, %v2567_v63  ;;  %v1955_v23 = vadd.f32 %v1954_v51, %v1953_v26  ;;  %v2508_v57 = vpack.c.bf16 %v3466_v11, %v3466_v11  ;;  %v1009_v24 = vsel %vm955_vm3, %v3409_v39, 0.0 }
 0x12a   :  { %v3692_v29 = vpop.f32.mrb[40].mxu1  ;;  %v3702_v52 = vpop.f32.mrb[41].mxu0  ;;  %v1008_v60 = vadd.f32 %v1007_v62, %v1006_v49  ;;  %v1203_v0 = vadd.f32 %v1202_v55, %v1201_v21  ;;  %v2151_v53 = vsel %vm1904_vm5, %v2063_v54, 0.0  ;;  %v1958_v10 = vsel %vm1904_vm5, %v3411_v7, 0.0 }
 0x12b   :  { %v3704_v50 = vpop.f32.mrb[41].mxu1  ;;  %v3709_v5 = vpop.f32.mrb[42].mxu0  ;;  %v1957_v14 = vadd.f32 %v1956_v28, %v1955_v23  ;;  %v2152_v45 = vadd.f32 %v2151_v53, %v2150_v13  ;;  %921 = vst.msk [vmem:[%s4600_s3 + $0x78] sm:$0xf] %vm890_vm2, %v2508_v57  ;;  %v2572_v39 = vpack.c.bf16 %v3468_v17, %v3468_v17  ;;  %v1206_v26 = vsel %vm955_vm3, %v1116_v42, 0.0 }
 0x12c   :  { %v3711_v40 = vpop.f32.mrb[42].mxu1  ;;  %v3721_v16 = vpop.f32.mrb[43].mxu0  ;;  %v2155_v27 = vsel %vm1904_vm5, %v2065_v44, 0.0  ;;  %v1205_v30 = vadd.f32 %v1204_v38, %v1203_v0  ;;  %v2506_v7 = vpack.c.bf16 %v3478_v58, %v3478_v58  ;;  %v1010_v33 = vadd.f32 %v1009_v24, %v1008_v60 }
 0x12d   :  { %v3723_v21 = vpop.f32.mrb[43].mxu1  ;;  %v2154_v62 = vadd.f32 %v2153_v47, %v2152_v45  ;;  %1870 = vst.msk [vmem:[%s4601_s5 + $0x78] sm:$0xf] %vm1839_vm4, %v2572_v39  ;;  %v1011_v12 = vsel %vm955_vm3, %v3478_v58, 0.0  ;;  %v1117_v37 = vmul.f32 %v3478_v58, %v3478_v58  ;;  %v1119_v28 = vmul.f32 %v3466_v11, %v3466_v11 }
 0x12e   :  { %919 = vst.msk [vmem:[%s4600_s3 + $0x70] sm:$0xf] %vm890_vm2, %v2506_v7  ;;  %v1207_v38 = vadd.f32 %v1206_v26, %v1205_v30  ;;  %v2570_v13 = vpack.c.bf16 %v3480_v20, %v3480_v20  ;;  %v1959_v25 = vadd.f32 %v1958_v10, %v1957_v14  ;;  %v1012_v42 = vadd.f32 %v1011_v12, %v1010_v33 }
 0x12f   :  { %v1208_v35 = vsel %vm955_vm3, %v1117_v37, 0.0  ;;  %v1960_v43 = vsel %vm1904_vm5, %v3480_v20, 0.0  ;;  %v2066_v58 = vmul.f32 %v3480_v20, %v3480_v20  ;;  %v2156_v49 = vadd.f32 %v2155_v27, %v2154_v62 }
 0x130   :  { %v1209_v63 = vadd.f32 %v1208_v35, %v1207_v38  ;;  %1868 = vst.msk [vmem:[%s4601_s5 + $0x70] sm:$0xf] %vm1839_vm4, %v2570_v13  ;;  %v1961_v44 = vadd.f32 %v1960_v43, %v1959_v25  ;;  %v2509_v51 = vpack.c.bf16 %v3485_v59, %v3485_v59  ;;  %v1015_v55 = vsel %vm955_vm3, %v3466_v11, 0.0 }
 0x131   :  { %v3756_v54 = vpop.f32.mrb[44].mxu0  ;;  %v2068_v20 = vmul.f32 %v3468_v17, %v3468_v17  ;;  %v2157_v23 = vsel %vm1904_vm5, %v2066_v58, 0.0  ;;  %v2573_v57 = vpack.c.bf16 %v3487_v19, %v3487_v19  ;;  %v1212_v0 = vsel %vm955_vm3, %v1119_v28, 0.0 }
 0x132   :  { %v3758_v47 = vpop.f32.mrb[44].mxu1  ;;  %v3767_v24 = vpop.f32.mrb[45].mxu0  ;;  %v1964_v53 = vsel %vm1904_vm5, %v3468_v17, 0.0  ;;  %v2158_v10 = vadd.f32 %v2157_v23, %v2156_v49  ;;  %922 = vst.msk [vmem:[%s4600_s3 + $0x7c] sm:$0xf] %vm890_vm2, %v2509_v51  ;;  %v2507_v11 = vpack.c.bf16 %v3497_v31, %v3497_v31  ;;  %v1120_v39 = vmul.f32 %v3485_v59, %v3485_v59 }
 0x133   :  { %v3769_v60 = vpop.f32.mrb[45].mxu1  ;;  %v3780_v14 = vpop.f32.mrb[46].mxu0  ;;  %1871 = vst.msk [vmem:[%s4601_s5 + $0x7c] sm:$0xf] %vm1839_vm4, %v2573_v57  ;;  %v1013_v17 = vsel %vm955_vm3, %v3497_v31, 0.0  ;;  %v1118_v26 = vmul.f32 %v3497_v31, %v3497_v31  ;;  %v2571_v27 = vpack.c.bf16 %v3499_v36, %v3499_v36  ;;  %v2069_v62 = vmul.f32 %v3487_v19, %v3487_v19 }
 0x134   :  { %v3782_v45 = vpop.f32.mrb[46].mxu1  ;;  %v3796_v30 = vpop.f32.mrb[47].mxu0  ;;  %920 = vst.msk [vmem:[%s4600_s3 + $0x74] sm:$0xf] %vm890_vm2, %v2507_v11  ;;  %v1014_v33 = vadd.f32 %v1013_v17, %v1012_v42  ;;  %v1962_v12 = vsel %vm1904_vm5, %v3499_v36, 0.0  ;;  %v2067_v31 = vmul.f32 %v3499_v36, %v3499_v36  ;;  %v2161_v37 = vsel %vm1904_vm5, %v2068_v20, 0.0 }
 0x135   :  { %v3798_v7 = vpop.f32.mrb[47].mxu1  ;;  %v1210_v28 = vsel %vm955_vm3, %v1118_v26, 0.0  ;;  %1869 = vst.msk [vmem:[%s4601_s5 + $0x74] sm:$0xf] %vm1839_vm4, %v2571_v27  ;;  %v1963_v38 = vadd.f32 %v1962_v12, %v1961_v44  ;;  %v2512_v13 = vpack.c.bf16 %v3532_v2, %v3532_v2  ;;  %v1017_v25 = vsel %vm955_vm3, %v3485_v59, 0.0 }
 0x136   :  { %v1016_v42 = vadd.f32 %v1015_v55, %v1014_v33  ;;  %v1211_v35 = vadd.f32 %v1210_v28, %v1209_v63  ;;  %v2159_v36 = vsel %vm1904_vm5, %v2067_v31, 0.0  ;;  %v1966_v43 = vsel %vm1904_vm5, %v3487_v19, 0.0 }
 0x137   :  { %v1965_v58 = vadd.f32 %v1964_v53, %v1963_v38  ;;  %v2160_v49 = vadd.f32 %v2159_v36, %v2158_v10  ;;  %925 = vst.msk [vmem:[%s4600_s3 + $0x88] sm:$0xf] %vm890_vm2, %v2512_v13  ;;  %v2576_v44 = vpack.c.bf16 %v3534_v4, %v3534_v4  ;;  %v1214_v51 = vsel %vm955_vm3, %v1120_v39, 0.0 }
 0x138   :  { %v2163_v59 = vsel %vm1904_vm5, %v2069_v62, 0.0  ;;  %v1213_v63 = vadd.f32 %v1212_v0, %v1211_v35  ;;  %v2510_v55 = vpack.c.bf16 %v3543_v6, %v3543_v6  ;;  %v1018_v57 = vadd.f32 %v1017_v25, %v1016_v42 }
 0x139   :  { %v3833_v20 = vpop.f32.mrb[48].mxu0  ;;  %v2162_v23 = vadd.f32 %v2161_v37, %v2160_v49  ;;  %1874 = vst.msk [vmem:[%s4601_s5 + $0x88] sm:$0xf] %vm1839_vm4, %v2576_v44  ;;  %v1019_v53 = vsel %vm955_vm3, %v3543_v6, 0.0  ;;  %v1121_v0 = vmul.f32 %v3543_v6, %v3543_v6  ;;  %v1123_v39 = vmul.f32 %v3532_v2, %v3532_v2 }
 0x13a   :  { %v3835_v19 = vpop.f32.mrb[48].mxu1  ;;  %v3845_v10 = vpop.f32.mrb[49].mxu0  ;;  %923 = vst.msk [vmem:[%s4600_s3 + $0x80] sm:$0xf] %vm890_vm2, %v2510_v55  ;;  %v1215_v17 = vadd.f32 %v1214_v51, %v1213_v63  ;;  %v2574_v26 = vpack.c.bf16 %v3545_v8, %v3545_v8  ;;  %v1967_v27 = vadd.f32 %v1966_v43, %v1965_v58  ;;  %v1020_v33 = vadd.f32 %v1019_v53, %v1018_v57 }
 0x13b   :  { %v3847_v11 = vpop.f32.mrb[49].mxu1  ;;  %v3857_v62 = vpop.f32.mrb[50].mxu0  ;;  %v1216_v12 = vsel %vm955_vm3, %v1121_v0, 0.0  ;;  %v1968_v31 = vsel %vm1904_vm5, %v3545_v8, 0.0  ;;  %v2070_v37 = vmul.f32 %v3545_v8, %v3545_v8  ;;  %v2164_v42 = vadd.f32 %v2163_v59, %v2162_v23 }
 0x13c   :  { %v3859_v6 = vpop.f32.mrb[50].mxu1  ;;  %v3866_v28 = vpop.f32.mrb[51].mxu0  ;;  %v1217_v13 = vadd.f32 %v1216_v12, %v1215_v17  ;;  %1872 = vst.msk [vmem:[%s4601_s5 + $0x80] sm:$0xf] %vm1839_vm4, %v2574_v26  ;;  %v1969_v25 = vadd.f32 %v1968_v31, %v1967_v27  ;;  %v2513_v35 = vpack.c.bf16 %v3556_v15, %v3556_v15  ;;  %v1023_v36 = vsel %vm955_vm3, %v3532_v2, 0.0 }
 0x13d   :  { %v3868_v38 = vpop.f32.mrb[51].mxu1  ;;  %v2072_v8 = vmul.f32 %v3534_v4, %v3534_v4  ;;  %v2165_v43 = vsel %vm1904_vm5, %v2070_v37, 0.0  ;;  %v2577_v58 = vpack.c.bf16 %v3558_v41, %v3558_v41  ;;  %v1220_v49 = vsel %vm955_vm3, %v1123_v39, 0.0 }
 0x13e   :  { %v1972_v44 = vsel %vm1904_vm5, %v3534_v4, 0.0  ;;  %v2166_v51 = vadd.f32 %v2165_v43, %v2164_v42  ;;  %926 = vst.msk [vmem:[%s4600_s3 + $0x8c] sm:$0xf] %vm890_vm2, %v2513_v35  ;;  %v2511_v2 = vpack.c.bf16 %v3572_v22, %v3572_v22  ;;  %v1124_v59 = vmul.f32 %v3556_v15, %v3556_v15 }
 0x13f   :  { %1875 = vst.msk [vmem:[%s4601_s5 + $0x8c] sm:$0xf] %vm1839_vm4, %v2577_v58  ;;  %v1021_v4 = vsel %vm955_vm3, %v3572_v22, 0.0  ;;  %v1122_v63 = vmul.f32 %v3572_v22, %v3572_v22  ;;  %v2575_v55 = vpack.c.bf16 %v3574_v34, %v3574_v34  ;;  %v2073_v23 = vmul.f32 %v3558_v41, %v3558_v41 }
 0x140   :  { %924 = vst.msk [vmem:[%s4600_s3 + $0x84] sm:$0xf] %vm890_vm2, %v2511_v2  ;;  %v1022_v57 = vadd.f32 %v1021_v4, %v1020_v33  ;;  %v1970_v53 = vsel %vm1904_vm5, %v3574_v34, 0.0  ;;  %v2071_v0 = vmul.f32 %v3574_v34, %v3574_v34  ;;  %v2169_v17 = vsel %vm1904_vm5, %v2072_v8, 0.0 }
 0x141   :  { %v3914_v39 = vpop.f32.mrb[52].mxu0  ;;  %v1218_v26 = vsel %vm955_vm3, %v1122_v63, 0.0  ;;  %1873 = vst.msk [vmem:[%s4601_s5 + $0x84] sm:$0xf] %vm1839_vm4, %v2575_v55  ;;  %v1971_v27 = vadd.f32 %v1970_v53, %v1969_v25  ;;  %v2516_v33 = vpack.c.bf16 %v3609_v1, %v3609_v1  ;;  %v1025_v31 = vsel %vm955_vm3, %v3556_v15, 0.0 }
 0x142   :  { %v3916_v22 = vpop.f32.mrb[52].mxu1  ;;  %v3926_v12 = vpop.f32.mrb[53].mxu0  ;;  %v1024_v37 = vadd.f32 %v1023_v36, %v1022_v57  ;;  %v1219_v42 = vadd.f32 %v1218_v26, %v1217_v13  ;;  %v2167_v35 = vsel %vm1904_vm5, %v2071_v0, 0.0  ;;  %v1974_v25 = vsel %vm1904_vm5, %v3558_v41, 0.0 }
 0x143   :  { %v3928_v34 = vpop.f32.mrb[53].mxu1  ;;  %v3933_v8 = vpop.f32.mrb[54].mxu0  ;;  %v1973_v58 = vadd.f32 %v1972_v44, %v1971_v27  ;;  %v2168_v2 = vadd.f32 %v2167_v35, %v2166_v51  ;;  %929 = vst.msk [vmem:[%s4600_s3 + $0x98] sm:$0xf] %vm890_vm2, %v2516_v33  ;;  %v2580_v15 = vpack.c.bf16 %v3611_v56, %v3611_v56  ;;  %v1222_v4 = vsel %vm955_vm3, %v1124_v59, 0.0 }
 0x144   :  { %v3935_v43 = vpop.f32.mrb[54].mxu1  ;;  %v3945_v13 = vpop.f32.mrb[55].mxu0  ;;  %v2171_v63 = vsel %vm1904_vm5, %v2073_v23, 0.0  ;;  %v1221_v55 = vadd.f32 %v1220_v49, %v1219_v42  ;;  %v2514_v41 = vpack.c.bf16 %v3621_v61, %v3621_v61  ;;  %v1026_v51 = vadd.f32 %v1025_v31, %v1024_v37 }
 0x145   :  { %v3947_v36 = vpop.f32.mrb[55].mxu1  ;;  %v2170_v44 = vadd.f32 %v2169_v17, %v2168_v2  ;;  %1878 = vst.msk [vmem:[%s4601_s5 + $0x98] sm:$0xf] %vm1839_vm4, %v2580_v15  ;;  %v1027_v57 = vsel %vm955_vm3, %v3621_v61, 0.0  ;;  %v1125_v53 = vmul.f32 %v3621_v61, %v3621_v61  ;;  %v1127_v59 = vmul.f32 %v3609_v1, %v3609_v1 }
 0x146   :  { %927 = vst.msk [vmem:[%s4600_s3 + $0x90] sm:$0xf] %vm890_vm2, %v2514_v41  ;;  %v1223_v49 = vadd.f32 %v1222_v4, %v1221_v55  ;;  %v2578_v23 = vpack.c.bf16 %v3623_v3, %v3623_v3  ;;  %v1975_v0 = vadd.f32 %v1974_v25, %v1973_v58  ;;  %v1028_v17 = vadd.f32 %v1027_v57, %v1026_v51 }
 0x147   :  { %v1224_v26 = vsel %vm955_vm3, %v1125_v53, 0.0  ;;  %v1976_v27 = vsel %vm1904_vm5, %v3623_v3, 0.0  ;;  %v2074_v61 = vmul.f32 %v3623_v3, %v3623_v3  ;;  %v2172_v37 = vadd.f32 %v2171_v63, %v2170_v44 }
 0x148   :  { %v1225_v33 = vadd.f32 %v1224_v26, %v1223_v49  ;;  %1876 = vst.msk [vmem:[%s4601_s5 + $0x90] sm:$0xf] %vm1839_vm4, %v2578_v23  ;;  %v1977_v31 = vadd.f32 %v1976_v27, %v1975_v0  ;;  %v2517_v42 = vpack.c.bf16 %v3633_v9, %v3633_v9  ;;  %v1031_v58 = vsel %vm955_vm3, %v3609_v1, 0.0 }
 0x149   :  { %v3980_v35 = vpop.f32.mrb[56].mxu0  ;;  %v2076_v3 = vmul.f32 %v3611_v56, %v3611_v56  ;;  %v2173_v2 = vsel %vm1904_vm5, %v2074_v61, 0.0  ;;  %v2581_v15 = vpack.c.bf16 %v3635_v32, %v3635_v32  ;;  %v1228_v55 = vsel %vm955_vm3, %v1127_v59, 0.0 }
 0x14a   :  { %v3982_v25 = vpop.f32.mrb[56].mxu1  ;;  %v3991_v4 = vpop.f32.mrb[57].mxu0  ;;  %v1980_v41 = vsel %vm1904_vm5, %v3611_v56, 0.0  ;;  %v2174_v44 = vadd.f32 %v2173_v2, %v2172_v37  ;;  %930 = vst.msk [vmem:[%s4600_s3 + $0x9c] sm:$0xf] %vm890_vm2, %v2517_v42  ;;  %v2515_v1 = vpack.c.bf16 %v3642_v48, %v3642_v48  ;;  %v1128_v53 = vmul.f32 %v3633_v9, %v3633_v9 }
 0x14b   :  { %v3993_v63 = vpop.f32.mrb[57].mxu1  ;;  %v4004_v51 = vpop.f32.mrb[58].mxu0  ;;  %1879 = vst.msk [vmem:[%s4601_s5 + $0x9c] sm:$0xf] %vm1839_vm4, %v2581_v15  ;;  %v1029_v56 = vsel %vm955_vm3, %v3642_v48, 0.0  ;;  %v1126_v59 = vmul.f32 %v3642_v48, %v3642_v48  ;;  %v2579_v49 = vpack.c.bf16 %v3644_v18, %v3644_v18  ;;  %v2077_v26 = vmul.f32 %v3635_v32, %v3635_v32 }
 0x14c   :  { %v4006_v57 = vpop.f32.mrb[58].mxu1  ;;  %v4020_v23 = vpop.f32.mrb[59].mxu0  ;;  %928 = vst.msk [vmem:[%s4600_s3 + $0x94] sm:$0xf] %vm890_vm2, %v2515_v1  ;;  %v1030_v27 = vadd.f32 %v1029_v56, %v1028_v17  ;;  %v1978_v61 = vsel %vm1904_vm5, %v3644_v18, 0.0  ;;  %v2075_v48 = vmul.f32 %v3644_v18, %v3644_v18  ;;  %v2177_v37 = vsel %vm1904_vm5, %v2076_v3, 0.0 }
 0x14d   :  { %v4022_v0 = vpop.f32.mrb[59].mxu1  ;;  %v1226_v42 = vsel %vm955_vm3, %v1126_v59, 0.0  ;;  %1877 = vst.msk [vmem:[%s4601_s5 + $0x94] sm:$0xf] %vm1839_vm4, %v2579_v49  ;;  %v1979_v2 = vadd.f32 %v1978_v61, %v1977_v31  ;;  %v2520_v15 = vpack.c.bf16 %v3690_v46, %v3690_v46  ;;  %v1033_v17 = vsel %vm955_vm3, %v3633_v9, 0.0 }
 0x14e   :  { %4605 = vst [vmem:[#allocation2_spill] sm:$0xff] %v4022_v0  ;;  %v1032_v1 = vadd.f32 %v1031_v58, %v1030_v27  ;;  %v1227_v56 = vadd.f32 %v1226_v42, %v1225_v33  ;;  %v2175_v18 = vsel %vm1904_vm5, %v2075_v48, 0.0  ;;  %v1982_v3 = vsel %vm1904_vm5, %v3635_v32, 0.0 }
 0x14f   :  { %v1981_v59 = vadd.f32 %v1980_v41, %v1979_v2  ;;  %v2176_v0 = vadd.f32 %v2175_v18, %v2174_v44  ;;  %933 = vst.msk [vmem:[%s4600_s3 + $0xa8] sm:$0xf] %vm890_vm2, %v2520_v15  ;;  %v2584_v31 = vpack.c.bf16 %v3692_v29, %v3692_v29  ;;  %v1230_v49 = vsel %vm955_vm3, %v1128_v53, 0.0 }
 0x150   :  { %v2179_v9 = vsel %vm1904_vm5, %v2077_v26, 0.0  ;;  %v1229_v33 = vadd.f32 %v1228_v55, %v1227_v56  ;;  %v2518_v58 = vpack.c.bf16 %v3702_v52, %v3702_v52  ;;  %v1034_v44 = vadd.f32 %v1033_v17, %v1032_v1 }
 0x151   :  { %v4057_v27 = vpop.f32.mrb[60].mxu0  ;;  %v2178_v41 = vadd.f32 %v2177_v37, %v2176_v0  ;;  %1882 = vst.msk [vmem:[%s4601_s5 + $0xa8] sm:$0xf] %vm1839_vm4, %v2584_v31  ;;  %v1035_v53 = vsel %vm955_vm3, %v3702_v52, 0.0  ;;  %v1129_v55 = vmul.f32 %v3702_v52, %v3702_v52  ;;  %v1131_v48 = vmul.f32 %v3690_v46, %v3690_v46 }
 0x152   :  { %v4059_v32 = vpop.f32.mrb[60].mxu1  ;;  %v4069_v26 = vpop.f32.mrb[61].mxu0  ;;  %931 = vst.msk [vmem:[%s4600_s3 + $0xa0] sm:$0xf] %vm890_vm2, %v2518_v58  ;;  %v1231_v0 = vadd.f32 %v1230_v49, %v1229_v33  ;;  %v2582_v37 = vpack.c.bf16 %v3704_v50, %v3704_v50  ;;  %v1983_v42 = vadd.f32 %v1982_v3, %v1981_v59  ;;  %v1036_v15 = vadd.f32 %v1035_v53, %v1034_v44 }
 0x153   :  { %v4071_v61 = vpop.f32.mrb[61].mxu1  ;;  %v4081_v2 = vpop.f32.mrb[62].mxu0  ;;  %v1232_v17 = vsel %vm955_vm3, %v1129_v55, 0.0  ;;  %v1984_v1 = vsel %vm1904_vm5, %v3704_v50, 0.0  ;;  %v2078_v56 = vmul.f32 %v3704_v50, %v3704_v50  ;;  %v2180_v59 = vadd.f32 %v2179_v9, %v2178_v41 }
 0x154   :  { %v4083_v52 = vpop.f32.mrb[62].mxu1  ;;  %v4090_v18 = vpop.f32.mrb[63].mxu0  ;;  %v1233_v49 = vadd.f32 %v1232_v17, %v1231_v0  ;;  %1880 = vst.msk [vmem:[%s4601_s5 + $0xa0] sm:$0xf] %vm1839_vm4, %v2582_v37  ;;  %v1985_v3 = vadd.f32 %v1984_v1, %v1983_v42  ;;  %v2521_v33 = vpack.c.bf16 %v3709_v5, %v3709_v5  ;;  %v1039_v58 = vsel %vm955_vm3, %v3690_v46, 0.0 }
 0x155   :  { %v4092_v31 = vpop.f32.mrb[63].mxu1  ;;  %v2080_v50 = vmul.f32 %v3692_v29, %v3692_v29  ;;  %v2181_v44 = vsel %vm1904_vm5, %v2078_v56, 0.0  ;;  %v2585_v53 = vpack.c.bf16 %v3711_v40, %v3711_v40  ;;  %v1236_v55 = vsel %vm955_vm3, %v1131_v48, 0.0 }
 0x156   :  { %v1988_v0 = vsel %vm1904_vm5, %v3692_v29, 0.0  ;;  %v2182_v9 = vadd.f32 %v2181_v44, %v2180_v59  ;;  %934 = vst.msk [vmem:[%s4600_s3 + $0xac] sm:$0xf] %vm890_vm2, %v2521_v33  ;;  %v2519_v46 = vpack.c.bf16 %v3721_v16, %v3721_v16  ;;  %v1132_v41 = vmul.f32 %v3709_v5, %v3709_v5 }
 0x157   :  { %1883 = vst.msk [vmem:[%s4601_s5 + $0xac] sm:$0xf] %vm1839_vm4, %v2585_v53  ;;  %v1037_v29 = vsel %vm955_vm3, %v3721_v16, 0.0  ;;  %v1130_v48 = vmul.f32 %v3721_v16, %v3721_v16  ;;  %v2583_v37 = vpack.c.bf16 %v3723_v21, %v3723_v21  ;;  %v2081_v42 = vmul.f32 %v3711_v40, %v3711_v40 }
 0x158   :  { %932 = vst.msk [vmem:[%s4600_s3 + $0xa4] sm:$0xf] %vm890_vm2, %v2519_v46  ;;  %v1038_v17 = vadd.f32 %v1037_v29, %v1036_v15  ;;  %v1986_v1 = vsel %vm1904_vm5, %v3723_v21, 0.0  ;;  %v2079_v56 = vmul.f32 %v3723_v21, %v3723_v21  ;;  %v2185_v16 = vsel %vm1904_vm5, %v2080_v50, 0.0 }
 0x159   :  { %v1234_v59 = vsel %vm955_vm3, %v1130_v48, 0.0  ;;  %1881 = vst.msk [vmem:[%s4601_s5 + $0xa4] sm:$0xf] %vm1839_vm4, %v2583_v37  ;;  %v1987_v33 = vadd.f32 %v1986_v1, %v1985_v3  ;;  %v2524_v44 = vpack.c.bf16 %v3756_v54, %v3756_v54  ;;  %v1041_v15 = vsel %vm955_vm3, %v3709_v5, 0.0 }
 0x15a   :  { %v1040_v53 = vadd.f32 %v1039_v58, %v1038_v17  ;;  %v1235_v46 = vadd.f32 %v1234_v59, %v1233_v49  ;;  %v2183_v21 = vsel %vm1904_vm5, %v2079_v56, 0.0  ;;  %v1990_v50 = vsel %vm1904_vm5, %v3711_v40, 0.0 }
 0x15b   :  { %v1989_v29 = vadd.f32 %v1988_v0, %v1987_v33  ;;  %v2184_v48 = vadd.f32 %v2183_v21, %v2182_v9  ;;  %937 = vst.msk [vmem:[%s4600_s3 + $0xb8] sm:$0xf] %vm890_vm2, %v2524_v44  ;;  %v2588_v3 = vpack.c.bf16 %v3758_v47, %v3758_v47  ;;  %v1238_v37 = vsel %vm955_vm3, %v1132_v41, 0.0 }
 0x15c   :  { %v2187_v5 = vsel %vm1904_vm5, %v2081_v42, 0.0  ;;  %v1237_v49 = vadd.f32 %v1236_v55, %v1235_v46  ;;  %v2522_v58 = vpack.c.bf16 %v3767_v24, %v3767_v24  ;;  %v1042_v40 = vadd.f32 %v1041_v15, %v1040_v53 }
 0x15d   :  { %v2186_v17 = vadd.f32 %v2185_v16, %v2184_v48  ;;  %1886 = vst.msk [vmem:[%s4601_s5 + $0xb8] sm:$0xf] %vm1839_vm4, %v2588_v3  ;;  %v1043_v0 = vsel %vm955_vm3, %v3767_v24, 0.0  ;;  %v1133_v9 = vmul.f32 %v3767_v24, %v3767_v24  ;;  %v1135_v41 = vmul.f32 %v3756_v54, %v3756_v54 }
 0x15e   :  { %935 = vst.msk [vmem:[%s4600_s3 + $0xb0] sm:$0xf] %vm890_vm2, %v2522_v58  ;;  %v1239_v55 = vadd.f32 %v1238_v37, %v1237_v49  ;;  %v2586_v42 = vpack.c.bf16 %v3769_v60, %v3769_v60  ;;  %v1991_v1 = vadd.f32 %v1990_v50, %v1989_v29  ;;  %v1044_v56 = vadd.f32 %v1043_v0, %v1042_v40 }
 0x15f   :  { %v1240_v16 = vsel %vm955_vm3, %v1133_v9, 0.0  ;;  %v1992_v59 = vsel %vm1904_vm5, %v3769_v60, 0.0  ;;  %v2082_v24 = vmul.f32 %v3769_v60, %v3769_v60  ;;  %v2188_v15 = vadd.f32 %v2187_v5, %v2186_v17 }
 0x160   :  { %v1241_v33 = vadd.f32 %v1240_v16, %v1239_v55  ;;  %1884 = vst.msk [vmem:[%s4601_s5 + $0xb0] sm:$0xf] %vm1839_vm4, %v2586_v42  ;;  %v1993_v44 = vadd.f32 %v1992_v59, %v1991_v1  ;;  %v2525_v53 = vpack.c.bf16 %v3780_v14, %v3780_v14  ;;  %v1047_v46 = vsel %vm955_vm3, %v3756_v54, 0.0 }
 0x161   :  { %v2084_v21 = vmul.f32 %v3758_v47, %v3758_v47  ;;  %v2189_v50 = vsel %vm1904_vm5, %v2082_v24, 0.0  ;;  %v2589_v60 = vpack.c.bf16 %v3782_v45, %v3782_v45  ;;  %v1244_v29 = vsel %vm955_vm3, %v1135_v41, 0.0 }
 0x162   :  { %v1996_v48 = vsel %vm1904_vm5, %v3758_v47, 0.0  ;;  %v2190_v3 = vadd.f32 %v2189_v50, %v2188_v15  ;;  %938 = vst.msk [vmem:[%s4600_s3 + $0xbc] sm:$0xf] %vm890_vm2, %v2525_v53  ;;  %v2523_v54 = vpack.c.bf16 %v3796_v30, %v3796_v30  ;;  %v1136_v37 = vmul.f32 %v3780_v14, %v3780_v14 }
 0x163   :  { %1887 = vst.msk [vmem:[%s4601_s5 + $0xbc] sm:$0xf] %vm1839_vm4, %v2589_v60  ;;  %v1045_v47 = vsel %vm955_vm3, %v3796_v30, 0.0  ;;  %v1134_v5 = vmul.f32 %v3796_v30, %v3796_v30  ;;  %v2587_v49 = vpack.c.bf16 %v3798_v7, %v3798_v7  ;;  %v2085_v58 = vmul.f32 %v3782_v45, %v3782_v45 }
 0x164   :  { %936 = vst.msk [vmem:[%s4600_s3 + $0xb4] sm:$0xf] %vm890_vm2, %v2523_v54  ;;  %v1046_v17 = vadd.f32 %v1045_v47, %v1044_v56  ;;  %v1994_v40 = vsel %vm1904_vm5, %v3798_v7, 0.0  ;;  %v2083_v0 = vmul.f32 %v3798_v7, %v3798_v7  ;;  %v2193_v30 = vsel %vm1904_vm5, %v2084_v21, 0.0 }
 0x165   :  { %v1242_v9 = vsel %vm955_vm3, %v1134_v5, 0.0  ;;  %1885 = vst.msk [vmem:[%s4601_s5 + $0xb4] sm:$0xf] %vm1839_vm4, %v2587_v49  ;;  %v1995_v41 = vadd.f32 %v1994_v40, %v1993_v44  ;;  %v2528_v55 = vpack.c.bf16 %v3833_v20, %v3833_v20  ;;  %v1049_v42 = vsel %vm955_vm3, %v3780_v14, 0.0 }
 0x166   :  { %v1048_v1 = vadd.f32 %v1047_v46, %v1046_v17  ;;  %v1243_v56 = vadd.f32 %v1242_v9, %v1241_v33  ;;  %v2191_v7 = vsel %vm1904_vm5, %v2083_v0, 0.0  ;;  %v1998_v16 = vsel %vm1904_vm5, %v3782_v45, 0.0 }
 0x167   :  { %v1997_v59 = vadd.f32 %v1996_v48, %v1995_v41  ;;  %v2192_v24 = vadd.f32 %v2191_v7, %v2190_v3  ;;  %941 = vst.msk [vmem:[%s4600_s3 + $0xc8] sm:$0xf] %vm890_vm2, %v2528_v55  ;;  %v2592_v44 = vpack.c.bf16 %v3835_v19, %v3835_v19  ;;  %v1246_v15 = vsel %vm955_vm3, %v1136_v37, 0.0 }
 0x168   :  { %v2195_v14 = vsel %vm1904_vm5, %v2085_v58, 0.0  ;;  %v1245_v33 = vadd.f32 %v1244_v29, %v1243_v56  ;;  %v2526_v53 = vpack.c.bf16 %v3845_v10, %v3845_v10  ;;  %v1050_v45 = vadd.f32 %v1049_v42, %v1048_v1 }
 0x169   :  { %v2194_v46 = vadd.f32 %v2193_v30, %v2192_v24  ;;  %1890 = vst.msk [vmem:[%s4601_s5 + $0xc8] sm:$0xf] %vm1839_vm4, %v2592_v44  ;;  %v1051_v21 = vsel %vm955_vm3, %v3845_v10, 0.0  ;;  %v1137_v50 = vmul.f32 %v3845_v10, %v3845_v10  ;;  %v1139_v60 = vmul.f32 %v3833_v20, %v3833_v20 }
 0x16a   :  { %939 = vst.msk [vmem:[%s4600_s3 + $0xc0] sm:$0xf] %vm890_vm2, %v2526_v53  ;;  %v1247_v29 = vadd.f32 %v1246_v15, %v1245_v33  ;;  %v2590_v48 = vpack.c.bf16 %v3847_v11, %v3847_v11  ;;  %v1999_v3 = vadd.f32 %v1998_v16, %v1997_v59  ;;  %v1052_v54 = vadd.f32 %v1051_v21, %v1050_v45 }
 0x16b   :  { %v1248_v37 = vsel %vm955_vm3, %v1137_v50, 0.0  ;;  %v2000_v47 = vsel %vm1904_vm5, %v3847_v11, 0.0  ;;  %v2086_v10 = vmul.f32 %v3847_v11, %v3847_v11  ;;  %v2196_v58 = vadd.f32 %v2195_v14, %v2194_v46 }
 0x16c   :  { %v1249_v5 = vadd.f32 %v1248_v37, %v1247_v29  ;;  %1888 = vst.msk [vmem:[%s4601_s5 + $0xc0] sm:$0xf] %vm1839_vm4, %v2590_v48  ;;  %v2001_v49 = vadd.f32 %v2000_v47, %v1999_v3  ;;  %v2529_v17 = vpack.c.bf16 %v3857_v62, %v3857_v62  ;;  %v1055_v40 = vsel %vm955_vm3, %v3833_v20, 0.0 }
 0x16d   :  { %v2088_v0 = vmul.f32 %v3835_v19, %v3835_v19  ;;  %v2197_v30 = vsel %vm1904_vm5, %v2086_v10, 0.0  ;;  %v2593_v11 = vpack.c.bf16 %v3859_v6, %v3859_v6  ;;  %v1252_v9 = vsel %vm955_vm3, %v1139_v60, 0.0 }
 0x16e   :  { %v2004_v41 = vsel %vm1904_vm5, %v3835_v19, 0.0  ;;  %v2198_v55 = vadd.f32 %v2197_v30, %v2196_v58  ;;  %942 = vst.msk [vmem:[%s4600_s3 + $0xcc] sm:$0xf] %vm890_vm2, %v2529_v17  ;;  %v2527_v20 = vpack.c.bf16 %v3866_v28, %v3866_v28  ;;  %v1140_v42 = vmul.f32 %v3857_v62, %v3857_v62 }
 0x16f   :  { %1891 = vst.msk [vmem:[%s4601_s5 + $0xcc] sm:$0xf] %vm1839_vm4, %v2593_v11  ;;  %v1053_v19 = vsel %vm955_vm3, %v3866_v28, 0.0  ;;  %v1138_v1 = vmul.f32 %v3866_v28, %v3866_v28  ;;  %v2591_v56 = vpack.c.bf16 %v3868_v38, %v3868_v38  ;;  %v2089_v7 = vmul.f32 %v3859_v6, %v3859_v6 }
 0x170   :  { %940 = vst.msk [vmem:[%s4600_s3 + $0xc4] sm:$0xf] %vm890_vm2, %v2527_v20  ;;  %v1054_v16 = vadd.f32 %v1053_v19, %v1052_v54  ;;  %v2002_v59 = vsel %vm1904_vm5, %v3868_v38, 0.0  ;;  %v2087_v24 = vmul.f32 %v3868_v38, %v3868_v38  ;;  %v2201_v28 = vsel %vm1904_vm5, %v2088_v0, 0.0 }
 0x171   :  { %v1250_v44 = vsel %vm955_vm3, %v1138_v1, 0.0  ;;  %1889 = vst.msk [vmem:[%s4601_s5 + $0xc4] sm:$0xf] %vm1839_vm4, %v2591_v56  ;;  %v2003_v15 = vadd.f32 %v2002_v59, %v2001_v49  ;;  %v2532_v14 = vpack.c.bf16 %v3914_v39, %v3914_v39  ;;  %v1057_v33 = vsel %vm955_vm3, %v3857_v62, 0.0 }
 0x172   :  { %v1056_v53 = vadd.f32 %v1055_v40, %v1054_v16  ;;  %v1251_v46 = vadd.f32 %v1250_v44, %v1249_v5  ;;  %v2199_v38 = vsel %vm1904_vm5, %v2087_v24, 0.0  ;;  %v2006_v45 = vsel %vm1904_vm5, %v3859_v6, 0.0 }
 0x173   :  { %v2005_v21 = vadd.f32 %v2004_v41, %v2003_v15  ;;  %v2200_v50 = vadd.f32 %v2199_v38, %v2198_v55  ;;  %945 = vst.msk [vmem:[%s4600_s3 + $0xd8] sm:$0xf] %vm890_vm2, %v2532_v14  ;;  %v2596_v60 = vpack.c.bf16 %v3916_v22, %v3916_v22  ;;  %v1254_v29 = vsel %vm955_vm3, %v1140_v42, 0.0 }
 0x174   :  { %v2203_v62 = vsel %vm1904_vm5, %v2089_v7, 0.0  ;;  %v1253_v48 = vadd.f32 %v1252_v9, %v1251_v46  ;;  %v2530_v3 = vpack.c.bf16 %v3926_v12, %v3926_v12  ;;  %v1058_v6 = vadd.f32 %v1057_v33, %v1056_v53 }
 0x175   :  { %v2202_v54 = vadd.f32 %v2201_v28, %v2200_v50  ;;  %1894 = vst.msk [vmem:[%s4601_s5 + $0xd8] sm:$0xf] %vm1839_vm4, %v2596_v60  ;;  %v1059_v37 = vsel %vm955_vm3, %v3926_v12, 0.0  ;;  %v1141_v47 = vmul.f32 %v3926_v12, %v3926_v12  ;;  %v1143_v10 = vmul.f32 %v3914_v39, %v3914_v39 }
 0x176   :  { %943 = vst.msk [vmem:[%s4600_s3 + $0xd0] sm:$0xf] %vm890_vm2, %v2530_v3  ;;  %v1255_v5 = vadd.f32 %v1254_v29, %v1253_v48  ;;  %v2594_v49 = vpack.c.bf16 %v3928_v34, %v3928_v34  ;;  %v2007_v58 = vadd.f32 %v2006_v45, %v2005_v21  ;;  %v1060_v17 = vadd.f32 %v1059_v37, %v1058_v6 }
 0x177   :  { %v1256_v40 = vsel %vm955_vm3, %v1141_v47, 0.0  ;;  %v2008_v0 = vsel %vm1904_vm5, %v3928_v34, 0.0  ;;  %v2090_v12 = vmul.f32 %v3928_v34, %v3928_v34  ;;  %v2204_v9 = vadd.f32 %v2203_v62, %v2202_v54 }
 0x178   :  { %v1257_v30 = vadd.f32 %v1256_v40, %v1255_v5  ;;  %1892 = vst.msk [vmem:[%s4601_s5 + $0xd0] sm:$0xf] %vm1839_vm4, %v2594_v49  ;;  %v2009_v11 = vadd.f32 %v2008_v0, %v2007_v58  ;;  %v2533_v41 = vpack.c.bf16 %v3933_v8, %v3933_v8  ;;  %v1063_v55 = vsel %vm955_vm3, %v3914_v39, 0.0 }
 0x179   :  { %v2092_v20 = vmul.f32 %v3916_v22, %v3916_v22  ;;  %v2205_v42 = vsel %vm1904_vm5, %v2090_v12, 0.0  ;;  %v2597_v34 = vpack.c.bf16 %v3935_v43, %v3935_v43  ;;  %v1260_v19 = vsel %vm955_vm3, %v1143_v10, 0.0 }
 0x17a   :  { %v2012_v1 = vsel %vm1904_vm5, %v3916_v22, 0.0  ;;  %v2206_v56 = vadd.f32 %v2205_v42, %v2204_v9  ;;  %946 = vst.msk [vmem:[%s4600_s3 + $0xdc] sm:$0xf] %vm890_vm2, %v2533_v41  ;;  %v2531_v39 = vpack.c.bf16 %v3945_v13, %v3945_v13  ;;  %v1144_v7 = vmul.f32 %v3933_v8, %v3933_v8 }
 0x17b   :  { %1895 = vst.msk [vmem:[%s4601_s5 + $0xdc] sm:$0xf] %vm1839_vm4, %v2597_v34  ;;  %v1061_v22 = vsel %vm955_vm3, %v3945_v13, 0.0  ;;  %v1142_v16 = vmul.f32 %v3945_v13, %v3945_v13  ;;  %v2595_v59 = vpack.c.bf16 %v3947_v36, %v3947_v36  ;;  %v2093_v24 = vmul.f32 %v3935_v43, %v3935_v43 }
 0x17c   :  { %944 = vst.msk [vmem:[%s4600_s3 + $0xd4] sm:$0xf] %vm890_vm2, %v2531_v39  ;;  %v1062_v28 = vadd.f32 %v1061_v22, %v1060_v17  ;;  %v2010_v44 = vsel %vm1904_vm5, %v3947_v36, 0.0  ;;  %v2091_v15 = vmul.f32 %v3947_v36, %v3947_v36  ;;  %v2209_v13 = vsel %vm1904_vm5, %v2092_v20, 0.0 }
 0x17d   :  { %v1258_v14 = vsel %vm955_vm3, %v1142_v16, 0.0  ;;  %1893 = vst.msk [vmem:[%s4601_s5 + $0xd4] sm:$0xf] %vm1839_vm4, %v2595_v59  ;;  %v2011_v33 = vadd.f32 %v2010_v44, %v2009_v11  ;;  %v2536_v53 = vpack.c.bf16 %v3980_v35, %v3980_v35  ;;  %v1065_v46 = vsel %vm955_vm3, %v3933_v8, 0.0 }
 0x17e   :  { %v1064_v38 = vadd.f32 %v1063_v55, %v1062_v28  ;;  %v1259_v45 = vadd.f32 %v1258_v14, %v1257_v30  ;;  %v2207_v36 = vsel %vm1904_vm5, %v2091_v15, 0.0  ;;  %v2014_v21 = vsel %vm1904_vm5, %v3935_v43, 0.0 }
 0x17f   :  { %v2013_v50 = vadd.f32 %v2012_v1, %v2011_v33  ;;  %v2208_v60 = vadd.f32 %v2207_v36, %v2206_v56  ;;  %949 = vst.msk [vmem:[%s4600_s3 + $0xe8] sm:$0xf] %vm890_vm2, %v2536_v53  ;;  %v2600_v29 = vpack.c.bf16 %v3982_v25, %v3982_v25  ;;  %v1262_v62 = vsel %vm955_vm3, %v1144_v7, 0.0  ;;  %v4606_v1 = vld [vmem:[#allocation2_spill] sm:$0xff] }
 0x180   :  { %v2211_v8 = vsel %vm1904_vm5, %v2093_v24, 0.0  ;;  %v1261_v48 = vadd.f32 %v1260_v19, %v1259_v45  ;;  %v2534_v3 = vpack.c.bf16 %v3991_v4, %v3991_v4  ;;  %v1066_v43 = vadd.f32 %v1065_v46, %v1064_v38 }
 0x181   :  { %v2210_v54 = vadd.f32 %v2209_v13, %v2208_v60  ;;  %1898 = vst.msk [vmem:[%s4601_s5 + $0xe8] sm:$0xf] %vm1839_vm4, %v2600_v29  ;;  %v1067_v6 = vsel %vm955_vm3, %v3991_v4, 0.0  ;;  %v1145_v37 = vmul.f32 %v3991_v4, %v3991_v4  ;;  %v1147_v47 = vmul.f32 %v3980_v35, %v3980_v35 }
 0x182   :  { %947 = vst.msk [vmem:[%s4600_s3 + $0xe0] sm:$0xf] %vm890_vm2, %v2534_v3  ;;  %v1263_v10 = vadd.f32 %v1262_v62, %v1261_v48  ;;  %v2598_v5 = vpack.c.bf16 %v3993_v63, %v3993_v63  ;;  %v2015_v49 = vadd.f32 %v2014_v21, %v2013_v50  ;;  %v1068_v58 = vadd.f32 %v1067_v6, %v1066_v43 }
 0x183   :  { %v1264_v17 = vsel %vm955_vm3, %v1145_v37, 0.0  ;;  %v2016_v40 = vsel %vm1904_vm5, %v3993_v63, 0.0  ;;  %v2094_v4 = vmul.f32 %v3993_v63, %v3993_v63  ;;  %v2212_v30 = vadd.f32 %v2211_v8, %v2210_v54 }
 0x184   :  { %v1265_v0 = vadd.f32 %v1264_v17, %v1263_v10  ;;  %1896 = vst.msk [vmem:[%s4601_s5 + $0xe0] sm:$0xf] %vm1839_vm4, %v2598_v5  ;;  %v2017_v12 = vadd.f32 %v2016_v40, %v2015_v49  ;;  %v2537_v11 = vpack.c.bf16 %v4004_v51, %v4004_v51  ;;  %v2096_v9 = vmul.f32 %v3982_v25, %v3982_v25 }
 0x185   :  { %v2213_v41 = vsel %vm1904_vm5, %v2094_v4, 0.0  ;;  %v2601_v55 = vpack.c.bf16 %v4006_v57, %v4006_v57  ;;  %v1071_v63 = vsel %vm955_vm3, %v3980_v35, 0.0  ;;  %v2020_v20 = vsel %vm1904_vm5, %v3982_v25, 0.0 }
 0x186   :  { %v2214_v42 = vadd.f32 %v2213_v41, %v2212_v30  ;;  %950 = vst.msk [vmem:[%s4600_s3 + $0xec] sm:$0xf] %vm890_vm2, %v2537_v11  ;;  %v2535_v34 = vpack.c.bf16 %v4020_v23, %v4020_v23  ;;  %v1268_v19 = vsel %vm955_vm3, %v1147_v47, 0.0  ;;  %v1069_v35 = vsel %vm955_vm3, %v4020_v23, 0.0 }
 0x187   :  { %1899 = vst.msk [vmem:[%s4601_s5 + $0xec] sm:$0xf] %vm1839_vm4, %v2601_v55  ;;  %v1146_v25 = vmul.f32 %v4020_v23, %v4020_v23  ;;  %v2599_v56 = vpack.c.bf16 %v4606_v1, %v4606_v1  ;;  %v1148_v39 = vmul.f32 %v4004_v51, %v4004_v51  ;;  %v1070_v7 = vadd.f32 %v1069_v35, %v1068_v58 }
 0x188   :  { %948 = vst.msk [vmem:[%s4600_s3 + $0xe4] sm:$0xf] %vm890_vm2, %v2535_v34  ;;  %v2018_v22 = vsel %vm1904_vm5, %v4606_v1, 0.0  ;;  %v2095_v16 = vmul.f32 %v4606_v1, %v4606_v1  ;;  %v2217_v23 = vsel %vm1904_vm5, %v2096_v9, 0.0  ;;  %v2540_v28 = vpack.c.bf16 %v4057_v27, %v4057_v27 }
 0x189   :  { %v1266_v59 = vsel %vm955_vm3, %v1146_v25, 0.0  ;;  %1897 = vst.msk [vmem:[%s4601_s5 + $0xe4] sm:$0xf] %vm1839_vm4, %v2599_v56  ;;  %v2019_v24 = vadd.f32 %v2018_v22, %v2017_v12  ;;  %v2097_v44 = vmul.f32 %v4006_v57, %v4006_v57  ;;  %v1072_v15 = vadd.f32 %v1071_v63, %v1070_v7 }
 0x18a   :  { %v1267_v13 = vadd.f32 %v1266_v59, %v1265_v0  ;;  %v2215_v14 = vsel %vm1904_vm5, %v2095_v16, 0.0  ;;  %v1073_v33 = vsel %vm955_vm3, %v4004_v51, 0.0  ;;  %953 = vst.msk [vmem:[%s4600_s3 + $0xf8] sm:$0xf] %vm890_vm2, %v2540_v28  ;;  %v2604_v38 = vpack.c.bf16 %v4059_v32, %v4059_v32 }
 0x18b   :  { %v2021_v53 = vadd.f32 %v2020_v20, %v2019_v24  ;;  %v2216_v46 = vadd.f32 %v2215_v14, %v2214_v42  ;;  %v1270_v45 = vsel %vm955_vm3, %v1148_v39, 0.0  ;;  %v2022_v36 = vsel %vm1904_vm5, %v4006_v57, 0.0 }
 0x18c   :  { %v1269_v21 = vadd.f32 %v1268_v19, %v1267_v13  ;;  %v2538_v50 = vpack.c.bf16 %v4069_v26, %v4069_v26  ;;  %1902 = vst.msk [vmem:[%s4601_s5 + $0xf8] sm:$0xf] %vm1839_vm4, %v2604_v38  ;;  %v1074_v60 = vadd.f32 %v1073_v33, %v1072_v15  ;;  %v1075_v29 = vsel %vm955_vm3, %v4069_v26, 0.0 }
 0x18d   :  { %v2218_v51 = vadd.f32 %v2217_v23, %v2216_v46  ;;  %v1149_v62 = vmul.f32 %v4069_v26, %v4069_v26  ;;  %v2219_v8 = vsel %vm1904_vm5, %v2097_v44, 0.0  ;;  %v2602_v48 = vpack.c.bf16 %v4071_v61, %v4071_v61 }
 0x18e   :  { %951 = vst.msk [vmem:[%s4600_s3 + $0xf0] sm:$0xf] %vm890_vm2, %v2538_v50  ;;  %v1271_v57 = vadd.f32 %v1270_v45, %v1269_v21  ;;  %v2023_v3 = vadd.f32 %v2022_v36, %v2021_v53  ;;  %v1076_v54 = vadd.f32 %v1075_v29, %v1074_v60  ;;  %v2024_v6 = vsel %vm1904_vm5, %v4071_v61, 0.0 }
 0x18f   :  { %v1272_v43 = vsel %vm955_vm3, %v1149_v62, 0.0  ;;  %v2098_v26 = vmul.f32 %v4071_v61, %v4071_v61  ;;  %1900 = vst.msk [vmem:[%s4601_s5 + $0xf0] sm:$0xf] %vm1839_vm4, %v2602_v48  ;;  %v2220_v10 = vadd.f32 %v2219_v8, %v2218_v51  ;;  %v2541_v5 = vpack.c.bf16 %v4081_v2, %v4081_v2 }
 0x190   :  { %v1273_v37 = vadd.f32 %v1272_v43, %v1271_v57  ;;  %v2025_v47 = vadd.f32 %v2024_v6, %v2023_v3  ;;  %v2605_v58 = vpack.c.bf16 %v4083_v52, %v4083_v52  ;;  %v2539_v61 = vpack.c.bf16 %v4090_v18, %v4090_v18 }
 0x191   :  { %v2221_v49 = vsel %vm1904_vm5, %v2098_v26, 0.0  ;;  %954 = vst.msk [vmem:[%s4600_s3 + $0xfc] sm:$0xf] %vm890_vm2, %v2541_v5  ;;  %v1151_v40 = vmul.f32 %v4057_v27, %v4057_v27  ;;  %v1077_v4 = vsel %vm955_vm3, %v4090_v18, 0.0  ;;  %v1150_v0 = vmul.f32 %v4090_v18, %v4090_v18 }
 0x192   :  { %v2222_v17 = vadd.f32 %v2221_v49, %v2220_v10  ;;  %1903 = vst.msk [vmem:[%s4601_s5 + $0xfc] sm:$0xf] %vm1839_vm4, %v2605_v58  ;;  %v1079_v12 = vsel %vm955_vm3, %v4057_v27, 0.0  ;;  %v2100_v30 = vmul.f32 %v4059_v32, %v4059_v32  ;;  %v1078_v11 = vadd.f32 %v1077_v4, %v1076_v54 }
 0x193   :  { %952 = vst.msk [vmem:[%s4600_s3 + $0xf4] sm:$0xf] %vm890_vm2, %v2539_v61  ;;  %v2603_v9 = vpack.c.bf16 %v4092_v31, %v4092_v31  ;;  %v1152_v41 = vmul.f32 %v4081_v2, %v4081_v2  ;;  %v1274_v18 = vsel %vm955_vm3, %v1150_v0, 0.0  ;;  %v2026_v27 = vsel %vm1904_vm5, %v4092_v31, 0.0 }
 0x194   :  { %v2099_v55 = vmul.f32 %v4092_v31, %v4092_v31  ;;  %v2028_v63 = vsel %vm1904_vm5, %v4059_v32, 0.0  ;;  %v1080_v20 = vadd.f32 %v1079_v12, %v1078_v11  ;;  %v1275_v42 = vadd.f32 %v1274_v18, %v1273_v37 }
 0x195   :  { %1901 = vst.msk [vmem:[%s4601_s5 + $0xf4] sm:$0xf] %vm1839_vm4, %v2603_v9  ;;  %v2027_v34 = vadd.f32 %v2026_v27, %v2025_v47  ;;  %v1276_v19 = vsel %vm955_vm3, %v1151_v40, 0.0  ;;  %v1081_v35 = vsel %vm955_vm3, %v4081_v2, 0.0  ;;  %v2101_v25 = vmul.f32 %v4083_v52, %v4083_v52 }
 0x196   :  { %v2223_v31 = vsel %vm1904_vm5, %v2099_v55, 0.0  ;;  %v1082_v1 = vadd.f32 %v1081_v35, %v1080_v20  ;;  %v1277_v32 = vadd.f32 %v1276_v19, %v1275_v42  ;;  %v2225_v7 = vsel %vm1904_vm5, %v2100_v30, 0.0 }
 0x197   :  { %v2029_v56 = vadd.f32 %v2028_v63, %v2027_v34  ;;  %v2224_v39 = vadd.f32 %v2223_v31, %v2222_v17  ;;  %v1278_v22 = vsel %vm955_vm3, %v1152_v41, 0.0  ;;  %v2030_v16 = vsel %vm1904_vm5, %v4083_v52, 0.0 }
 0x198   :  { %v1083_v23 = vrot.slane %v1082_v1, 4  ;;  %v1279_v59 = vadd.f32 %v1278_v22, %v1277_v32  ;;  %v2227_v28 = vsel %vm1904_vm5, %v2101_v25, 0.0 }
 0x199   :  { %v2031_v24 = vadd.f32 %v2030_v16, %v2029_v56  ;;  %v2226_v2 = vadd.f32 %v2225_v7, %v2224_v39 }
 0x19a   :  { %v1084_v44 = vadd.f32 %v1083_v23, %v1082_v1  ;;  %v1280_v15 = vrot.slane %v1279_v59, 4 }
 0x19b   :  { %v2032_v13 = vrot.slane %v2031_v24, 4  ;;  %v2228_v14 = vadd.f32 %v2227_v28, %v2226_v2 }
 0x19c   :  { %v1085_v33 = vrot.slane %v1084_v44, 2  ;;  %v1281_v53 = vadd.f32 %v1280_v15, %v1279_v59 }
 0x19d   :  { %v2033_v46 = vadd.f32 %v2032_v13, %v2031_v24  ;;  %v2229_v38 = vrot.slane %v2228_v14, 4 }
 0x19e   :  { %v1086_v45 = vadd.f32 %v1085_v33, %v1084_v44  ;;  %v1282_v36 = vrot.slane %v1281_v53, 2 }
 0x19f   :  { %v2034_v21 = vrot.slane %v2033_v46, 2  ;;  %v2230_v50 = vadd.f32 %v2229_v38, %v2228_v14 }
 0x1a0   :  { %v1087_v51 = vrot.slane %v1086_v45, 1  ;;  %v1283_v52 = vadd.f32 %v1282_v36, %v1281_v53 }
 0x1a1   :  { %v2035_v60 = vadd.f32 %v2034_v21, %v2033_v46  ;;  %v2231_v29 = vrot.slane %v2230_v50, 2 }
 0x1a2   :  { %v1284_v62 = vrot.slane %v1283_v52, 1  ;;  %v1088_v48 = vadd.f32 %v1087_v51, %v1086_v45 }
 0x1a3   :  { %v2036_v8 = vrot.slane %v2035_v60, 1  ;;  %v2232_v57 = vadd.f32 %v2231_v29, %v2230_v50 }
 0x1a4   :  { %v1285_v3 = vadd.f32 %v1284_v62, %v1283_v52 }
 0x1a5   :  { %v2233_v54 = vrot.slane %v2232_v57, 1  ;;  %v2037_v6 = vadd.f32 %v2036_v8, %v2035_v60 }
 0x1a6   :  { %v1287_v43 = vsel %vm1286_vm6, %v1088_v48, %v1285_v3 }
 0x1a7   :  { %v2234_v26 = vadd.f32 %v2233_v54, %v2232_v57  ;;  %1289 = vst.msk [vmem:[%s4602_s4] sm:$0x3] %vm1288_vm7, %v1287_v43 }
 0x1a9   :  { %v2235_v37 = vsel %vm1286_vm6, %v2037_v6, %v2234_v26 }
 0x1aa   :  { %2237 = vst.msk [vmem:[%s4603_s6] sm:$0x3] %vm2236_vm8, %v2235_v37 }

// kernel: block_forward.5
= control target key start
LH: loop header
LB: loop body
LE: loop exit
PB: predicated region body
PF: predicated region fallthrough
CT: control target
= control target key end

     0   :  { %s2934_s18 = smov 0   ;;  %s4562_s0 = inlined_call_operand.vmem [shape: bf16[2,16,16,32], index: 0, kind: input, shape index: {}]   ;;  %s4563_s1 = inlined_call_operand.vmem [shape: f32[1,32], index: 1, kind: input, shape index: {}]   ;;  %s4564_s2 = inlined_call_operand.vmem [shape: f32[1,32], index: 2, kind: input, shape index: {}]   ;;  %s4565_s3 = inlined_call_operand.vmem [shape: f32[9,32], index: 3, kind: input, shape index: {}]   ;;  %s4566_s4 = inlined_call_operand.vmem [shape: bf16[2,16,16,32], index: 4, kind: output, shape index: {0}]   ;;  %s4567_s5 = inlined_call_operand.vmem [shape: f32[2,2,32], index: 5, kind: output, shape index: {1}]  }
   0x1 LB: > { %s2722_s19 = sadd.s32 4294967295, %s2901_s18   ;;  %p2726_p0 = scmp.ge.s32.totalorder %s2901_s18, 1  ;;  %s2901_s18 = sphi %s2934_s18, %s16_s18  }
   0x2   : > { %p190_p1 = scmp.lt.s32.totalorder %s2901_s18, 3 }
   0x4   : > { %p191_p2 = pnand %p2726_p0, %p190_p1 }
   0x5   : > { %vm410_vm0 = vcmask (!%p191_p2), 261120   ;;  %vm413_vm1 = vcmask (!%p191_p2), 254976   ;;  %vm420_vm2 = vcmask (!%p191_p2), 253952   ;;  %p2944_p3 = scmp.lt.s32.totalorder (!%p191_p2), %s2722_s19, 1  ;;  %v2903_v0 = vmov (!%p191_p2), 0.0  }
   0x6   : > { %194 = sbr.rel (%p191_p2) target bundleno = 403 (0x193), region = 36  ;;  %411 = vst.msk [vmem:[#allocation2] sm:$0xff] (!%p191_p2), %vm410_vm0, %v2903_v0  ;;  %412 = vst.msk [vmem:[#allocation2 + $0x8] sm:$0xff] (!%p191_p2), %vm410_vm0, %v2903_v0  ;;  %v535_v1 = vlaneseq (!%p191_p2)  ;;  %v3005_v3 = vld [vmem:[%s4563_s1] ss:$0 sm:$0xff] (!%p191_p2)  ;;  %vm703_vm3 = vcmask (!%p191_p2), 1046528  }
   0x7   : > { %416 = vst.msk [vmem:[#allocation2 + $0x198] sm:$0xff] (!%p191_p2), %vm410_vm0, %v2903_v0  ;;  %417 = vst.msk [vmem:[#allocation2 + $0x1a0] sm:$0xff] (!%p191_p2), %vm410_vm0, %v2903_v0  ;;  %v3021_v19 = vld [vmem:[%s4564_s2] ss:$0 sm:$0xff] (!%p191_p2)  ;;  %vm948_vm4 = vcmask (!%p191_p2), 1045504   ;;  %vm2430_vm5 = vcmask (!%p191_p2), 257024  }
   0x8   : > { %414 = vst.msk [vmem:[#allocation2 + $0x10] sm:$0x3] (!%p191_p2), %vm413_vm1, %v2903_v0  ;;  %418 = vst.msk [vmem:[#allocation2 + $0x1a8] sm:$0x3] (!%p191_p2), %vm413_vm1, %v2903_v0  ;;  %v2992_v2 = vshrl.u32 (!%p191_p2), %v535_v1, 7  ;;  %vm2633_vm6 = vcmask (!%p191_p2), 1040384  }
   0x9   : > { %421 = vst.msk [vmem:[#allocation2 + $0x18] sm:$0x1] (!%p191_p2), %vm420_vm2, %v2903_v0  ;;  %422 = vst.msk [vmem:[#allocation2 + $0x30] sm:$0x1] (!%p191_p2), %vm420_vm2, %v2903_v0 }
   0xa   : > { %423 = vst.msk [vmem:[#allocation2 + $0x48] sm:$0x1] (!%p191_p2), %vm420_vm2, %v2903_v0  ;;  %424 = vst.msk [vmem:[#allocation2 + $0x60] sm:$0x1] (!%p191_p2), %vm420_vm2, %v2903_v0  ;;  %v537_v4 = vsub.s32 (!%p191_p2), 0, %v2992_v2  ;;  %v605_v5 = vsub.s32 (!%p191_p2), 1, %v2992_v2 }
   0xb   : > { %425 = vst.msk [vmem:[#allocation2 + $0x78] sm:$0x1] (!%p191_p2), %vm420_vm2, %v2903_v0  ;;  %426 = vst.msk [vmem:[#allocation2 + $0x90] sm:$0x1] (!%p191_p2), %vm420_vm2, %v2903_v0  ;;  %v850_v6 = vsub.s32 (!%p191_p2), 2, %v2992_v2  ;;  %v1143_v7 = vsub.s32 (!%p191_p2), 3, %v2992_v2 }
   0xc   : > { %427 = vst.msk [vmem:[#allocation2 + $0xa8] sm:$0x1] (!%p191_p2), %vm420_vm2, %v2903_v0  ;;  %428 = vst.msk [vmem:[#allocation2 + $0xc0] sm:$0x1] (!%p191_p2), %vm420_vm2, %v2903_v0  ;;  %v1211_v11 = vsub.s32 (!%p191_p2), 4, %v2992_v2  ;;  %v1455_v12 = vsub.s32 (!%p191_p2), 5, %v2992_v2 }
   0xd   : > { %429 = vst.msk [vmem:[#allocation2 + $0xd8] sm:$0x1] %vm420_vm2, %v2903_v0  ;;  %430 = vst.msk [vmem:[#allocation2 + $0xf0] sm:$0x1] %vm420_vm2, %v2903_v0  ;;  %s4570_s19 = smov (!%p2944_p3, %s2722_s19), 1  ;;  %v1748_v13 = vsub.s32 6, %v2992_v2 }
   0xe   : > { %431 = vst.msk [vmem:[#allocation2 + $0x108] sm:$0x1] %vm420_vm2, %v2903_v0  ;;  %432 = vst.msk [vmem:[#allocation2 + $0x120] sm:$0x1] %vm420_vm2, %v2903_v0  ;;  %s2769_s21 = sshll.u32 %s4570_s19, 7 }
   0xf   : > { %433 = vst.msk [vmem:[#allocation2 + $0x138] sm:$0x1] %vm420_vm2, %v2903_v0  ;;  %434 = vst.msk [vmem:[#allocation2 + $0x150] sm:$0x1] %vm420_vm2, %v2903_v0  ;;  %s3000_s24 = scalar_lea.vmem %s4562_s0, %s2769_s21  ;;  %s3185_s10 = scalar_lea.vmem %s4566_s4, %s2769_s21 }
  0x10   : > { %435 = vst.msk [vmem:[#allocation2 + $0x168] sm:$0x1] %vm420_vm2, %v2903_v0  ;;  %436 = vst.msk [vmem:[#allocation2 + $0x180] sm:$0x1] %vm420_vm2, %v2903_v0  ;;  %v2804_v8 = vld [vmem:[%s3000_s24] sm:$0xff]   ;;  %v2867_v9 = vld [vmem:[%s3000_s24 + $0x8] sm:$0xff]  }
  0x11   : > { %437 = vst.msk [vmem:[#allocation2 + $0x29] sm:$0x1] %vm420_vm2, %v2903_v0  ;;  %438 = vst.msk [vmem:[#allocation2 + $0x41] sm:$0x1] %vm420_vm2, %v2903_v0  ;;  %v2868_v10 = vld [vmem:[%s3000_s24 + $0x10] sm:$0xff]   ;;  %v2805_v14 = vunpack.c.l.bf16 %v2804_v8  ;;  %v2806_v15 = vunpack.c.h.bf16 %v2804_v8  ;;  %v2809_v16 = vunpack.c.l.bf16 %v2867_v9  ;;  %v2810_v17 = vunpack.c.h.bf16 %v2867_v9  ;;  %v2869_v18 = vld [vmem:[%s3000_s24 + $0x18] sm:$0xff]  }
  0x12   : > { %439 = vst.msk [vmem:[#allocation2 + $0x59] sm:$0x1] %vm420_vm2, %v2903_v0  ;;  %440 = vst.msk [vmem:[#allocation2 + $0x71] sm:$0x1] %vm420_vm2, %v2903_v0  ;;  %v2813_v20 = vunpack.c.l.bf16 %v2868_v10  ;;  %v2814_v21 = vunpack.c.h.bf16 %v2868_v10  ;;  %v2817_v22 = vunpack.c.l.bf16 %v2869_v18  ;;  %v2818_v23 = vunpack.c.h.bf16 %v2869_v18  ;;  %v2870_v40 = vld [vmem:[%s3000_s24 + $0x20] sm:$0xff]   ;;  %v2871_v41 = vld [vmem:[%s3000_s24 + $0x28] sm:$0xff]  }
  0x13   : > { %441 = vst.msk [vmem:[#allocation2 + $0x89] sm:$0x1] %vm420_vm2, %v2903_v0  ;;  %442 = vst.msk [vmem:[#allocation2 + $0xa1] sm:$0x1] %vm420_vm2, %v2903_v0  ;;  %v307_v24 = vmul.f32 %v2805_v14, %v3005_v3  ;;  %v308_v25 = vmul.f32 %v2806_v15, %v3005_v3  ;;  %v309_v26 = vmul.f32 %v2809_v16, %v3005_v3  ;;  %v2872_v46 = vld [vmem:[%s3000_s24 + $0x30] sm:$0xff]   ;;  %v2873_v47 = vld [vmem:[%s3000_s24 + $0x38] sm:$0xff]   ;;  %v2821_v52 = vunpack.c.l.bf16 %v2870_v40 }
  0x14   : > { %443 = vst.msk [vmem:[#allocation2 + $0xb9] sm:$0x1] %vm420_vm2, %v2903_v0  ;;  %444 = vst.msk [vmem:[#allocation2 + $0xd1] sm:$0x1] %vm420_vm2, %v2903_v0  ;;  %v310_v27 = vmul.f32 %v2810_v17, %v3005_v3  ;;  %v311_v28 = vmul.f32 %v2813_v20, %v3005_v3  ;;  %v312_v29 = vmul.f32 %v2814_v21, %v3005_v3  ;;  %v2822_v53 = vunpack.c.h.bf16 %v2870_v40  ;;  %s2731_s21 = sshll.u32 %s4570_s19, 1 }
  0x15   : > { %445 = vst.msk [vmem:[#allocation2 + $0xe9] sm:$0x1] %vm420_vm2, %v2903_v0  ;;  %446 = vst.msk [vmem:[#allocation2 + $0x101] sm:$0x1] %vm420_vm2, %v2903_v0  ;;  %v313_v30 = vmul.f32 %v2817_v22, %v3005_v3  ;;  %v314_v31 = vmul.f32 %v2818_v23, %v3005_v3  ;;  %v346_v32 = vadd.f32 %v3021_v19, %v307_v24  ;;  %v2825_v54 = vunpack.c.l.bf16 %v2871_v41  ;;  %v485_v22 = vld [vmem:[%s4565_s3] sm:$0xff] }
  0x16   : > { %447 = vst.msk [vmem:[#allocation2 + $0x119] sm:$0x1] %vm420_vm2, %v2903_v0  ;;  %448 = vst.msk [vmem:[#allocation2 + $0x131] sm:$0x1] %vm420_vm2, %v2903_v0  ;;  %v347_v33 = vadd.f32 %v3021_v19, %v308_v25  ;;  %v348_v34 = vadd.f32 %v3021_v19, %v309_v26  ;;  %v349_v35 = vadd.f32 %v3021_v19, %v310_v27  ;;  %v2826_v55 = vunpack.c.h.bf16 %v2871_v41 }
  0x17   : > { %449 = vst.msk [vmem:[#allocation2 + $0x149] sm:$0x1] %vm420_vm2, %v2903_v0  ;;  %450 = vst.msk [vmem:[#allocation2 + $0x161] sm:$0x1] %vm420_vm2, %v2903_v0  ;;  %v350_v36 = vadd.f32 %v3021_v19, %v311_v28  ;;  %v351_v37 = vadd.f32 %v3021_v19, %v312_v29  ;;  %v352_v38 = vadd.f32 %v3021_v19, %v313_v30  ;;  %v378_v42 = vmax.f32 %v346_v32, 0.0  ;;  %v488_v32 = vld [vmem:[#allocation2 + $0x8] sm:$0xff] }
  0x18   : > { %451 = vst.msk [vmem:[#allocation2 + $0x179] sm:$0x1] %vm420_vm2, %v2903_v0  ;;  %452 = vst.msk [vmem:[#allocation2 + $0x191] sm:$0x1] %vm420_vm2, %v2903_v0  ;;  %v353_v39 = vadd.f32 %v3021_v19, %v314_v31  ;;  %v379_v43 = vmax.f32 %v347_v33, 0.0  ;;  %v380_v44 = vmax.f32 %v348_v34, 0.0  ;;  %v2829_v56 = vunpack.c.l.bf16 %v2872_v46 }
  0x19   : > { %v381_v45 = vmax.f32 %v349_v35, 0.0  ;;  %v382_v48 = vmax.f32 %v350_v36, 0.0  ;;  %v383_v49 = vmax.f32 %v351_v37, 0.0  ;;  %v384_v50 = vmax.f32 %v352_v38, 0.0  ;;  %453 = vst.msk [vmem:[#allocation2 + $0x19] sm:$0xff] %vm410_vm0, %v378_v42  ;;  %v487_v31 = vld [vmem:[#allocation2] sm:$0xff] }
  0x1a   : > { %v385_v51 = vmax.f32 %v353_v39, 0.0  ;;  %454 = vst.msk [vmem:[#allocation2 + $0x21] sm:$0xff] %vm410_vm0, %v379_v43  ;;  %455 = vst.msk [vmem:[#allocation2 + $0x31] sm:$0xff] %vm410_vm0, %v380_v44  ;;  %v2830_v57 = vunpack.c.h.bf16 %v2872_v46  ;;  %v2833_v58 = vunpack.c.l.bf16 %v2873_v47  ;;  %v2834_v59 = vunpack.c.h.bf16 %v2873_v47 }
  0x1b   : > { %456 = vst.msk [vmem:[#allocation2 + $0x39] sm:$0xff] %vm410_vm0, %v381_v45  ;;  %457 = vst.msk [vmem:[#allocation2 + $0x49] sm:$0xff] %vm410_vm0, %v382_v48  ;;  %v315_v60 = vmul.f32 %v2821_v52, %v3005_v3  ;;  %v316_v61 = vmul.f32 %v2822_v53, %v3005_v3  ;;  %v317_v62 = vmul.f32 %v2825_v54, %v3005_v3 }
  0x1c   : > { %458 = vst.msk [vmem:[#allocation2 + $0x51] sm:$0xff] %vm410_vm0, %v383_v49  ;;  %459 = vst.msk [vmem:[#allocation2 + $0x61] sm:$0xff] %vm410_vm0, %v384_v50  ;;  %v318_v63 = vmul.f32 %v2826_v55, %v3005_v3  ;;  %v319_v0 = vmul.f32 %v2829_v56, %v3005_v3  ;;  %v320_v1 = vmul.f32 %v2830_v57, %v3005_v3  ;;  %v489_v56 = vld [vmem:[#allocation2 + $0x10] sm:$0x3] }
  0x1d   : > { %460 = vst.msk [vmem:[#allocation2 + $0x69] sm:$0xff] %vm410_vm0, %v385_v51  ;;  %v321_v8 = vmul.f32 %v2833_v58, %v3005_v3  ;;  %v322_v9 = vmul.f32 %v2834_v59, %v3005_v3  ;;  %v354_v10 = vadd.f32 %v3021_v19, %v315_v60  ;;  %v355_v14 = vadd.f32 %v3021_v19, %v316_v61 }
  0x1e   : > { %v356_v15 = vadd.f32 %v3021_v19, %v317_v62  ;;  %v357_v16 = vadd.f32 %v3021_v19, %v318_v63  ;;  %v358_v17 = vadd.f32 %v3021_v19, %v319_v0  ;;  %v359_v18 = vadd.f32 %v3021_v19, %v320_v1 }
  0x1f   : > { %v360_v20 = vadd.f32 %v3021_v19, %v321_v8  ;;  %v361_v21 = vadd.f32 %v3021_v19, %v322_v9  ;;  %v386_v23 = vmax.f32 %v354_v10, 0.0  ;;  %v387_v24 = vmax.f32 %v355_v14, 0.0 }
  0x20   : > { %v388_v25 = vmax.f32 %v356_v15, 0.0  ;;  %v389_v26 = vmax.f32 %v357_v16, 0.0  ;;  %v390_v27 = vmax.f32 %v358_v17, 0.0  ;;  %v391_v28 = vmax.f32 %v359_v18, 0.0  ;;  %v3086_v36 = vld [vmem:[#allocation2 + $0x18] sm:$0xff] }
  0x21   : > { %v392_v29 = vmax.f32 %v360_v20, 0.0  ;;  %v393_v30 = vmax.f32 %v361_v21, 0.0  ;;  %461 = vst.msk [vmem:[#allocation2 + $0x79] sm:$0xff] %vm410_vm0, %v386_v23  ;;  %462 = vst.msk [vmem:[#allocation2 + $0x81] sm:$0xff] %vm410_vm0, %v387_v24  ;;  %v3076_v33 = vrot.slane %v485_v22, %v537_v4  ;;  %v3080_v34 = vrot.slane %v485_v22, %v605_v5  ;;  %v3088_v37 = vld [vmem:[#allocation2 + $0x20] sm:$0xff]  ;;  %v3132_v54 = vld [vmem:[#allocation2 + $0x30] sm:$0xff] }
  0x22   : > { %463 = vst.msk [vmem:[#allocation2 + $0x91] sm:$0xff] %vm410_vm0, %v388_v25  ;;  %464 = vst.msk [vmem:[#allocation2 + $0x99] sm:$0xff] %vm410_vm0, %v389_v26  ;;  %v3084_v35 = vrot.slane %v485_v22, %v850_v6  ;;  %v3096_v4 = vrot.slane %v485_v22, %v1143_v7  ;;  %v3100_v5 = vrot.slane %v485_v22, %v1211_v11  ;;  %v1816_v7 = vsub.s32 7, %v2992_v2  ;;  %v3125_v2 = vld [vmem:[%s4565_s3 + $0x8] ss:$0 sm:$0xff]  ;;  %v3137_v60 = vld [vmem:[#allocation2 + $0x38] sm:$0xff] }
  0x23   : > { %465 = vst.msk [vmem:[#allocation2 + $0xa9] sm:$0xff] %vm410_vm0, %v390_v27  ;;  %466 = vst.msk [vmem:[#allocation2 + $0xb1] sm:$0xff] %vm410_vm0, %v391_v28  ;;  %v3104_v6 = vrot.slane %v485_v22, %v1455_v12  ;;  %v3108_v38 = vrot.slane %v485_v22, %v1748_v13  ;;  %v607_v39 = vmul.f32 %v3080_v34, %v487_v31  ;;  %v1095_v15 = vld [vmem:[#allocation2 + $0x28] sm:$0x3]  ;;  %v1700_v25 = vld [vmem:[#allocation2 + $0x40] sm:$0x3] }
  0x24   : > { %467 = vst.msk [vmem:[#allocation2 + $0xc1] sm:$0xff] %vm410_vm0, %v392_v29  ;;  %468 = vst.msk [vmem:[#allocation2 + $0xc9] sm:$0xff] %vm410_vm0, %v393_v30  ;;  %v608_v40 = vmul.f32 %v3080_v34, %v488_v32  ;;  %v852_v41 = vmul.f32 %v3084_v35, %v487_v31  ;;  %v539_v42 = vmul.f32 %v3076_v33, %v487_v31  ;;  %v2874_v30 = vld [vmem:[%s3000_s24 + $0x40] sm:$0xff]  }
  0x25   : > { %v853_v11 = vmul.f32 %v3084_v35, %v488_v32  ;;  %v1213_v12 = vmul.f32 %v3100_v5, %v3086_v36  ;;  %v1214_v43 = vmul.f32 %v3100_v5, %v3088_v37  ;;  %v704_v13 = vrot.slane %v607_v39, 1 }
  0x26   : > { %v705_v44 = vrot.slane %v608_v40, 1  ;;  %v949_v45 = vrot.slane %v852_v41, 2  ;;  %v1457_v46 = vmul.f32 %v3104_v6, %v3086_v36  ;;  %v1458_v50 = vmul.f32 %v3104_v6, %v3088_v37 }
  0x27   : > { %v950_v47 = vrot.slane %v853_v11, 2  ;;  %v1309_v48 = vrot.slane %v1213_v12, 1  ;;  %v1310_v49 = vrot.slane %v1214_v43, 1  ;;  %v1145_v52 = vmul.f32 %v3096_v4, %v3086_v36 }
  0x28   : > { %v706_v51 = vsel %vm703_vm3, %v704_v13, %v705_v44  ;;  %v1553_v53 = vrot.slane %v1457_v46, 2  ;;  %v3134_v55 = vrot.slane %v485_v22, %v1816_v7  ;;  %v1554_v59 = vrot.slane %v1458_v50, 2  ;;  %v2875_v46 = vld [vmem:[%s3000_s24 + $0x48] sm:$0xff]  }
  0x29   : > { %v816_v57 = vadd.f32 %v706_v51, %v539_v42  ;;  %v951_v58 = vsel %vm948_vm4, %v949_v45, %v950_v47  ;;  %v1750_v61 = vmul.f32 %v3108_v38, %v3132_v54  ;;  %v2062_v0 = vmul.f32 %v3125_v2, %v3132_v54 }
  0x2a   : > { %v1818_v62 = vmul.f32 %v3134_v55, %v3132_v54  ;;  %v1819_v63 = vmul.f32 %v3134_v55, %v3137_v60  ;;  %v2063_v1 = vmul.f32 %v3125_v2, %v3137_v60  ;;  %v1311_v9 = vsel %vm703_vm3, %v1309_v48, %v1310_v49 }
  0x2b   : > { %v1061_v8 = vadd.f32 %v951_v58, %v816_v57  ;;  %v540_v10 = vmul.f32 %v3076_v33, %v488_v32  ;;  %v609_v14 = vmul.f32 %v3080_v34, %v489_v56  ;;  %v2158_v18 = vrot.slane %v2062_v0, 2 }
  0x2c   : > { %v1914_v16 = vrot.slane %v1818_v62, 1  ;;  %v1915_v17 = vrot.slane %v1819_v63, 1  ;;  %v2159_v20 = vrot.slane %v2063_v1, 2  ;;  %v1555_v22 = vsel %vm948_vm4, %v1553_v53, %v1554_v59 }
  0x2d   : > { %v1177_v21 = vadd.f32 %v1145_v52, %v1061_v8  ;;  %v707_v23 = vrot.slane %v609_v14, 1  ;;  %v854_v24 = vmul.f32 %v3084_v35, %v489_v56  ;;  %v1146_v27 = vmul.f32 %v3096_v4, %v3088_v37 }
  0x2e   : > { %v1916_v26 = vsel %vm703_vm3, %v1914_v16, %v1915_v17  ;;  %v1215_v28 = vmul.f32 %v3100_v5, %v1095_v15  ;;  %v1459_v29 = vmul.f32 %v3104_v6, %v1095_v15  ;;  %v2160_v32 = vsel %vm948_vm4, %v2158_v18, %v2159_v20 }
  0x2f   : > { %v1421_v31 = vadd.f32 %v1311_v9, %v1177_v21  ;;  %v708_v39 = vsel %vm703_vm3, %v705_v44, %v707_v23  ;;  %v952_v40 = vrot.slane %v854_v24, 2  ;;  %v1820_v11 = vmul.f32 %v3134_v55, %v1700_v25 }
  0x30   : > { %v817_v41 = vadd.f32 %v708_v39, %v540_v10  ;;  %v1312_v7 = vrot.slane %v1215_v28, 1  ;;  %v1556_v42 = vrot.slane %v1459_v29, 2  ;;  %v2064_v13 = vmul.f32 %v3125_v2, %v1700_v25 }
  0x31   : > { %v1665_v12 = vadd.f32 %v1555_v22, %v1421_v31  ;;  %v953_v43 = vsel %vm948_vm4, %v950_v47, %v952_v40  ;;  %v2837_v45 = vunpack.c.l.bf16 %v2874_v30  ;;  %v1751_v44 = vmul.f32 %v3108_v38, %v3137_v60 }
  0x32   : > { %v1062_v48 = vadd.f32 %v953_v43, %v817_v41  ;;  %v1313_v50 = vsel %vm703_vm3, %v1310_v49, %v1312_v7  ;;  %v1917_v51 = vrot.slane %v1820_v11, 1  ;;  %v2161_v53 = vrot.slane %v2064_v13, 2 }
  0x33   : > { %v1782_v52 = vadd.f32 %v1750_v61, %v1665_v12  ;;  %v323_v56 = vmul.f32 %v2837_v45, %v3005_v3  ;;  %v2838_v57 = vunpack.c.h.bf16 %v2874_v30  ;;  %v1557_v47 = vsel %vm948_vm4, %v1554_v59, %v1556_v42 }
  0x34   : > { %v1178_v58 = vadd.f32 %v1146_v27, %v1062_v48  ;;  %v2841_v62 = vunpack.c.l.bf16 %v2875_v46  ;;  %v2842_v63 = vunpack.c.h.bf16 %v2875_v46  ;;  %v1918_v1 = vsel %vm703_vm3, %v1915_v17, %v1917_v51 }
  0x35   : > { %v2026_v0 = vadd.f32 %v1916_v26, %v1782_v52  ;;  %v362_v49 = vadd.f32 %v3021_v19, %v323_v56  ;;  %v324_v8 = vmul.f32 %v2838_v57, %v3005_v3  ;;  %v2162_v61 = vsel %vm948_vm4, %v2159_v20, %v2161_v53 }
  0x36   : > { %v1422_v9 = vadd.f32 %v1313_v50, %v1178_v58  ;;  %v325_v10 = vmul.f32 %v2841_v62, %v3005_v3  ;;  %v326_v14 = vmul.f32 %v2842_v63, %v3005_v3  ;;  %v610_v18 = vmul.f32 %v3086_v36, %v3080_v34  ;;  %v3229_v62 = vld [vmem:[#allocation2 + $0x48] sm:$0xff] }
  0x37   : > { %v2270_v15 = vadd.f32 %v2160_v32, %v2026_v0  ;;  %v394_v16 = vmax.f32 %v362_v49, 0.0  ;;  %v363_v59 = vadd.f32 %v3021_v19, %v324_v8  ;;  %v3191_v22 = vmul.f32 %v3088_v37, %v3080_v34 }
  0x38   : > { %v1666_v17 = vadd.f32 %v1557_v47, %v1422_v9  ;;  %v364_v20 = vadd.f32 %v3021_v19, %v325_v10  ;;  %v365_v21 = vadd.f32 %v3021_v19, %v326_v14  ;;  %v541_v26 = vmul.f32 %v3086_v36, %v3076_v33 }
  0x39   : > { %v2771_v23 = vpack.c.bf16 %v2270_v15, %v2270_v15  ;;  %v2532_v24 = vmul.f32 %v2270_v15, %v2270_v15  ;;  %469 = vst.msk [vmem:[#allocation2 + $0xd9] sm:$0xff] %vm410_vm0, %v394_v16  ;;  %v395_v25 = vmax.f32 %v363_v59, 0.0  ;;  %v709_v30 = vrot.slane %v610_v18, 1 }
  0x3a   : > { %v1783_v27 = vadd.f32 %v1751_v44, %v1666_v17  ;;  %v396_v28 = vmax.f32 %v364_v20, 0.0  ;;  %v397_v29 = vmax.f32 %v365_v21, 0.0  ;;  %v2463_v31 = vsel %vm410_vm0, %v2270_v15, 0.0  ;;  %v492_v15 = vld [vmem:[#allocation2 + $0x28] sm:$0x3] }
  0x3b   : > { %2431 = vst.msk [vmem:[%s3185_s10] sm:$0xf] %vm2430_vm5, %v2771_v23  ;;  %v710_v32 = vrot.slane %v3191_v22, 1  ;;  %v855_v39 = vmul.f32 %v3086_v36, %v3084_v35  ;;  %v3205_v40 = vmul.f32 %v3088_v37, %v3084_v35  ;;  %v2564_v41 = vsel %vm410_vm0, %v2532_v24, 0.0  ;;  %v1098_v20 = vld [vmem:[#allocation2 + $0x40] sm:$0x3] }
  0x3c   : > { %470 = vst.msk [vmem:[#allocation2 + $0xe1] sm:$0xff] %vm410_vm0, %v395_v25  ;;  %v2027_v7 = vadd.f32 %v1918_v1, %v1783_v27  ;;  %471 = vst.msk [vmem:[#allocation2 + $0xf1] sm:$0xff] %vm410_vm0, %v396_v28  ;;  %v1216_v42 = vmul.f32 %v3132_v54, %v3100_v5  ;;  %v3214_v11 = vmul.f32 %v3137_v60, %v3100_v5  ;;  %v3231_v1 = vld [vmem:[#allocation2 + $0x50] sm:$0xff] }
  0x3d   : > { %472 = vst.msk [vmem:[#allocation2 + $0xf9] sm:$0xff] %vm410_vm0, %v397_v29  ;;  %v711_v36 = vsel %vm703_vm3, %v709_v30, %v710_v32  ;;  %v954_v12 = vrot.slane %v855_v39, 2  ;;  %v955_v43 = vrot.slane %v3205_v40, 2  ;;  %v1460_v13 = vmul.f32 %v3132_v54, %v3104_v6  ;;  %v1703_v30 = vld [vmem:[#allocation2 + $0x58] sm:$0x3] }
  0x3e   : > { %v2271_v45 = vadd.f32 %v2162_v61, %v2027_v7  ;;  %v818_v46 = vadd.f32 %v711_v36, %v541_v26  ;;  %v1147_v48 = vmul.f32 %v3132_v54, %v3096_v4  ;;  %v1314_v50 = vrot.slane %v1216_v42, 1 }
  0x3f   : > { %v956_v44 = vsel %vm948_vm4, %v954_v12, %v955_v43  ;;  %v1315_v51 = vrot.slane %v3214_v11, 1  ;;  %v1461_v52 = vmul.f32 %v3137_v60, %v3104_v6  ;;  %v1558_v53 = vrot.slane %v1460_v13, 2 }
  0x40   : > { %v2772_v56 = vpack.c.bf16 %v2271_v45, %v2271_v45  ;;  %v2464_v57 = vsel %vm410_vm0, %v2271_v45, 0.0  ;;  %v2533_v58 = vmul.f32 %v2271_v45, %v2271_v45  ;;  %v1063_v47 = vadd.f32 %v956_v44, %v818_v46 }
  0x41   : > { %v2465_v63 = vadd.f32 %v2464_v57, %v2463_v31  ;;  %v1559_v0 = vrot.slane %v1461_v52, 2  ;;  %v1752_v49 = vmul.f32 %v3108_v38, %v3229_v62  ;;  %v1821_v8 = vmul.f32 %v3134_v55, %v3229_v62 }
  0x42   : > { %2432 = vst.msk [vmem:[%s3185_s10 + $0x4] sm:$0xf] %vm2430_vm5, %v2772_v56  ;;  %v2565_v9 = vsel %vm410_vm0, %v2533_v58, 0.0  ;;  %v1179_v61 = vadd.f32 %v1147_v48, %v1063_v47  ;;  %v1822_v10 = vmul.f32 %v3134_v55, %v3231_v1  ;;  %v2065_v14 = vmul.f32 %v3125_v2, %v3229_v62 }
  0x43   : > { %v2566_v16 = vadd.f32 %v2565_v9, %v2564_v41  ;;  %v1316_v59 = vsel %vm703_vm3, %v1314_v50, %v1315_v51  ;;  %v1919_v18 = vrot.slane %v1821_v8, 1  ;;  %v3247_v17 = vmul.f32 %v3125_v2, %v3231_v1 }
  0x44   : > { %v1423_v21 = vadd.f32 %v1316_v59, %v1179_v61  ;;  %v1560_v23 = vsel %vm948_vm4, %v1558_v53, %v1559_v0  ;;  %v1920_v24 = vrot.slane %v1822_v10, 1  ;;  %v2163_v25 = vrot.slane %v2065_v14, 2 }
  0x45   : > { %v2164_v26 = vrot.slane %v3247_v17, 2  ;;  %v542_v27 = vmul.f32 %v3088_v37, %v3076_v33  ;;  %v612_v28 = vmul.f32 %v3080_v34, %v492_v15  ;;  %v857_v29 = vmul.f32 %v3084_v35, %v492_v15 }
  0x46   : > { %v1667_v31 = vadd.f32 %v1560_v23, %v1423_v21  ;;  %v1148_v39 = vmul.f32 %v3137_v60, %v3096_v4  ;;  %v1218_v40 = vmul.f32 %v3100_v5, %v1098_v20  ;;  %v1462_v41 = vmul.f32 %v3104_v6, %v1098_v20 }
  0x47   : > { %v1921_v7 = vsel %vm703_vm3, %v1919_v18, %v1920_v24  ;;  %v2165_v42 = vsel %vm948_vm4, %v2163_v25, %v2164_v26  ;;  %v712_v37 = vrot.slane %v612_v28, 1  ;;  %v957_v11 = vrot.slane %v857_v29, 2 }
  0x48   : > { %v1784_v36 = vadd.f32 %v1752_v49, %v1667_v31  ;;  %v1317_v12 = vrot.slane %v1218_v40, 1  ;;  %v1561_v13 = vrot.slane %v1462_v41, 2  ;;  %v1823_v45 = vmul.f32 %v3134_v55, %v1703_v30 }
  0x49   : > { %v713_v46 = vsel %vm703_vm3, %v710_v32, %v712_v37  ;;  %v958_v48 = vsel %vm948_vm4, %v955_v43, %v957_v11  ;;  %v1753_v50 = vmul.f32 %v3108_v38, %v3231_v1  ;;  %v2067_v44 = vmul.f32 %v3125_v2, %v1703_v30 }
  0x4a   : > { %v2028_v52 = vadd.f32 %v1921_v7, %v1784_v36  ;;  %v819_v53 = vadd.f32 %v713_v46, %v542_v27  ;;  %v1318_v56 = vsel %vm703_vm3, %v1315_v51, %v1317_v12  ;;  %v543_v57 = vmul.f32 %v3132_v54, %v3076_v33 }
  0x4b   : > { %v1562_v58 = vsel %vm948_vm4, %v1559_v0, %v1561_v13  ;;  %v1922_v47 = vrot.slane %v1823_v45, 1  ;;  %v613_v22 = vmul.f32 %v3132_v54, %v3080_v34  ;;  %v3279_v32 = vmul.f32 %v3137_v60, %v3080_v34 }
  0x4c   : > { %v2272_v43 = vadd.f32 %v2165_v42, %v2028_v52  ;;  %v1064_v49 = vadd.f32 %v958_v48, %v819_v53  ;;  %v858_v8 = vmul.f32 %v3132_v54, %v3084_v35  ;;  %v3285_v51 = vmul.f32 %v3137_v60, %v3084_v35  ;;  %v3317_v48 = vld [vmem:[#allocation2 + $0x68] sm:$0xff] }
  0x4d   : > { %v1923_v0 = vsel %vm703_vm3, %v1920_v24, %v1922_v47  ;;  %v2166_v9 = vrot.slane %v2067_v44, 2  ;;  %v714_v61 = vrot.slane %v613_v22, 1  ;;  %v715_v10 = vrot.slane %v3279_v32, 1  ;;  %v495_v44 = vld [vmem:[#allocation2 + $0x40] sm:$0x3] }
  0x4e   : > { %v2773_v14 = vpack.c.bf16 %v2272_v43, %v2272_v43  ;;  %v2466_v15 = vsel %vm410_vm0, %v2272_v43, 0.0  ;;  %v2534_v59 = vmul.f32 %v2272_v43, %v2272_v43  ;;  %v1180_v18 = vadd.f32 %v1148_v39, %v1064_v49  ;;  %v1101_v32 = vld [vmem:[#allocation2 + $0x58] sm:$0x3] }
  0x4f   : > { %v2467_v20 = vadd.f32 %v2466_v15, %v2465_v63  ;;  %v716_v21 = vsel %vm703_vm3, %v714_v61, %v715_v10  ;;  %v959_v23 = vrot.slane %v858_v8, 2  ;;  %v960_v54 = vrot.slane %v3285_v51, 2 }
  0x50   : > { %2433 = vst.msk [vmem:[%s3185_s10 + $0x8] sm:$0xf] %vm2430_vm5, %v2773_v14  ;;  %v2567_v25 = vsel %vm410_vm0, %v2534_v59, 0.0  ;;  %v1424_v24 = vadd.f32 %v1318_v56, %v1180_v18  ;;  %v820_v27 = vadd.f32 %v716_v21, %v543_v57  ;;  %v1149_v28 = vmul.f32 %v3229_v62, %v3096_v4 }
  0x51   : > { %v2568_v29 = vadd.f32 %v2567_v25, %v2566_v16  ;;  %v961_v30 = vsel %vm948_vm4, %v959_v23, %v960_v54  ;;  %v1219_v63 = vmul.f32 %v3229_v62, %v3100_v5  ;;  %v1220_v31 = vmul.f32 %v3231_v1, %v3100_v5  ;;  %v3310_v16 = vld [vmem:[#allocation2 + $0x60] sm:$0xff] }
  0x52   : > { %v1668_v39 = vadd.f32 %v1562_v58, %v1424_v24  ;;  %v1065_v40 = vadd.f32 %v961_v30, %v820_v27  ;;  %v1463_v41 = vmul.f32 %v3229_v62, %v3104_v6  ;;  %v3308_v7 = vmul.f32 %v3231_v1, %v3104_v6 }
  0x53   : > { %v1319_v42 = vrot.slane %v1219_v63, 1  ;;  %v1320_v37 = vrot.slane %v1220_v31, 1  ;;  %v1754_v11 = vmul.f32 %v3108_v38, %v3310_v16  ;;  %v1824_v36 = vmul.f32 %v3134_v55, %v3310_v16  ;;  %v1706_v63 = vld [vmem:[#allocation2 + $0x70] sm:$0x3] }
  0x54   : > { %v1785_v12 = vadd.f32 %v1753_v50, %v1668_v39  ;;  %v1181_v13 = vadd.f32 %v1149_v28, %v1065_v40  ;;  %v1563_v45 = vrot.slane %v1463_v41, 2  ;;  %v1564_v46 = vrot.slane %v3308_v7, 2 }
  0x55   : > { %v1321_v52 = vsel %vm703_vm3, %v1319_v42, %v1320_v37  ;;  %v1825_v53 = vmul.f32 %v3134_v55, %v3317_v48  ;;  %v1924_v56 = vrot.slane %v1824_v36, 1  ;;  %v2068_v57 = vmul.f32 %v3125_v2, %v3310_v16 }
  0x56   : > { %v2029_v58 = vadd.f32 %v1923_v0, %v1785_v12  ;;  %v1425_v47 = vadd.f32 %v1321_v52, %v1181_v13  ;;  %v1565_v50 = vsel %vm948_vm4, %v1563_v45, %v1564_v46  ;;  %v3327_v22 = vmul.f32 %v3125_v2, %v3317_v48 }
  0x57   : > { %v2167_v43 = vsel %vm948_vm4, %v2164_v26, %v2166_v9  ;;  %v1925_v49 = vrot.slane %v1825_v53, 1  ;;  %v2168_v8 = vrot.slane %v2068_v57, 2  ;;  %v615_v61 = vmul.f32 %v3080_v34, %v495_v44 }
  0x58   : > { %v2273_v14 = vadd.f32 %v2167_v43, %v2029_v58  ;;  %v1669_v15 = vadd.f32 %v1565_v50, %v1425_v47  ;;  %v544_v0 = vmul.f32 %v3137_v60, %v3076_v33  ;;  %v860_v59 = vmul.f32 %v3084_v35, %v495_v44 }
  0x59   : > { %v1926_v18 = vsel %vm703_vm3, %v1924_v56, %v1925_v49  ;;  %v2169_v21 = vrot.slane %v3327_v22, 2  ;;  %v717_v23 = vrot.slane %v615_v61, 1  ;;  %v1221_v17 = vmul.f32 %v3100_v5, %v1101_v32 }
  0x5a   : > { %v2774_v26 = vpack.c.bf16 %v2273_v14, %v2273_v14  ;;  %v2468_v9 = vsel %vm410_vm0, %v2273_v14, 0.0  ;;  %v2535_v25 = vmul.f32 %v2273_v14, %v2273_v14  ;;  %v1786_v24 = vadd.f32 %v1754_v11, %v1669_v15 }
  0x5b   : > { %v2469_v27 = vadd.f32 %v2468_v9, %v2467_v20  ;;  %v718_v28 = vsel %vm703_vm3, %v715_v10, %v717_v23  ;;  %v962_v30 = vrot.slane %v860_v59, 2  ;;  %v1150_v60 = vmul.f32 %v3231_v1, %v3096_v4 }
  0x5c   : > { %2434 = vst.msk [vmem:[%s3185_s10 + $0xc] sm:$0xf] %vm2430_vm5, %v2774_v26  ;;  %v2569_v31 = vsel %vm410_vm0, %v2535_v25, 0.0  ;;  %v2030_v39 = vadd.f32 %v1926_v18, %v1786_v24  ;;  %v821_v40 = vadd.f32 %v718_v28, %v544_v0  ;;  %v1322_v41 = vrot.slane %v1221_v17, 1 }
  0x5d   : > { %v2570_v7 = vadd.f32 %v2569_v31, %v2568_v29  ;;  %v2170_v42 = vsel %vm948_vm4, %v2168_v8, %v2169_v21  ;;  %v963_v10 = vsel %vm948_vm4, %v960_v54, %v962_v30  ;;  %v1465_v20 = vmul.f32 %v3104_v6, %v1101_v32 }
  0x5e   : > { %v2274_v11 = vadd.f32 %v2170_v42, %v2030_v39  ;;  %v1066_v36 = vadd.f32 %v963_v10, %v821_v40  ;;  %v1755_v12 = vmul.f32 %v3108_v38, %v3317_v48  ;;  %v1826_v13 = vmul.f32 %v3134_v55, %v1706_v63  ;;  %v3405_v42 = vld [vmem:[#allocation2 + $0x80] sm:$0xff] }
  0x5f   : > { %v1323_v29 = vsel %vm703_vm3, %v1320_v37, %v1322_v41  ;;  %v1566_v45 = vrot.slane %v1465_v20, 2  ;;  %v2070_v44 = vmul.f32 %v3125_v2, %v1706_v63  ;;  %v616_v51 = vmul.f32 %v3229_v62, %v3080_v34 }
  0x60   : > { %v2775_v52 = vpack.c.bf16 %v2274_v11, %v2274_v11  ;;  %v2470_v54 = vsel %vm410_vm0, %v2274_v11, 0.0  ;;  %v2536_v53 = vmul.f32 %v2274_v11, %v2274_v11  ;;  %v1182_v56 = vadd.f32 %v1150_v60, %v1066_v36 }
  0x61   : > { %v2471_v57 = vadd.f32 %v2470_v54, %v2469_v27  ;;  %v1567_v58 = vsel %vm948_vm4, %v1564_v46, %v1566_v45  ;;  %v1927_v47 = vrot.slane %v1826_v13, 1  ;;  %v545_v50 = vmul.f32 %v3229_v62, %v3076_v33 }
  0x62   : > { %2435 = vst.msk [vmem:[%s3185_s10 + $0x10] sm:$0xf] %vm2430_vm5, %v2775_v52  ;;  %v2571_v37 = vsel %vm410_vm0, %v2536_v53, 0.0  ;;  %v1426_v32 = vadd.f32 %v1323_v29, %v1182_v56  ;;  %v3369_v43 = vmul.f32 %v3231_v1, %v3080_v34  ;;  %v719_v8 = vrot.slane %v616_v51, 1  ;;  %v498_v52 = vld [vmem:[#allocation2 + $0x58] sm:$0x3] }
  0x63   : > { %v2572_v61 = vadd.f32 %v2571_v37, %v2570_v7  ;;  %v1928_v14 = vsel %vm703_vm3, %v1925_v49, %v1927_v47  ;;  %v2171_v15 = vrot.slane %v2070_v44, 2  ;;  %v861_v46 = vmul.f32 %v3229_v62, %v3084_v35  ;;  %v3403_v7 = vld [vmem:[#allocation2 + $0x78] sm:$0xff]  ;;  %v1104_v47 = vld [vmem:[#allocation2 + $0x70] sm:$0x3] }
  0x64   : > { %v1670_v0 = vadd.f32 %v1567_v58, %v1426_v32  ;;  %v720_v59 = vrot.slane %v3369_v43, 1  ;;  %v3377_v18 = vmul.f32 %v3231_v1, %v3084_v35  ;;  %v1151_v23 = vmul.f32 %v3310_v16, %v3096_v4 }
  0x65   : > { %v964_v17 = vrot.slane %v861_v46, 2  ;;  %v1222_v26 = vmul.f32 %v3310_v16, %v3100_v5  ;;  %v3385_v49 = vmul.f32 %v3317_v48, %v3100_v5  ;;  %v1466_v62 = vmul.f32 %v3310_v16, %v3104_v6 }
  0x66   : > { %v1787_v9 = vadd.f32 %v1755_v12, %v1670_v0  ;;  %v721_v25 = vsel %vm703_vm3, %v719_v8, %v720_v59  ;;  %v965_v24 = vrot.slane %v3377_v18, 2  ;;  %v3395_v27 = vmul.f32 %v3317_v48, %v3104_v6  ;;  %v1709_v18 = vld [vmem:[#allocation2 + $0x88] sm:$0x3] }
  0x67   : > { %v822_v28 = vadd.f32 %v721_v25, %v545_v50  ;;  %v1324_v30 = vrot.slane %v1222_v26, 1  ;;  %v1325_v60 = vrot.slane %v3385_v49, 1  ;;  %v1568_v63 = vrot.slane %v1466_v62, 2  ;;  %v2876_v49 = vld [vmem:[%s3000_s24 + $0x50] sm:$0xff]  }
  0x68   : > { %v2031_v31 = vadd.f32 %v1928_v14, %v1787_v9  ;;  %v2172_v39 = vsel %vm948_vm4, %v2169_v21, %v2171_v15  ;;  %v966_v40 = vsel %vm948_vm4, %v964_v17, %v965_v24  ;;  %v1569_v41 = vrot.slane %v3395_v27, 2 }
  0x69   : > { %v1067_v10 = vadd.f32 %v966_v40, %v822_v28  ;;  %v1756_v20 = vmul.f32 %v3108_v38, %v3403_v7  ;;  %v1827_v11 = vmul.f32 %v3134_v55, %v3403_v7  ;;  %v1828_v22 = vmul.f32 %v3134_v55, %v3405_v42 }
  0x6a   : > { %v2275_v36 = vadd.f32 %v2172_v39, %v2031_v31  ;;  %v1326_v21 = vsel %vm703_vm3, %v1324_v30, %v1325_v60  ;;  %v2071_v12 = vmul.f32 %v3125_v2, %v3403_v7  ;;  %v3418_v13 = vmul.f32 %v3125_v2, %v3405_v42 }
  0x6b   : > { %v1183_v29 = vadd.f32 %v1151_v23, %v1067_v10  ;;  %v1570_v45 = vsel %vm948_vm4, %v1568_v63, %v1569_v41  ;;  %v1929_v44 = vrot.slane %v1827_v11, 1  ;;  %v1930_v51 = vrot.slane %v1828_v22, 1 }
  0x6c   : > { %v2776_v54 = vpack.c.bf16 %v2275_v36, %v2275_v36  ;;  %v2472_v53 = vsel %vm410_vm0, %v2275_v36, 0.0  ;;  %v2537_v56 = vmul.f32 %v2275_v36, %v2275_v36  ;;  %v2173_v58 = vrot.slane %v2071_v12, 2 }
  0x6d   : > { %v2473_v50 = vadd.f32 %v2472_v53, %v2471_v57  ;;  %v1427_v37 = vadd.f32 %v1326_v21, %v1183_v29  ;;  %v2174_v32 = vrot.slane %v3418_v13, 2  ;;  %v546_v8 = vmul.f32 %v3231_v1, %v3076_v33 }
  0x6e   : > { %2436 = vst.msk [vmem:[%s3185_s10 + $0x14] sm:$0xf] %vm2430_vm5, %v2776_v54  ;;  %v2573_v14 = vsel %vm410_vm0, %v2537_v56, 0.0  ;;  %v1931_v15 = vsel %vm703_vm3, %v1929_v44, %v1930_v51  ;;  %v618_v46 = vmul.f32 %v3080_v34, %v498_v52  ;;  %v863_v0 = vmul.f32 %v3084_v35, %v498_v52 }
  0x6f   : > { %v2574_v23 = vadd.f32 %v2573_v14, %v2572_v61  ;;  %v1671_v17 = vadd.f32 %v1570_v45, %v1427_v37  ;;  %v1152_v57 = vmul.f32 %v3317_v48, %v3096_v4  ;;  %v1224_v26 = vmul.f32 %v3100_v5, %v1104_v47 }
  0x70   : > { %v2175_v1 = vsel %vm948_vm4, %v2173_v58, %v2174_v32  ;;  %v722_v62 = vrot.slane %v618_v46, 1  ;;  %v967_v9 = vrot.slane %v863_v0, 2  ;;  %v1468_v25 = vmul.f32 %v3104_v6, %v1104_v47 }
  0x71   : > { %v1788_v27 = vadd.f32 %v1756_v20, %v1671_v17  ;;  %v1327_v28 = vrot.slane %v1224_v26, 1  ;;  %v1829_v30 = vmul.f32 %v3134_v55, %v1709_v18  ;;  %v2073_v61 = vmul.f32 %v3125_v2, %v1709_v18 }
  0x72   : > { %v723_v63 = vsel %vm703_vm3, %v720_v59, %v722_v62  ;;  %v968_v31 = vsel %vm948_vm4, %v965_v24, %v967_v9  ;;  %v1571_v39 = vrot.slane %v1468_v25, 2  ;;  %v2845_v40 = vunpack.c.l.bf16 %v2876_v49 }
  0x73   : > { %v2032_v10 = vadd.f32 %v1931_v15, %v1788_v27  ;;  %v823_v11 = vadd.f32 %v723_v63, %v546_v8  ;;  %v1757_v22 = vmul.f32 %v3108_v38, %v3405_v42  ;;  %v1932_v36 = vrot.slane %v1829_v30, 1 }
  0x74   : > { %v1328_v20 = vsel %vm703_vm3, %v1325_v60, %v1327_v28  ;;  %v1572_v21 = vsel %vm948_vm4, %v1569_v41, %v1571_v39  ;;  %v327_v12 = vmul.f32 %v2845_v40, %v3005_v3  ;;  %v2846_v29 = vunpack.c.h.bf16 %v2876_v49  ;;  %v3496_v39 = vld [vmem:[#allocation2 + $0x90] sm:$0xff] }
  0x75   : > { %v2276_v43 = vadd.f32 %v2175_v1, %v2032_v10  ;;  %v1068_v59 = vadd.f32 %v968_v31, %v823_v11  ;;  %v1933_v24 = vsel %vm703_vm3, %v1930_v51, %v1932_v36  ;;  %v2176_v45 = vrot.slane %v2073_v61, 2 }
  0x76   : > { %v366_v44 = vadd.f32 %v3021_v19, %v327_v12  ;;  %v328_v52 = vmul.f32 %v2846_v29, %v3005_v3  ;;  %v547_v54 = vmul.f32 %v3310_v16, %v3076_v33  ;;  %v619_v60 = vmul.f32 %v3310_v16, %v3080_v34 }
  0x77   : > { %v2777_v41 = vpack.c.bf16 %v2276_v43, %v2276_v43  ;;  %v2474_v53 = vsel %vm410_vm0, %v2276_v43, 0.0  ;;  %v2538_v56 = vmul.f32 %v2276_v43, %v2276_v43  ;;  %v1184_v58 = vadd.f32 %v1152_v57, %v1068_v59 }
  0x78   : > { %v2475_v47 = vadd.f32 %v2474_v53, %v2473_v50  ;;  %v398_v37 = vmax.f32 %v366_v44, 0.0  ;;  %v367_v51 = vadd.f32 %v3021_v19, %v328_v52  ;;  %v3461_v8 = vmul.f32 %v3317_v48, %v3080_v34 }
  0x79   : > { %2437 = vst.msk [vmem:[%s3185_s10 + $0x18] sm:$0xf] %vm2430_vm5, %v2777_v41  ;;  %v2575_v3 = vsel %vm410_vm0, %v2538_v56, 0.0  ;;  %v1428_v14 = vadd.f32 %v1328_v20, %v1184_v58  ;;  %v724_v15 = vrot.slane %v619_v60, 1  ;;  %v864_v46 = vmul.f32 %v3310_v16, %v3084_v35  ;;  %v1107_v58 = vld [vmem:[#allocation2 + $0x88] sm:$0x3] }
  0x7a   : > { %v2576_v0 = vadd.f32 %v2575_v3, %v2574_v23  ;;  %473 = vst.msk [vmem:[#allocation2 + $0x109] sm:$0xff] %vm410_vm0, %v398_v37  ;;  %v399_v50 = vmax.f32 %v367_v51, 0.0  ;;  %v725_v18 = vrot.slane %v3461_v8, 1  ;;  %v3472_v19 = vmul.f32 %v3317_v48, %v3084_v35 }
  0x7b   : > { %v1672_v17 = vadd.f32 %v1572_v21, %v1428_v14  ;;  %v969_v57 = vrot.slane %v864_v46, 2  ;;  %v1153_v26 = vmul.f32 %v3403_v7, %v3096_v4  ;;  %v1225_v49 = vmul.f32 %v3403_v7, %v3100_v5 }
  0x7c   : > { %474 = vst.msk [vmem:[#allocation2 + $0x111] sm:$0xff] %vm410_vm0, %v399_v50  ;;  %v726_v16 = vsel %vm703_vm3, %v724_v15, %v725_v18  ;;  %v970_v23 = vrot.slane %v3472_v19, 2  ;;  %v3485_v1 = vmul.f32 %v3405_v42, %v3100_v5  ;;  %v1469_v62 = vmul.f32 %v3403_v7, %v3104_v6  ;;  %v1712_v15 = vld [vmem:[#allocation2 + $0xa0] sm:$0x3] }
  0x7d   : > { %v1789_v9 = vadd.f32 %v1757_v22, %v1672_v17  ;;  %v824_v25 = vadd.f32 %v726_v16, %v547_v54  ;;  %v1329_v27 = vrot.slane %v1225_v49, 1  ;;  %v1470_v28 = vmul.f32 %v3405_v42, %v3104_v6  ;;  %v3498_v22 = vld [vmem:[#allocation2 + $0x98] sm:$0xff] }
  0x7e   : > { %v2177_v30 = vsel %vm948_vm4, %v2174_v32, %v2176_v45  ;;  %v971_v61 = vsel %vm948_vm4, %v969_v57, %v970_v23  ;;  %v1330_v63 = vrot.slane %v3485_v1, 1  ;;  %v1573_v31 = vrot.slane %v1469_v62, 2 }
  0x7f   : > { %v2033_v40 = vadd.f32 %v1933_v24, %v1789_v9  ;;  %v1069_v10 = vadd.f32 %v971_v61, %v824_v25  ;;  %v1574_v11 = vrot.slane %v1470_v28, 2  ;;  %v1830_v36 = vmul.f32 %v3134_v55, %v3496_v39  ;;  %v501_v24 = vld [vmem:[#allocation2 + $0x70] sm:$0x3]  ;;  %v2877_v9 = vld [vmem:[%s3000_s24 + $0x58] sm:$0xff]  }
  0x80   : > { %v1331_v20 = vsel %vm703_vm3, %v1329_v27, %v1330_v63  ;;  %v1831_v13 = vmul.f32 %v3134_v55, %v3498_v22  ;;  %v2074_v32 = vmul.f32 %v3125_v2, %v3496_v39  ;;  %v3509_v21 = vmul.f32 %v3125_v2, %v3498_v22 }
  0x81   : > { %v2277_v12 = vadd.f32 %v2177_v30, %v2033_v40  ;;  %v1185_v29 = vadd.f32 %v1153_v26, %v1069_v10  ;;  %v1758_v43 = vmul.f32 %v3108_v38, %v3496_v39  ;;  %v1934_v59 = vrot.slane %v1830_v36, 1 }
  0x82   : > { %v1575_v45 = vsel %vm948_vm4, %v1573_v31, %v1574_v11  ;;  %v1935_v44 = vrot.slane %v1831_v13, 1  ;;  %v2178_v52 = vrot.slane %v2074_v32, 2  ;;  %v2179_v54 = vrot.slane %v3509_v21, 2 }
  0x83   : > { %v2778_v60 = vpack.c.bf16 %v2277_v12, %v2277_v12  ;;  %v2476_v41 = vsel %vm410_vm0, %v2277_v12, 0.0  ;;  %v2539_v53 = vmul.f32 %v2277_v12, %v2277_v12  ;;  %v1429_v56 = vadd.f32 %v1331_v20, %v1185_v29 }
  0x84   : > { %v2477_v37 = vadd.f32 %v2476_v41, %v2475_v47  ;;  %v1936_v51 = vsel %vm703_vm3, %v1934_v59, %v1935_v44  ;;  %v548_v3 = vmul.f32 %v3317_v48, %v3076_v33  ;;  %v621_v14 = vmul.f32 %v3080_v34, %v501_v24 }
  0x85   : > { %2438 = vst.msk [vmem:[%s3185_s10 + $0x1c] sm:$0xf] %vm2430_vm5, %v2778_v60  ;;  %v2577_v46 = vsel %vm410_vm0, %v2539_v53, 0.0  ;;  %v1673_v50 = vadd.f32 %v1575_v45, %v1429_v56  ;;  %v2180_v19 = vsel %vm948_vm4, %v2178_v52, %v2179_v54  ;;  %v866_v47 = vmul.f32 %v3084_v35, %v501_v24 }
  0x86   : > { %v2578_v17 = vadd.f32 %v2577_v46, %v2576_v0  ;;  %v727_v57 = vrot.slane %v621_v14, 1  ;;  %v1227_v26 = vmul.f32 %v3100_v5, %v1107_v58  ;;  %v1471_v48 = vmul.f32 %v3104_v6, %v1107_v58 }
  0x87   : > { %v1790_v49 = vadd.f32 %v1758_v43, %v1673_v50  ;;  %v972_v16 = vrot.slane %v866_v47, 2  ;;  %v1154_v1 = vmul.f32 %v3405_v42, %v3096_v4  ;;  %v1832_v62 = vmul.f32 %v3134_v55, %v1712_v15 }
  0x88   : > { %v728_v25 = vsel %vm703_vm3, %v725_v18, %v727_v57  ;;  %v1332_v27 = vrot.slane %v1227_v26, 1  ;;  %v1576_v28 = vrot.slane %v1471_v48, 2  ;;  %v2076_v0 = vmul.f32 %v3125_v2, %v1712_v15 }
  0x89   : > { %v2034_v30 = vadd.f32 %v1936_v51, %v1790_v49  ;;  %v825_v61 = vadd.f32 %v728_v25, %v548_v3  ;;  %v973_v31 = vsel %vm948_vm4, %v970_v23, %v972_v16  ;;  %v1937_v40 = vrot.slane %v1832_v62, 1  ;;  %v3546_v23 = vld [vmem:[%s4563_s1] ss:$0 sm:$0xff] }
  0x8a   : > { %v1333_v10 = vsel %vm703_vm3, %v1330_v63, %v1332_v27  ;;  %v1577_v36 = vsel %vm948_vm4, %v1574_v11, %v1576_v28  ;;  %v1759_v20 = vmul.f32 %v3108_v38, %v3498_v22  ;;  %v2849_v13 = vunpack.c.l.bf16 %v2877_v9  ;;  %v3598_v28 = vld [vmem:[#allocation2 + $0xa8] sm:$0xff] }
  0x8b   : > { %v2278_v8 = vadd.f32 %v2180_v19, %v2034_v30  ;;  %v1070_v32 = vadd.f32 %v973_v31, %v825_v61  ;;  %v2181_v18 = vrot.slane %v2076_v0, 2  ;;  %v2850_v12 = vunpack.c.h.bf16 %v2877_v9  ;;  %v3601_v31 = vld [vmem:[#allocation2 + $0xb0] sm:$0xff] }
  0x8c   : > { %v1938_v29 = vsel %vm703_vm3, %v1935_v44, %v1937_v40  ;;  %v329_v63 = vmul.f32 %v3546_v23, %v2849_v13  ;;  %v549_v11 = vmul.f32 %v3403_v7, %v3076_v33  ;;  %v622_v43 = vmul.f32 %v3403_v7, %v3080_v34  ;;  %v3557_v44 = vld [vmem:[%s4564_s2] ss:$0 sm:$0xff] }
  0x8d   : > { %v2779_v59 = vpack.c.bf16 %v2278_v8, %v2278_v8  ;;  %v2478_v24 = vsel %vm410_vm0, %v2278_v8, 0.0  ;;  %v2540_v45 = vmul.f32 %v2278_v8, %v2278_v8  ;;  %v1186_v52 = vadd.f32 %v1154_v1, %v1070_v32 }
  0x8e   : > { %v2479_v60 = vadd.f32 %v2478_v24, %v2477_v37  ;;  %v368_v41 = vadd.f32 %v3557_v44, %v329_v63  ;;  %v330_v53 = vmul.f32 %v3546_v23, %v2850_v12  ;;  %v3563_v56 = vmul.f32 %v3405_v42, %v3080_v34 }
  0x8f   : > { %2439 = vst.msk [vmem:[%s3185_s10 + $0x20] sm:$0xf] %vm2430_vm5, %v2779_v59  ;;  %v2579_v58 = vsel %vm410_vm0, %v2540_v45, 0.0  ;;  %v1430_v51 = vadd.f32 %v1333_v10, %v1186_v52  ;;  %v729_v3 = vrot.slane %v622_v43, 1  ;;  %v867_v37 = vmul.f32 %v3403_v7, %v3084_v35  ;;  %v504_v59 = vld [vmem:[#allocation2 + $0x88] sm:$0x3] }
  0x90   : > { %v2580_v14 = vadd.f32 %v2579_v58, %v2578_v17  ;;  %v400_v15 = vmax.f32 %v368_v41, 0.0  ;;  %v369_v46 = vadd.f32 %v3557_v44, %v330_v53  ;;  %v730_v50 = vrot.slane %v3563_v56, 1  ;;  %v1110_v53 = vld [vmem:[#allocation2 + $0xa0] sm:$0x3] }
  0x91   : > { %v1674_v19 = vadd.f32 %v1577_v36, %v1430_v51  ;;  %v2182_v47 = vsel %vm948_vm4, %v2179_v54, %v2181_v18  ;;  %v3577_v57 = vmul.f32 %v3405_v42, %v3084_v35  ;;  %v974_v26 = vrot.slane %v867_v37, 2 }
  0x92   : > { %475 = vst.msk [vmem:[#allocation2 + $0x121] sm:$0xff] %vm410_vm0, %v400_v15  ;;  %v401_v48 = vmax.f32 %v369_v46, 0.0  ;;  %v731_v7 = vsel %vm703_vm3, %v729_v3, %v730_v50  ;;  %v1228_v17 = vmul.f32 %v3496_v39, %v3100_v5  ;;  %v3587_v21 = vmul.f32 %v3498_v22, %v3100_v5 }
  0x93   : > { %v1791_v54 = vadd.f32 %v1759_v20, %v1674_v19  ;;  %v826_v49 = vadd.f32 %v731_v7, %v549_v11  ;;  %v975_v16 = vrot.slane %v3577_v57, 2  ;;  %v1472_v1 = vmul.f32 %v3496_v39, %v3104_v6  ;;  %v2878_v7 = vld [vmem:[%s3000_s24 + $0x60] sm:$0xff]  }
  0x94   : > { %476 = vst.msk [vmem:[#allocation2 + $0x129] sm:$0xff] %vm410_vm0, %v401_v48  ;;  %v1155_v62 = vmul.f32 %v3496_v39, %v3096_v4  ;;  %v1334_v9 = vrot.slane %v1228_v17, 1  ;;  %v1335_v25 = vrot.slane %v3587_v21, 1  ;;  %v1473_v27 = vmul.f32 %v3498_v22, %v3104_v6 }
  0x95   : > { %v2035_v0 = vadd.f32 %v1938_v29, %v1791_v54  ;;  %v976_v30 = vsel %vm948_vm4, %v974_v26, %v975_v16  ;;  %v1578_v61 = vrot.slane %v1472_v1, 2  ;;  %v1833_v40 = vmul.f32 %v3134_v55, %v3598_v28 }
  0x96   : > { %v1071_v10 = vadd.f32 %v976_v30, %v826_v49  ;;  %v1336_v36 = vsel %vm703_vm3, %v1334_v9, %v1335_v25  ;;  %v1579_v20 = vrot.slane %v1473_v27, 2  ;;  %v1834_v13 = vmul.f32 %v3134_v55, %v3601_v31 }
  0x97   : > { %v2279_v8 = vadd.f32 %v2182_v47, %v2035_v0  ;;  %v1939_v32 = vrot.slane %v1833_v40, 1  ;;  %v2077_v18 = vmul.f32 %v3125_v2, %v3598_v28  ;;  %v3612_v12 = vmul.f32 %v3125_v2, %v3601_v31  ;;  %v1715_v47 = vld [vmem:[#allocation2 + $0xb8] sm:$0x3] }
  0x98   : > { %v1187_v29 = vadd.f32 %v1155_v62, %v1071_v10  ;;  %v1580_v63 = vsel %vm948_vm4, %v1578_v61, %v1579_v20  ;;  %v1760_v11 = vmul.f32 %v3108_v38, %v3598_v28  ;;  %v1940_v43 = vrot.slane %v1834_v13, 1 }
  0x99   : > { %v2780_v24 = vpack.c.bf16 %v2279_v8, %v2279_v8  ;;  %v2480_v45 = vsel %vm410_vm0, %v2279_v8, 0.0  ;;  %v2541_v52 = vmul.f32 %v2279_v8, %v2279_v8  ;;  %v2183_v41 = vrot.slane %v2077_v18, 2 }
  0x9a   : > { %v2481_v58 = vadd.f32 %v2480_v45, %v2479_v60  ;;  %v1431_v51 = vadd.f32 %v1336_v36, %v1187_v29  ;;  %v2184_v2 = vrot.slane %v3612_v12, 2  ;;  %v550_v3 = vmul.f32 %v3405_v42, %v3076_v33 }
  0x9b   : > { %2440 = vst.msk [vmem:[%s3185_s10 + $0x24] sm:$0xf] %vm2430_vm5, %v2780_v24  ;;  %v2581_v37 = vsel %vm410_vm0, %v2541_v52, 0.0  ;;  %v1941_v15 = vsel %vm703_vm3, %v1939_v32, %v1940_v43  ;;  %v624_v46 = vmul.f32 %v3080_v34, %v504_v59  ;;  %v869_v19 = vmul.f32 %v3084_v35, %v504_v59 }
  0x9c   : > { %v2582_v57 = vadd.f32 %v2581_v37, %v2580_v14  ;;  %v1675_v26 = vadd.f32 %v1580_v63, %v1431_v51  ;;  %v1156_v60 = vmul.f32 %v3498_v22, %v3096_v4  ;;  %v1230_v48 = vmul.f32 %v3100_v5, %v1110_v53  ;;  %v3639_v14 = vld [vmem:[%s4565_s3 + $0x8] ss:$0 sm:$0xff] }
  0x9d   : > { %v2185_v42 = vsel %vm948_vm4, %v2183_v41, %v2184_v2  ;;  %v732_v17 = vrot.slane %v624_v46, 1  ;;  %v977_v21 = vrot.slane %v869_v19, 2  ;;  %v1474_v54 = vmul.f32 %v3104_v6, %v1110_v53 }
  0x9e   : > { %v1792_v49 = vadd.f32 %v1760_v11, %v1675_v26  ;;  %v1337_v1 = vrot.slane %v1230_v48, 1  ;;  %v1835_v62 = vmul.f32 %v3134_v55, %v1715_v47  ;;  %v2079_v9 = vmul.f32 %v3639_v14, %v1715_v47 }
  0x9f   : > { %v733_v27 = vsel %vm703_vm3, %v730_v50, %v732_v17  ;;  %v978_v0 = vsel %vm948_vm4, %v975_v16, %v977_v21  ;;  %v1581_v30 = vrot.slane %v1474_v54, 2  ;;  %v2853_v61 = vunpack.c.l.bf16 %v2878_v7 }
  0xa0   : > { %v2036_v40 = vadd.f32 %v1941_v15, %v1792_v49  ;;  %v827_v10 = vadd.f32 %v733_v27, %v550_v3  ;;  %v1761_v36 = vmul.f32 %v3108_v38, %v3601_v31  ;;  %v1942_v13 = vrot.slane %v1835_v62, 1 }
  0xa1   : > { %v1338_v8 = vsel %vm703_vm3, %v1335_v25, %v1337_v1  ;;  %v1582_v32 = vsel %vm948_vm4, %v1579_v20, %v1581_v30  ;;  %v331_v18 = vmul.f32 %v3546_v23, %v2853_v61  ;;  %v2854_v29 = vunpack.c.h.bf16 %v2878_v7 }
  0xa2   : > { %v2280_v56 = vadd.f32 %v2185_v42, %v2036_v40  ;;  %v1072_v50 = vadd.f32 %v978_v0, %v827_v10  ;;  %v1943_v16 = vsel %vm703_vm3, %v1940_v43, %v1942_v13  ;;  %v2186_v63 = vrot.slane %v2079_v9, 2  ;;  %v3697_v40 = vld [vmem:[#allocation2 + $0xc0] sm:$0xff] }
  0xa3   : > { %v370_v11 = vadd.f32 %v3557_v44, %v331_v18  ;;  %v332_v59 = vmul.f32 %v3546_v23, %v2854_v29  ;;  %v551_v24 = vmul.f32 %v3496_v39, %v3076_v33  ;;  %v625_v25 = vmul.f32 %v3496_v39, %v3080_v34 }
  0xa4   : > { %v2781_v20 = vpack.c.bf16 %v2280_v56, %v2280_v56  ;;  %v2482_v45 = vsel %vm410_vm0, %v2280_v56, 0.0  ;;  %v2542_v52 = vmul.f32 %v2280_v56, %v2280_v56  ;;  %v1188_v41 = vadd.f32 %v1156_v60, %v1072_v50 }
  0xa5   : > { %v2483_v53 = vadd.f32 %v2482_v45, %v2481_v58  ;;  %v402_v51 = vmax.f32 %v370_v11, 0.0  ;;  %v371_v43 = vadd.f32 %v3557_v44, %v332_v59  ;;  %v3662_v3 = vmul.f32 %v3498_v22, %v3080_v34  ;;  %v507_v11 = vld [vmem:[#allocation2 + $0xa0] sm:$0x3] }
  0xa6   : > { %2441 = vst.msk [vmem:[%s3185_s10 + $0x28] sm:$0xf] %vm2430_vm5, %v2781_v20  ;;  %v2583_v37 = vsel %vm410_vm0, %v2542_v52, 0.0  ;;  %v1432_v15 = vadd.f32 %v1338_v8, %v1188_v41  ;;  %v734_v46 = vrot.slane %v625_v25, 1  ;;  %v870_v19 = vmul.f32 %v3496_v39, %v3084_v35 }
  0xa7   : > { %v2584_v47 = vadd.f32 %v2583_v37, %v2582_v57  ;;  %477 = vst.msk [vmem:[#allocation2 + $0x139] sm:$0xff] %vm410_vm0, %v402_v51  ;;  %v403_v58 = vmax.f32 %v371_v43, 0.0  ;;  %v735_v26 = vrot.slane %v3662_v3, 1  ;;  %v3673_v60 = vmul.f32 %v3498_v22, %v3084_v35  ;;  %v1113_v43 = vld [vmem:[#allocation2 + $0xb8] sm:$0x3] }
  0xa8   : > { %v1676_v48 = vadd.f32 %v1582_v32, %v1432_v15  ;;  %v979_v7 = vrot.slane %v870_v19, 2  ;;  %v1157_v42 = vmul.f32 %v3598_v28, %v3096_v4  ;;  %v1231_v17 = vmul.f32 %v3598_v28, %v3100_v5 }
  0xa9   : > { %478 = vst.msk [vmem:[#allocation2 + $0x141] sm:$0xff] %vm410_vm0, %v403_v58  ;;  %v736_v39 = vsel %vm703_vm3, %v734_v46, %v735_v26  ;;  %v980_v57 = vrot.slane %v3673_v60, 2  ;;  %v3686_v21 = vmul.f32 %v3601_v31, %v3100_v5  ;;  %v1475_v54 = vmul.f32 %v3598_v28, %v3104_v6  ;;  %v1718_v58 = vld [vmem:[#allocation2 + $0xd0] sm:$0x3] }
  0xaa   : > { %v1793_v49 = vadd.f32 %v1761_v36, %v1676_v48  ;;  %v828_v1 = vadd.f32 %v736_v39, %v551_v24  ;;  %v1339_v62 = vrot.slane %v1231_v17, 1  ;;  %v1476_v9 = vmul.f32 %v3601_v31, %v3104_v6  ;;  %v3699_v36 = vld [vmem:[#allocation2 + $0xc8] sm:$0xff] }
  0xab   : > { %v2187_v27 = vsel %vm948_vm4, %v2184_v2, %v2186_v63  ;;  %v981_v0 = vsel %vm948_vm4, %v979_v7, %v980_v57  ;;  %v1340_v30 = vrot.slane %v3686_v21, 1  ;;  %v1583_v61 = vrot.slane %v1475_v54, 2 }
  0xac   : > { %v2037_v10 = vadd.f32 %v1943_v16, %v1793_v49  ;;  %v1073_v13 = vadd.f32 %v981_v0, %v828_v1  ;;  %v1584_v8 = vrot.slane %v1476_v9, 2  ;;  %v1836_v32 = vmul.f32 %v3134_v55, %v3697_v40 }
  0xad   : > { %v1341_v18 = vsel %vm703_vm3, %v1339_v62, %v1340_v30  ;;  %v1837_v12 = vmul.f32 %v3134_v55, %v3699_v36  ;;  %v2080_v2 = vmul.f32 %v3639_v14, %v3697_v40  ;;  %v3710_v29 = vmul.f32 %v3639_v14, %v3699_v36  ;;  %v2879_v62 = vld [vmem:[%s3000_s24 + $0x68] sm:$0xff]  }
  0xae   : > { %v2281_v56 = vadd.f32 %v2187_v27, %v2037_v10  ;;  %v1189_v50 = vadd.f32 %v1157_v42, %v1073_v13  ;;  %v1762_v16 = vmul.f32 %v3108_v38, %v3697_v40  ;;  %v1944_v63 = vrot.slane %v1836_v32, 1 }
  0xaf   : > { %v1585_v59 = vsel %vm948_vm4, %v1583_v61, %v1584_v8  ;;  %v1945_v24 = vrot.slane %v1837_v12, 1  ;;  %v2188_v25 = vrot.slane %v2080_v2, 2  ;;  %v2189_v20 = vrot.slane %v3710_v29, 2 }
  0xb0   : > { %v2782_v45 = vpack.c.bf16 %v2281_v56, %v2281_v56  ;;  %v2484_v52 = vsel %vm410_vm0, %v2281_v56, 0.0  ;;  %v2543_v41 = vmul.f32 %v2281_v56, %v2281_v56  ;;  %v1433_v51 = vadd.f32 %v1341_v18, %v1189_v50 }
  0xb1   : > { %v2485_v37 = vadd.f32 %v2484_v52, %v2483_v53  ;;  %v1946_v15 = vsel %vm703_vm3, %v1944_v63, %v1945_v24  ;;  %v552_v46 = vmul.f32 %v3498_v22, %v3076_v33  ;;  %v627_v19 = vmul.f32 %v3080_v34, %v507_v11 }
  0xb2   : > { %2442 = vst.msk [vmem:[%s3185_s10 + $0x2c] sm:$0xf] %vm2430_vm5, %v2782_v45  ;;  %v2585_v60 = vsel %vm410_vm0, %v2543_v41, 0.0  ;;  %v1677_v48 = vadd.f32 %v1585_v59, %v1433_v51  ;;  %v2190_v7 = vsel %vm948_vm4, %v2188_v25, %v2189_v20  ;;  %v872_v53 = vmul.f32 %v3084_v35, %v507_v11 }
  0xb3   : > { %v2586_v42 = vadd.f32 %v2585_v60, %v2584_v47  ;;  %v737_v17 = vrot.slane %v627_v19, 1  ;;  %v1233_v39 = vmul.f32 %v3100_v5, %v1113_v43  ;;  %v1477_v22 = vmul.f32 %v3104_v6, %v1113_v43 }
  0xb4   : > { %v1794_v21 = vadd.f32 %v1762_v16, %v1677_v48  ;;  %v982_v54 = vrot.slane %v872_v53, 2  ;;  %v1158_v49 = vmul.f32 %v3601_v31, %v3096_v4  ;;  %v1838_v1 = vmul.f32 %v3134_v55, %v1718_v58 }
  0xb5   : > { %v738_v9 = vsel %vm703_vm3, %v735_v26, %v737_v17  ;;  %v1342_v27 = vrot.slane %v1233_v39, 1  ;;  %v1586_v0 = vrot.slane %v1477_v22, 2  ;;  %v2082_v47 = vmul.f32 %v3639_v14, %v1718_v58 }
  0xb6   : > { %v2038_v61 = vadd.f32 %v1946_v15, %v1794_v21  ;;  %v829_v10 = vadd.f32 %v738_v9, %v552_v46  ;;  %v983_v13 = vsel %vm948_vm4, %v980_v57, %v982_v54  ;;  %v1947_v32 = vrot.slane %v1838_v1, 1 }
  0xb7   : > { %v1343_v18 = vsel %vm703_vm3, %v1340_v30, %v1342_v27  ;;  %v1587_v12 = vsel %vm948_vm4, %v1584_v8, %v1586_v0  ;;  %v1763_v2 = vmul.f32 %v3108_v38, %v3699_v36  ;;  %v2857_v56 = vunpack.c.l.bf16 %v2879_v62  ;;  %v3789_v0 = vld [vmem:[#allocation2 + $0xd8] sm:$0xff] }
  0xb8   : > { %v2282_v3 = vadd.f32 %v2190_v7, %v2038_v61  ;;  %v1074_v26 = vadd.f32 %v983_v13, %v829_v10  ;;  %v2191_v50 = vrot.slane %v2082_v47, 2  ;;  %v2858_v16 = vunpack.c.h.bf16 %v2879_v62  ;;  %v3792_v13 = vld [vmem:[#allocation2 + $0xe0] sm:$0xff] }
  0xb9   : > { %v1948_v63 = vsel %vm703_vm3, %v1945_v24, %v1947_v32  ;;  %v333_v11 = vmul.f32 %v3546_v23, %v2857_v56  ;;  %v553_v57 = vmul.f32 %v3598_v28, %v3076_v33  ;;  %v628_v30 = vmul.f32 %v3598_v28, %v3080_v34 }
  0xba   : > { %v2783_v8 = vpack.c.bf16 %v2282_v3, %v2282_v3  ;;  %v2486_v59 = vsel %vm410_vm0, %v2282_v3, 0.0  ;;  %v2544_v25 = vmul.f32 %v2282_v3, %v2282_v3  ;;  %v1190_v45 = vadd.f32 %v1158_v49, %v1074_v26 }
  0xbb   : > { %v2487_v52 = vadd.f32 %v2486_v59, %v2485_v37  ;;  %v372_v41 = vadd.f32 %v3557_v44, %v333_v11  ;;  %v334_v51 = vmul.f32 %v3546_v23, %v2858_v16  ;;  %v3754_v24 = vmul.f32 %v3601_v31, %v3080_v34 }
  0xbc   : > { %2443 = vst.msk [vmem:[%s3185_s10 + $0x30] sm:$0xf] %vm2430_vm5, %v2783_v8  ;;  %v2587_v43 = vsel %vm410_vm0, %v2544_v25, 0.0  ;;  %v1434_v15 = vadd.f32 %v1343_v18, %v1190_v45  ;;  %v739_v46 = vrot.slane %v628_v30, 1  ;;  %v873_v19 = vmul.f32 %v3598_v28, %v3084_v35  ;;  %v510_v8 = vld [vmem:[#allocation2 + $0xb8] sm:$0x3] }
  0xbd   : > { %v2588_v58 = vadd.f32 %v2587_v43, %v2586_v42  ;;  %v404_v60 = vmax.f32 %v372_v41, 0.0  ;;  %v373_v37 = vadd.f32 %v3557_v44, %v334_v51  ;;  %v740_v48 = vrot.slane %v3754_v24, 1  ;;  %v1116_v51 = vld [vmem:[#allocation2 + $0xd0] sm:$0x3] }
  0xbe   : > { %v1678_v7 = vadd.f32 %v1587_v12, %v1434_v15  ;;  %v2192_v53 = vsel %vm948_vm4, %v2189_v20, %v2191_v50  ;;  %v3768_v17 = vmul.f32 %v3601_v31, %v3084_v35  ;;  %v984_v39 = vrot.slane %v873_v19, 2 }
  0xbf   : > { %479 = vst.msk [vmem:[#allocation2 + $0x151] sm:$0xff] %vm410_vm0, %v404_v60  ;;  %v405_v22 = vmax.f32 %v373_v37, 0.0  ;;  %v741_v28 = vsel %vm703_vm3, %v739_v46, %v740_v48  ;;  %v1234_v42 = vmul.f32 %v3697_v40, %v3100_v5  ;;  %v3778_v29 = vmul.f32 %v3699_v36, %v3100_v5 }
  0xc0   : > { %v1795_v20 = vadd.f32 %v1763_v2, %v1678_v7  ;;  %v830_v21 = vadd.f32 %v741_v28, %v553_v57  ;;  %v985_v54 = vrot.slane %v3768_v17, 2  ;;  %v1478_v49 = vmul.f32 %v3697_v40, %v3104_v6  ;;  %v1721_v17 = vld [vmem:[#allocation2 + $0xe8] sm:$0x3] }
  0xc1   : > { %480 = vst.msk [vmem:[#allocation2 + $0x159] sm:$0xff] %vm410_vm0, %v405_v22  ;;  %v1159_v1 = vmul.f32 %v3697_v40, %v3096_v4  ;;  %v1344_v62 = vrot.slane %v1234_v42, 1  ;;  %v1345_v9 = vrot.slane %v3778_v29, 1  ;;  %v1479_v27 = vmul.f32 %v3699_v36, %v3104_v6  ;;  %v2880_v42 = vld [vmem:[%s3000_s24 + $0x70] sm:$0xff]  }
  0xc2   : > { %v2039_v47 = vadd.f32 %v1948_v63, %v1795_v20  ;;  %v986_v61 = vsel %vm948_vm4, %v984_v39, %v985_v54  ;;  %v1588_v10 = vrot.slane %v1478_v49, 2  ;;  %v1839_v32 = vmul.f32 %v3134_v55, %v3789_v0 }
  0xc3   : > { %v1075_v18 = vadd.f32 %v986_v61, %v830_v21  ;;  %v1346_v12 = vsel %vm703_vm3, %v1344_v62, %v1345_v9  ;;  %v1589_v2 = vrot.slane %v1479_v27, 2  ;;  %v1840_v56 = vmul.f32 %v3134_v55, %v3792_v13 }
  0xc4   : > { %v2283_v3 = vadd.f32 %v2192_v53, %v2039_v47  ;;  %v1949_v26 = vrot.slane %v1839_v32, 1  ;;  %v2083_v50 = vmul.f32 %v3639_v14, %v3789_v0  ;;  %v3803_v16 = vmul.f32 %v3639_v14, %v3792_v13 }
  0xc5   : > { %v1191_v63 = vadd.f32 %v1159_v1, %v1075_v18  ;;  %v1590_v11 = vsel %vm948_vm4, %v1588_v10, %v1589_v2  ;;  %v1764_v57 = vmul.f32 %v3108_v38, %v3789_v0  ;;  %v1950_v30 = vrot.slane %v1840_v56, 1 }
  0xc6   : > { %v2784_v59 = vpack.c.bf16 %v2283_v3, %v2283_v3  ;;  %v2488_v25 = vsel %vm410_vm0, %v2283_v3, 0.0  ;;  %v2545_v45 = vmul.f32 %v2283_v3, %v2283_v3  ;;  %v2193_v41 = vrot.slane %v2083_v50, 2 }
  0xc7   : > { %v2489_v43 = vadd.f32 %v2488_v25, %v2487_v52  ;;  %v1435_v15 = vadd.f32 %v1346_v12, %v1191_v63  ;;  %v2194_v46 = vrot.slane %v3803_v16, 2  ;;  %v554_v19 = vmul.f32 %v3601_v31, %v3076_v33 }
  0xc8   : > { %2444 = vst.msk [vmem:[%s3185_s10 + $0x34] sm:$0xf] %vm2430_vm5, %v2784_v59  ;;  %v2589_v60 = vsel %vm410_vm0, %v2545_v45, 0.0  ;;  %v1951_v37 = vsel %vm703_vm3, %v1949_v26, %v1950_v30  ;;  %v630_v7 = vmul.f32 %v3080_v34, %v510_v8  ;;  %v875_v53 = vmul.f32 %v3084_v35, %v510_v8 }
  0xc9   : > { %v2590_v39 = vadd.f32 %v2589_v60, %v2588_v58  ;;  %v1679_v22 = vadd.f32 %v1590_v11, %v1435_v15  ;;  %v1160_v52 = vmul.f32 %v3699_v36, %v3096_v4  ;;  %v1236_v28 = vmul.f32 %v3100_v5, %v1116_v51 }
  0xca   : > { %v2195_v31 = vsel %vm948_vm4, %v2193_v41, %v2194_v46  ;;  %v742_v29 = vrot.slane %v630_v7, 1  ;;  %v987_v20 = vrot.slane %v875_v53, 2  ;;  %v1480_v21 = vmul.f32 %v3104_v6, %v1116_v51 }
  0xcb   : > { %v1796_v49 = vadd.f32 %v1764_v57, %v1679_v22  ;;  %v1347_v1 = vrot.slane %v1236_v28, 1  ;;  %v1841_v62 = vmul.f32 %v3134_v55, %v1721_v17  ;;  %v2085_v58 = vmul.f32 %v3639_v14, %v1721_v17 }
  0xcc   : > { %v743_v27 = vsel %vm703_vm3, %v740_v48, %v742_v29  ;;  %v988_v47 = vsel %vm948_vm4, %v985_v54, %v987_v20  ;;  %v1591_v61 = vrot.slane %v1480_v21, 2  ;;  %v2861_v10 = vunpack.c.l.bf16 %v2880_v42 }
  0xcd   : > { %v2040_v32 = vadd.f32 %v1951_v37, %v1796_v49  ;;  %v831_v18 = vadd.f32 %v743_v27, %v554_v19  ;;  %v1765_v12 = vmul.f32 %v3108_v38, %v3792_v13  ;;  %v1952_v56 = vrot.slane %v1841_v62, 1 }
  0xce   : > { %v1348_v3 = vsel %vm703_vm3, %v1345_v9, %v1347_v1  ;;  %v1592_v26 = vsel %vm948_vm4, %v1589_v2, %v1591_v61  ;;  %v335_v50 = vmul.f32 %v3546_v23, %v2861_v10  ;;  %v2862_v63 = vunpack.c.h.bf16 %v2880_v42 }
  0xcf   : > { %v2284_v24 = vadd.f32 %v2195_v31, %v2040_v32  ;;  %v1076_v48 = vadd.f32 %v988_v47, %v831_v18  ;;  %v1953_v54 = vsel %vm703_vm3, %v1950_v30, %v1952_v56  ;;  %v2196_v11 = vrot.slane %v2085_v58, 2  ;;  %v3878_v32 = vld [vmem:[#allocation2 + $0xf0] sm:$0xff] }
  0xd0   : > { %v374_v57 = vadd.f32 %v3557_v44, %v335_v50  ;;  %v336_v8 = vmul.f32 %v3546_v23, %v2862_v63  ;;  %v555_v59 = vmul.f32 %v3697_v40, %v3076_v33  ;;  %v631_v9 = vmul.f32 %v3697_v40, %v3080_v34 }
  0xd1   : > { %v2785_v2 = vpack.c.bf16 %v2284_v24, %v2284_v24  ;;  %v2490_v25 = vsel %vm410_vm0, %v2284_v24, 0.0  ;;  %v2546_v45 = vmul.f32 %v2284_v24, %v2284_v24  ;;  %v1192_v41 = vadd.f32 %v1160_v52, %v1076_v48 }
  0xd2   : > { %v2491_v51 = vadd.f32 %v2490_v25, %v2489_v43  ;;  %v406_v15 = vmax.f32 %v374_v57, 0.0  ;;  %v375_v30 = vadd.f32 %v3557_v44, %v336_v8  ;;  %v3848_v19 = vmul.f32 %v3699_v36, %v3080_v34  ;;  %v513_v57 = vld [vmem:[#allocation2 + $0xd0] sm:$0x3] }
  0xd3   : > { %2445 = vst.msk [vmem:[%s3185_s10 + $0x38] sm:$0xf] %vm2430_vm5, %v2785_v2  ;;  %v2591_v60 = vsel %vm410_vm0, %v2546_v45, 0.0  ;;  %v1436_v37 = vadd.f32 %v1348_v3, %v1192_v41  ;;  %v744_v7 = vrot.slane %v631_v9, 1  ;;  %v876_v53 = vmul.f32 %v3697_v40, %v3084_v35 }
  0xd4   : > { %v2592_v17 = vadd.f32 %v2591_v60, %v2590_v39  ;;  %481 = vst.msk [vmem:[#allocation2 + $0x169] sm:$0xff] %vm410_vm0, %v406_v15  ;;  %v407_v43 = vmax.f32 %v375_v30, 0.0  ;;  %v745_v22 = vrot.slane %v3848_v19, 1  ;;  %v3859_v52 = vmul.f32 %v3699_v36, %v3084_v35  ;;  %v1119_v30 = vld [vmem:[#allocation2 + $0xe8] sm:$0x3] }
  0xd5   : > { %v1680_v28 = vadd.f32 %v1592_v26, %v1436_v37  ;;  %v989_v42 = vrot.slane %v876_v53, 2  ;;  %v1161_v31 = vmul.f32 %v3789_v0, %v3096_v4  ;;  %v1237_v29 = vmul.f32 %v3789_v0, %v3100_v5  ;;  %v3880_v26 = vld [vmem:[#allocation2 + $0xf8] sm:$0xff]  ;;  %v1724_v53 = vld [vmem:[#allocation2 + $0x100] sm:$0x3] }
  0xd6   : > { %482 = vst.msk [vmem:[#allocation2 + $0x171] sm:$0xff] %vm410_vm0, %v407_v43  ;;  %v746_v40 = vsel %vm703_vm3, %v744_v7, %v745_v22  ;;  %v990_v39 = vrot.slane %v3859_v52, 2  ;;  %v1238_v20 = vmul.f32 %v3792_v13, %v3100_v5  ;;  %v1481_v21 = vmul.f32 %v3789_v0, %v3104_v6 }
  0xd7   : > { %v1797_v49 = vadd.f32 %v1765_v12, %v1680_v28  ;;  %v832_v1 = vadd.f32 %v746_v40, %v555_v59  ;;  %v1349_v62 = vrot.slane %v1237_v29, 1  ;;  %v1482_v58 = vmul.f32 %v3792_v13, %v3104_v6 }
  0xd8   : > { %v2197_v27 = vsel %vm948_vm4, %v2194_v46, %v2196_v11  ;;  %v991_v47 = vsel %vm948_vm4, %v989_v42, %v990_v39  ;;  %v1350_v61 = vrot.slane %v1238_v20, 1  ;;  %v1593_v10 = vrot.slane %v1481_v21, 2 }
  0xd9   : > { %v2041_v18 = vadd.f32 %v1953_v54, %v1797_v49  ;;  %v1077_v56 = vadd.f32 %v991_v47, %v832_v1  ;;  %v1594_v3 = vrot.slane %v1482_v58, 2  ;;  %v1842_v12 = vmul.f32 %v3134_v55, %v3878_v32 }
  0xda   : > { %v1351_v50 = vsel %vm703_vm3, %v1349_v62, %v1350_v61  ;;  %v1843_v16 = vmul.f32 %v3134_v55, %v3880_v26  ;;  %v2086_v46 = vmul.f32 %v3639_v14, %v3878_v32  ;;  %v3891_v63 = vmul.f32 %v3639_v14, %v3880_v26 }
  0xdb   : > { %v2285_v24 = vadd.f32 %v2197_v27, %v2041_v18  ;;  %v1193_v48 = vadd.f32 %v1161_v31, %v1077_v56  ;;  %v1766_v54 = vmul.f32 %v3108_v38, %v3878_v32  ;;  %v1954_v11 = vrot.slane %v1842_v12, 1 }
  0xdc   : > { %v1595_v8 = vsel %vm948_vm4, %v1593_v10, %v1594_v3  ;;  %v1955_v59 = vrot.slane %v1843_v16, 1  ;;  %v2198_v9 = vrot.slane %v2086_v46, 2  ;;  %v2199_v2 = vrot.slane %v3891_v63, 2 }
  0xdd   : > { %v2786_v25 = vpack.c.bf16 %v2285_v24, %v2285_v24  ;;  %v2492_v45 = vsel %vm410_vm0, %v2285_v24, 0.0  ;;  %v2547_v41 = vmul.f32 %v2285_v24, %v2285_v24  ;;  %v1437_v15 = vadd.f32 %v1351_v50, %v1193_v48 }
  0xde   : > { %v2493_v19 = vadd.f32 %v2492_v45, %v2491_v51  ;;  %v1956_v60 = vsel %vm703_vm3, %v1954_v11, %v1955_v59  ;;  %v556_v37 = vmul.f32 %v3699_v36, %v3076_v33  ;;  %v633_v7 = vmul.f32 %v3080_v34, %v513_v57 }
  0xdf   : > { %2446 = vst.msk [vmem:[%s3185_s10 + $0x3c] sm:$0xf] %vm2430_vm5, %v2786_v25  ;;  %v2593_v43 = vsel %vm410_vm0, %v2547_v41, 0.0  ;;  %v1681_v52 = vadd.f32 %v1595_v8, %v1437_v15  ;;  %v2200_v28 = vsel %vm948_vm4, %v2198_v9, %v2199_v2  ;;  %v878_v42 = vmul.f32 %v3084_v35, %v513_v57 }
  0xe0   : > { %v2594_v51 = vadd.f32 %v2593_v43, %v2592_v17  ;;  %v747_v31 = vrot.slane %v633_v7, 1  ;;  %v1239_v29 = vmul.f32 %v3100_v5, %v1119_v30  ;;  %v1483_v36 = vmul.f32 %v3104_v6, %v1119_v30 }
  0xe1   : > { %v1798_v40 = vadd.f32 %v1766_v54, %v1681_v52  ;;  %v992_v20 = vrot.slane %v878_v42, 2  ;;  %v1162_v21 = vmul.f32 %v3792_v13, %v3096_v4  ;;  %v1844_v49 = vmul.f32 %v3134_v55, %v1724_v53 }
  0xe2   : > { %v748_v1 = vsel %vm703_vm3, %v745_v22, %v747_v31  ;;  %v1352_v62 = vrot.slane %v1239_v29, 1  ;;  %v1596_v58 = vrot.slane %v1483_v36, 2  ;;  %v2088_v27 = vmul.f32 %v3639_v14, %v1724_v53 }
  0xe3   : > { %v2042_v47 = vadd.f32 %v1956_v60, %v1798_v40  ;;  %v833_v17 = vadd.f32 %v748_v1, %v556_v37  ;;  %v993_v10 = vsel %vm948_vm4, %v990_v39, %v992_v20  ;;  %v1957_v18 = vrot.slane %v1844_v49, 1  ;;  %v3962_v40 = vld [vmem:[#allocation2 + $0x108] sm:$0xff]  ;;  %v3964_v1 = vld [vmem:[#allocation2 + $0x110] sm:$0xff] }
  0xe4   : > { %v1353_v56 = vsel %vm703_vm3, %v1350_v61, %v1352_v62  ;;  %v1597_v12 = vsel %vm948_vm4, %v1594_v3, %v1596_v58  ;;  %v1767_v50 = vmul.f32 %v3108_v38, %v3880_v26  ;;  %v2201_v16 = vrot.slane %v2088_v27, 2 }
  0xe5   : > { %v2286_v46 = vadd.f32 %v2200_v28, %v2042_v47  ;;  %v1078_v22 = vadd.f32 %v993_v10, %v833_v17  ;;  %v557_v24 = vmul.f32 %v3789_v0, %v3076_v33  ;;  %v634_v48 = vmul.f32 %v3789_v0, %v3080_v34  ;;  %v516_v47 = vld [vmem:[#allocation2 + $0xe8] sm:$0x3] }
  0xe6   : > { %v1958_v39 = vsel %vm703_vm3, %v1955_v59, %v1957_v18  ;;  %v3928_v61 = vmul.f32 %v3792_v13, %v3080_v34  ;;  %v879_v3 = vmul.f32 %v3789_v0, %v3084_v35  ;;  %v3934_v54 = vmul.f32 %v3792_v13, %v3084_v35 }
  0xe7   : > { %v2787_v11 = vpack.c.bf16 %v2286_v46, %v2286_v46  ;;  %v2494_v57 = vsel %vm410_vm0, %v2286_v46, 0.0  ;;  %v2548_v8 = vmul.f32 %v2286_v46, %v2286_v46  ;;  %v1194_v9 = vadd.f32 %v1162_v21, %v1078_v22 }
  0xe8   : > { %v2495_v25 = vadd.f32 %v2494_v57, %v2493_v19  ;;  %v749_v45 = vrot.slane %v634_v48, 1  ;;  %v750_v59 = vrot.slane %v3928_v61, 1  ;;  %v994_v41 = vrot.slane %v879_v3, 2 }
  0xe9   : > { %2447 = vst.msk [vmem:[%s3185_s10 + $0x40] sm:$0xf] %vm2430_vm5, %v2787_v11  ;;  %v2595_v15 = vsel %vm410_vm0, %v2548_v8, 0.0  ;;  %v1438_v30 = vadd.f32 %v1353_v56, %v1194_v9  ;;  %v995_v0 = vrot.slane %v3934_v54, 2  ;;  %v1163_v60 = vmul.f32 %v3878_v32, %v3096_v4 }
  0xea   : > { %v2596_v37 = vadd.f32 %v2595_v15, %v2594_v51  ;;  %v751_v7 = vsel %vm703_vm3, %v749_v45, %v750_v59  ;;  %v1240_v19 = vmul.f32 %v3878_v32, %v3100_v5  ;;  %v3951_v53 = vmul.f32 %v3880_v26, %v3100_v5 }
  0xeb   : > { %v1682_v43 = vadd.f32 %v1597_v12, %v1438_v30  ;;  %v834_v52 = vadd.f32 %v751_v7, %v557_v24  ;;  %v996_v28 = vsel %vm948_vm4, %v994_v41, %v995_v0  ;;  %v1484_v42 = vmul.f32 %v3878_v32, %v3104_v6  ;;  %v1122_v12 = vld [vmem:[#allocation2 + $0x100] sm:$0x3] }
  0xec   : > { %v2202_v51 = vsel %vm948_vm4, %v2199_v2, %v2201_v16  ;;  %v1354_v31 = vrot.slane %v1240_v19, 1  ;;  %v1355_v29 = vrot.slane %v3951_v53, 1  ;;  %v1485_v36 = vmul.f32 %v3880_v26, %v3104_v6 }
  0xed   : > { %v1799_v20 = vadd.f32 %v1767_v50, %v1682_v43  ;;  %v1079_v21 = vadd.f32 %v996_v28, %v834_v52  ;;  %v1598_v49 = vrot.slane %v1484_v42, 2  ;;  %v1845_v62 = vmul.f32 %v3134_v55, %v3962_v40  ;;  %v1727_v28 = vld [vmem:[#allocation2 + $0x118] sm:$0x3] }
  0xee   : > { %v1356_v63 = vsel %vm703_vm3, %v1354_v31, %v1355_v29  ;;  %v1599_v58 = vrot.slane %v1485_v36, 2  ;;  %v1846_v2 = vmul.f32 %v3134_v55, %v3964_v1  ;;  %v2089_v27 = vmul.f32 %v3639_v14, %v3962_v40  ;;  %v2881_v42 = vld [vmem:[%s3000_s24 + $0x78] sm:$0xff]   ;;  %s235_s24 = scalar_lea.vmem %s4567_s5, %s2731_s21 }
  0xef   : > { %v2043_v17 = vadd.f32 %v1958_v39, %v1799_v20  ;;  %v1195_v10 = vadd.f32 %v1163_v60, %v1079_v21  ;;  %v1959_v18 = vrot.slane %v1845_v62, 1  ;;  %v3975_v56 = vmul.f32 %v3639_v14, %v3964_v1 }
  0xf0   : > { %v1600_v50 = vsel %vm948_vm4, %v1598_v49, %v1599_v58  ;;  %v1768_v16 = vmul.f32 %v3108_v38, %v3962_v40  ;;  %v1960_v46 = vrot.slane %v1846_v2, 1  ;;  %v2203_v22 = vrot.slane %v2089_v27, 2 }
  0xf1   : > { %v2287_v24 = vadd.f32 %v2202_v51, %v2043_v17  ;;  %v1439_v48 = vadd.f32 %v1356_v63, %v1195_v10  ;;  %v558_v39 = vmul.f32 %v3792_v13, %v3076_v33  ;;  %v636_v3 = vmul.f32 %v3080_v34, %v516_v47 }
  0xf2   : > { %v1961_v54 = vsel %vm703_vm3, %v1959_v18, %v1960_v46  ;;  %v2204_v11 = vrot.slane %v3975_v56, 2  ;;  %v881_v57 = vmul.f32 %v3084_v35, %v516_v47  ;;  %v1242_v8 = vmul.f32 %v3100_v5, %v1122_v12 }
  0xf3   : > { %v2788_v9 = vpack.c.bf16 %v2287_v24, %v2287_v24  ;;  %v2496_v45 = vsel %vm410_vm0, %v2287_v24, 0.0  ;;  %v2549_v41 = vmul.f32 %v2287_v24, %v2287_v24  ;;  %v1683_v15 = vadd.f32 %v1600_v50, %v1439_v48 }
  0xf4   : > { %v2497_v30 = vadd.f32 %v2496_v45, %v2495_v25  ;;  %v752_v60 = vrot.slane %v636_v3, 1  ;;  %v997_v7 = vrot.slane %v881_v57, 2  ;;  %v1164_v13 = vmul.f32 %v3880_v26, %v3096_v4 }
  0xf5   : > { %2448 = vst.msk [vmem:[%s3185_s10 + $0x44] sm:$0xf] %vm2430_vm5, %v2788_v9  ;;  %v2597_v19 = vsel %vm410_vm0, %v2549_v41, 0.0  ;;  %v1800_v53 = vadd.f32 %v1768_v16, %v1683_v15  ;;  %v1357_v43 = vrot.slane %v1242_v8, 1  ;;  %v1486_v52 = vmul.f32 %v3104_v6, %v1122_v12 }
  0xf6   : > { %v2598_v51 = vadd.f32 %v2597_v19, %v2596_v37  ;;  %v2205_v31 = vsel %vm948_vm4, %v2203_v22, %v2204_v11  ;;  %v753_v25 = vsel %vm703_vm3, %v750_v59, %v752_v60  ;;  %v998_v36 = vsel %vm948_vm4, %v995_v0, %v997_v7 }
  0xf7   : > { %v2044_v20 = vadd.f32 %v1961_v54, %v1800_v53  ;;  %v835_v21 = vadd.f32 %v753_v25, %v558_v39  ;;  %v1601_v49 = vrot.slane %v1486_v52, 2  ;;  %v1769_v62 = vmul.f32 %v3108_v38, %v3964_v1 }
  0xf8   : > { %v1847_v63 = vmul.f32 %v3134_v55, %v1727_v28  ;;  %v2091_v2 = vmul.f32 %v3639_v14, %v1727_v28  ;;  %v2865_v27 = vunpack.c.l.bf16 %v2881_v42  ;;  %v2866_v37 = vunpack.c.h.bf16 %v2881_v42 }
  0xf9   : > { %v2288_v47 = vadd.f32 %v2205_v31, %v2044_v20  ;;  %v1080_v17 = vadd.f32 %v998_v36, %v835_v21  ;;  %v1358_v61 = vsel %vm703_vm3, %v1355_v29, %v1357_v43  ;;  %v1602_v59 = vsel %vm948_vm4, %v1599_v58, %v1601_v49  ;;  %v4049_v20 = vld [vmem:[#allocation2 + $0x120] sm:$0xff]  ;;  %v4051_v21 = vld [vmem:[#allocation2 + $0x128] sm:$0xff] }
  0xfa   : > { %v1962_v0 = vrot.slane %v1847_v63, 1  ;;  %v337_v10 = vmul.f32 %v3546_v23, %v2865_v27  ;;  %v338_v18 = vmul.f32 %v3546_v23, %v2866_v37  ;;  %v559_v56 = vmul.f32 %v3878_v32, %v3076_v33 }
  0xfb   : > { %v2789_v12 = vpack.c.bf16 %v2288_v47, %v2288_v47  ;;  %v2498_v50 = vsel %vm410_vm0, %v2288_v47, 0.0  ;;  %v2550_v16 = vmul.f32 %v2288_v47, %v2288_v47  ;;  %v1196_v22 = vadd.f32 %v1164_v13, %v1080_v17 }
  0xfc   : > { %v2499_v24 = vadd.f32 %v2498_v50, %v2497_v30  ;;  %v1963_v48 = vsel %vm703_vm3, %v1960_v46, %v1962_v0  ;;  %v2206_v39 = vrot.slane %v2091_v2, 2  ;;  %v376_v29 = vadd.f32 %v3557_v44, %v337_v10 }
  0xfd   : > { %2449 = vst.msk [vmem:[%s3185_s10 + $0x48] sm:$0xf] %vm2430_vm5, %v2789_v12  ;;  %v2599_v58 = vsel %vm410_vm0, %v2550_v16, 0.0  ;;  %v1440_v3 = vadd.f32 %v1358_v61, %v1196_v22  ;;  %v377_v23 = vadd.f32 %v3557_v44, %v338_v18  ;;  %v637_v54 = vmul.f32 %v3878_v32, %v3080_v34  ;;  %v519_v18 = vld [vmem:[#allocation2 + $0x100] sm:$0x3] }
  0xfe   : > { %v2600_v57 = vadd.f32 %v2599_v58, %v2598_v51  ;;  %v408_v8 = vmax.f32 %v376_v29, 0.0  ;;  %v4021_v9 = vmul.f32 %v3880_v26, %v3080_v34  ;;  %v882_v46 = vmul.f32 %v3878_v32, %v3084_v35  ;;  %v1125_v58 = vld [vmem:[#allocation2 + $0x118] sm:$0x3] }
  0xff   : > { %v1684_v45 = vadd.f32 %v1602_v59, %v1440_v3  ;;  %v409_v41 = vmax.f32 %v377_v23, 0.0  ;;  %v754_v15 = vrot.slane %v637_v54, 1  ;;  %v4027_v30 = vmul.f32 %v3880_v26, %v3084_v35 }
 0x100   : > { %v2207_v44 = vsel %vm948_vm4, %v2204_v11, %v2206_v39  ;;  %483 = vst.msk [vmem:[#allocation2 + $0x181] sm:$0xff] %vm410_vm0, %v408_v8  ;;  %v755_v60 = vrot.slane %v4021_v9, 1  ;;  %v999_v7 = vrot.slane %v882_v46, 2  ;;  %v1243_v13 = vmul.f32 %v3962_v40, %v3100_v5  ;;  %v1730_v9 = vld [vmem:[#allocation2 + $0x130] sm:$0x3] }
 0x101   : > { %v1801_v19 = vadd.f32 %v1769_v62, %v1684_v45  ;;  %484 = vst.msk [vmem:[#allocation2 + $0x189] sm:$0xff] %vm410_vm0, %v409_v41  ;;  %v1000_v32 = vrot.slane %v4027_v30, 2  ;;  %v4038_v53 = vmul.f32 %v3964_v1, %v3100_v5  ;;  %v1487_v11 = vmul.f32 %v3962_v40, %v3104_v6 }
 0x102   : > { %v756_v43 = vsel %vm703_vm3, %v754_v15, %v755_v60  ;;  %v1165_v52 = vmul.f32 %v3962_v40, %v3096_v4  ;;  %v1359_v28 = vrot.slane %v1243_v13, 1  ;;  %v1488_v42 = vmul.f32 %v3964_v1, %v3104_v6 }
 0x103   : > { %v2045_v51 = vadd.f32 %v1963_v48, %v1801_v19  ;;  %v836_v31 = vadd.f32 %v756_v43, %v559_v56  ;;  %v1001_v25 = vsel %vm948_vm4, %v999_v7, %v1000_v32  ;;  %v1360_v36 = vrot.slane %v4038_v53, 1 }
 0x104   : > { %v1603_v49 = vrot.slane %v1487_v11, 2  ;;  %v1604_v62 = vrot.slane %v1488_v42, 2  ;;  %v1848_v63 = vmul.f32 %v3134_v55, %v4049_v20  ;;  %v1849_v2 = vmul.f32 %v3134_v55, %v4051_v21 }
 0x105   : > { %v2289_v27 = vadd.f32 %v2207_v44, %v2045_v51  ;;  %v1081_v37 = vadd.f32 %v1001_v25, %v836_v31  ;;  %v1770_v47 = vmul.f32 %v3108_v38, %v4049_v20  ;;  %v2092_v17 = vmul.f32 %v3639_v14, %v4049_v20 }
 0x106   : > { %v1361_v61 = vsel %vm703_vm3, %v1359_v28, %v1360_v36  ;;  %v1964_v59 = vrot.slane %v1848_v63, 1  ;;  %v1965_v0 = vrot.slane %v1849_v2, 1  ;;  %v4064_v10 = vmul.f32 %v3639_v14, %v4051_v21 }
 0x107   : > { %v2790_v56 = vpack.c.bf16 %v2289_v27, %v2289_v27  ;;  %v2500_v12 = vsel %vm410_vm0, %v2289_v27, 0.0  ;;  %v2551_v50 = vmul.f32 %v2289_v27, %v2289_v27  ;;  %v1197_v16 = vadd.f32 %v1165_v52, %v1081_v37 }
 0x108   : > { %v2501_v22 = vadd.f32 %v2500_v12, %v2499_v24  ;;  %v1605_v48 = vsel %vm948_vm4, %v1603_v49, %v1604_v62  ;;  %v2208_v39 = vrot.slane %v2092_v17, 2  ;;  %v2209_v29 = vrot.slane %v4064_v10, 2 }
 0x109   : > { %2450 = vst.msk [vmem:[%s3185_s10 + $0x4c] sm:$0xf] %vm2430_vm5, %v2790_v56  ;;  %v2601_v3 = vsel %vm410_vm0, %v2551_v50, 0.0  ;;  %v1441_v23 = vadd.f32 %v1361_v61, %v1197_v16  ;;  %v1966_v54 = vsel %vm703_vm3, %v1964_v59, %v1965_v0  ;;  %v639_v8 = vmul.f32 %v3080_v34, %v519_v18 }
 0x10a   : > { %v2602_v46 = vadd.f32 %v2601_v3, %v2600_v57  ;;  %v2210_v45 = vsel %vm948_vm4, %v2208_v39, %v2209_v29  ;;  %v560_v24 = vmul.f32 %v3880_v26, %v3076_v33  ;;  %v884_v41 = vmul.f32 %v3084_v35, %v519_v18 }
 0x10b   : > { %v1685_v15 = vadd.f32 %v1605_v48, %v1441_v23  ;;  %v757_v30 = vrot.slane %v639_v8, 1  ;;  %v1245_v44 = vmul.f32 %v3100_v5, %v1125_v58  ;;  %v1489_v7 = vmul.f32 %v3104_v6, %v1125_v58 }
 0x10c   : > { %v1002_v13 = vrot.slane %v884_v41, 2  ;;  %v1166_v19 = vmul.f32 %v3964_v1, %v3096_v4  ;;  %v1850_v53 = vmul.f32 %v3134_v55, %v1730_v9  ;;  %v2094_v57 = vmul.f32 %v3639_v14, %v1730_v9 }
 0x10d   : > { %v1802_v11 = vadd.f32 %v1770_v47, %v1685_v15  ;;  %v758_v43 = vsel %vm703_vm3, %v755_v60, %v757_v30  ;;  %v1362_v26 = vrot.slane %v1245_v44, 1  ;;  %v1606_v52 = vrot.slane %v1489_v7, 2  ;;  %v4128_v30 = vld [vmem:[#allocation2 + $0x138] sm:$0xff]  ;;  %v4130_v44 = vld [vmem:[#allocation2 + $0x140] sm:$0xff] }
 0x10e   : > { %v837_v28 = vadd.f32 %v758_v43, %v560_v24  ;;  %v1003_v42 = vsel %vm948_vm4, %v1000_v32, %v1002_v13  ;;  %v1771_v51 = vmul.f32 %v3108_v38, %v4051_v21  ;;  %v1967_v31 = vrot.slane %v1850_v53, 1 }
 0x10f   : > { %v2046_v25 = vadd.f32 %v1966_v54, %v1802_v11  ;;  %v1363_v49 = vsel %vm703_vm3, %v1360_v36, %v1362_v26  ;;  %v1607_v63 = vsel %vm948_vm4, %v1604_v62, %v1606_v52  ;;  %v2211_v2 = vrot.slane %v2094_v57, 2  ;;  %v4143_v11 = vld [vmem:[%s4565_s3 + $0x8] ss:$0 sm:$0xff]  ;;  %v522_v26 = vld [vmem:[#allocation2 + $0x118] sm:$0x3] }
 0x110   : > { %v1082_v27 = vadd.f32 %v1003_v42, %v837_v28  ;;  %v1968_v14 = vsel %vm703_vm3, %v1965_v0, %v1967_v31  ;;  %v561_v60 = vmul.f32 %v3962_v40, %v3076_v33  ;;  %v640_v37 = vmul.f32 %v3962_v40, %v3080_v34  ;;  %v1128_v31 = vld [vmem:[#allocation2 + $0x130] sm:$0x3] }
 0x111   : > { %v2290_v32 = vadd.f32 %v2210_v45, %v2046_v25  ;;  %v4097_v47 = vmul.f32 %v3964_v1, %v3080_v34  ;;  %v885_v36 = vmul.f32 %v3962_v40, %v3084_v35  ;;  %v4103_v62 = vmul.f32 %v3964_v1, %v3084_v35 }
 0x112   : > { %v1198_v17 = vadd.f32 %v1166_v19, %v1082_v27  ;;  %v759_v61 = vrot.slane %v640_v37, 1  ;;  %v1167_v59 = vmul.f32 %v4049_v20, %v3096_v4  ;;  %v1246_v0 = vmul.f32 %v4049_v20, %v3100_v5 }
 0x113   : > { %v2791_v10 = vpack.c.bf16 %v2290_v32, %v2290_v32  ;;  %v2502_v18 = vsel %vm410_vm0, %v2290_v32, 0.0  ;;  %v2552_v56 = vmul.f32 %v2290_v32, %v2290_v32  ;;  %v760_v12 = vrot.slane %v4097_v47, 1 }
 0x114   : > { %v2503_v50 = vadd.f32 %v2502_v18, %v2501_v22  ;;  %v1442_v40 = vadd.f32 %v1363_v49, %v1198_v17  ;;  %v1004_v16 = vrot.slane %v885_v36, 2  ;;  %v1005_v48 = vrot.slane %v4103_v62, 2 }
 0x115   : > { %2451 = vst.msk [vmem:[%s3185_s10 + $0x50] sm:$0xf] %vm2430_vm5, %v2791_v10  ;;  %v2603_v39 = vsel %vm410_vm0, %v2552_v56, 0.0  ;;  %v761_v58 = vsel %vm703_vm3, %v759_v61, %v760_v12  ;;  %v1247_v3 = vmul.f32 %v4051_v21, %v3100_v5  ;;  %v1364_v23 = vrot.slane %v1246_v0, 1 }
 0x116   : > { %v2604_v54 = vadd.f32 %v2603_v39, %v2602_v46  ;;  %v1686_v8 = vadd.f32 %v1607_v63, %v1442_v40  ;;  %v838_v9 = vadd.f32 %v761_v58, %v561_v60  ;;  %v1006_v22 = vsel %vm948_vm4, %v1004_v16, %v1005_v48 }
 0x117   : > { %v2212_v45 = vsel %vm948_vm4, %v2209_v29, %v2211_v2  ;;  %v1365_v24 = vrot.slane %v1247_v3, 1  ;;  %v1490_v41 = vmul.f32 %v4049_v20, %v3104_v6  ;;  %v4126_v15 = vmul.f32 %v4051_v21, %v3104_v6 }
 0x118   : > { %v1803_v7 = vadd.f32 %v1771_v51, %v1686_v8  ;;  %v1083_v46 = vadd.f32 %v1006_v22, %v838_v9  ;;  %v1851_v13 = vmul.f32 %v3134_v55, %v4128_v30  ;;  %v4136_v29 = vmul.f32 %v3134_v55, %v4130_v44 }
 0x119   : > { %v1366_v19 = vsel %vm703_vm3, %v1364_v23, %v1365_v24  ;;  %v1608_v53 = vrot.slane %v1490_v41, 2  ;;  %v1609_v57 = vrot.slane %v4126_v15, 2  ;;  %v2095_v43 = vmul.f32 %v4143_v11, %v4128_v30  ;;  %v1733_v23 = vld [vmem:[#allocation2 + $0x148] sm:$0x3] }
 0x11a   : > { %v2047_v52 = vadd.f32 %v1968_v14, %v1803_v7  ;;  %v1199_v28 = vadd.f32 %v1167_v59, %v1083_v46  ;;  %v1969_v42 = vrot.slane %v1851_v13, 1  ;;  %v1970_v51 = vrot.slane %v4136_v29, 1 }
 0x11b   : > { %v1610_v25 = vsel %vm948_vm4, %v1608_v53, %v1609_v57  ;;  %v1772_v49 = vmul.f32 %v3108_v38, %v4128_v30  ;;  %v2096_v63 = vmul.f32 %v4143_v11, %v4130_v44  ;;  %v2213_v2 = vrot.slane %v2095_v43, 2 }
 0x11c   : > { %v2291_v27 = vadd.f32 %v2212_v45, %v2047_v52  ;;  %v1443_v60 = vadd.f32 %v1366_v19, %v1199_v28  ;;  %v562_v14 = vmul.f32 %v3964_v1, %v3076_v33  ;;  %v642_v37 = vmul.f32 %v3080_v34, %v522_v26 }
 0x11d   : > { %v1971_v32 = vsel %vm703_vm3, %v1969_v42, %v1970_v51  ;;  %v2214_v36 = vrot.slane %v2096_v63, 2  ;;  %v887_v62 = vmul.f32 %v3084_v35, %v522_v26  ;;  %v1248_v17 = vmul.f32 %v3100_v5, %v1128_v31 }
 0x11e   : > { %v2792_v61 = vpack.c.bf16 %v2291_v27, %v2291_v27  ;;  %v2504_v59 = vsel %vm410_vm0, %v2291_v27, 0.0  ;;  %v2553_v0 = vmul.f32 %v2291_v27, %v2291_v27  ;;  %v1687_v10 = vadd.f32 %v1610_v25, %v1443_v60 }
 0x11f   : > { %v2505_v18 = vadd.f32 %v2504_v59, %v2503_v50  ;;  %v762_v56 = vrot.slane %v642_v37, 1  ;;  %v1007_v40 = vrot.slane %v887_v62, 2  ;;  %v1168_v1 = vmul.f32 %v4051_v21, %v3096_v4 }
 0x120   : > { %2452 = vst.msk [vmem:[%s3185_s10 + $0x54] sm:$0xf] %vm2430_vm5, %v2792_v61  ;;  %v2605_v16 = vsel %vm410_vm0, %v2553_v0, 0.0  ;;  %v1804_v39 = vadd.f32 %v1772_v49, %v1687_v10  ;;  %v1367_v58 = vrot.slane %v1248_v17, 1  ;;  %v1492_v3 = vmul.f32 %v3104_v6, %v1128_v31 }
 0x121   : > { %v2606_v8 = vadd.f32 %v2605_v16, %v2604_v54  ;;  %v2215_v9 = vsel %vm948_vm4, %v2213_v2, %v2214_v36  ;;  %v763_v50 = vsel %vm703_vm3, %v760_v12, %v762_v56  ;;  %v1008_v22 = vsel %vm948_vm4, %v1005_v48, %v1007_v40  ;;  %v4209_v56 = vld [vmem:[#allocation2 + $0x150] sm:$0xff] }
 0x122   : > { %v2048_v45 = vadd.f32 %v1971_v32, %v1804_v39  ;;  %v839_v41 = vadd.f32 %v763_v50, %v562_v14  ;;  %v1368_v15 = vsel %vm703_vm3, %v1365_v24, %v1367_v58  ;;  %v1773_v7 = vmul.f32 %v3108_v38, %v4130_v44  ;;  %v4212_v39 = vld [vmem:[#allocation2 + $0x158] sm:$0xff]  ;;  %v525_v50 = vld [vmem:[#allocation2 + $0x130] sm:$0x3] }
 0x123   : > { %v1611_v46 = vrot.slane %v1492_v3, 2  ;;  %v1853_v13 = vmul.f32 %v3134_v55, %v1733_v23  ;;  %v2097_v54 = vmul.f32 %v4143_v11, %v1733_v23  ;;  %v643_v29 = vmul.f32 %v4049_v20, %v3080_v34 }
 0x124   : > { %v2292_v47 = vadd.f32 %v2215_v9, %v2048_v45  ;;  %v1084_v12 = vadd.f32 %v1008_v22, %v839_v41  ;;  %v563_v48 = vmul.f32 %v4049_v20, %v3076_v33  ;;  %v4182_v24 = vmul.f32 %v4051_v21, %v3080_v34 }
 0x125   : > { %v1972_v19 = vrot.slane %v1853_v13, 1  ;;  %v2216_v53 = vrot.slane %v2097_v54, 2  ;;  %v764_v43 = vrot.slane %v643_v29, 1  ;;  %v888_v26 = vmul.f32 %v4049_v20, %v3084_v35 }
 0x126   : > { %v2793_v52 = vpack.c.bf16 %v2292_v47, %v2292_v47  ;;  %v2506_v28 = vsel %vm410_vm0, %v2292_v47, 0.0  ;;  %v2554_v42 = vmul.f32 %v2292_v47, %v2292_v47  ;;  %v1200_v31 = vadd.f32 %v1168_v1, %v1084_v12 }
 0x127   : > { %v2507_v25 = vadd.f32 %v2506_v28, %v2505_v18  ;;  %v1612_v49 = vsel %vm948_vm4, %v1609_v57, %v1611_v46  ;;  %v1973_v63 = vsel %vm703_vm3, %v1970_v51, %v1972_v19  ;;  %v765_v2 = vrot.slane %v4182_v24, 1 }
 0x128   : > { %2453 = vst.msk [vmem:[%s3185_s10 + $0x58] sm:$0xf] %vm2430_vm5, %v2793_v52  ;;  %v2607_v27 = vsel %vm410_vm0, %v2554_v42, 0.0  ;;  %v1444_v60 = vadd.f32 %v1368_v15, %v1200_v31  ;;  %v889_v20 = vmul.f32 %v4051_v21, %v3084_v35  ;;  %v1009_v14 = vrot.slane %v888_v26, 2  ;;  %v1131_v26 = vld [vmem:[#allocation2 + $0x148] sm:$0x3] }
 0x129   : > { %v2608_v37 = vadd.f32 %v2607_v27, %v2606_v8  ;;  %v2217_v32 = vsel %vm948_vm4, %v2214_v36, %v2216_v53  ;;  %v766_v62 = vsel %vm703_vm3, %v764_v43, %v765_v2  ;;  %v1249_v57 = vmul.f32 %v4128_v30, %v3100_v5 }
 0x12a   : > { %v1688_v51 = vadd.f32 %v1612_v49, %v1444_v60  ;;  %v840_v17 = vadd.f32 %v766_v62, %v563_v48  ;;  %v1010_v61 = vrot.slane %v889_v20, 2  ;;  %v1250_v59 = vmul.f32 %v4130_v44, %v3100_v5  ;;  %v1736_v20 = vld [vmem:[#allocation2 + $0x160] sm:$0x3] }
 0x12b   : > { %v1169_v0 = vmul.f32 %v4128_v30, %v3096_v4  ;;  %v1369_v10 = vrot.slane %v1249_v57, 1  ;;  %v1493_v18 = vmul.f32 %v4128_v30, %v3104_v6  ;;  %v4207_v36 = vmul.f32 %v4130_v44, %v3104_v6 }
 0x12c   : > { %v1805_v40 = vadd.f32 %v1773_v7, %v1688_v51  ;;  %v1011_v1 = vsel %vm948_vm4, %v1009_v14, %v1010_v61  ;;  %v1370_v16 = vrot.slane %v1250_v59, 1  ;;  %v1854_v58 = vmul.f32 %v3134_v55, %v4209_v56 }
 0x12d   : > { %v1085_v3 = vadd.f32 %v1011_v1, %v840_v17  ;;  %v1613_v23 = vrot.slane %v1493_v18, 2  ;;  %v1614_v8 = vrot.slane %v4207_v36, 2  ;;  %v4219_v9 = vmul.f32 %v3134_v55, %v4212_v39 }
 0x12e   : > { %v2049_v22 = vadd.f32 %v1973_v63, %v1805_v40  ;;  %v1371_v45 = vsel %vm703_vm3, %v1369_v10, %v1370_v16  ;;  %v1774_v41 = vmul.f32 %v3108_v38, %v4209_v56  ;;  %v2098_v15 = vmul.f32 %v4143_v11, %v4209_v56 }
 0x12f   : > { %v1201_v7 = vadd.f32 %v1169_v0, %v1085_v3  ;;  %v1974_v46 = vrot.slane %v1854_v58, 1  ;;  %v1975_v13 = vrot.slane %v4219_v9, 1  ;;  %v4229_v54 = vmul.f32 %v4143_v11, %v4212_v39 }
 0x130   : > { %v2293_v29 = vadd.f32 %v2217_v32, %v2049_v22  ;;  %v1615_v47 = vsel %vm948_vm4, %v1613_v23, %v1614_v8  ;;  %v2218_v12 = vrot.slane %v2098_v15, 2  ;;  %v645_v48 = vmul.f32 %v3080_v34, %v525_v50 }
 0x131   : > { %v1445_v24 = vadd.f32 %v1371_v45, %v1201_v7  ;;  %v2219_v19 = vrot.slane %v4229_v54, 2  ;;  %v564_v53 = vmul.f32 %v4051_v21, %v3076_v33  ;;  %v890_v43 = vmul.f32 %v3084_v35, %v525_v50 }
 0x132   : > { %v2794_v52 = vpack.c.bf16 %v2293_v29, %v2293_v29  ;;  %v2508_v28 = vsel %vm410_vm0, %v2293_v29, 0.0  ;;  %v2555_v42 = vmul.f32 %v2293_v29, %v2293_v29  ;;  %v767_v31 = vrot.slane %v645_v48, 1 }
 0x133   : > { %v4238_v49 = vadd.f32 %v2508_v28, %v2507_v25  ;;  %v1689_v63 = vadd.f32 %v1615_v47, %v1445_v24  ;;  %v1976_v27 = vsel %vm703_vm3, %v1974_v46, %v1975_v13  ;;  %v1012_v60 = vrot.slane %v890_v43, 2 }
 0x134   : > { %2454 = vst.msk [vmem:[%s3185_s10 + $0x5c] sm:$0xf] %vm2430_vm5, %v2794_v52  ;;  %v2609_v14 = vsel %vm410_vm0, %v2555_v42, 0.0  ;;  %v768_v21 = vsel %vm703_vm3, %v765_v2, %v767_v31  ;;  %v1170_v32 = vmul.f32 %v4130_v44, %v3096_v4  ;;  %v1251_v62 = vmul.f32 %v3100_v5, %v1131_v26  ;;  %v4288_v42 = vld [vmem:[#allocation2 + $0x168] sm:$0xff] }
 0x135   : > { %v4248_v57 = vadd.f32 %v2609_v14, %v2608_v37  ;;  %v1806_v25 = vadd.f32 %v1774_v41, %v1689_v63  ;;  %v841_v51 = vadd.f32 %v768_v21, %v564_v53  ;;  %v1013_v17 = vsel %vm948_vm4, %v1010_v61, %v1012_v60 }
 0x136   : > { %v2220_v59 = vsel %vm948_vm4, %v2218_v12, %v2219_v19  ;;  %v1372_v0 = vrot.slane %v1251_v62, 1  ;;  %v1495_v10 = vmul.f32 %v3104_v6, %v1131_v26  ;;  %v1856_v18 = vmul.f32 %v3134_v55, %v1736_v20 }
 0x137   : > { %v2050_v36 = vadd.f32 %v1976_v27, %v1806_v25  ;;  %v1086_v2 = vadd.f32 %v1013_v17, %v841_v51  ;;  %v2100_v58 = vmul.f32 %v4143_v11, %v1736_v20  ;;  %v646_v37 = vmul.f32 %v4128_v30, %v3080_v34 }
 0x138   : > { %v1373_v40 = vsel %vm703_vm3, %v1370_v16, %v1372_v0  ;;  %v1616_v1 = vrot.slane %v1495_v10, 2  ;;  %v1977_v23 = vrot.slane %v1856_v18, 1  ;;  %v4262_v9 = vmul.f32 %v4130_v44, %v3080_v34 }
 0x139   : > { %v4258_v3 = vadd.f32 %v2220_v59, %v2050_v36  ;;  %v1202_v61 = vadd.f32 %v1170_v32, %v1086_v2  ;;  %v769_v22 = vrot.slane %v646_v37, 1  ;;  %v891_v16 = vmul.f32 %v4128_v30, %v3084_v35 }
 0x13a   : > { %v1617_v50 = vsel %vm948_vm4, %v1614_v8, %v1616_v1  ;;  %v1775_v15 = vmul.f32 %v3108_v38, %v4212_v39  ;;  %v565_v7 = vmul.f32 %v4128_v30, %v3076_v33  ;;  %v2221_v46 = vrot.slane %v2100_v58, 2 }
 0x13b   : > { %v2795_v45 = vpack.c.bf16 %v4258_v3, %v4258_v3  ;;  %v1446_v41 = vadd.f32 %v1373_v40, %v1202_v61  ;;  %v770_v54 = vrot.slane %v4262_v9, 1  ;;  %v892_v8 = vmul.f32 %v4130_v44, %v3084_v35  ;;  %v528_v40 = vld [vmem:[#allocation2 + $0x148] sm:$0x3]  ;;  %v1134_v61 = vld [vmem:[#allocation2 + $0x160] sm:$0x3] }
 0x13c   : > { %v1978_v47 = vsel %vm703_vm3, %v1975_v13, %v1977_v23  ;;  %v1014_v12 = vrot.slane %v891_v16, 2  ;;  %v1171_v53 = vmul.f32 %v4209_v56, %v3096_v4  ;;  %v1252_v30 = vmul.f32 %v4209_v56, %v3100_v5  ;;  %v4290_v13 = vld [vmem:[#allocation2 + $0x170] sm:$0xff] }
 0x13d   : > { %2455 = vst.msk [vmem:[%s3185_s10 + $0x60] sm:$0xf] %vm2430_vm5, %v2795_v45  ;;  %v1690_v29 = vadd.f32 %v1617_v50, %v1446_v41  ;;  %v771_v48 = vsel %vm703_vm3, %v769_v22, %v770_v54  ;;  %v1015_v24 = vrot.slane %v892_v8, 2  ;;  %v1253_v52 = vmul.f32 %v4212_v39, %v3100_v5  ;;  %v1739_v45 = vld [vmem:[#allocation2 + $0x178] sm:$0x3] }
 0x13e   : > { %v842_v26 = vadd.f32 %v771_v48, %v565_v7  ;;  %v1496_v28 = vmul.f32 %v4209_v56, %v3104_v6  ;;  %v2222_v31 = vsel %vm948_vm4, %v2219_v19, %v2221_v46  ;;  %v1374_v27 = vrot.slane %v1252_v30, 1 }
 0x13f   : > { %v1807_v43 = vadd.f32 %v1775_v15, %v1690_v29  ;;  %v1016_v63 = vsel %vm948_vm4, %v1014_v12, %v1015_v24  ;;  %v1497_v60 = vmul.f32 %v4212_v39, %v3104_v6  ;;  %v1375_v21 = vrot.slane %v1253_v52, 1 }
 0x140   : > { %v1087_v14 = vadd.f32 %v1016_v63, %v842_v26  ;;  %v1618_v32 = vrot.slane %v1496_v28, 2  ;;  %v1857_v25 = vmul.f32 %v3134_v55, %v4288_v42  ;;  %v1858_v51 = vmul.f32 %v3134_v55, %v4290_v13 }
 0x141   : > { %v2051_v20 = vadd.f32 %v1978_v47, %v1807_v43  ;;  %v1619_v62 = vrot.slane %v1497_v60, 2  ;;  %v2101_v19 = vmul.f32 %v4143_v11, %v4288_v42  ;;  %v1376_v0 = vsel %vm703_vm3, %v1374_v27, %v1375_v21 }
 0x142   : > { %v1203_v59 = vadd.f32 %v1171_v53, %v1087_v14  ;;  %v4307_v10 = vmul.f32 %v4143_v11, %v4290_v13  ;;  %v1979_v36 = vrot.slane %v1857_v25, 1  ;;  %v1980_v2 = vrot.slane %v1858_v51, 1 }
 0x143   : > { %v4302_v17 = vadd.f32 %v2222_v31, %v2051_v20  ;;  %v1620_v18 = vsel %vm948_vm4, %v1618_v32, %v1619_v62  ;;  %v1776_v37 = vmul.f32 %v3108_v38, %v4288_v42  ;;  %v2223_v23 = vrot.slane %v2101_v19, 2 }
 0x144   : > { %v1447_v58 = vadd.f32 %v1376_v0, %v1203_v59  ;;  %v2224_v9 = vrot.slane %v4307_v10, 2  ;;  %v648_v22 = vmul.f32 %v3080_v34, %v528_v40  ;;  %v893_v16 = vmul.f32 %v3084_v35, %v528_v40 }
 0x145   : > { %v2796_v1 = vpack.c.bf16 %v4302_v17, %v4302_v17  ;;  %v1981_v41 = vsel %vm703_vm3, %v1979_v36, %v1980_v2  ;;  %v566_v15 = vmul.f32 %v4130_v44, %v3076_v33  ;;  %v1254_v7 = vmul.f32 %v3100_v5, %v1134_v61 }
 0x146   : > { %v1691_v50 = vadd.f32 %v1620_v18, %v1447_v58  ;;  %v772_v8 = vrot.slane %v648_v22, 1  ;;  %v1017_v29 = vrot.slane %v893_v16, 2  ;;  %v1498_v47 = vmul.f32 %v3104_v6, %v1134_v61 }
 0x147   : > { %2456 = vst.msk [vmem:[%s3185_s10 + $0x64] sm:$0xf] %vm2430_vm5, %v2796_v1  ;;  %v2225_v12 = vsel %vm948_vm4, %v2223_v23, %v2224_v9  ;;  %v1859_v48 = vmul.f32 %v3134_v55, %v1739_v45  ;;  %v1377_v26 = vrot.slane %v1254_v7, 1  ;;  %v1172_v52 = vmul.f32 %v4212_v39, %v3096_v4  ;;  %v4362_v23 = vld [vmem:[#allocation2 + $0x180] sm:$0xff] }
 0x148   : > { %v1808_v46 = vadd.f32 %v1776_v37, %v1691_v50  ;;  %v773_v30 = vsel %vm703_vm3, %v770_v54, %v772_v8  ;;  %v1018_v43 = vsel %vm948_vm4, %v1015_v24, %v1017_v29  ;;  %v1621_v31 = vrot.slane %v1498_v47, 2 }
 0x149   : > { %v843_v44 = vadd.f32 %v773_v30, %v566_v15  ;;  %v2103_v63 = vmul.f32 %v4143_v11, %v1739_v45  ;;  %v649_v27 = vmul.f32 %v4209_v56, %v3080_v34  ;;  %v1982_v20 = vrot.slane %v1859_v48, 1  ;;  %v531_v30 = vld [vmem:[#allocation2 + $0x160] sm:$0x3] }
 0x14a   : > { %v2052_v53 = vadd.f32 %v1981_v41, %v1808_v46  ;;  %v4339_v54 = vmul.f32 %v4212_v39, %v3080_v34  ;;  %v1378_v14 = vsel %vm703_vm3, %v1375_v21, %v1377_v26  ;;  %v567_v32 = vmul.f32 %v4209_v56, %v3076_v33 }
 0x14b   : > { %v1088_v60 = vadd.f32 %v1018_v43, %v843_v44  ;;  %v774_v25 = vrot.slane %v649_v27, 1  ;;  %v1777_v19 = vmul.f32 %v3108_v38, %v4290_v13  ;;  %v894_v0 = vmul.f32 %v4209_v56, %v3084_v35  ;;  %v4364_v56 = vld [vmem:[#allocation2 + $0x188] sm:$0xff] }
 0x14c   : > { %v4332_v28 = vadd.f32 %v2225_v12, %v2052_v53  ;;  %v775_v59 = vrot.slane %v4339_v54, 1  ;;  %v1622_v18 = vsel %vm948_vm4, %v1619_v62, %v1621_v31  ;;  %v2226_v36 = vrot.slane %v2103_v63, 2 }
 0x14d   : > { %v1204_v51 = vadd.f32 %v1172_v52, %v1088_v60  ;;  %v4356_v21 = vmul.f32 %v4212_v39, %v3084_v35  ;;  %v1255_v40 = vmul.f32 %v4288_v42, %v3100_v5  ;;  %v1983_v58 = vsel %vm703_vm3, %v1980_v2, %v1982_v20  ;;  %v1137_v20 = vld [vmem:[#allocation2 + $0x178] sm:$0x3] }
 0x14e   : > { %v2797_v24 = vpack.c.bf16 %v4332_v28, %v4332_v28  ;;  %v776_v37 = vsel %vm703_vm3, %v774_v25, %v775_v59  ;;  %v1019_v61 = vrot.slane %v894_v0, 2  ;;  %v1256_v22 = vmul.f32 %v4290_v13, %v3100_v5 }
 0x14f   : > { %v1448_v1 = vadd.f32 %v1378_v14, %v1204_v51  ;;  %v844_v50 = vadd.f32 %v776_v37, %v567_v32  ;;  %v1020_v62 = vrot.slane %v4356_v21, 2  ;;  %v1379_v16 = vrot.slane %v1255_v40, 1 }
 0x150   : > { %2457 = vst.msk [vmem:[%s3185_s10 + $0x68] sm:$0xf] %vm2430_vm5, %v2797_v24  ;;  %v1173_v41 = vmul.f32 %v4288_v42, %v3096_v4  ;;  %v1499_v2 = vmul.f32 %v4288_v42, %v3104_v6  ;;  %v1500_v15 = vmul.f32 %v4290_v13, %v3104_v6  ;;  %v1380_v46 = vrot.slane %v1256_v22, 1 }
 0x151   : > { %v1692_v45 = vadd.f32 %v1622_v18, %v1448_v1  ;;  %v1021_v7 = vsel %vm948_vm4, %v1019_v61, %v1020_v62  ;;  %v1860_v8 = vmul.f32 %v3134_v55, %v4362_v23  ;;  %v4380_v29 = vmul.f32 %v3134_v55, %v4364_v56 }
 0x152   : > { %v1089_v12 = vadd.f32 %v1021_v7, %v844_v50  ;;  %v1623_v48 = vrot.slane %v1499_v2, 2  ;;  %v1624_v53 = vrot.slane %v1500_v15, 2  ;;  %v2227_v43 = vsel %vm948_vm4, %v2224_v9, %v2226_v36  ;;  %v1742_v50 = vld [vmem:[#allocation2 + $0x190] sm:$0x3] }
 0x153   : > { %v1809_v47 = vadd.f32 %v1777_v19, %v1692_v45  ;;  %v1381_v26 = vsel %vm703_vm3, %v1379_v16, %v1380_v46  ;;  %v1778_v44 = vmul.f32 %v3108_v38, %v4362_v23  ;;  %v2104_v52 = vmul.f32 %v4143_v11, %v4362_v23 }
 0x154   : > { %v1205_v63 = vadd.f32 %v1173_v41, %v1089_v12  ;;  %v1984_v27 = vrot.slane %v1860_v8, 1  ;;  %v4392_v60 = vmul.f32 %v4143_v11, %v4364_v56  ;;  %v1625_v10 = vsel %vm948_vm4, %v1623_v48, %v1624_v53 }
 0x155   : > { %v2053_v31 = vadd.f32 %v1983_v58, %v1809_v47  ;;  %v1985_v9 = vrot.slane %v4380_v29, 1  ;;  %v2228_v54 = vrot.slane %v2104_v52, 2  ;;  %v651_v24 = vmul.f32 %v3080_v34, %v531_v30 }
 0x156   : > { %v1449_v32 = vadd.f32 %v1381_v26, %v1205_v63  ;;  %v568_v25 = vmul.f32 %v4212_v39, %v3076_v33  ;;  %v896_v51 = vmul.f32 %v3084_v35, %v531_v30  ;;  %v2229_v19 = vrot.slane %v4392_v60, 2 }
 0x157   : > { %v4397_v14 = vadd.f32 %v2227_v43, %v2053_v31  ;;  %v777_v0 = vrot.slane %v651_v24, 1  ;;  %v1257_v18 = vmul.f32 %v3100_v5, %v1137_v20  ;;  %v1501_v36 = vmul.f32 %v3104_v6, %v1137_v20 }
 0x158   : > { %v2556_v21 = vmul.f32 %v4258_v3, %v4258_v3  ;;  %v1693_v1 = vadd.f32 %v1625_v10, %v1449_v32  ;;  %v2510_v58 = vsel %vm410_vm0, %v4258_v3, 0.0  ;;  %v1986_v39 = vsel %vm703_vm3, %v1984_v27, %v1985_v9 }
 0x159   : > { %v2798_v40 = vpack.c.bf16 %v4397_v14, %v4397_v14  ;;  %v778_v37 = vsel %vm703_vm3, %v775_v59, %v777_v0  ;;  %v1022_v61 = vrot.slane %v896_v51, 2  ;;  %v1174_v45 = vmul.f32 %v4290_v13, %v3096_v4 }
 0x15a   : > { %v1810_v22 = vadd.f32 %v1778_v44, %v1693_v1  ;;  %v845_v16 = vadd.f32 %v778_v37, %v568_v25  ;;  %v1382_v41 = vrot.slane %v1257_v18, 1  ;;  %v2511_v2 = vadd.f32 %v2510_v58, %v4238_v49 }
 0x15b   : > { %2458 = vst.msk [vmem:[%s3185_s10 + $0x6c] sm:$0xf] %vm2430_vm5, %v2798_v40  ;;  %v2230_v15 = vsel %vm948_vm4, %v2228_v54, %v2229_v19  ;;  %v1023_v3 = vsel %vm948_vm4, %v1020_v62, %v1022_v61  ;;  %v1626_v7 = vrot.slane %v1501_v36, 2  ;;  %v2611_v8 = vsel %vm410_vm0, %v2556_v21, 0.0  ;;  %v1743_v21 = vld [vmem:[#allocation2 + $0x198] sm:$0xff] }
 0x15c   : > { %v2054_v59 = vadd.f32 %v1986_v39, %v1810_v22  ;;  %v1090_v29 = vadd.f32 %v1023_v3, %v845_v16  ;;  %v1862_v47 = vmul.f32 %v3134_v55, %v1742_v50  ;;  %v2612_v12 = vadd.f32 %v2611_v8, %v4248_v57 }
 0x15d   : > { %v1383_v48 = vsel %vm703_vm3, %v1380_v46, %v1382_v41  ;;  %v2106_v30 = vmul.f32 %v4143_v11, %v1742_v50  ;;  %v652_v49 = vmul.f32 %v4288_v42, %v3080_v34  ;;  %v1627_v62 = vsel %vm948_vm4, %v1624_v53, %v1626_v7 }
 0x15e   : > { %v4427_v43 = vadd.f32 %v2230_v15, %v2054_v59  ;;  %v1206_v26 = vadd.f32 %v1174_v45, %v1090_v29  ;;  %v4432_v44 = vmul.f32 %v4290_v13, %v3080_v34  ;;  %v1987_v52 = vrot.slane %v1862_v47, 1 }
 0x15f   : > { %v779_v31 = vrot.slane %v652_v49, 1  ;;  %v897_v57 = vmul.f32 %v4288_v42, %v3084_v35  ;;  %v4438_v46 = vmul.f32 %v4290_v13, %v3084_v35  ;;  %v1779_v53 = vmul.f32 %v3108_v38, %v4364_v56 }
 0x160   : > { %v2799_v63 = vpack.c.bf16 %v4427_v43, %v4427_v43  ;;  %v1450_v27 = vadd.f32 %v1383_v48, %v1206_v26  ;;  %v569_v60 = vmul.f32 %v4288_v42, %v3076_v33  ;;  %v2512_v20 = vsel %vm410_vm0, %v4302_v17, 0.0  ;;  %v534_v26 = vld [vmem:[#allocation2 + $0x178] sm:$0x3] }
 0x161   : > { %v2557_v10 = vmul.f32 %v4302_v17, %v4302_v17  ;;  %v2231_v54 = vrot.slane %v2106_v30, 2  ;;  %v780_v24 = vrot.slane %v4432_v44, 1  ;;  %v2513_v32 = vadd.f32 %v2512_v20, %v2511_v2 }
 0x162   : > { %2459 = vst.msk [vmem:[%s3185_s10 + $0x70] sm:$0xf] %vm2430_vm5, %v2799_v63  ;;  %v1694_v25 = vadd.f32 %v1627_v62, %v1450_v27  ;;  %v1024_v51 = vrot.slane %v897_v57, 2  ;;  %v1025_v0 = vrot.slane %v4438_v46, 2  ;;  %v1988_v18 = vsel %vm703_vm3, %v1985_v9, %v1987_v52  ;;  %v4467_v9 = vld [vmem:[#allocation2 + $0x1a0] sm:$0xff] }
 0x163   : > { %v781_v42 = vsel %vm703_vm3, %v779_v31, %v780_v24  ;;  %v1175_v36 = vmul.f32 %v4362_v23, %v3096_v4  ;;  %v1258_v17 = vmul.f32 %v4362_v23, %v3100_v5  ;;  %v4465_v39 = vmul.f32 %v4364_v56, %v3100_v5  ;;  %v1140_v46 = vld [vmem:[#allocation2 + $0x190] sm:$0x3] }
 0x164   : > { %v1811_v40 = vadd.f32 %v1779_v53, %v1694_v25  ;;  %v846_v1 = vadd.f32 %v781_v42, %v569_v60  ;;  %v1026_v58 = vsel %vm948_vm4, %v1024_v51, %v1025_v0  ;;  %v2232_v37 = vsel %vm948_vm4, %v2229_v19, %v2231_v54 }
 0x165   : > { %v1384_v61 = vrot.slane %v1258_v17, 1  ;;  %v1502_v50 = vmul.f32 %v4362_v23, %v3104_v6  ;;  %v4474_v22 = vmul.f32 %v4364_v56, %v3104_v6  ;;  %v1385_v41 = vrot.slane %v4465_v39, 1 }
 0x166   : > { %v2055_v16 = vadd.f32 %v1988_v18, %v1811_v40  ;;  %v1091_v45 = vadd.f32 %v1026_v58, %v846_v1  ;;  %v1863_v2 = vmul.f32 %v3134_v55, %v1743_v21  ;;  %v4481_v19 = vmul.f32 %v3134_v55, %v4467_v9  ;;  %v1745_v40 = vld [vmem:[#allocation2 + $0x1a8] sm:$0x3] }
 0x167   : > { %v1628_v15 = vrot.slane %v1502_v50, 2  ;;  %v1629_v3 = vrot.slane %v4474_v22, 2  ;;  %v2107_v7 = vmul.f32 %v4143_v11, %v1743_v21  ;;  %v2558_v23 = vmul.f32 %v4332_v28, %v4332_v28 }
 0x168   : > { %v4486_v8 = vadd.f32 %v2232_v37, %v2055_v16  ;;  %v1207_v59 = vadd.f32 %v1175_v36, %v1091_v45  ;;  %v1386_v29 = vsel %vm703_vm3, %v1384_v61, %v1385_v41  ;;  %v1989_v48 = vrot.slane %v1863_v2, 1 }
 0x169   : > { %v1630_v47 = vsel %vm948_vm4, %v1628_v15, %v1629_v3  ;;  %v1990_v30 = vrot.slane %v4481_v19, 1  ;;  %v4493_v49 = vmul.f32 %v4143_v11, %v4467_v9  ;;  %v2613_v62 = vsel %vm410_vm0, %v2557_v10, 0.0 }
 0x16a   : > { %v2800_v52 = vpack.c.bf16 %v4486_v8, %v4486_v8  ;;  %v1451_v31 = vadd.f32 %v1386_v29, %v1207_v59  ;;  %v1780_v57 = vmul.f32 %v3108_v38, %v1743_v21  ;;  %v2614_v63 = vadd.f32 %v2613_v62, %v2612_v12 }
 0x16b   : > { %v2514_v27 = vsel %vm410_vm0, %v4332_v28, 0.0  ;;  %v2233_v53 = vrot.slane %v2107_v7, 2  ;;  %v2234_v60 = vrot.slane %v4493_v49, 2  ;;  %v654_v10 = vmul.f32 %v3080_v34, %v534_v26 }
 0x16c   : > { %v2515_v20 = vadd.f32 %v2514_v27, %v2513_v32  ;;  %2460 = vst.msk [vmem:[%s3185_s10 + $0x74] sm:$0xf] %vm2430_vm5, %v2800_v52  ;;  %v1695_v54 = vadd.f32 %v1630_v47, %v1451_v31  ;;  %v899_v25 = vmul.f32 %v3084_v35, %v534_v26  ;;  %v2615_v51 = vsel %vm410_vm0, %v2558_v23, 0.0 }
 0x16d   : > { %v1991_v12 = vsel %vm703_vm3, %v1989_v48, %v1990_v30  ;;  %v570_v28 = vmul.f32 %v4290_v13, %v3076_v33  ;;  %v1260_v18 = vmul.f32 %v3100_v5, %v1140_v46  ;;  %v782_v32 = vrot.slane %v654_v10, 1 }
 0x16e   : > { %v1812_v42 = vadd.f32 %v1780_v57, %v1695_v54  ;;  %v1027_v36 = vrot.slane %v899_v25, 2  ;;  %v1504_v17 = vmul.f32 %v3104_v6, %v1140_v46  ;;  %v2616_v21 = vadd.f32 %v2615_v51, %v2614_v63 }
 0x16f   : > { %v2559_v34 = vmul.f32 %v4397_v14, %v4397_v14  ;;  %v2235_v35 = vsel %vm948_vm4, %v2233_v53, %v2234_v60  ;;  %v783_v58 = vsel %vm703_vm3, %v780_v24, %v782_v32  ;;  %v1387_v5 = vrot.slane %v1260_v18, 1 }
 0x170   : > { %v2056_v1 = vadd.f32 %v1991_v12, %v1812_v42  ;;  %v1028_v33 = vsel %vm948_vm4, %v1025_v0, %v1027_v36  ;;  %v2516_v13 = vsel %vm410_vm0, %v4397_v14, 0.0  ;;  %v847_v39 = vadd.f32 %v783_v58, %v570_v28 }
 0x171   : > { %v1176_v6 = vmul.f32 %v4364_v56, %v3096_v4  ;;  %v2517_v37 = vadd.f32 %v2516_v13, %v2515_v20  ;;  %v1631_v50 = vrot.slane %v1504_v17, 2  ;;  %v1865_v22 = vmul.f32 %v3134_v55, %v1745_v40 }
 0x172   : > { %v2300_v61 = vadd.f32 %v2235_v35, %v2056_v1  ;;  %v2617_v44 = vsel %vm410_vm0, %v2559_v34, 0.0  ;;  %v2560_v24 = vmul.f32 %v4427_v43, %v4427_v43  ;;  %v1092_v0 = vadd.f32 %v1028_v33, %v847_v39 }
 0x173   : > { %v2618_v16 = vadd.f32 %v2617_v44, %v2616_v21  ;;  %v1388_v14 = vsel %vm703_vm3, %v1385_v41, %v1387_v5  ;;  %v2109_v2 = vmul.f32 %v4143_v11, %v1745_v40  ;;  %v2518_v4 = vsel %vm410_vm0, %v4427_v43, 0.0 }
 0x174   : > { %v2801_v45 = vpack.c.bf16 %v2300_v61, %v2300_v61  ;;  %v1208_v56 = vadd.f32 %v1176_v6, %v1092_v0  ;;  %v2519_v15 = vadd.f32 %v2518_v4, %v2517_v37  ;;  %v1632_v55 = vsel %vm948_vm4, %v1629_v3, %v1631_v50 }
 0x175   : > { %v1992_v7 = vrot.slane %v1865_v22, 1  ;;  %v2619_v23 = vsel %vm410_vm0, %v2560_v24, 0.0  ;;  %v2561_v59 = vmul.f32 %v4486_v8, %v4486_v8  ;;  %v1781_v41 = vmul.f32 %v3108_v38, %v4467_v9 }
 0x176   : > { %2461 = vst.msk [vmem:[%s3185_s10 + $0x78] sm:$0xf] %vm2430_vm5, %v2801_v45  ;;  %v1452_v29 = vadd.f32 %v1388_v14, %v1208_v56  ;;  %v2620_v11 = vadd.f32 %v2619_v23, %v2618_v16  ;;  %v2236_v47 = vrot.slane %v2109_v2, 2  ;;  %v2520_v43 = vsel %vm410_vm0, %v4486_v8, 0.0 }
 0x177   : > { %v2521_v49 = vadd.f32 %v2520_v43, %v2519_v15  ;;  %v1993_v3 = vsel %vm703_vm3, %v1990_v30, %v1992_v7  ;;  %v2621_v26 = vsel %vm410_vm0, %v2561_v59, 0.0  ;;  %v2562_v62 = vmul.f32 %v2300_v61, %v2300_v61 }
 0x178   : > { %v1696_v48 = vadd.f32 %v1632_v55, %v1452_v29  ;;  %v2622_v31 = vadd.f32 %v2621_v26, %v2620_v11  ;;  %v2237_v57 = vsel %vm948_vm4, %v2234_v60, %v2236_v47  ;;  %v2522_v38 = vsel %vm410_vm0, %v2300_v61, 0.0 }
 0x179   : > { %v2523_v46 = vadd.f32 %v2522_v38, %v2521_v49  ;;  %v2623_v8 = vsel %vm410_vm0, %v2562_v62, 0.0 }
 0x17a   : > { %v1813_v52 = vadd.f32 %v1781_v41, %v1696_v48  ;;  %v2624_v27 = vadd.f32 %v2623_v8, %v2622_v31 }
 0x17c   : > { %v2057_v9 = vadd.f32 %v1993_v3, %v1813_v52 }
 0x17e   : > { %v2301_v63 = vadd.f32 %v2237_v57, %v2057_v9 }
 0x180   : > { %v2802_v53 = vpack.c.bf16 %v2301_v63, %v2301_v63  ;;  %v2524_v19 = vsel %vm410_vm0, %v2301_v63, 0.0  ;;  %v2563_v30 = vmul.f32 %v2301_v63, %v2301_v63 }
 0x181   : > { %v2525_v20 = vadd.f32 %v2524_v19, %v2523_v46 }
 0x182   : > { %2462 = vst.msk [vmem:[%s3185_s10 + $0x7c] sm:$0xf] %vm2430_vm5, %v2802_v53  ;;  %v2625_v54 = vsel %vm410_vm0, %v2563_v30, 0.0 }
 0x183   : > { %v2526_v10 = vrot.slane %v2525_v20, 4  ;;  %v2626_v60 = vadd.f32 %v2625_v54, %v2624_v27 }
 0x185   : > { %v2527_v25 = vadd.f32 %v2526_v10, %v2525_v20  ;;  %v2627_v51 = vrot.slane %v2626_v60, 4 }
 0x187   : > { %v2528_v12 = vrot.slane %v2527_v25, 2  ;;  %v2628_v28 = vadd.f32 %v2627_v51, %v2626_v60 }
 0x189   : > { %v2529_v18 = vadd.f32 %v2528_v12, %v2527_v25  ;;  %v2629_v42 = vrot.slane %v2628_v28, 2 }
 0x18b   : > { %v2530_v32 = vrot.slane %v2529_v18, 1  ;;  %v2630_v36 = vadd.f32 %v2629_v42, %v2628_v28 }
 0x18d   : > { %v2631_v17 = vrot.slane %v2630_v36, 1  ;;  %v2531_v21 = vadd.f32 %v2530_v32, %v2529_v18 }
 0x18f   : > { %v2632_v34 = vadd.f32 %v2631_v17, %v2630_v36 }
 0x191   : > { %v2634_v35 = vsel %vm2633_vm6, %v2531_v21, %v2632_v34 }
 0x192   : > { %2635 = vst.msk [vmem:[%s235_s24] sm:$0x3] %vm413_vm1, %v2634_v35 }
 0x193 PF: > { %s16_s18 = sadd.s32 1, %s2901_s18  }
 0x194   : > { %p13_p4 = scmp.ge.s32.totalorder %s16_s18, 4  }
 0x196   :  { %15 = sbr.rel (!%p13_p4) target bundleno = 1 (0x1), region = 81 }

// kernel: block_forward.7
= control target key start
LH: loop header
LB: loop body
LE: loop exit
PB: predicated region body
PF: predicated region fallthrough
CT: control target
= control target key end

     0   :  { %v37_v0 = vlaneseq  ;;  %s242_s0 = inlined_call_operand.vmem [shape: bf16[32,256], index: 0, kind: input, shape index: {}]   ;;  %s243_s1 = inlined_call_operand.vmem [shape: f32[1,256], index: 1, kind: input, shape index: {}]   ;;  %s244_s2 = inlined_call_operand.vmem [shape: f32[1,256], index: 2, kind: input, shape index: {}]   ;;  %s245_s3 = inlined_call_operand.vmem [shape: bf16[32,256], index: 3, kind: input, shape index: {}]   ;;  %s246_s4 = inlined_call_operand.vmem [shape: f32[1,256], index: 4, kind: input, shape index: {}]   ;;  %s247_s5 = inlined_call_operand.vmem [shape: f32[1,256], index: 5, kind: input, shape index: {}]   ;;  %s248_s6 = inlined_call_operand.vmem [shape: f32[32,256], index: 6, kind: output, shape index: {}]  }
   0x1   :  { %v23_v1 = vld [vmem:[%s242_s0] sm:$0xff]  ;;  %v24_v12 = vld [vmem:[%s242_s0 + $0x8] sm:$0xff]  ;;  %v25_v14 = vld [vmem:[%s242_s0 + $0x10] sm:$0xff] }
   0x2   :  { %v35_v2 = vld [vmem:[%s243_s1] sm:$0x3]  ;;  %v38_v4 = vshrl.u32 %v37_v0, 7  ;;  %v27_v8 = vunpack.c.l.bf16 %v23_v1  ;;  %v28_v10 = vunpack.c.h.bf16 %v23_v1  ;;  %v76_v13 = vld [vmem:[%s245_s3 + $0x8] sm:$0xff]  ;;  %v29_v17 = vunpack.c.l.bf16 %v24_v12  ;;  %v77_v19 = vld [vmem:[%s245_s3 + $0x10] sm:$0xff] }
   0x3   :  { %v55_v3 = vld [vmem:[%s244_s2] sm:$0x3]  ;;  %v81_v18 = vunpack.c.l.bf16 %v76_v13  ;;  %v30_v20 = vunpack.c.h.bf16 %v24_v12  ;;  %v82_v21 = vunpack.c.h.bf16 %v76_v13  ;;  %v31_v22 = vunpack.c.l.bf16 %v25_v14  ;;  %v26_v48 = vld [vmem:[%s242_s0 + $0x18] sm:$0xff] }
   0x4   :  { %v75_v5 = vld [vmem:[%s245_s3] sm:$0xff]  ;;  %v39_v15 = vsub.s32 0, %v38_v4  ;;  %v43_v16 = vsub.s32 1, %v38_v4  ;;  %v83_v23 = vunpack.c.l.bf16 %v77_v19  ;;  %v78_v49 = vld [vmem:[%s245_s3 + $0x18] sm:$0xff]  ;;  %v32_v56 = vunpack.c.h.bf16 %v25_v14 }
   0x5   :  { %v87_v6 = vld [vmem:[%s246_s4] sm:$0x3]  ;;  %v79_v9 = vunpack.c.l.bf16 %v75_v5  ;;  %v80_v11 = vunpack.c.h.bf16 %v75_v5  ;;  %v84_v57 = vunpack.c.h.bf16 %v77_v19  ;;  %v33_v60 = vunpack.c.l.bf16 %v26_v48 }
   0x6   :  { %v107_v7 = vld [vmem:[%s247_s5] sm:$0x3]  ;;  %v40_v24 = vrot.slane %v35_v2, %v39_v15  ;;  %v60_v25 = vrot.slane %v55_v3, %v39_v15  ;;  %v92_v26 = vrot.slane %v87_v6, %v39_v15  ;;  %v44_v28 = vrot.slane %v35_v2, %v43_v16 }
   0x7   :  { %v112_v27 = vrot.slane %v107_v7, %v39_v15  ;;  %v64_v29 = vrot.slane %v55_v3, %v43_v16  ;;  %v96_v30 = vrot.slane %v87_v6, %v43_v16  ;;  %v116_v31 = vrot.slane %v107_v7, %v43_v16 }
   0x8   :  { %v47_v32 = vmul.f32 %v40_v24, %v27_v8  ;;  %v99_v33 = vmul.f32 %v92_v26, %v79_v9  ;;  %v49_v34 = vmul.f32 %v40_v24, %v29_v17  ;;  %v101_v35 = vmul.f32 %v92_v26, %v81_v18 }
   0x9   :  { %v48_v36 = vmul.f32 %v44_v28, %v28_v10  ;;  %v100_v37 = vmul.f32 %v96_v30, %v80_v11  ;;  %v50_v38 = vmul.f32 %v44_v28, %v30_v20  ;;  %v102_v39 = vmul.f32 %v96_v30, %v82_v21 }
   0xa   :  { %v67_v40 = vadd.f32 %v60_v25, %v47_v32  ;;  %v119_v41 = vadd.f32 %v112_v27, %v99_v33  ;;  %v69_v42 = vadd.f32 %v60_v25, %v49_v34  ;;  %v121_v43 = vadd.f32 %v112_v27, %v101_v35 }
   0xb   :  { %v68_v44 = vadd.f32 %v64_v29, %v48_v36  ;;  %v120_v45 = vadd.f32 %v116_v31, %v100_v37  ;;  %v70_v46 = vadd.f32 %v64_v29, %v50_v38  ;;  %v122_v47 = vadd.f32 %v116_v31, %v102_v39 }
   0xc   :  { %v127_v50 = vadd.f32 %v119_v41, %v67_v40  ;;  %v129_v51 = vadd.f32 %v121_v43, %v69_v42  ;;  %v51_v52 = vmul.f32 %v40_v24, %v31_v22  ;;  %v103_v53 = vmul.f32 %v92_v26, %v83_v23 }
   0xd   :  { %v128_v54 = vadd.f32 %v120_v45, %v68_v44  ;;  %v130_v55 = vadd.f32 %v122_v47, %v70_v46  ;;  %v85_v61 = vunpack.c.l.bf16 %v78_v49  ;;  %v52_v62 = vmul.f32 %v44_v28, %v32_v56 }
   0xe   :  { %135 = vst [vmem:[%s248_s6] sm:$0xff] %v127_v50  ;;  %137 = vst [vmem:[%s248_s6 + $0x10] sm:$0xff] %v129_v51  ;;  %v71_v58 = vadd.f32 %v60_v25, %v51_v52  ;;  %v123_v59 = vadd.f32 %v112_v27, %v103_v53  ;;  %v104_v63 = vmul.f32 %v96_v30, %v84_v57  ;;  %v34_v0 = vunpack.c.h.bf16 %v26_v48 }
   0xf   :  { %136 = vst [vmem:[%s248_s6 + $0x8] sm:$0xff] %v128_v54  ;;  %138 = vst [vmem:[%s248_s6 + $0x18] sm:$0xff] %v130_v55  ;;  %v86_v1 = vunpack.c.h.bf16 %v78_v49  ;;  %v53_v3 = vmul.f32 %v40_v24, %v33_v60  ;;  %v105_v4 = vmul.f32 %v92_v26, %v85_v61  ;;  %v72_v5 = vadd.f32 %v64_v29, %v52_v62 }
  0x10   :  { %v131_v2 = vadd.f32 %v123_v59, %v71_v58  ;;  %v124_v6 = vadd.f32 %v116_v31, %v104_v63  ;;  %v54_v7 = vmul.f32 %v44_v28, %v34_v0 }
  0x11   :  { %v106_v8 = vmul.f32 %v96_v30, %v86_v1  ;;  %v73_v9 = vadd.f32 %v60_v25, %v53_v3  ;;  %v125_v10 = vadd.f32 %v112_v27, %v105_v4 }
  0x12   :  { %139 = vst [vmem:[%s248_s6 + $0x20] sm:$0xff] %v131_v2  ;;  %v132_v11 = vadd.f32 %v124_v6, %v72_v5  ;;  %v74_v12 = vadd.f32 %v64_v29, %v54_v7 }
  0x13   :  { %v126_v13 = vadd.f32 %v116_v31, %v106_v8  ;;  %v133_v14 = vadd.f32 %v125_v10, %v73_v9 }
  0x14   :  { %140 = vst [vmem:[%s248_s6 + $0x28] sm:$0xff] %v132_v11 }
  0x15   :  { %v134_v15 = vadd.f32 %v126_v13, %v74_v12  ;;  %141 = vst [vmem:[%s248_s6 + $0x30] sm:$0xff] %v133_v14 }
  0x17   :  { %142 = vst [vmem:[%s248_s6 + $0x38] sm:$0xff] %v134_v15 }

</bundles_post_ra>
